<compile_context>
chip_gen: v6e
topology: v6e:2x2x1
jax: 0.10.0
libtpu: 0.0.40
codegen_flags: <defaults>
</compile_context>

<pallas_src>
import functools

import jax
import jax.numpy as jnp
from jax.experimental import pallas as pl
from jax.experimental.pallas import tpu as pltpu


_VMEM_LIMIT = 48 * 1024 * 1024  # explicit scoped-VMEM limit (v5e default is 16 MiB)


def _round_up(x, m):
    return ((x + m - 1) // m) * m


# ----------------------------------------------------------------------------
# GEMM (+ bias, + optional LeakyReLU) — full-K blocks, no scratch accumulator
# ----------------------------------------------------------------------------
def _matmul_bias_act_kernel(x_ref, w_ref, b_ref, o_ref, *, negative_slope,
                            apply_act):
    acc = jnp.dot(x_ref[...], w_ref[...], preferred_element_type=jnp.float32)
    acc = acc + b_ref[...]
    if apply_act:
        acc = jnp.where(acc >= 0, acc, negative_slope * acc)
    o_ref[...] = acc.astype(o_ref.dtype)


def pallas_matmul_bias_act(x, w, b, *, negative_slope=0.2, apply_act=False,
                           out_dtype=jnp.bfloat16):
    """x: (M, K) bf16, w: (K, N), b: (N,) -> (M, N) in out_dtype.

    Single-K-block GEMM: grid = (M_tiles, N_tiles), f32 MXU accumulation,
    bias + optional LeakyReLU fused in the epilogue, lane-dense padded N.
    """
    M, K = x.shape
    K2, N = w.shape
    assert K == K2

    Kp = _round_up(K, 128)

    # Shrink the M tile as K grows so x-tile * 2 buffers stays <= ~8 MiB.
    if Kp <= 512:
        tm_base = 1024
    elif Kp <= 2048:
        tm_base = 512
    else:
        tm_base = 256
    TM = min(tm_base, _round_up(M, 8))
    Mp = _round_up(M, TM)
    m_tiles = Mp // TM

    Np128 = _round_up(N, 128)
    # Wide-N tiles only when the M axis already gives >= 2 parallel tiles
    # (keeps both v7x TensorCores busy on the deep, small-M layers).
    if N >= 512 and Np128 % 512 == 0 and m_tiles >= 2:
        TN = 512
    else:
        TN = min(256, Np128)
    Np = _round_up(Np128, TN)

    xp = x if x.dtype == jnp.bfloat16 else x.astype(jnp.bfloat16)
    if (Mp, Kp) != (M, K):
        xp = jnp.pad(xp, ((0, Mp - M), (0, Kp - K)))
    wp = w.astype(jnp.bfloat16)
    if (Kp, Np) != (K, N):
        wp = jnp.pad(wp, ((0, Kp - K), (0, Np - N)))
    bp = b.astype(jnp.float32).reshape(1, N)
    if Np != N:
        bp = jnp.pad(bp, ((0, 0), (0, Np - N)))

    kernel = functools.partial(_matmul_bias_act_kernel,
                               negative_slope=negative_slope,
                               apply_act=apply_act)
    grid_spec = pltpu.PrefetchScalarGridSpec(
        num_scalar_prefetch=0,
        grid=(Mp // TM, Np // TN),
        in_specs=[
            pl.BlockSpec((TM, Kp), lambda i, j: (i, 0)),
            pl.BlockSpec((Kp, TN), lambda i, j: (0, j)),
            pl.BlockSpec((1, TN), lambda i, j: (0, j)),
        ],
        out_specs=pl.BlockSpec((TM, TN), lambda i, j: (i, j)),
    )
    out = pl.pallas_call(
        kernel,
        out_shape=jax.ShapeDtypeStruct((Mp, Np), out_dtype),
        grid_spec=grid_spec,
        compiler_params=pltpu.CompilerParams(
            dimension_semantics=("parallel", "parallel"),
            vmem_limit_bytes=_VMEM_LIMIT),
    )(xp, wp, bp)
    if (Mp, Np) != (M, N):
        out = out[:M, :N]
    return out


# ----------------------------------------------------------------------------
# InstanceNorm2d(affine=False) + LeakyReLU(0.2), bf16 in / bf16 out
# ----------------------------------------------------------------------------
def _in_lrelu_fused_kernel(x_ref, o_ref, *, eps, negative_slope, inv_hw):
    # Whole (n, channel-block) spatial extent in one block (small-HW fast path).
    tc = x_ref.shape[-1]
    x = x_ref[...].astype(jnp.float32).reshape(-1, tc)        # (HW, TC)
    mean = jnp.sum(x, axis=0, keepdims=True) * inv_hw
    var = jnp.sum(x * x, axis=0, keepdims=True) * inv_hw - mean * mean
    var = jnp.maximum(var, 0.0)                                # guard cancellation
    y = (x - mean) * jax.lax.rsqrt(var + eps)
    y = jnp.where(y >= 0, y, negative_slope * y)
    o_ref[...] = y.reshape(o_ref.shape).astype(o_ref.dtype)


def _in_stats_kernel(x_ref, mean_ref, rstd_ref, *, eps, inv_hw):
    # Pass 1: accumulate E[x] and E[x^2] over spatial row-blocks; last step
    # converts the second output in place to rsqrt(var + eps).
    @pl.when(pl.program_id(2) == 0)
    def _():
        mean_ref[...] = jnp.zeros_like(mean_ref)
        rstd_ref[...] = jnp.zeros_like(rstd_ref)

    tc = x_ref.shape[-1]
    x = x_ref[...].astype(jnp.float32).reshape(-1, tc)         # (TOH*OW, TC)
    mean_ref[...] += (jnp.sum(x, axis=0, keepdims=True) * inv_hw
                      ).reshape(mean_ref.shape)
    rstd_ref[...] += (jnp.sum(x * x, axis=0, keepdims=True) * inv_hw
                      ).reshape(rstd_ref.shape)

    @pl.when(pl.program_id(2) == pl.num_programs(2) - 1)
    def _():
        m = mean_ref[...]
        var = jnp.maximum(rstd_ref[...] - m * m, 0.0)
        rstd_ref[...] = jax.lax.rsqrt(var + eps)


def _in_apply_lrelu_kernel(x_ref, mean_ref, rstd_ref, o_ref, *, negative_slope):
    # Pass 2: normalize + LeakyReLU + bf16 re-cast for the next conv.
    tc = x_ref.shape[-1]
    x = x_ref[...].astype(jnp.float32).reshape(-1, tc)
    m = mean_ref[...].reshape(1, tc)
    r = rstd_ref[...].reshape(1, tc)
    y = (x - m) * r
    y = jnp.where(y >= 0, y, negative_slope * y)
    o_ref[...] = y.reshape(o_ref.shape).astype(o_ref.dtype)


def _pick_row_tile(oh, ow, tc, elem_bytes=2, budget=2 << 20):
    """Largest divisor of OH whose (TOH, OW, TC) block stays under `budget`."""
    max_rows = max(1, budget // max(1, ow * tc * elem_bytes))
    if oh <= max_rows:
        return oh
    for t in range(min(oh, max_rows), 0, -1):
        if oh % t == 0:
            return t
    return oh


def pallas_instnorm_lrelu(x_nhwc, *, eps=1e-5, negative_slope=0.2):
    """x_nhwc: (N, H, W, C) bf16 -> InstanceNorm2d(affine=False) + LeakyReLU(0.2), bf16."""
    Nb, OH, OW, C = x_nhwc.shape
    TC = 128 if C % 128 == 0 else C
    Cb = C // TC
    inv_hw = 1.0 / (OH * OW)
    out_dtype = jnp.bfloat16

    # Fast path: whole spatial extent per (n, c-block) fits comfortably in VMEM.
    if OH * OW * TC * 2 <= (1 << 20):
        kernel = functools.partial(_in_lrelu_fused_kernel, eps=eps,
                                   negative_slope=negative_slope, inv_hw=inv_hw)
        return pl.pallas_call(
            kernel,
            out_shape=jax.ShapeDtypeStruct((Nb, OH, OW, C), out_dtype),
            grid_spec=pltpu.PrefetchScalarGridSpec(
                num_scalar_prefetch=0,
                grid=(Nb, Cb),
                in_specs=[pl.BlockSpec((1, OH, OW, TC),
                                       lambda n, c: (n, 0, 0, c))],
                out_specs=pl.BlockSpec((1, OH, OW, TC),
                                       lambda n, c: (n, 0, 0, c)),
            ),
            compiler_params=pltpu.CompilerParams(
                dimension_semantics=("parallel", "parallel"),
                vmem_limit_bytes=_VMEM_LIMIT),
        )(x_nhwc)

    # Large spatial extent: spatially tiled two-pass (stats sweep + apply sweep)
    # so per-step blocks stay ~2 MiB regardless of image size.
    TOH = _pick_row_tile(OH, OW, TC)
    OHb = OH // TOH

    stats_kernel = functools.partial(_in_stats_kernel, eps=eps, inv_hw=inv_hw)
    mean, rstd = pl.pallas_call(
        stats_kernel,
        out_shape=(jax.ShapeDtypeStruct((Nb, 1, 1, C), jnp.float32),
                   jax.ShapeDtypeStruct((Nb, 1, 1, C), jnp.float32)),
        grid_spec=pltpu.PrefetchScalarGridSpec(
            num_scalar_prefetch=0,
            grid=(Nb, Cb, OHb),
            in_specs=[pl.BlockSpec((1, TOH, OW, TC),
                                   lambda n, c, h: (n, h, 0, c))],
            out_specs=(pl.BlockSpec((1, 1, 1, TC), lambda n, c, h: (n, 0, 0, c)),
                       pl.BlockSpec((1, 1, 1, TC), lambda n, c, h: (n, 0, 0, c))),
        ),
        compiler_params=pltpu.CompilerParams(
            dimension_semantics=("parallel", "parallel", "arbitrary"),
            vmem_limit_bytes=_VMEM_LIMIT),
    )(x_nhwc)

    apply_kernel = functools.partial(_in_apply_lrelu_kernel,
                                     negative_slope=negative_slope)
    return pl.pallas_call(
        apply_kernel,
        out_shape=jax.ShapeDtypeStruct((Nb, OH, OW, C), out_dtype),
        grid_spec=pltpu.PrefetchScalarGridSpec(
            num_scalar_prefetch=0,
            grid=(Nb, Cb, OHb),
            in_specs=[pl.BlockSpec((1, TOH, OW, TC), lambda n, c, h: (n, h, 0, c)),
                      pl.BlockSpec((1, 1, 1, TC), lambda n, c, h: (n, 0, 0, c)),
                      pl.BlockSpec((1, 1, 1, TC), lambda n, c, h: (n, 0, 0, c))],
            out_specs=pl.BlockSpec((1, TOH, OW, TC), lambda n, c, h: (n, h, 0, c)),
        ),
        compiler_params=pltpu.CompilerParams(
            dimension_semantics=("parallel", "parallel", "parallel"),
            vmem_limit_bytes=_VMEM_LIMIT),
    )(x_nhwc, mean, rstd)


# ----------------------------------------------------------------------------
# Plain-JAX glue: NHWC im2col in bf16 with padding folded in (no extra copy)
# ----------------------------------------------------------------------------
def _im2col_nhwc_bf16(x, k, stride, pad):
    """x: (N, H, W, C) -> bf16 (N*OH*OW, K*K*C); column order (KH, KW, C)."""
    N, H, W, C = x.shape
    x = x if x.dtype == jnp.bfloat16 else x.astype(jnp.bfloat16)  # single cast
    xp = jnp.pad(x, ((0, 0), (pad, pad), (pad, pad), (0, 0)))
    OH = (H + 2 * pad - k) // stride + 1
    OW = (W + 2 * pad - k) // stride + 1
    cols = []
    for di in range(k):
        for dj in range(k):
            cols.append(xp[:, di:di + stride * OH:stride,
                           dj:dj + stride * OW:stride, :])
    p = jnp.stack(cols, axis=3)                 # (N, OH, OW, K*K, C)
    return p.reshape(N * OH * OW, k * k * C), OH, OW


def conv2d_pallas(x_nhwc, w, b, *, stride, pad, apply_act,
                  out_dtype=jnp.bfloat16):
    """Conv2d (+ optional LeakyReLU(0.2)); PyTorch weight layout (OC, IC, KH, KW)."""
    Nb = x_nhwc.shape[0]
    OC, IC, KH, KW = w.shape
    patches, OH, OW = _im2col_nhwc_bf16(x_nhwc, KH, stride, pad)
    w2 = jnp.transpose(w, (2, 3, 1, 0)).reshape(KH * KW * IC, OC)  # (KH,KW,IC) cols
    out = pallas_matmul_bias_act(patches, w2, b, negative_slope=0.2,
                                 apply_act=apply_act, out_dtype=out_dtype)
    return out.reshape(Nb, OH, OW, OC)          # stays NHWC


# ----------------------------------------------------------------------------
# Discriminator_global forward (NCHW in / NCHW out, NHWC + bf16 internally)
# ----------------------------------------------------------------------------
def discriminator_global(params, x_nchw):
    x = jnp.transpose(x_nchw, (0, 2, 3, 1))                                        # -> NHWC once
    x = conv2d_pallas(x, params["w1"], params["b1"], stride=2, pad=1,
                      apply_act=True, out_dtype=jnp.bfloat16)                      # conv1+lrelu
    x = conv2d_pallas(x, params["w2"], params["b2"], stride=2, pad=1,
                      apply_act=False, out_dtype=jnp.bfloat16)                     # conv2
    x = pallas_instnorm_lrelu(x)                                                   # IN(128)+lrelu
    x = conv2d_pallas(x, params["w3"], params["b3"], stride=2, pad=1,
                      apply_act=False, out_dtype=jnp.bfloat16)                     # conv3
    x = pallas_instnorm_lrelu(x)                                                   # IN(256)+lrelu
    x = conv2d_pallas(x, params["w4"], params["b4"], stride=2, pad=1,
                      apply_act=False, out_dtype=jnp.bfloat16)                     # conv4
    x = pallas_instnorm_lrelu(x)                                                   # IN(512)+lrelu
    x = conv2d_pallas(x, params["w5"], params["b5"], stride=1, pad=1,
                      apply_act=False, out_dtype=jnp.float32)                      # conv5 -> f32
    return jnp.transpose(x, (0, 3, 1, 2))                                          # back to NCHW


def init_params(key, input_channel=3):
    """Deterministic init mimicking PyTorch default (uniform +-1/sqrt(fan_in))."""
    shapes = {
        "w1": (64, input_channel, 4, 4), "b1": (64,),
        "w2": (128, 64, 4, 4),           "b2": (128,),
        "w3": (256, 128, 4, 4),          "b3": (256,),
        "w4": (512, 256, 4, 4),          "b4": (512,),
        "w5": (1, 512, 4, 4),            "b5": (1,),
    }
    params = {}
    keys = jax.random.split(key, len(shapes))
    for (name, shape), k in zip(shapes.items(), keys):
        if name.startswith("w"):
            fan_in = shape[1] * shape[2] * shape[3]
        else:
            wshape = shapes["w" + name[1:]]
            fan_in = wshape[1] * wshape[2] * wshape[3]
        bound = 1.0 / jnp.sqrt(jnp.float32(fan_in))
        params[name] = jax.random.uniform(
            k, shape, dtype=jnp.float32, minval=-bound, maxval=bound
        )
    return params


if __name__ == "__main__":
    key = jax.random.PRNGKey(0)
    k_params, k_input = jax.random.split(key)

    # Small but valid input: 32x32 spatial so conv5 (k=4, pad=1) yields a 1x1 map.
    x = jax.random.normal(k_input, (2, 3, 32, 32), dtype=jnp.float32)
    params = init_params(k_params, input_channel=3)

    fwd = jax.jit(discriminator_global)
    out = fwd(params, x)
    out = jax.block_until_ready(out)

    assert out.shape == (2, 1, 1, 1), out.shape
    assert bool(jnp.all(jnp.isfinite(out)))
    print("KERNEL_OK")
</pallas_src>

<mosaic_0001>
module attributes {stable_mosaic.version = 11 : i64} {
  func.func @_matmul_bias_act_kernel(%arg0: i32, %arg1: i32, %arg2: memref<512x128xbf16, #tpu.memory_space<vmem>>, %arg3: memref<128x128xbf16, #tpu.memory_space<vmem>>, %arg4: memref<1x128xf32, #tpu.memory_space<vmem>>, %arg5: memref<512x128xbf16, #tpu.memory_space<vmem>>) attributes {dimension_semantics = [#tpu.dimension_semantics<parallel>, #tpu.dimension_semantics<parallel>], iteration_bounds = array<i64: 1, 1>, scalar_prefetch = 0 : i64, scratch_operands = 0 : i64, tpu.core_type = #tpu.core_type<tc>, window_params = [{transform_indices = @transform_0, window_bounds = array<i64: 512, 128>}, {transform_indices = @transform_1, window_bounds = array<i64: 128, 128>}, {transform_indices = @transform_2, window_bounds = array<i64: 1, 128>}, {transform_indices = @transform_3, window_bounds = array<i64: 512, 128>}]} {
    %c0 = arith.constant 0 : index
    %c0_0 = arith.constant 0 : index
    %0 = vector.load %arg2[%c0, %c0_0] : memref<512x128xbf16, #tpu.memory_space<vmem>>, vector<512x128xbf16>
    %c0_1 = arith.constant 0 : index
    %c0_2 = arith.constant 0 : index
    %1 = vector.load %arg3[%c0_1, %c0_2] : memref<128x128xbf16, #tpu.memory_space<vmem>>, vector<128x128xbf16>
    %cst = arith.constant dense<0.000000e+00> : vector<512x128xf32>
    %2 = tpu.matmul %0, %1, %cst {dimension_numbers = #tpu.dot_dimension_numbers<[1], [0], [0], [1], [0, 0, 1, 1], [], []>} : vector<512x128xbf16>, vector<128x128xbf16>, vector<512x128xf32> -> vector<512x128xf32>
    %c0_3 = arith.constant 0 : index
    %c0_4 = arith.constant 0 : index
    %3 = vector.load %arg4[%c0_3, %c0_4] : memref<1x128xf32, #tpu.memory_space<vmem>>, vector<1x128xf32>
    %4 = vector.broadcast %3 : vector<1x128xf32> to vector<512x128xf32>
    %5 = arith.addf %2, %4 : vector<512x128xf32>
    %cst_5 = arith.constant 0.000000e+00 : f32
    %6 = vector.broadcast %cst_5 : f32 to vector<512x128xf32>
    %7 = arith.cmpf oge, %5, %6 : vector<512x128xf32>
    %cst_6 = arith.constant 2.000000e-01 : f32
    %8 = vector.broadcast %cst_6 : f32 to vector<512x128xf32>
    %9 = arith.mulf %8, %5 : vector<512x128xf32>
    %10 = arith.select %7, %5, %9 : vector<512x128xi1>, vector<512x128xf32>
    %11 = arith.truncf %10 : vector<512x128xf32> to vector<512x128xbf16>
    %c0_7 = arith.constant 0 : index
    %c0_8 = arith.constant 0 : index
    %12 = vector.load %arg5[%c0_7, %c0_8] : memref<512x128xbf16, #tpu.memory_space<vmem>>, vector<512x128xbf16>
    tpu.vector_store %arg5[%c0_7, %c0_8], %11 {strides = array<i32>} : memref<512x128xbf16, #tpu.memory_space<vmem>>, vector<512x128xbf16>,
    return
  }
  func.func @transform_0(%arg0: i32, %arg1: i32) -> (i32, i32) {
    %c0_i32 = arith.constant 0 : i32
    %c0_i32_0 = arith.constant 0 : i32
    return %arg0, %c0_i32 : i32, i32
  }
  func.func @transform_1(%arg0: i32, %arg1: i32) -> (i32, i32) {
    %c0_i32 = arith.constant 0 : i32
    %c0_i32_0 = arith.constant 0 : i32
    return %c0_i32, %arg1 : i32, i32
  }
  func.func @transform_2(%arg0: i32, %arg1: i32) -> (i32, i32) {
    %c0_i32 = arith.constant 0 : i32
    %c0_i32_0 = arith.constant 0 : i32
    return %c0_i32, %arg1 : i32, i32
  }
  func.func @transform_3(%arg0: i32, %arg1: i32) -> (i32, i32) {
    %c0_i32 = arith.constant 0 : i32
    return %arg0, %arg1 : i32, i32
  }
}

module attributes {stable_mosaic.version = 11 : i64} {
  func.func @_matmul_bias_act_kernel(%arg0: i32, %arg1: i32, %arg2: memref<128x1024xbf16, #tpu.memory_space<vmem>>, %arg3: memref<1024x128xbf16, #tpu.memory_space<vmem>>, %arg4: memref<1x128xf32, #tpu.memory_space<vmem>>, %arg5: memref<128x128xbf16, #tpu.memory_space<vmem>>) attributes {dimension_semantics = [#tpu.dimension_semantics<parallel>, #tpu.dimension_semantics<parallel>], iteration_bounds = array<i64: 1, 1>, scalar_prefetch = 0 : i64, scratch_operands = 0 : i64, tpu.core_type = #tpu.core_type<tc>, window_params = [{transform_indices = @transform_0, window_bounds = array<i64: 128, 1024>}, {transform_indices = @transform_1, window_bounds = array<i64: 1024, 128>}, {transform_indices = @transform_2, window_bounds = array<i64: 1, 128>}, {transform_indices = @transform_3, window_bounds = array<i64: 128, 128>}]} {
    %c0 = arith.constant 0 : index
    %c0_0 = arith.constant 0 : index
    %0 = vector.load %arg2[%c0, %c0_0] : memref<128x1024xbf16, #tpu.memory_space<vmem>>, vector<128x1024xbf16>
    %c0_1 = arith.constant 0 : index
    %c0_2 = arith.constant 0 : index
    %1 = vector.load %arg3[%c0_1, %c0_2] : memref<1024x128xbf16, #tpu.memory_space<vmem>>, vector<1024x128xbf16>
    %cst = arith.constant dense<0.000000e+00> : vector<128x128xf32>
    %2 = tpu.matmul %0, %1, %cst {dimension_numbers = #tpu.dot_dimension_numbers<[1], [0], [0], [1], [0, 0, 1, 1], [], []>} : vector<128x1024xbf16>, vector<1024x128xbf16>, vector<128x128xf32> -> vector<128x128xf32>
    %c0_3 = arith.constant 0 : index
    %c0_4 = arith.constant 0 : index
    %3 = vector.load %arg4[%c0_3, %c0_4] : memref<1x128xf32, #tpu.memory_space<vmem>>, vector<1x128xf32>
    %4 = vector.broadcast %3 : vector<1x128xf32> to vector<128x128xf32>
    %5 = arith.addf %2, %4 : vector<128x128xf32>
    %6 = arith.truncf %5 : vector<128x128xf32> to vector<128x128xbf16>
    %c0_5 = arith.constant 0 : index
    %c0_6 = arith.constant 0 : index
    %7 = vector.load %arg5[%c0_5, %c0_6] : memref<128x128xbf16, #tpu.memory_space<vmem>>, vector<128x128xbf16>
    tpu.vector_store %arg5[%c0_5, %c0_6], %6 {strides = array<i32>} : memref<128x128xbf16, #tpu.memory_space<vmem>>, vector<128x128xbf16>,
    return
  }
  func.func @transform_0(%arg0: i32, %arg1: i32) -> (i32, i32) {
    %c0_i32 = arith.constant 0 : i32
    %c0_i32_0 = arith.constant 0 : i32
    return %arg0, %c0_i32 : i32, i32
  }
  func.func @transform_1(%arg0: i32, %arg1: i32) -> (i32, i32) {
    %c0_i32 = arith.constant 0 : i32
    %c0_i32_0 = arith.constant 0 : i32
    return %c0_i32, %arg1 : i32, i32
  }
  func.func @transform_2(%arg0: i32, %arg1: i32) -> (i32, i32) {
    %c0_i32 = arith.constant 0 : i32
    %c0_i32_0 = arith.constant 0 : i32
    return %c0_i32, %arg1 : i32, i32
  }
  func.func @transform_3(%arg0: i32, %arg1: i32) -> (i32, i32) {
    %c0_i32 = arith.constant 0 : i32
    return %arg0, %arg1 : i32, i32
  }
}

module attributes {stable_mosaic.version = 11 : i64} {
  func.func @_in_lrelu_fused_kernel(%arg0: i32, %arg1: i32, %arg2: memref<1x8x8x128xbf16, #tpu.memory_space<vmem>>, %arg3: memref<1x8x8x128xbf16, #tpu.memory_space<vmem>>) attributes {dimension_semantics = [#tpu.dimension_semantics<parallel>, #tpu.dimension_semantics<parallel>], iteration_bounds = array<i64: 2, 1>, scalar_prefetch = 0 : i64, scratch_operands = 0 : i64, tpu.core_type = #tpu.core_type<tc>, window_params = [{transform_indices = @transform_0, window_bounds = array<i64: 1, 8, 8, 128>}, {transform_indices = @transform_1, window_bounds = array<i64: 1, 8, 8, 128>}]} {
    %c0 = arith.constant 0 : index
    %c0_0 = arith.constant 0 : index
    %c0_1 = arith.constant 0 : index
    %c0_2 = arith.constant 0 : index
    %0 = vector.load %arg2[%c0, %c0_0, %c0_1, %c0_2] : memref<1x8x8x128xbf16, #tpu.memory_space<vmem>>, vector<1x8x8x128xbf16>
    %1 = arith.extf %0 : vector<1x8x8x128xbf16> to vector<1x8x8x128xf32>
    %2 = vector.shape_cast %1 : vector<1x8x8x128xf32> to vector<64x128xf32>
    %cst = arith.constant dense<0.000000e+00> : vector<128xf32>
    %3 = vector.multi_reduction <add>, %2, %cst [0] : vector<64x128xf32> to vector<128xf32>
    %4 = vector.shape_cast %3 : vector<128xf32> to vector<1x128xf32>
    %cst_3 = arith.constant 1.562500e-02 : f32
    %5 = vector.broadcast %cst_3 : f32 to vector<1x128xf32>
    %6 = arith.mulf %4, %5 : vector<1x128xf32>
    %7 = arith.mulf %2, %2 : vector<64x128xf32>
    %cst_4 = arith.constant dense<0.000000e+00> : vector<128xf32>
    %8 = vector.multi_reduction <add>, %7, %cst_4 [0] : vector<64x128xf32> to vector<128xf32>
    %9 = vector.shape_cast %8 : vector<128xf32> to vector<1x128xf32>
    %cst_5 = arith.constant 1.562500e-02 : f32
    %10 = vector.broadcast %cst_5 : f32 to vector<1x128xf32>
    %11 = arith.mulf %9, %10 : vector<1x128xf32>
    %12 = arith.mulf %6, %6 : vector<1x128xf32>
    %13 = arith.subf %11, %12 : vector<1x128xf32>
    %cst_6 = arith.constant 0.000000e+00 : f32
    %14 = vector.broadcast %cst_6 : f32 to vector<1x128xf32>
    %15 = arith.maximumf %13, %14 : vector<1x128xf32>
    %16 = vector.broadcast %6 : vector<1x128xf32> to vector<64x128xf32>
    %17 = arith.subf %2, %16 : vector<64x128xf32>
    %cst_7 = arith.constant 9.99999974E-6 : f32
    %18 = vector.broadcast %cst_7 : f32 to vector<1x128xf32>
    %19 = arith.addf %15, %18 : vector<1x128xf32>
    %20 = math.rsqrt %19 : vector<1x128xf32>
    %21 = vector.broadcast %20 : vector<1x128xf32> to vector<64x128xf32>
    %22 = arith.mulf %17, %21 : vector<64x128xf32>
    %cst_8 = arith.constant 0.000000e+00 : f32
    %23 = vector.broadcast %cst_8 : f32 to vector<64x128xf32>
    %24 = arith.cmpf oge, %22, %23 : vector<64x128xf32>
    %cst_9 = arith.constant 2.000000e-01 : f32
    %25 = vector.broadcast %cst_9 : f32 to vector<64x128xf32>
    %26 = arith.mulf %25, %22 : vector<64x128xf32>
    %27 = arith.select %24, %22, %26 : vector<64x128xi1>, vector<64x128xf32>
    %28 = vector.shape_cast %27 : vector<64x128xf32> to vector<1x8x8x128xf32>
    %29 = arith.truncf %28 : vector<1x8x8x128xf32> to vector<1x8x8x128xbf16>
    %c0_10 = arith.constant 0 : index
    %c0_11 = arith.constant 0 : index
    %c0_12 = arith.constant 0 : index
    %c0_13 = arith.constant 0 : index
    %30 = vector.load %arg3[%c0_10, %c0_11, %c0_12, %c0_13] : memref<1x8x8x128xbf16, #tpu.memory_space<vmem>>, vector<1x8x8x128xbf16>
    tpu.vector_store %arg3[%c0_10, %c0_11, %c0_12, %c0_13], %29 {strides = array<i32>} : memref<1x8x8x128xbf16, #tpu.memory_space<vmem>>, vector<1x8x8x128xbf16>,
    return
  }
  func.func @transform_0(%arg0: i32, %arg1: i32) -> (i32, i32, i32, i32) {
    %c0_i32 = arith.constant 0 : i32
    %c0_i32_0 = arith.constant 0 : i32
    %c0_i32_1 = arith.constant 0 : i32
    return %arg0, %c0_i32, %c0_i32_0, %arg1 : i32, i32, i32, i32
  }
  func.func @transform_1(%arg0: i32, %arg1: i32) -> (i32, i32, i32, i32) {
    %c0_i32 = arith.constant 0 : i32
    %c0_i32_0 = arith.constant 0 : i32
    %c0_i32_1 = arith.constant 0 : i32
    return %arg0, %c0_i32, %c0_i32_0, %arg1 : i32, i32, i32, i32
  }
}

module attributes {stable_mosaic.version = 11 : i64} {
  func.func @_matmul_bias_act_kernel(%arg0: i32, %arg1: i32, %arg2: memref<32x2048xbf16, #tpu.memory_space<vmem>>, %arg3: memref<2048x256xbf16, #tpu.memory_space<vmem>>, %arg4: memref<1x256xf32, #tpu.memory_space<vmem>>, %arg5: memref<32x256xbf16, #tpu.memory_space<vmem>>) attributes {dimension_semantics = [#tpu.dimension_semantics<parallel>, #tpu.dimension_semantics<parallel>], iteration_bounds = array<i64: 1, 1>, scalar_prefetch = 0 : i64, scratch_operands = 0 : i64, tpu.core_type = #tpu.core_type<tc>, window_params = [{transform_indices = @transform_0, window_bounds = array<i64: 32, 2048>}, {transform_indices = @transform_1, window_bounds = array<i64: 2048, 256>}, {transform_indices = @transform_2, window_bounds = array<i64: 1, 256>}, {transform_indices = @transform_3, window_bounds = array<i64: 32, 256>}]} {
    %c0 = arith.constant 0 : index
    %c0_0 = arith.constant 0 : index
    %0 = vector.load %arg2[%c0, %c0_0] : memref<32x2048xbf16, #tpu.memory_space<vmem>>, vector<32x2048xbf16>
    %c0_1 = arith.constant 0 : index
    %c0_2 = arith.constant 0 : index
    %1 = vector.load %arg3[%c0_1, %c0_2] : memref<2048x256xbf16, #tpu.memory_space<vmem>>, vector<2048x256xbf16>
    %cst = arith.constant dense<0.000000e+00> : vector<32x256xf32>
    %2 = tpu.matmul %0, %1, %cst {dimension_numbers = #tpu.dot_dimension_numbers<[1], [0], [0], [1], [0, 0, 1, 1], [], []>} : vector<32x2048xbf16>, vector<2048x256xbf16>, vector<32x256xf32> -> vector<32x256xf32>
    %c0_3 = arith.constant 0 : index
    %c0_4 = arith.constant 0 : index
    %3 = vector.load %arg4[%c0_3, %c0_4] : memref<1x256xf32, #tpu.memory_space<vmem>>, vector<1x256xf32>
    %4 = vector.broadcast %3 : vector<1x256xf32> to vector<32x256xf32>
    %5 = arith.addf %2, %4 : vector<32x256xf32>
    %6 = arith.truncf %5 : vector<32x256xf32> to vector<32x256xbf16>
    %c0_5 = arith.constant 0 : index
    %c0_6 = arith.constant 0 : index
    %7 = vector.load %arg5[%c0_5, %c0_6] : memref<32x256xbf16, #tpu.memory_space<vmem>>, vector<32x256xbf16>
    tpu.vector_store %arg5[%c0_5, %c0_6], %6 {strides = array<i32>} : memref<32x256xbf16, #tpu.memory_space<vmem>>, vector<32x256xbf16>,
    return
  }
  func.func @transform_0(%arg0: i32, %arg1: i32) -> (i32, i32) {
    %c0_i32 = arith.constant 0 : i32
    %c0_i32_0 = arith.constant 0 : i32
    return %arg0, %c0_i32 : i32, i32
  }
  func.func @transform_1(%arg0: i32, %arg1: i32) -> (i32, i32) {
    %c0_i32 = arith.constant 0 : i32
    %c0_i32_0 = arith.constant 0 : i32
    return %c0_i32, %arg1 : i32, i32
  }
  func.func @transform_2(%arg0: i32, %arg1: i32) -> (i32, i32) {
    %c0_i32 = arith.constant 0 : i32
    %c0_i32_0 = arith.constant 0 : i32
    return %c0_i32, %arg1 : i32, i32
  }
  func.func @transform_3(%arg0: i32, %arg1: i32) -> (i32, i32) {
    %c0_i32 = arith.constant 0 : i32
    return %arg0, %arg1 : i32, i32
  }
}

module attributes {stable_mosaic.version = 11 : i64} {
  func.func @_in_lrelu_fused_kernel(%arg0: i32, %arg1: i32, %arg2: memref<1x4x4x128xbf16, #tpu.memory_space<vmem>>, %arg3: memref<1x4x4x128xbf16, #tpu.memory_space<vmem>>) attributes {dimension_semantics = [#tpu.dimension_semantics<parallel>, #tpu.dimension_semantics<parallel>], iteration_bounds = array<i64: 2, 2>, scalar_prefetch = 0 : i64, scratch_operands = 0 : i64, tpu.core_type = #tpu.core_type<tc>, window_params = [{transform_indices = @transform_0, window_bounds = array<i64: 1, 4, 4, 128>}, {transform_indices = @transform_1, window_bounds = array<i64: 1, 4, 4, 128>}]} {
    %c0 = arith.constant 0 : index
    %c0_0 = arith.constant 0 : index
    %c0_1 = arith.constant 0 : index
    %c0_2 = arith.constant 0 : index
    %0 = vector.load %arg2[%c0, %c0_0, %c0_1, %c0_2] : memref<1x4x4x128xbf16, #tpu.memory_space<vmem>>, vector<1x4x4x128xbf16>
    %1 = arith.extf %0 : vector<1x4x4x128xbf16> to vector<1x4x4x128xf32>
    %2 = vector.shape_cast %1 : vector<1x4x4x128xf32> to vector<16x128xf32>
    %cst = arith.constant dense<0.000000e+00> : vector<128xf32>
    %3 = vector.multi_reduction <add>, %2, %cst [0] : vector<16x128xf32> to vector<128xf32>
    %4 = vector.shape_cast %3 : vector<128xf32> to vector<1x128xf32>
    %cst_3 = arith.constant 6.250000e-02 : f32
    %5 = vector.broadcast %cst_3 : f32 to vector<1x128xf32>
    %6 = arith.mulf %4, %5 : vector<1x128xf32>
    %7 = arith.mulf %2, %2 : vector<16x128xf32>
    %cst_4 = arith.constant dense<0.000000e+00> : vector<128xf32>
    %8 = vector.multi_reduction <add>, %7, %cst_4 [0] : vector<16x128xf32> to vector<128xf32>
    %9 = vector.shape_cast %8 : vector<128xf32> to vector<1x128xf32>
    %cst_5 = arith.constant 6.250000e-02 : f32
    %10 = vector.broadcast %cst_5 : f32 to vector<1x128xf32>
    %11 = arith.mulf %9, %10 : vector<1x128xf32>
    %12 = arith.mulf %6, %6 : vector<1x128xf32>
    %13 = arith.subf %11, %12 : vector<1x128xf32>
    %cst_6 = arith.constant 0.000000e+00 : f32
    %14 = vector.broadcast %cst_6 : f32 to vector<1x128xf32>
    %15 = arith.maximumf %13, %14 : vector<1x128xf32>
    %16 = vector.broadcast %6 : vector<1x128xf32> to vector<16x128xf32>
    %17 = arith.subf %2, %16 : vector<16x128xf32>
    %cst_7 = arith.constant 9.99999974E-6 : f32
    %18 = vector.broadcast %cst_7 : f32 to vector<1x128xf32>
    %19 = arith.addf %15, %18 : vector<1x128xf32>
    %20 = math.rsqrt %19 : vector<1x128xf32>
    %21 = vector.broadcast %20 : vector<1x128xf32> to vector<16x128xf32>
    %22 = arith.mulf %17, %21 : vector<16x128xf32>
    %cst_8 = arith.constant 0.000000e+00 : f32
    %23 = vector.broadcast %cst_8 : f32 to vector<16x128xf32>
    %24 = arith.cmpf oge, %22, %23 : vector<16x128xf32>
    %cst_9 = arith.constant 2.000000e-01 : f32
    %25 = vector.broadcast %cst_9 : f32 to vector<16x128xf32>
    %26 = arith.mulf %25, %22 : vector<16x128xf32>
    %27 = arith.select %24, %22, %26 : vector<16x128xi1>, vector<16x128xf32>
    %28 = vector.shape_cast %27 : vector<16x128xf32> to vector<1x4x4x128xf32>
    %29 = arith.truncf %28 : vector<1x4x4x128xf32> to vector<1x4x4x128xbf16>
    %c0_10 = arith.constant 0 : index
    %c0_11 = arith.constant 0 : index
    %c0_12 = arith.constant 0 : index
    %c0_13 = arith.constant 0 : index
    %30 = vector.load %arg3[%c0_10, %c0_11, %c0_12, %c0_13] : memref<1x4x4x128xbf16, #tpu.memory_space<vmem>>, vector<1x4x4x128xbf16>
    tpu.vector_store %arg3[%c0_10, %c0_11, %c0_12, %c0_13], %29 {strides = array<i32>} : memref<1x4x4x128xbf16, #tpu.memory_space<vmem>>, vector<1x4x4x128xbf16>,
    return
  }
  func.func @transform_0(%arg0: i32, %arg1: i32) -> (i32, i32, i32, i32) {
    %c0_i32 = arith.constant 0 : i32
    %c0_i32_0 = arith.constant 0 : i32
    %c0_i32_1 = arith.constant 0 : i32
    return %arg0, %c0_i32, %c0_i32_0, %arg1 : i32, i32, i32, i32
  }
  func.func @transform_1(%arg0: i32, %arg1: i32) -> (i32, i32, i32, i32) {
    %c0_i32 = arith.constant 0 : i32
    %c0_i32_0 = arith.constant 0 : i32
    %c0_i32_1 = arith.constant 0 : i32
    return %arg0, %c0_i32, %c0_i32_0, %arg1 : i32, i32, i32, i32
  }
}

module attributes {stable_mosaic.version = 11 : i64} {
  func.func @_matmul_bias_act_kernel(%arg0: i32, %arg1: i32, %arg2: memref<8x4096xbf16, #tpu.memory_space<vmem>>, %arg3: memref<4096x256xbf16, #tpu.memory_space<vmem>>, %arg4: memref<1x256xf32, #tpu.memory_space<vmem>>, %arg5: memref<8x256xbf16, #tpu.memory_space<vmem>>) attributes {dimension_semantics = [#tpu.dimension_semantics<parallel>, #tpu.dimension_semantics<parallel>], iteration_bounds = array<i64: 1, 2>, scalar_prefetch = 0 : i64, scratch_operands = 0 : i64, tpu.core_type = #tpu.core_type<tc>, window_params = [{transform_indices = @transform_0, window_bounds = array<i64: 8, 4096>}, {transform_indices = @transform_1, window_bounds = array<i64: 4096, 256>}, {transform_indices = @transform_2, window_bounds = array<i64: 1, 256>}, {transform_indices = @transform_3, window_bounds = array<i64: 8, 256>}]} {
    %c0 = arith.constant 0 : index
    %c0_0 = arith.constant 0 : index
    %0 = vector.load %arg2[%c0, %c0_0] : memref<8x4096xbf16, #tpu.memory_space<vmem>>, vector<8x4096xbf16>
    %c0_1 = arith.constant 0 : index
    %c0_2 = arith.constant 0 : index
    %1 = vector.load %arg3[%c0_1, %c0_2] : memref<4096x256xbf16, #tpu.memory_space<vmem>>, vector<4096x256xbf16>
    %cst = arith.constant dense<0.000000e+00> : vector<8x256xf32>
    %2 = tpu.matmul %0, %1, %cst {dimension_numbers = #tpu.dot_dimension_numbers<[1], [0], [0], [1], [0, 0, 1, 1], [], []>} : vector<8x4096xbf16>, vector<4096x256xbf16>, vector<8x256xf32> -> vector<8x256xf32>
    %c0_3 = arith.constant 0 : index
    %c0_4 = arith.constant 0 : index
    %3 = vector.load %arg4[%c0_3, %c0_4] : memref<1x256xf32, #tpu.memory_space<vmem>>, vector<1x256xf32>
    %4 = vector.broadcast %3 : vector<1x256xf32> to vector<8x256xf32>
    %5 = arith.addf %2, %4 : vector<8x256xf32>
    %6 = arith.truncf %5 : vector<8x256xf32> to vector<8x256xbf16>
    %c0_5 = arith.constant 0 : index
    %c0_6 = arith.constant 0 : index
    %7 = vector.load %arg5[%c0_5, %c0_6] : memref<8x256xbf16, #tpu.memory_space<vmem>>, vector<8x256xbf16>
    tpu.vector_store %arg5[%c0_5, %c0_6], %6 {strides = array<i32>} : memref<8x256xbf16, #tpu.memory_space<vmem>>, vector<8x256xbf16>,
    return
  }
  func.func @transform_0(%arg0: i32, %arg1: i32) -> (i32, i32) {
    %c0_i32 = arith.constant 0 : i32
    %c0_i32_0 = arith.constant 0 : i32
    return %arg0, %c0_i32 : i32, i32
  }
  func.func @transform_1(%arg0: i32, %arg1: i32) -> (i32, i32) {
    %c0_i32 = arith.constant 0 : i32
    %c0_i32_0 = arith.constant 0 : i32
    return %c0_i32, %arg1 : i32, i32
  }
  func.func @transform_2(%arg0: i32, %arg1: i32) -> (i32, i32) {
    %c0_i32 = arith.constant 0 : i32
    %c0_i32_0 = arith.constant 0 : i32
    return %c0_i32, %arg1 : i32, i32
  }
  func.func @transform_3(%arg0: i32, %arg1: i32) -> (i32, i32) {
    %c0_i32 = arith.constant 0 : i32
    return %arg0, %arg1 : i32, i32
  }
}

module attributes {stable_mosaic.version = 11 : i64} {
  func.func @_in_lrelu_fused_kernel(%arg0: i32, %arg1: i32, %arg2: memref<1x2x2x128xbf16, #tpu.memory_space<vmem>>, %arg3: memref<1x2x2x128xbf16, #tpu.memory_space<vmem>>) attributes {dimension_semantics = [#tpu.dimension_semantics<parallel>, #tpu.dimension_semantics<parallel>], iteration_bounds = array<i64: 2, 4>, scalar_prefetch = 0 : i64, scratch_operands = 0 : i64, tpu.core_type = #tpu.core_type<tc>, window_params = [{transform_indices = @transform_0, window_bounds = array<i64: 1, 2, 2, 128>}, {transform_indices = @transform_1, window_bounds = array<i64: 1, 2, 2, 128>}]} {
    %c0 = arith.constant 0 : index
    %c0_0 = arith.constant 0 : index
    %c0_1 = arith.constant 0 : index
    %c0_2 = arith.constant 0 : index
    %0 = vector.load %arg2[%c0, %c0_0, %c0_1, %c0_2] : memref<1x2x2x128xbf16, #tpu.memory_space<vmem>>, vector<1x2x2x128xbf16>
    %1 = arith.extf %0 : vector<1x2x2x128xbf16> to vector<1x2x2x128xf32>
    %2 = vector.shape_cast %1 : vector<1x2x2x128xf32> to vector<4x128xf32>
    %cst = arith.constant dense<0.000000e+00> : vector<128xf32>
    %3 = vector.multi_reduction <add>, %2, %cst [0] : vector<4x128xf32> to vector<128xf32>
    %4 = vector.shape_cast %3 : vector<128xf32> to vector<1x128xf32>
    %cst_3 = arith.constant 2.500000e-01 : f32
    %5 = vector.broadcast %cst_3 : f32 to vector<1x128xf32>
    %6 = arith.mulf %4, %5 : vector<1x128xf32>
    %7 = arith.mulf %2, %2 : vector<4x128xf32>
    %cst_4 = arith.constant dense<0.000000e+00> : vector<128xf32>
    %8 = vector.multi_reduction <add>, %7, %cst_4 [0] : vector<4x128xf32> to vector<128xf32>
    %9 = vector.shape_cast %8 : vector<128xf32> to vector<1x128xf32>
    %cst_5 = arith.constant 2.500000e-01 : f32
    %10 = vector.broadcast %cst_5 : f32 to vector<1x128xf32>
    %11 = arith.mulf %9, %10 : vector<1x128xf32>
    %12 = arith.mulf %6, %6 : vector<1x128xf32>
    %13 = arith.subf %11, %12 : vector<1x128xf32>
    %cst_6 = arith.constant 0.000000e+00 : f32
    %14 = vector.broadcast %cst_6 : f32 to vector<1x128xf32>
    %15 = arith.maximumf %13, %14 : vector<1x128xf32>
    %16 = vector.broadcast %6 : vector<1x128xf32> to vector<4x128xf32>
    %17 = arith.subf %2, %16 : vector<4x128xf32>
    %cst_7 = arith.constant 9.99999974E-6 : f32
    %18 = vector.broadcast %cst_7 : f32 to vector<1x128xf32>
    %19 = arith.addf %15, %18 : vector<1x128xf32>
    %20 = math.rsqrt %19 : vector<1x128xf32>
    %21 = vector.broadcast %20 : vector<1x128xf32> to vector<4x128xf32>
    %22 = arith.mulf %17, %21 : vector<4x128xf32>
    %cst_8 = arith.constant 0.000000e+00 : f32
    %23 = vector.broadcast %cst_8 : f32 to vector<4x128xf32>
    %24 = arith.cmpf oge, %22, %23 : vector<4x128xf32>
    %cst_9 = arith.constant 2.000000e-01 : f32
    %25 = vector.broadcast %cst_9 : f32 to vector<4x128xf32>
    %26 = arith.mulf %25, %22 : vector<4x128xf32>
    %27 = arith.select %24, %22, %26 : vector<4x128xi1>, vector<4x128xf32>
    %28 = vector.shape_cast %27 : vector<4x128xf32> to vector<1x2x2x128xf32>
    %29 = arith.truncf %28 : vector<1x2x2x128xf32> to vector<1x2x2x128xbf16>
    %c0_10 = arith.constant 0 : index
    %c0_11 = arith.constant 0 : index
    %c0_12 = arith.constant 0 : index
    %c0_13 = arith.constant 0 : index
    %30 = vector.load %arg3[%c0_10, %c0_11, %c0_12, %c0_13] : memref<1x2x2x128xbf16, #tpu.memory_space<vmem>>, vector<1x2x2x128xbf16>
    tpu.vector_store %arg3[%c0_10, %c0_11, %c0_12, %c0_13], %29 {strides = array<i32>} : memref<1x2x2x128xbf16, #tpu.memory_space<vmem>>, vector<1x2x2x128xbf16>,
    return
  }
  func.func @transform_0(%arg0: i32, %arg1: i32) -> (i32, i32, i32, i32) {
    %c0_i32 = arith.constant 0 : i32
    %c0_i32_0 = arith.constant 0 : i32
    %c0_i32_1 = arith.constant 0 : i32
    return %arg0, %c0_i32, %c0_i32_0, %arg1 : i32, i32, i32, i32
  }
  func.func @transform_1(%arg0: i32, %arg1: i32) -> (i32, i32, i32, i32) {
    %c0_i32 = arith.constant 0 : i32
    %c0_i32_0 = arith.constant 0 : i32
    %c0_i32_1 = arith.constant 0 : i32
    return %arg0, %c0_i32, %c0_i32_0, %arg1 : i32, i32, i32, i32
  }
}

module attributes {stable_mosaic.version = 11 : i64} {
  func.func @_matmul_bias_act_kernel(%arg0: i32, %arg1: i32, %arg2: memref<8x8192xbf16, #tpu.memory_space<vmem>>, %arg3: memref<8192x128xbf16, #tpu.memory_space<vmem>>, %arg4: memref<1x128xf32, #tpu.memory_space<vmem>>, %arg5: memref<8x128xf32, #tpu.memory_space<vmem>>) attributes {dimension_semantics = [#tpu.dimension_semantics<parallel>, #tpu.dimension_semantics<parallel>], iteration_bounds = array<i64: 1, 1>, scalar_prefetch = 0 : i64, scratch_operands = 0 : i64, tpu.core_type = #tpu.core_type<tc>, window_params = [{transform_indices = @transform_0, window_bounds = array<i64: 8, 8192>}, {transform_indices = @transform_1, window_bounds = array<i64: 8192, 128>}, {transform_indices = @transform_2, window_bounds = array<i64: 1, 128>}, {transform_indices = @transform_3, window_bounds = array<i64: 8, 128>}]} {
    %c0 = arith.constant 0 : index
    %c0_0 = arith.constant 0 : index
    %0 = vector.load %arg2[%c0, %c0_0] : memref<8x8192xbf16, #tpu.memory_space<vmem>>, vector<8x8192xbf16>
    %c0_1 = arith.constant 0 : index
    %c0_2 = arith.constant 0 : index
    %1 = vector.load %arg3[%c0_1, %c0_2] : memref<8192x128xbf16, #tpu.memory_space<vmem>>, vector<8192x128xbf16>
    %cst = arith.constant dense<0.000000e+00> : vector<8x128xf32>
    %2 = tpu.matmul %0, %1, %cst {dimension_numbers = #tpu.dot_dimension_numbers<[1], [0], [0], [1], [0, 0, 1, 1], [], []>} : vector<8x8192xbf16>, vector<8192x128xbf16>, vector<8x128xf32> -> vector<8x128xf32>
    %c0_3 = arith.constant 0 : index
    %c0_4 = arith.constant 0 : index
    %3 = vector.load %arg4[%c0_3, %c0_4] : memref<1x128xf32, #tpu.memory_space<vmem>>, vector<1x128xf32>
    %4 = vector.broadcast %3 : vector<1x128xf32> to vector<8x128xf32>
    %5 = arith.addf %2, %4 : vector<8x128xf32>
    %c0_5 = arith.constant 0 : index
    %c0_6 = arith.constant 0 : index
    %6 = vector.load %arg5[%c0_5, %c0_6] : memref<8x128xf32, #tpu.memory_space<vmem>>, vector<8x128xf32>
    tpu.vector_store %arg5[%c0_5, %c0_6], %5 {strides = array<i32>} : memref<8x128xf32, #tpu.memory_space<vmem>>, vector<8x128xf32>,
    return
  }
  func.func @transform_0(%arg0: i32, %arg1: i32) -> (i32, i32) {
    %c0_i32 = arith.constant 0 : i32
    %c0_i32_0 = arith.constant 0 : i32
    return %arg0, %c0_i32 : i32, i32
  }
  func.func @transform_1(%arg0: i32, %arg1: i32) -> (i32, i32) {
    %c0_i32 = arith.constant 0 : i32
    %c0_i32_0 = arith.constant 0 : i32
    return %c0_i32, %arg1 : i32, i32
  }
  func.func @transform_2(%arg0: i32, %arg1: i32) -> (i32, i32) {
    %c0_i32 = arith.constant 0 : i32
    %c0_i32_0 = arith.constant 0 : i32
    return %c0_i32, %arg1 : i32, i32
  }
  func.func @transform_3(%arg0: i32, %arg1: i32) -> (i32, i32) {
    %c0_i32 = arith.constant 0 : i32
    return %arg0, %arg1 : i32, i32
  }
}

</mosaic_0001>

<bundles_post_ra>
// kernel: discriminator_global.8
= control target key start
LH: loop header
LB: loop body
LE: loop exit
PB: predicated region body
PF: predicated region fallthrough
CT: control target
= control target key end

     0   :  { %s1991_s1 = inlined_call_operand.vmem [shape: bf16[128,128], index: 1, kind: input, shape index: {}]   ;;  %s1992_s0 = inlined_call_operand.vmem [shape: bf16[512,128], index: 0, kind: input, shape index: {}]   ;;  %s1993_s2 = inlined_call_operand.vmem [shape: f32[1,128], index: 2, kind: input, shape index: {}]   ;;  %s1994_s3 = inlined_call_operand.vmem [shape: bf16[512,128], index: 3, kind: output, shape index: {}]  }
   0x1   :  { %v1643_v0 = vld [vmem:[%s1991_s1 + $0x38] sm:$0xff]   ;;  %v1644_v1 = vld [vmem:[%s1991_s1 + $0x30] sm:$0xff]   ;;  %v1645_v2 = vld [vmem:[%s1991_s1 + $0x28] sm:$0xff]  }
   0x2   :  { %1547 = vmatprep.subr.bf16.mxu0 %v1643_v0  ;;  %1627 = vmatprep.subr.bf16.mxu1 %v1643_v0  ;;  %v1646_v3 = vld [vmem:[%s1991_s1 + $0x20] sm:$0xff]   ;;  %v1647_v6 = vld [vmem:[%s1991_s1 + $0x18] sm:$0xff]   ;;  %v1648_v7 = vld [vmem:[%s1991_s1 + $0x10] sm:$0xff]  }
   0x3   :  { %1548 = vmatpush3.bf16.msra.mxu0 %v1643_v0  ;;  %1635 = vmatpush3.bf16.msra.mxu1 %v1643_v0  ;;  %v1651_v4 = vld [vmem:[%s1992_s0] sm:$0xff]   ;;  %v1649_v8 = vld [vmem:[%s1991_s1 + $0x8] sm:$0xff]   ;;  %v1655_v12 = vld [vmem:[%s1992_s0 + $0x10] sm:$0xff]  }
   0x4   :  { %1549 = vmatprep.subr.bf16.mxu0 %v1644_v1  ;;  %1628 = vmatprep.subr.bf16.mxu1 %v1644_v1  ;;  %v1652_v5 = vld [vmem:[%s1992_s0 + $0x80] sm:$0xff]   ;;  %v1653_v10 = vld [vmem:[%s1992_s0 + $0x8] sm:$0xff]   ;;  %v1656_v13 = vld [vmem:[%s1992_s0 + $0x90] sm:$0xff]  }
   0x5   :  { %1563 = vmatprep.mubr.bf16.mxu0 %v1651_v4  ;;  %1595 = vmatprep.mubr.bf16.mxu1 %v1652_v5  ;;  %v1650_v9 = vld [vmem:[%s1991_s1] sm:$0xff]   ;;  %v1654_v11 = vld [vmem:[%s1992_s0 + $0x88] sm:$0xff]   ;;  %v1657_v14 = vld [vmem:[%s1992_s0 + $0x18] sm:$0xff]  }
   0x6   :  { %v1658_v15 = vld [vmem:[%s1992_s0 + $0x98] sm:$0xff]   ;;  %v1659_v16 = vld [vmem:[%s1992_s0 + $0x20] sm:$0xff]   ;;  %v1661_v18 = vld [vmem:[%s1992_s0 + $0x28] sm:$0xff]  }
   0x7   :  { %1550 = vmatpush3.bf16.msra.mxu0 %v1644_v1  ;;  %1636 = vmatpush3.bf16.msra.mxu1 %v1644_v1  ;;  %v1660_v17 = vld [vmem:[%s1992_s0 + $0xa0] sm:$0xff]   ;;  %v1662_v19 = vld [vmem:[%s1992_s0 + $0xa8] sm:$0xff]   ;;  %v1663_v20 = vld [vmem:[%s1992_s0 + $0x30] sm:$0xff]  }
   0x8   :  { %1551 = vmatprep.subr.bf16.mxu0 %v1645_v2  ;;  %1629 = vmatprep.subr.bf16.mxu1 %v1645_v2  ;;  %v1664_v21 = vld [vmem:[%s1992_s0 + $0xb0] sm:$0xff]   ;;  %v1665_v22 = vld [vmem:[%s1992_s0 + $0x38] sm:$0xff]   ;;  %v1667_v24 = vld [vmem:[%s1992_s0 + $0x40] sm:$0xff]  }
   0x9   :  { %v1666_v23 = vld [vmem:[%s1992_s0 + $0xb8] sm:$0xff]   ;;  %v1668_v25 = vld [vmem:[%s1992_s0 + $0xc0] sm:$0xff]   ;;  %v1669_v26 = vld [vmem:[%s1992_s0 + $0x48] sm:$0xff]  }
   0xa   :  { %v1670_v27 = vld [vmem:[%s1992_s0 + $0xc8] sm:$0xff]   ;;  %v1671_v28 = vld [vmem:[%s1992_s0 + $0x50] sm:$0xff]   ;;  %v1673_v30 = vld [vmem:[%s1992_s0 + $0x58] sm:$0xff]  }
   0xb   :  { %1552 = vmatpush3.bf16.msra.mxu0 %v1645_v2  ;;  %1637 = vmatpush3.bf16.msra.mxu1 %v1645_v2  ;;  %v1672_v29 = vld [vmem:[%s1992_s0 + $0xd0] sm:$0xff]   ;;  %v1674_v31 = vld [vmem:[%s1992_s0 + $0xd8] sm:$0xff]   ;;  %v1675_v32 = vld [vmem:[%s1992_s0 + $0x60] sm:$0xff]  }
   0xc   :  { %1553 = vmatprep.subr.bf16.mxu0 %v1646_v3  ;;  %1630 = vmatprep.subr.bf16.mxu1 %v1646_v3  ;;  %v1676_v33 = vld [vmem:[%s1992_s0 + $0xe0] sm:$0xff]   ;;  %v1677_v34 = vld [vmem:[%s1992_s0 + $0x68] sm:$0xff]   ;;  %v1679_v36 = vld [vmem:[%s1992_s0 + $0x70] sm:$0xff]  }
   0xd   :  { %v1678_v35 = vld [vmem:[%s1992_s0 + $0xe8] sm:$0xff]   ;;  %v1680_v37 = vld [vmem:[%s1992_s0 + $0xf0] sm:$0xff]   ;;  %v1681_v38 = vld [vmem:[%s1992_s0 + $0x78] sm:$0xff]  }
   0xe   :  { %v1682_v39 = vld [vmem:[%s1992_s0 + $0xf8] sm:$0xff]   ;;  %v1826_v40 = vld [vmem:[%s1993_s2] ss:$0 sm:$0xff] }
   0xf   :  { %1554 = vmatpush3.bf16.msra.mxu0 %v1646_v3  ;;  %1638 = vmatpush3.bf16.msra.mxu1 %v1646_v3 }
  0x10   :  { %1555 = vmatprep.subr.bf16.mxu0 %v1647_v6  ;;  %1631 = vmatprep.subr.bf16.mxu1 %v1647_v6 }
  0x13   :  { %1556 = vmatpush3.bf16.msra.mxu0 %v1647_v6  ;;  %1639 = vmatpush3.bf16.msra.mxu1 %v1647_v6 }
  0x14   :  { %1557 = vmatprep.subr.bf16.mxu0 %v1648_v7  ;;  %1632 = vmatprep.subr.bf16.mxu1 %v1648_v7 }
  0x17   :  { %1558 = vmatpush3.bf16.msra.mxu0 %v1648_v7  ;;  %1640 = vmatpush3.bf16.msra.mxu1 %v1648_v7 }
  0x18   :  { %1559 = vmatprep.subr.bf16.mxu0 %v1649_v8  ;;  %1633 = vmatprep.subr.bf16.mxu1 %v1649_v8 }
  0x1b   :  { %1560 = vmatpush3.bf16.msra.mxu0 %v1649_v8  ;;  %1641 = vmatpush3.bf16.msra.mxu1 %v1649_v8 }
  0x1c   :  { %1561 = vmatprep.subr.bf16.mxu0 %v1650_v9  ;;  %1634 = vmatprep.subr.bf16.mxu1 %v1650_v9 }
  0x1f   :  { %1562 = vmatpush3.bf16.msra.mxu0 %v1650_v9  ;;  %1642 = vmatpush3.bf16.msra.mxu1 %v1650_v9 }
  0x22   :  { %1564 = vmatmul.mubr.bf16.vlgmr.msra.gmra.mxu0 %v1653_v10  ;;  %1596 = vmatmul.mubr.bf16.vlgmr.msra.gmra.mxu1 %v1654_v11 }
  0x23   :  { %1567 = vmatprep.mubr.bf16.mxu0 %v1655_v12  ;;  %1599 = vmatprep.mubr.bf16.mxu1 %v1656_v13 }
  0x2a   :  { %1568 = vmatmul.mubr.bf16.gmra.mxu0 %v1657_v14  ;;  %1600 = vmatmul.mubr.bf16.gmra.mxu1 %v1658_v15 }
  0x2b   :  { %1571 = vmatprep.mubr.bf16.mxu0 %v1659_v16  ;;  %1603 = vmatprep.mubr.bf16.mxu1 %v1660_v17 }
  0x32   :  { %1572 = vmatmul.mubr.bf16.gmra.mxu0 %v1661_v18  ;;  %1604 = vmatmul.mubr.bf16.gmra.mxu1 %v1662_v19 }
  0x33   :  { %1575 = vmatprep.mubr.bf16.mxu0 %v1663_v20  ;;  %1607 = vmatprep.mubr.bf16.mxu1 %v1664_v21 }
  0x3a   :  { %1576 = vmatmul.mubr.bf16.gmra.mxu0 %v1665_v22  ;;  %1608 = vmatmul.mubr.bf16.gmra.mxu1 %v1666_v23 }
  0x3b   :  { %1579 = vmatprep.mubr.bf16.mxu0 %v1667_v24  ;;  %1611 = vmatprep.mubr.bf16.mxu1 %v1668_v25 }
  0x42   :  { %1580 = vmatmul.mubr.bf16.gmra.mxu0 %v1669_v26  ;;  %1612 = vmatmul.mubr.bf16.gmra.mxu1 %v1670_v27 }
  0x43   :  { %1583 = vmatprep.mubr.bf16.mxu0 %v1671_v28  ;;  %1615 = vmatprep.mubr.bf16.mxu1 %v1672_v29 }
  0x4a   :  { %1584 = vmatmul.mubr.bf16.gmra.mxu0 %v1673_v30  ;;  %1616 = vmatmul.mubr.bf16.gmra.mxu1 %v1674_v31 }
  0x4b   :  { %1587 = vmatprep.mubr.bf16.mxu0 %v1675_v32  ;;  %1619 = vmatprep.mubr.bf16.mxu1 %v1676_v33 }
  0x52   :  { %1588 = vmatmul.mubr.bf16.gmra.mxu0 %v1677_v34  ;;  %1620 = vmatmul.mubr.bf16.gmra.mxu1 %v1678_v35 }
  0x53   :  { %1591 = vmatprep.mubr.bf16.mxu0 %v1679_v36  ;;  %1623 = vmatprep.mubr.bf16.mxu1 %v1680_v37 }
  0x5a   :  { %1592 = vmatmul.mubr.bf16.gmra.mxu0 %v1681_v38  ;;  %1624 = vmatmul.mubr.bf16.gmra.mxu1 %v1682_v39 }
  0xe2   :  { %v1565_v41 = vpop.f32.mrf.mxu0  ;;  %v1597_v42 = vpop.f32.mrf.mxu1 }
  0xe3   :  { %v385_v43 = vadd.f32 %v1565_v41, %v1826_v40  ;;  %v513_v44 = vadd.f32 %v1597_v42, %v1826_v40 }
  0xe4   :  { %v376_v45 = vpop.f32.mrf.mxu0  ;;  %v504_v46 = vpop.f32.mrf.mxu1 }
  0xe5   :  { %vm633_vm0 = vcmp.ge.f32.partialorder %v385_v43, 0.0  ;;  %v697_v47 = vmul.f32 0.2, %v385_v43  ;;  %vm665_vm1 = vcmp.ge.f32.partialorder %v513_v44, 0.0  ;;  %v729_v48 = vmul.f32 0.2, %v513_v44 }
  0xe6   :  { %v377_v49 = vadd.f32 %v1826_v40, %v376_v45  ;;  %v505_v50 = vadd.f32 %v1826_v40, %v504_v46  ;;  %v1566_v51 = vpop.f32.mrf.mxu0  ;;  %v1598_v52 = vpop.f32.mrf.mxu1 }
  0xe7   :  { %v761_v53 = vsel %vm633_vm0, %v385_v43, %v697_v47  ;;  %v388_v54 = vadd.f32 %v1566_v51, %v1826_v40  ;;  %v516_v55 = vadd.f32 %v1598_v52, %v1826_v40  ;;  %v793_v56 = vsel %vm665_vm1, %v513_v44, %v729_v48 }
  0xe8   :  { %vm631_vm2 = vcmp.ge.f32.partialorder %v377_v49, 0.0  ;;  %v695_v57 = vmul.f32 0.2, %v377_v49  ;;  %vm663_vm3 = vcmp.ge.f32.partialorder %v505_v50, 0.0  ;;  %v379_v58 = vpop.f32.mrf.mxu0  ;;  %v507_v59 = vpop.f32.mrf.mxu1  ;;  %v727_v63 = vmul.f32 0.2, %v505_v50 }
  0xe9   :  { %vm634_vm4 = vcmp.ge.f32.partialorder %v388_v54, 0.0  ;;  %v698_v60 = vmul.f32 0.2, %v388_v54  ;;  %vm666_vm5 = vcmp.ge.f32.partialorder %v516_v55, 0.0  ;;  %v730_v61 = vmul.f32 0.2, %v516_v55 }
  0xea   :  { %v759_v62 = vsel %vm631_vm2, %v377_v49, %v695_v57  ;;  %v380_v0 = vadd.f32 %v1826_v40, %v379_v58  ;;  %v508_v1 = vadd.f32 %v1826_v40, %v507_v59  ;;  %v1569_v2 = vpop.f32.mrf.mxu0  ;;  %v1601_v3 = vpop.f32.mrf.mxu1  ;;  %v791_v15 = vsel %vm663_vm3, %v505_v50, %v727_v63 }
  0xeb   :  { %v762_v4 = vsel %vm634_vm4, %v388_v54, %v698_v60  ;;  %v794_v5 = vsel %vm666_vm5, %v516_v55, %v730_v61  ;;  %v401_v6 = vadd.f32 %v1569_v2, %v1826_v40  ;;  %v529_v7 = vadd.f32 %v1601_v3, %v1826_v40 }
  0xec   :  { %v1324_v8 = vpack.c.bf16 %v762_v4, %v761_v53  ;;  %v1404_v9 = vpack.c.bf16 %v794_v5, %v793_v56  ;;  %vm632_vm6 = vcmp.ge.f32.partialorder %v380_v0, 0.0  ;;  %v696_v10 = vmul.f32 0.2, %v380_v0  ;;  %v392_v11 = vpop.f32.mrf.mxu0  ;;  %v520_v12 = vpop.f32.mrf.mxu1 }
  0xed   :  { %vm664_vm7 = vcmp.ge.f32.partialorder %v508_v1, 0.0  ;;  %v728_v13 = vmul.f32 0.2, %v508_v1  ;;  %vm637_vm8 = vcmp.ge.f32.partialorder %v401_v6, 0.0  ;;  %v701_v14 = vmul.f32 0.2, %v401_v6 }
  0xee   :  { %1476 = vst [vmem:[%s1994_s3 + $0x8] sm:$0xff] %v1324_v8   ;;  %1492 = vst [vmem:[%s1994_s3 + $0x88] sm:$0xff] %v1404_v9   ;;  %v760_v16 = vsel %vm632_vm6, %v380_v0, %v696_v10  ;;  %v733_v17 = vmul.f32 0.2, %v529_v7  ;;  %v393_v18 = vadd.f32 %v1826_v40, %v392_v11  ;;  %v1570_v19 = vpop.f32.mrf.mxu0  ;;  %v1602_v20 = vpop.f32.mrf.mxu1  ;;  %vm669_vm9 = vcmp.ge.f32.partialorder %v529_v7, 0.0 }
  0xef   :  { %v1319_v21 = vpack.c.bf16 %v760_v16, %v759_v62  ;;  %v792_v22 = vsel %vm664_vm7, %v508_v1, %v728_v13  ;;  %v521_v23 = vadd.f32 %v1826_v40, %v520_v12  ;;  %v765_v25 = vsel %vm637_vm8, %v401_v6, %v701_v14 }
  0xf0   :  { %v1399_v24 = vpack.c.bf16 %v792_v22, %v791_v15  ;;  %vm635_vm10 = vcmp.ge.f32.partialorder %v393_v18, 0.0  ;;  %v699_v26 = vmul.f32 0.2, %v393_v18  ;;  %v395_v27 = vpop.f32.mrf.mxu0  ;;  %v523_v28 = vpop.f32.mrf.mxu1  ;;  %v404_v30 = vadd.f32 %v1570_v19, %v1826_v40 }
  0xf1   :  { %1320 = vst [vmem:[%s1994_s3] sm:$0xff] %v1319_v21   ;;  %vm667_vm11 = vcmp.ge.f32.partialorder %v521_v23, 0.0  ;;  %v731_v29 = vmul.f32 0.2, %v521_v23  ;;  %v532_v31 = vadd.f32 %v1602_v20, %v1826_v40  ;;  %v797_v32 = vsel %vm669_vm9, %v529_v7, %v733_v17 }
  0xf2   :  { %1491 = vst [vmem:[%s1994_s3 + $0x80] sm:$0xff] %v1399_v24   ;;  %v763_v33 = vsel %vm635_vm10, %v393_v18, %v699_v26  ;;  %v396_v34 = vadd.f32 %v1826_v40, %v395_v27  ;;  %v524_v35 = vadd.f32 %v1826_v40, %v523_v28  ;;  %v1573_v36 = vpop.f32.mrf.mxu0  ;;  %v1605_v37 = vpop.f32.mrf.mxu1  ;;  %vm638_vm12 = vcmp.ge.f32.partialorder %v404_v30, 0.0 }
  0xf3   :  { %v795_v38 = vsel %vm667_vm11, %v521_v23, %v731_v29  ;;  %v702_v39 = vmul.f32 0.2, %v404_v30  ;;  %vm670_vm13 = vcmp.ge.f32.partialorder %v532_v31, 0.0  ;;  %v734_v41 = vmul.f32 0.2, %v532_v31 }
  0xf4   :  { %vm636_vm14 = vcmp.ge.f32.partialorder %v396_v34, 0.0  ;;  %v700_v42 = vmul.f32 0.2, %v396_v34  ;;  %vm668_vm15 = vcmp.ge.f32.partialorder %v524_v35, 0.0  ;;  %v408_v43 = vpop.f32.mrf.mxu0  ;;  %v536_v44 = vpop.f32.mrf.mxu1  ;;  %v732_v46 = vmul.f32 0.2, %v524_v35 }
  0xf5   :  { %v766_v45 = vsel %vm638_vm12, %v404_v30, %v702_v39  ;;  %v417_v47 = vadd.f32 %v1573_v36, %v1826_v40  ;;  %v545_v48 = vadd.f32 %v1605_v37, %v1826_v40  ;;  %v798_v50 = vsel %vm670_vm13, %v532_v31, %v734_v41 }
  0xf6   :  { %v1334_v49 = vpack.c.bf16 %v766_v45, %v765_v25  ;;  %v764_v51 = vsel %vm636_vm14, %v396_v34, %v700_v42  ;;  %v409_v52 = vadd.f32 %v1826_v40, %v408_v43  ;;  %v1574_v53 = vpop.f32.mrf.mxu0  ;;  %v1606_v54 = vpop.f32.mrf.mxu1  ;;  %v1414_v55 = vpack.c.bf16 %v798_v50, %v797_v32 }
  0xf7   :  { %v1329_v56 = vpack.c.bf16 %v764_v51, %v763_v33  ;;  %v796_v57 = vsel %vm668_vm15, %v524_v35, %v732_v46  ;;  %vm641_vm0 = vcmp.ge.f32.partialorder %v417_v47, 0.0  ;;  %v705_v59 = vmul.f32 0.2, %v417_v47 }
  0xf8   :  { %1478 = vst [vmem:[%s1994_s3 + $0x18] sm:$0xff] %v1334_v49   ;;  %v1409_v58 = vpack.c.bf16 %v796_v57, %v795_v38  ;;  %vm673_vm1 = vcmp.ge.f32.partialorder %v545_v48, 0.0  ;;  %v737_v60 = vmul.f32 0.2, %v545_v48  ;;  %v411_v61 = vpop.f32.mrf.mxu0  ;;  %v539_v62 = vpop.f32.mrf.mxu1  ;;  %1494 = vst [vmem:[%s1994_s3 + $0x98] sm:$0xff] %v1414_v55   ;;  %vm639_vm2 = vcmp.ge.f32.partialorder %v409_v52, 0.0 }
  0xf9   :  { %1477 = vst [vmem:[%s1994_s3 + $0x10] sm:$0xff] %v1329_v56   ;;  %v703_v63 = vmul.f32 0.2, %v409_v52  ;;  %v537_v0 = vadd.f32 %v1826_v40, %v536_v44  ;;  %v420_v1 = vadd.f32 %v1574_v53, %v1826_v40  ;;  %v769_v2 = vsel %vm641_vm0, %v417_v47, %v705_v59 }
  0xfa   :  { %1493 = vst [vmem:[%s1994_s3 + $0x90] sm:$0xff] %v1409_v58   ;;  %v801_v3 = vsel %vm673_vm1, %v545_v48, %v737_v60  ;;  %v548_v4 = vadd.f32 %v1606_v54, %v1826_v40  ;;  %v412_v5 = vadd.f32 %v1826_v40, %v411_v61  ;;  %v1577_v6 = vpop.f32.mrf.mxu0  ;;  %v1609_v7 = vpop.f32.mrf.mxu1  ;;  %v540_v16 = vadd.f32 %v1826_v40, %v539_v62 }
  0xfb   :  { %v767_v8 = vsel %vm639_vm2, %v409_v52, %v703_v63  ;;  %vm671_vm3 = vcmp.ge.f32.partialorder %v537_v0, 0.0  ;;  %v735_v9 = vmul.f32 0.2, %v537_v0  ;;  %vm642_vm4 = vcmp.ge.f32.partialorder %v420_v1, 0.0 }
  0xfc   :  { %v706_v10 = vmul.f32 0.2, %v420_v1  ;;  %vm674_vm5 = vcmp.ge.f32.partialorder %v548_v4, 0.0  ;;  %v738_v11 = vmul.f32 0.2, %v548_v4  ;;  %vm640_vm6 = vcmp.ge.f32.partialorder %v412_v5, 0.0  ;;  %v424_v12 = vpop.f32.mrf.mxu0  ;;  %v552_v13 = vpop.f32.mrf.mxu1 }
  0xfd   :  { %v799_v14 = vsel %vm671_vm3, %v537_v0, %v735_v9  ;;  %v704_v15 = vmul.f32 0.2, %v412_v5  ;;  %v433_v17 = vadd.f32 %v1577_v6, %v1826_v40  ;;  %v561_v20 = vadd.f32 %v1609_v7, %v1826_v40 }
  0xfe   :  { %v770_v18 = vsel %vm642_vm4, %v420_v1, %v706_v10  ;;  %v802_v19 = vsel %vm674_vm5, %v548_v4, %v738_v11  ;;  %v425_v21 = vadd.f32 %v1826_v40, %v424_v12  ;;  %v1578_v22 = vpop.f32.mrf.mxu0  ;;  %v1610_v23 = vpop.f32.mrf.mxu1  ;;  %vm672_vm7 = vcmp.ge.f32.partialorder %v540_v16, 0.0 }
  0xff   :  { %v1344_v24 = vpack.c.bf16 %v770_v18, %v769_v2  ;;  %v1424_v25 = vpack.c.bf16 %v802_v19, %v801_v3  ;;  %v768_v26 = vsel %vm640_vm6, %v412_v5, %v704_v15  ;;  %v736_v28 = vmul.f32 0.2, %v540_v16 }
 0x100   :  { %v1339_v27 = vpack.c.bf16 %v768_v26, %v767_v8  ;;  %vm645_vm8 = vcmp.ge.f32.partialorder %v433_v17, 0.0  ;;  %v709_v29 = vmul.f32 0.2, %v433_v17  ;;  %v427_v30 = vpop.f32.mrf.mxu0  ;;  %v555_v31 = vpop.f32.mrf.mxu1  ;;  %vm677_vm9 = vcmp.ge.f32.partialorder %v561_v20, 0.0 }
 0x101   :  { %1480 = vst [vmem:[%s1994_s3 + $0x28] sm:$0xff] %v1344_v24   ;;  %1496 = vst [vmem:[%s1994_s3 + $0xa8] sm:$0xff] %v1424_v25   ;;  %v741_v32 = vmul.f32 0.2, %v561_v20  ;;  %vm643_vm10 = vcmp.ge.f32.partialorder %v425_v21, 0.0  ;;  %v800_v34 = vsel %vm672_vm7, %v540_v16, %v736_v28  ;;  %v553_v36 = vadd.f32 %v1826_v40, %v552_v13 }
 0x102   :  { %v707_v33 = vmul.f32 0.2, %v425_v21  ;;  %1479 = vst [vmem:[%s1994_s3 + $0x20] sm:$0xff] %v1339_v27   ;;  %v773_v35 = vsel %vm645_vm8, %v433_v17, %v709_v29  ;;  %v436_v37 = vadd.f32 %v1578_v22, %v1826_v40  ;;  %v1581_v38 = vpop.f32.mrf.mxu0  ;;  %v1613_v39 = vpop.f32.mrf.mxu1  ;;  %v1419_v41 = vpack.c.bf16 %v800_v34, %v799_v14 }
 0x103   :  { %v805_v42 = vsel %vm677_vm9, %v561_v20, %v741_v32  ;;  %v564_v44 = vadd.f32 %v1610_v23, %v1826_v40  ;;  %vm675_vm11 = vcmp.ge.f32.partialorder %v553_v36, 0.0  ;;  %v739_v45 = vmul.f32 0.2, %v553_v36 }
 0x104   :  { %v771_v43 = vsel %vm643_vm10, %v425_v21, %v707_v33  ;;  %vm646_vm12 = vcmp.ge.f32.partialorder %v436_v37, 0.0  ;;  %v710_v46 = vmul.f32 0.2, %v436_v37  ;;  %v440_v47 = vpop.f32.mrf.mxu0  ;;  %v568_v48 = vpop.f32.mrf.mxu1  ;;  %1495 = vst [vmem:[%s1994_s3 + $0xa0] sm:$0xff] %v1419_v41   ;;  %v428_v50 = vadd.f32 %v1826_v40, %v427_v30 }
 0x105   :  { %vm678_vm13 = vcmp.ge.f32.partialorder %v564_v44, 0.0  ;;  %v742_v49 = vmul.f32 0.2, %v564_v44  ;;  %v556_v51 = vadd.f32 %v1826_v40, %v555_v31  ;;  %v803_v52 = vsel %vm675_vm11, %v553_v36, %v739_v45 }
 0x106   :  { %v774_v53 = vsel %vm646_vm12, %v436_v37, %v710_v46  ;;  %v449_v54 = vadd.f32 %v1581_v38, %v1826_v40  ;;  %v577_v55 = vadd.f32 %v1613_v39, %v1826_v40  ;;  %v1582_v56 = vpop.f32.mrf.mxu0  ;;  %v1614_v57 = vpop.f32.mrf.mxu1  ;;  %vm644_vm14 = vcmp.ge.f32.partialorder %v428_v50, 0.0 }
 0x107   :  { %v1354_v58 = vpack.c.bf16 %v774_v53, %v773_v35  ;;  %v806_v59 = vsel %vm678_vm13, %v564_v44, %v742_v49  ;;  %v708_v60 = vmul.f32 0.2, %v428_v50  ;;  %vm676_vm15 = vcmp.ge.f32.partialorder %v556_v51, 0.0 }
 0x108   :  { %v1434_v61 = vpack.c.bf16 %v806_v59, %v805_v42  ;;  %v740_v62 = vmul.f32 0.2, %v556_v51  ;;  %vm649_vm0 = vcmp.ge.f32.partialorder %v449_v54, 0.0  ;;  %v443_v63 = vpop.f32.mrf.mxu0  ;;  %v571_v0 = vpop.f32.mrf.mxu1  ;;  %v713_v2 = vmul.f32 0.2, %v449_v54 }
 0x109   :  { %1482 = vst [vmem:[%s1994_s3 + $0x38] sm:$0xff] %v1354_v58   ;;  %v772_v1 = vsel %vm644_vm14, %v428_v50, %v708_v60  ;;  %vm681_vm1 = vcmp.ge.f32.partialorder %v577_v55, 0.0  ;;  %v745_v3 = vmul.f32 0.2, %v577_v55  ;;  %v441_v6 = vadd.f32 %v1826_v40, %v440_v47 }
 0x10a   :  { %1498 = vst [vmem:[%s1994_s3 + $0xb8] sm:$0xff] %v1434_v61   ;;  %v1349_v4 = vpack.c.bf16 %v772_v1, %v771_v43  ;;  %v804_v5 = vsel %vm676_vm15, %v556_v51, %v740_v62  ;;  %v569_v7 = vadd.f32 %v1826_v40, %v568_v48  ;;  %v1585_v8 = vpop.f32.mrf.mxu0  ;;  %v1617_v9 = vpop.f32.mrf.mxu1  ;;  %v777_v11 = vsel %vm649_vm0, %v449_v54, %v713_v2 }
 0x10b   :  { %v1429_v10 = vpack.c.bf16 %v804_v5, %v803_v52  ;;  %v809_v12 = vsel %vm681_vm1, %v577_v55, %v745_v3  ;;  %v452_v13 = vadd.f32 %v1582_v56, %v1826_v40  ;;  %vm647_vm2 = vcmp.ge.f32.partialorder %v441_v6, 0.0 }
 0x10c   :  { %1481 = vst [vmem:[%s1994_s3 + $0x30] sm:$0xff] %v1349_v4   ;;  %v711_v14 = vmul.f32 0.2, %v441_v6  ;;  %vm679_vm3 = vcmp.ge.f32.partialorder %v569_v7, 0.0  ;;  %v743_v15 = vmul.f32 0.2, %v569_v7  ;;  %v456_v16 = vpop.f32.mrf.mxu0  ;;  %v584_v17 = vpop.f32.mrf.mxu1  ;;  %v580_v19 = vadd.f32 %v1614_v57, %v1826_v40 }
 0x10d   :  { %1497 = vst [vmem:[%s1994_s3 + $0xb0] sm:$0xff] %v1429_v10   ;;  %vm650_vm4 = vcmp.ge.f32.partialorder %v452_v13, 0.0  ;;  %v714_v18 = vmul.f32 0.2, %v452_v13  ;;  %v444_v20 = vadd.f32 %v1826_v40, %v443_v63  ;;  %v572_v23 = vadd.f32 %v1826_v40, %v571_v0 }
 0x10e   :  { %v775_v21 = vsel %vm647_vm2, %v441_v6, %v711_v14  ;;  %v807_v22 = vsel %vm679_vm3, %v569_v7, %v743_v15  ;;  %v465_v24 = vadd.f32 %v1585_v8, %v1826_v40  ;;  %v1586_v25 = vpop.f32.mrf.mxu0  ;;  %v1618_v26 = vpop.f32.mrf.mxu1  ;;  %vm682_vm5 = vcmp.ge.f32.partialorder %v580_v19, 0.0 }
 0x10f   :  { %v778_v27 = vsel %vm650_vm4, %v452_v13, %v714_v18  ;;  %v746_v28 = vmul.f32 0.2, %v580_v19  ;;  %vm648_vm6 = vcmp.ge.f32.partialorder %v444_v20, 0.0  ;;  %v712_v30 = vmul.f32 0.2, %v444_v20 }
 0x110   :  { %v1364_v29 = vpack.c.bf16 %v778_v27, %v777_v11  ;;  %vm680_vm7 = vcmp.ge.f32.partialorder %v572_v23, 0.0  ;;  %v744_v31 = vmul.f32 0.2, %v572_v23  ;;  %v459_v32 = vpop.f32.mrf.mxu0  ;;  %v587_v33 = vpop.f32.mrf.mxu1  ;;  %vm653_vm8 = vcmp.ge.f32.partialorder %v465_v24, 0.0 }
 0x111   :  { %v810_v34 = vsel %vm682_vm5, %v580_v19, %v746_v28  ;;  %v717_v35 = vmul.f32 0.2, %v465_v24  ;;  %v593_v36 = vadd.f32 %v1617_v9, %v1826_v40  ;;  %v776_v38 = vsel %vm648_vm6, %v444_v20, %v712_v30 }
 0x112   :  { %1484 = vst [vmem:[%s1994_s3 + $0x48] sm:$0xff] %v1364_v29   ;;  %v1444_v37 = vpack.c.bf16 %v810_v34, %v809_v12  ;;  %v808_v39 = vsel %vm680_vm7, %v572_v23, %v744_v31  ;;  %v457_v41 = vadd.f32 %v1826_v40, %v456_v16  ;;  %v1589_v42 = vpop.f32.mrf.mxu0  ;;  %v1621_v43 = vpop.f32.mrf.mxu1  ;;  %v1359_v44 = vpack.c.bf16 %v776_v38, %v775_v21 }
 0x113   :  { %v1439_v45 = vpack.c.bf16 %v808_v39, %v807_v22  ;;  %v781_v46 = vsel %vm653_vm8, %v465_v24, %v717_v35  ;;  %vm685_vm9 = vcmp.ge.f32.partialorder %v593_v36, 0.0  ;;  %v749_v47 = vmul.f32 0.2, %v593_v36 }
 0x114   :  { %1500 = vst [vmem:[%s1994_s3 + $0xc8] sm:$0xff] %v1444_v37   ;;  %vm651_vm10 = vcmp.ge.f32.partialorder %v457_v41, 0.0  ;;  %v715_v48 = vmul.f32 0.2, %v457_v41  ;;  %v585_v49 = vadd.f32 %v1826_v40, %v584_v17  ;;  %v472_v50 = vpop.f32.mrf.mxu0  ;;  %v600_v51 = vpop.f32.mrf.mxu1  ;;  %1483 = vst [vmem:[%s1994_s3 + $0x40] sm:$0xff] %v1359_v44   ;;  %v468_v52 = vadd.f32 %v1586_v25, %v1826_v40 }
 0x115   :  { %1499 = vst [vmem:[%s1994_s3 + $0xc0] sm:$0xff] %v1439_v45   ;;  %v596_v53 = vadd.f32 %v1618_v26, %v1826_v40  ;;  %v460_v54 = vadd.f32 %v1826_v40, %v459_v32  ;;  %v588_v55 = vadd.f32 %v1826_v40, %v587_v33  ;;  %v813_v56 = vsel %vm685_vm9, %v593_v36, %v749_v47 }
 0x116   :  { %v779_v57 = vsel %vm651_vm10, %v457_v41, %v715_v48  ;;  %vm683_vm11 = vcmp.ge.f32.partialorder %v585_v49, 0.0  ;;  %v747_v58 = vmul.f32 0.2, %v585_v49  ;;  %v1590_v59 = vpop.f32.mrf.mxu0  ;;  %v1622_v60 = vpop.f32.mrf.mxu1  ;;  %vm654_vm12 = vcmp.ge.f32.partialorder %v468_v52, 0.0 }
 0x117   :  { %v718_v61 = vmul.f32 0.2, %v468_v52  ;;  %vm686_vm13 = vcmp.ge.f32.partialorder %v596_v53, 0.0  ;;  %v750_v62 = vmul.f32 0.2, %v596_v53  ;;  %vm652_vm14 = vcmp.ge.f32.partialorder %v460_v54, 0.0 }
 0x118   :  { %v811_v63 = vsel %vm683_vm11, %v585_v49, %v747_v58  ;;  %v716_v0 = vmul.f32 0.2, %v460_v54  ;;  %vm684_vm15 = vcmp.ge.f32.partialorder %v588_v55, 0.0  ;;  %v475_v1 = vpop.f32.mrf.mxu0  ;;  %v603_v2 = vpop.f32.mrf.mxu1  ;;  %v748_v5 = vmul.f32 0.2, %v588_v55 }
 0x119   :  { %v782_v3 = vsel %vm654_vm12, %v468_v52, %v718_v61  ;;  %v814_v4 = vsel %vm686_vm13, %v596_v53, %v750_v62  ;;  %v481_v6 = vadd.f32 %v1589_v42, %v1826_v40  ;;  %v609_v10 = vadd.f32 %v1621_v43, %v1826_v40 }
 0x11a   :  { %v1374_v7 = vpack.c.bf16 %v782_v3, %v781_v46  ;;  %v1454_v8 = vpack.c.bf16 %v814_v4, %v813_v56  ;;  %v780_v9 = vsel %vm652_vm14, %v460_v54, %v716_v0  ;;  %v1593_v11 = vpop.f32.mrf.mxu0  ;;  %v1625_v12 = vpop.f32.mrf.mxu1  ;;  %v812_v14 = vsel %vm684_vm15, %v588_v55, %v748_v5 }
 0x11b   :  { %v1369_v13 = vpack.c.bf16 %v780_v9, %v779_v57  ;;  %vm657_vm0 = vcmp.ge.f32.partialorder %v481_v6, 0.0  ;;  %v721_v15 = vmul.f32 0.2, %v481_v6  ;;  %v1449_v16 = vpack.c.bf16 %v812_v14, %v811_v63 }
 0x11c   :  { %1486 = vst [vmem:[%s1994_s3 + $0x58] sm:$0xff] %v1374_v7   ;;  %1502 = vst [vmem:[%s1994_s3 + $0xd8] sm:$0xff] %v1454_v8   ;;  %vm689_vm1 = vcmp.ge.f32.partialorder %v609_v10, 0.0  ;;  %v753_v17 = vmul.f32 0.2, %v609_v10  ;;  %v473_v18 = vadd.f32 %v1826_v40, %v472_v50  ;;  %v601_v19 = vadd.f32 %v1826_v40, %v600_v51  ;;  %v488_v25 = vpop.f32.mrf.mxu0  ;;  %v616_v26 = vpop.f32.mrf.mxu1 }
 0x11d   :  { %1485 = vst [vmem:[%s1994_s3 + $0x50] sm:$0xff] %v1369_v13   ;;  %v484_v20 = vadd.f32 %v1590_v59, %v1826_v40  ;;  %v612_v21 = vadd.f32 %v1622_v60, %v1826_v40  ;;  %1501 = vst [vmem:[%s1994_s3 + $0xd0] sm:$0xff] %v1449_v16   ;;  %v785_v22 = vsel %vm657_vm0, %v481_v6, %v721_v15 }
 0x11e   :  { %vm655_vm2 = vcmp.ge.f32.partialorder %v473_v18, 0.0  ;;  %v719_v23 = vmul.f32 0.2, %v473_v18  ;;  %v476_v24 = vadd.f32 %v1826_v40, %v475_v1  ;;  %v817_v27 = vsel %vm689_vm1, %v609_v10, %v753_v17  ;;  %v1594_v39 = vpop.f32.mrf.mxu0  ;;  %v1626_v41 = vpop.f32.mrf.mxu1 }
 0x11f   :  { %vm687_vm3 = vcmp.ge.f32.partialorder %v601_v19, 0.0  ;;  %vm658_vm4 = vcmp.ge.f32.partialorder %v484_v20, 0.0  ;;  %v722_v28 = vmul.f32 0.2, %v484_v20  ;;  %v751_v29 = vmul.f32 0.2, %v601_v19 }
 0x120   :  { %vm690_vm5 = vcmp.ge.f32.partialorder %v612_v21, 0.0  ;;  %v754_v30 = vmul.f32 0.2, %v612_v21  ;;  %vm656_vm6 = vcmp.ge.f32.partialorder %v476_v24, 0.0  ;;  %v783_v31 = vsel %vm655_vm2, %v473_v18, %v719_v23  ;;  %v491_v55 = vpop.f32.mrf.mxu0  ;;  %v619_v56 = vpop.f32.mrf.mxu1 }
 0x121   :  { %v786_v32 = vsel %vm658_vm4, %v484_v20, %v722_v28  ;;  %v720_v33 = vmul.f32 0.2, %v476_v24  ;;  %v604_v34 = vadd.f32 %v1826_v40, %v603_v2  ;;  %v497_v37 = vadd.f32 %v1593_v11, %v1826_v40 }
 0x122   :  { %v1384_v35 = vpack.c.bf16 %v786_v32, %v785_v22  ;;  %v818_v36 = vsel %vm690_vm5, %v612_v21, %v754_v30  ;;  %v625_v38 = vadd.f32 %v1625_v12, %v1826_v40  ;;  %v815_v45 = vsel %vm687_vm3, %v601_v19, %v751_v29 }
 0x123   :  { %v1464_v42 = vpack.c.bf16 %v818_v36, %v817_v27  ;;  %v784_v43 = vsel %vm656_vm6, %v476_v24, %v720_v33  ;;  %vm688_vm7 = vcmp.ge.f32.partialorder %v604_v34, 0.0  ;;  %v752_v44 = vmul.f32 0.2, %v604_v34 }
 0x124   :  { %1488 = vst [vmem:[%s1994_s3 + $0x68] sm:$0xff] %v1384_v35   ;;  %v1379_v46 = vpack.c.bf16 %v784_v43, %v783_v31  ;;  %vm661_vm8 = vcmp.ge.f32.partialorder %v497_v37, 0.0  ;;  %v725_v47 = vmul.f32 0.2, %v497_v37  ;;  %vm693_vm9 = vcmp.ge.f32.partialorder %v625_v38, 0.0 }
 0x125   :  { %1504 = vst [vmem:[%s1994_s3 + $0xe8] sm:$0xff] %v1464_v42   ;;  %v816_v48 = vsel %vm688_vm7, %v604_v34, %v752_v44  ;;  %v757_v49 = vmul.f32 0.2, %v625_v38  ;;  %v489_v50 = vadd.f32 %v1826_v40, %v488_v25  ;;  %v617_v52 = vadd.f32 %v1826_v40, %v616_v26 }
 0x126   :  { %1487 = vst [vmem:[%s1994_s3 + $0x60] sm:$0xff] %v1379_v46   ;;  %v1459_v51 = vpack.c.bf16 %v816_v48, %v815_v45  ;;  %v500_v53 = vadd.f32 %v1594_v39, %v1826_v40  ;;  %v628_v54 = vadd.f32 %v1626_v41, %v1826_v40  ;;  %v789_v57 = vsel %vm661_vm8, %v497_v37, %v725_v47 }
 0x127   :  { %v821_v58 = vsel %vm693_vm9, %v625_v38, %v757_v49  ;;  %v723_v60 = vmul.f32 0.2, %v489_v50  ;;  %v492_v62 = vadd.f32 %v1826_v40, %v491_v55  ;;  %v620_v63 = vadd.f32 %v1826_v40, %v619_v56 }
 0x128   :  { %1503 = vst [vmem:[%s1994_s3 + $0xe0] sm:$0xff] %v1459_v51   ;;  %vm662_vm10 = vcmp.ge.f32.partialorder %v500_v53, 0.0  ;;  %v726_v59 = vmul.f32 0.2, %v500_v53  ;;  %vm694_vm11 = vcmp.ge.f32.partialorder %v628_v54, 0.0  ;;  %vm659_vm12 = vcmp.ge.f32.partialorder %v489_v50, 0.0 }
 0x129   :  { %v758_v61 = vmul.f32 0.2, %v628_v54  ;;  %vm691_vm13 = vcmp.ge.f32.partialorder %v617_v52, 0.0  ;;  %v755_v0 = vmul.f32 0.2, %v617_v52  ;;  %vm660_vm14 = vcmp.ge.f32.partialorder %v492_v62, 0.0 }
 0x12a   :  { %v790_v1 = vsel %vm662_vm10, %v500_v53, %v726_v59  ;;  %v724_v4 = vmul.f32 0.2, %v492_v62  ;;  %vm692_vm15 = vcmp.ge.f32.partialorder %v620_v63, 0.0  ;;  %v756_v6 = vmul.f32 0.2, %v620_v63 }
 0x12b   :  { %v1394_v2 = vpack.c.bf16 %v790_v1, %v789_v57  ;;  %v822_v3 = vsel %vm694_vm11, %v628_v54, %v758_v61  ;;  %v787_v7 = vsel %vm659_vm12, %v489_v50, %v723_v60  ;;  %v819_v9 = vsel %vm691_vm13, %v617_v52, %v755_v0 }
 0x12c   :  { %v1474_v5 = vpack.c.bf16 %v822_v3, %v821_v58  ;;  %v788_v8 = vsel %vm660_vm14, %v492_v62, %v724_v4  ;;  %v820_v10 = vsel %vm692_vm15, %v620_v63, %v756_v6 }
 0x12d   :  { %1490 = vst [vmem:[%s1994_s3 + $0x78] sm:$0xff] %v1394_v2   ;;  %v1389_v40 = vpack.c.bf16 %v788_v8, %v787_v7  ;;  %v1469_v11 = vpack.c.bf16 %v820_v10, %v819_v9 }
 0x12e   :  { %1506 = vst [vmem:[%s1994_s3 + $0xf8] sm:$0xff] %v1474_v5  }
 0x12f   :  { %1489 = vst [vmem:[%s1994_s3 + $0x70] sm:$0xff] %v1389_v40   ;;  %1505 = vst [vmem:[%s1994_s3 + $0xf0] sm:$0xff] %v1469_v11  }

// kernel: discriminator_global.10
= control target key start
LH: loop header
LB: loop body
LE: loop exit
PB: predicated region body
PF: predicated region fallthrough
CT: control target
= control target key end

     0   :  { %s459_s6 = smov 0   ;;  %s461_s7 = smov 0   ;;  %s499_s0 = inlined_call_operand.vmem [shape: bf16[2,8,8,128], index: 0, kind: input, shape index: {}]   ;;  %s500_s1 = inlined_call_operand.vmem [shape: bf16[2,8,8,128], index: 1, kind: output, shape index: {}]  }
   0x1   :  { %s463_s8 = smov 0  }
   0x2 LB: > { %s23_s9 = sadd.s32 1, %s443_s7  ;;  %p348_p0 = scmp.ge.s32.totalorder %s447_s8, 1  ;;  %s447_s8 = sphi %s463_s8, %s11_s8   ;;  %s443_s7 = sphi %s461_s7, %s502_s7   ;;  %s439_s6 = sphi %s459_s6, %s501_s6  }
   0x3   : > { %p25_p1 = scmp.ge.s32.totalorder %s23_s9, 2  ;;  %p106_p2 = scmp.lt.s32.totalorder %s447_s8, 3 }
   0x5   : > { %s504_s9 = smov (%p25_p1, %s23_s9), 0  ;;  %p107_p3 = pnand %p348_p0, %p106_p2 }
   0x6   : > { %p132_p4 = scmp.lt.s32.totalorder (!%p107_p3), %s439_s6, 1 }
   0x7   : > { %110 = sbr.rel (%p107_p3) target bundleno = 81 (0x51), region = 24 }
   0xc   : > { %s506_s6 = smov (!%p132_p4, %s439_s6), 1 }
   0xd   : > { %s355_s10 = sshll.u32 %s506_s6, 5 }
   0xe   : > { %s139_s13 = scalar_lea.vmem %s499_s0, %s355_s10  ;;  %s147_s16 = scalar_lea.vmem %s500_s1, %s355_s10 }
   0xf   : > { %v358_v0 = vld [vmem:[%s139_s13] sm:$0xff]   ;;  %v393_v1 = vld [vmem:[%s139_s13 + $0x8] sm:$0xff]   ;;  %v394_v2 = vld [vmem:[%s139_s13 + $0x10] sm:$0xff]  }
  0x10   : > { %v359_v3 = vunpack.c.l.bf16 %v358_v0  ;;  %v360_v4 = vunpack.c.h.bf16 %v358_v0  ;;  %v363_v5 = vunpack.c.l.bf16 %v393_v1  ;;  %v364_v6 = vunpack.c.h.bf16 %v393_v1  ;;  %v395_v12 = vld [vmem:[%s139_s13 + $0x18] sm:$0xff]  }
  0x11   : > { %v367_v7 = vunpack.c.l.bf16 %v394_v2  ;;  %v368_v13 = vunpack.c.h.bf16 %v394_v2  ;;  %v371_v17 = vunpack.c.l.bf16 %v395_v12  ;;  %v372_v21 = vunpack.c.h.bf16 %v395_v12 }
  0x12   : > { %v164_v8 = vadd.f32 %v360_v4, %v359_v3  ;;  %v178_v9 = vmul.f32 %v359_v3, %v359_v3  ;;  %v179_v10 = vmul.f32 %v360_v4, %v360_v4  ;;  %v180_v11 = vmul.f32 %v363_v5, %v363_v5 }
  0x13   : > { %v181_v15 = vmul.f32 %v364_v6, %v364_v6  ;;  %v182_v19 = vmul.f32 %v367_v7, %v367_v7  ;;  %v183_v23 = vmul.f32 %v368_v13, %v368_v13  ;;  %v184_v26 = vmul.f32 %v371_v17, %v371_v17 }
  0x14   : > { %v165_v14 = vadd.f32 %v363_v5, %v164_v8  ;;  %v186_v16 = vadd.f32 %v179_v10, %v178_v9  ;;  %v185_v29 = vmul.f32 %v372_v21, %v372_v21 }
  0x16   : > { %v166_v18 = vadd.f32 %v364_v6, %v165_v14  ;;  %v187_v20 = vadd.f32 %v186_v16, %v180_v11 }
  0x18   : > { %v167_v22 = vadd.f32 %v367_v7, %v166_v18  ;;  %v188_v24 = vadd.f32 %v187_v20, %v181_v15 }
  0x1a   : > { %v168_v25 = vadd.f32 %v368_v13, %v167_v22  ;;  %v189_v27 = vadd.f32 %v188_v24, %v182_v19 }
  0x1c   : > { %v169_v28 = vadd.f32 %v371_v17, %v168_v25  ;;  %v190_v30 = vadd.f32 %v189_v27, %v183_v23 }
  0x1e   : > { %v170_v31 = vadd.f32 %v372_v21, %v169_v28  ;;  %v191_v32 = vadd.f32 %v190_v30, %v184_v26 }
  0x20   : > { %v171_v33 = vrot.slane %v170_v31, 4  ;;  %v192_v34 = vadd.f32 %v191_v32, %v185_v29 }
  0x22   : > { %v172_v35 = vadd.f32 %v171_v33, %v170_v31  ;;  %v193_v36 = vrot.slane %v192_v34, 4 }
  0x24   : > { %v173_v37 = vrot.slane %v172_v35, 2  ;;  %v194_v38 = vadd.f32 %v193_v36, %v192_v34 }
  0x26   : > { %v174_v39 = vadd.f32 %v173_v37, %v172_v35  ;;  %v195_v40 = vrot.slane %v194_v38, 2 }
  0x28   : > { %v175_v41 = vrot.slane %v174_v39, 1  ;;  %v196_v42 = vadd.f32 %v195_v40, %v194_v38 }
  0x2a   : > { %v176_v43 = vadd.f32 %v175_v41, %v174_v39  ;;  %v197_v44 = vrot.slane %v196_v42, 1 }
  0x2c   : > { %v177_v45 = vmul.f32 0.015625, %v176_v43  ;;  %v198_v46 = vadd.f32 %v197_v44, %v196_v42 }
  0x2e   : > { %v199_v47 = vmul.f32 0.015625, %v198_v46  ;;  %v200_v48 = vmul.f32 %v177_v45, %v177_v45  ;;  %v203_v52 = vsub.f32 %v359_v3, %v177_v45  ;;  %v204_v53 = vsub.f32 %v360_v4, %v177_v45 }
  0x2f   : > { %v205_v54 = vsub.f32 %v363_v5, %v177_v45  ;;  %v206_v55 = vsub.f32 %v364_v6, %v177_v45  ;;  %v207_v56 = vsub.f32 %v367_v7, %v177_v45  ;;  %v208_v57 = vsub.f32 %v368_v13, %v177_v45 }
  0x30   : > { %v201_v49 = vsub.f32 %v199_v47, %v200_v48  ;;  %v209_v58 = vsub.f32 %v371_v17, %v177_v45  ;;  %v210_v59 = vsub.f32 %v372_v21, %v177_v45 }
  0x32   : > { %v202_v50 = vmax.f32 %v201_v49, 0.0 }
  0x34   : > { %v211_v51 = vadd.f32 1e-05, %v202_v50 }
  0x36   : > { %423 = vrsqrt.f32 %v211_v51 }
  0x43   : > { %v424_v60 = vpop.eup %423 }
  0x44   : > { %v213_v61 = vmul.f32 %v424_v60, %v203_v52  ;;  %v214_v62 = vmul.f32 %v424_v60, %v204_v53  ;;  %v215_v63 = vmul.f32 %v424_v60, %v205_v54  ;;  %v216_v0 = vmul.f32 %v424_v60, %v206_v55 }
  0x45   : > { %v217_v1 = vmul.f32 %v424_v60, %v207_v56  ;;  %v218_v2 = vmul.f32 %v424_v60, %v208_v57  ;;  %v219_v8 = vmul.f32 %v424_v60, %v209_v58  ;;  %v220_v9 = vmul.f32 %v424_v60, %v210_v59 }
  0x46   : > { %vm221_vm0 = vcmp.ge.f32.partialorder %v213_v61, 0.0  ;;  %vm222_vm1 = vcmp.ge.f32.partialorder %v214_v62, 0.0  ;;  %v229_v3 = vmul.f32 0.2, %v213_v61  ;;  %v230_v4 = vmul.f32 0.2, %v214_v62 }
  0x47   : > { %vm223_vm2 = vcmp.ge.f32.partialorder %v215_v63, 0.0  ;;  %vm224_vm3 = vcmp.ge.f32.partialorder %v216_v0, 0.0  ;;  %v231_v5 = vmul.f32 0.2, %v215_v63  ;;  %v232_v6 = vmul.f32 0.2, %v216_v0 }
  0x48   : > { %v237_v7 = vsel %vm221_vm0, %v213_v61, %v229_v3  ;;  %v238_v10 = vsel %vm222_vm1, %v214_v62, %v230_v4  ;;  %vm225_vm4 = vcmp.ge.f32.partialorder %v217_v1, 0.0  ;;  %vm226_vm5 = vcmp.ge.f32.partialorder %v218_v2, 0.0 }
  0x49   : > { %v376_v11 = vpack.c.bf16 %v238_v10, %v237_v7  ;;  %v239_v12 = vsel %vm223_vm2, %v215_v63, %v231_v5  ;;  %v240_v13 = vsel %vm224_vm3, %v216_v0, %v232_v6  ;;  %v233_v14 = vmul.f32 0.2, %v217_v1 }
  0x4a   : > { %v381_v15 = vpack.c.bf16 %v240_v13, %v239_v12  ;;  %v234_v16 = vmul.f32 0.2, %v218_v2  ;;  %vm227_vm6 = vcmp.ge.f32.partialorder %v219_v8, 0.0  ;;  %vm228_vm7 = vcmp.ge.f32.partialorder %v220_v9, 0.0 }
  0x4b   : > { %377 = vst [vmem:[%s147_s16] sm:$0xff] %v376_v11   ;;  %v241_v17 = vsel %vm225_vm4, %v217_v1, %v233_v14  ;;  %v235_v18 = vmul.f32 0.2, %v219_v8  ;;  %v236_v19 = vmul.f32 0.2, %v220_v9 }
  0x4c   : > { %396 = vst [vmem:[%s147_s16 + $0x8] sm:$0xff] %v381_v15   ;;  %v242_v20 = vsel %vm226_vm5, %v218_v2, %v234_v16 }
  0x4d   : > { %v386_v21 = vpack.c.bf16 %v242_v20, %v241_v17  ;;  %v243_v22 = vsel %vm227_vm6, %v219_v8, %v235_v18  ;;  %v244_v23 = vsel %vm228_vm7, %v220_v9, %v236_v19 }
  0x4e   : > { %v391_v24 = vpack.c.bf16 %v244_v23, %v243_v22 }
  0x4f   : > { %397 = vst [vmem:[%s147_s16 + $0x10] sm:$0xff] %v386_v21  }
  0x50   : > { %398 = vst [vmem:[%s147_s16 + $0x18] sm:$0xff] %v391_v24  }
  0x51 PF: > { %s11_s8 = sadd.s32 1, %s447_s8   ;;  %s501_s6 = smov %s443_s7 }
  0x52   : > { %p8_p5 = scmp.ge.s32.totalorder %s11_s8, 4   ;;  %s502_s7 = smov %s504_s9 }
  0x54   :  { %10 = sbr.rel (!%p8_p5) target bundleno = 2 (0x2), region = 54 }

// kernel: discriminator_global.9
= control target key start
LH: loop header
LB: loop body
LE: loop exit
PB: predicated region body
PF: predicated region fallthrough
CT: control target
= control target key end

     0   :  { %s2487_s1 = inlined_call_operand.vmem [shape: bf16[1024,128], index: 1, kind: input, shape index: {}]   ;;  %s2488_s0 = inlined_call_operand.vmem [shape: bf16[128,1024], index: 0, kind: input, shape index: {}]   ;;  %s2489_s2 = inlined_call_operand.vmem [shape: f32[1,128], index: 2, kind: input, shape index: {}]   ;;  %s2490_s3 = inlined_call_operand.vmem [shape: bf16[128,128], index: 3, kind: output, shape index: {}]  }
   0x1   :  { %v1854_v0 = vld [vmem:[%s2487_s1 + $0x78] sm:$0xff]   ;;  %v1858_v4 = vld [vmem:[%s2487_s1 + $0x70] sm:$0xff]   ;;  %v1862_v8 = vld [vmem:[%s2487_s1 + $0x68] sm:$0xff]  }
   0x2   :  { %v1855_v1 = vld [vmem:[%s2487_s1 + $0xf8] sm:$0xff]   ;;  %1598 = vmatprep.subr.bf16.mxu0 %v1854_v0  ;;  %v1859_v5 = vld [vmem:[%s2487_s1 + $0xf0] sm:$0xff]   ;;  %v1863_v9 = vld [vmem:[%s2487_s1 + $0xe8] sm:$0xff]  }
   0x3   :  { %v1856_v2 = vld [vmem:[%s2487_s1 + $0x38] sm:$0xff]   ;;  %1662 = vmatprep.subr.bf16.mxu1 %v1855_v1  ;;  %v1860_v6 = vld [vmem:[%s2487_s1 + $0x30] sm:$0xff]   ;;  %v1864_v10 = vld [vmem:[%s2487_s1 + $0x28] sm:$0xff]  }
   0x4   :  { %v1857_v3 = vld [vmem:[%s2487_s1 + $0xb8] sm:$0xff]   ;;  %1599 = vmatpush3.bf16.msra.mxu0 %v1856_v2  ;;  %v1861_v7 = vld [vmem:[%s2487_s1 + $0xb0] sm:$0xff]   ;;  %v1865_v11 = vld [vmem:[%s2487_s1 + $0xa8] sm:$0xff]  }
   0x5   :  { %1663 = vmatpush3.bf16.msra.mxu1 %v1857_v3  ;;  %1600 = vmatprep.subr.bf16.mxu0 %v1858_v4  ;;  %v1866_v12 = vld [vmem:[%s2487_s1 + $0x60] sm:$0xff]   ;;  %v1870_v16 = vld [vmem:[%s2487_s1 + $0x58] sm:$0xff]   ;;  %v1874_v20 = vld [vmem:[%s2487_s1 + $0x50] sm:$0xff]  }
   0x6   :  { %1664 = vmatprep.subr.bf16.mxu1 %v1859_v5  ;;  %v1867_v13 = vld [vmem:[%s2487_s1 + $0xe0] sm:$0xff]   ;;  %v1871_v17 = vld [vmem:[%s2487_s1 + $0xd8] sm:$0xff]   ;;  %v1875_v21 = vld [vmem:[%s2487_s1 + $0xd0] sm:$0xff]  }
   0x7   :  { %v1868_v14 = vld [vmem:[%s2487_s1 + $0x20] sm:$0xff]   ;;  %v1872_v18 = vld [vmem:[%s2487_s1 + $0x18] sm:$0xff]   ;;  %v1876_v22 = vld [vmem:[%s2487_s1 + $0x10] sm:$0xff]  }
   0x8   :  { %1601 = vmatpush3.bf16.msra.mxu0 %v1860_v6  ;;  %v1869_v15 = vld [vmem:[%s2487_s1 + $0xa0] sm:$0xff]   ;;  %v1873_v19 = vld [vmem:[%s2487_s1 + $0x98] sm:$0xff]   ;;  %v1877_v23 = vld [vmem:[%s2487_s1 + $0x90] sm:$0xff]  }
   0x9   :  { %1665 = vmatpush3.bf16.msra.mxu1 %v1861_v7  ;;  %1602 = vmatprep.subr.bf16.mxu0 %v1862_v8  ;;  %v1878_v24 = vld [vmem:[%s2487_s1 + $0x48] sm:$0xff]   ;;  %v1882_v28 = vld [vmem:[%s2487_s1 + $0x40] sm:$0xff]   ;;  %v1886_v40 = vld [vmem:[%s2487_s1 + $0x178] sm:$0xff]  }
   0xa   :  { %1666 = vmatprep.subr.bf16.mxu1 %v1863_v9  ;;  %v1879_v25 = vld [vmem:[%s2487_s1 + $0xc8] sm:$0xff]   ;;  %v1883_v29 = vld [vmem:[%s2487_s1 + $0xc0] sm:$0xff]   ;;  %v1887_v41 = vld [vmem:[%s2487_s1 + $0x138] sm:$0xff]  }
   0xb   :  { %v1880_v26 = vld [vmem:[%s2487_s1 + $0x8] sm:$0xff]   ;;  %v1884_v30 = vld [vmem:[%s2487_s1] sm:$0xff]   ;;  %v1888_v42 = vld [vmem:[%s2487_s1 + $0x1f8] sm:$0xff]  }
   0xc   :  { %1603 = vmatpush3.bf16.msra.mxu0 %v1864_v10  ;;  %v1881_v27 = vld [vmem:[%s2487_s1 + $0x88] sm:$0xff]   ;;  %v1885_v31 = vld [vmem:[%s2487_s1 + $0x80] sm:$0xff]   ;;  %v1889_v43 = vld [vmem:[%s2487_s1 + $0x1b8] sm:$0xff]  }
   0xd   :  { %1667 = vmatpush3.bf16.msra.mxu1 %v1865_v11  ;;  %1604 = vmatprep.subr.bf16.mxu0 %v1866_v12  ;;  %v15_v32 = vld [vmem:[%s2488_s0] sm:$0xff]  ;;  %v16_v34 = vld [vmem:[%s2488_s0 + $0x8] sm:$0xff]  ;;  %v1890_v50 = vld [vmem:[%s2487_s1 + $0x170] sm:$0xff]  }
   0xe   :  { %1668 = vmatprep.subr.bf16.mxu1 %v1867_v13  ;;  %v19_v33 = vld [vmem:[%s2488_s0 + $0x20] sm:$0xff]  ;;  %v20_v37 = vld [vmem:[%s2488_s0 + $0x28] sm:$0xff]  ;;  %v1891_v52 = vld [vmem:[%s2487_s1 + $0x130] sm:$0xff]  }
   0xf   :  { %v1391_v35 = vcombine.low %v15_v32, %v19_v33  ;;  %v1392_v36 = vcombine.high %v15_v32, %v19_v33  ;;  %v1393_v38 = vcombine.low %v16_v34, %v20_v37  ;;  %v1394_v39 = vcombine.high %v16_v34, %v20_v37  ;;  %v23_v44 = vld [vmem:[%s2488_s0 + $0x40] sm:$0xff]  ;;  %v24_v47 = vld [vmem:[%s2488_s0 + $0x48] sm:$0xff]  ;;  %v1892_v54 = vld [vmem:[%s2487_s1 + $0x1f0] sm:$0xff]  }
  0x10   :  { %1605 = vmatpush3.bf16.msra.mxu0 %v1868_v14  ;;  %v27_v45 = vld [vmem:[%s2488_s0 + $0x60] sm:$0xff]  ;;  %v28_v48 = vld [vmem:[%s2488_s0 + $0x68] sm:$0xff]  ;;  %v1893_v55 = vld [vmem:[%s2487_s1 + $0x1b0] sm:$0xff]  }
  0x11   :  { %1669 = vmatpush3.bf16.msra.mxu1 %v1869_v15  ;;  %1606 = vmatprep.subr.bf16.mxu0 %v1870_v16  ;;  %v1400_v46 = vcombine.high %v23_v44, %v27_v45  ;;  %v1402_v49 = vcombine.high %v24_v47, %v28_v48  ;;  %v1399_v51 = vcombine.low %v23_v44, %v27_v45  ;;  %v31_v56 = vld [vmem:[%s2488_s0 + $0x80] sm:$0xff]  ;;  %v32_v58 = vld [vmem:[%s2488_s0 + $0x88] sm:$0xff]  ;;  %v1908_v32 = vld [vmem:[%s2487_s1 + $0x1d0] sm:$0xff]  }
  0x12   :  { %1670 = vmatprep.subr.bf16.mxu1 %v1871_v17  ;;  %950 = vmatprep.mubr.bf16.mxu0 %v1392_v36  ;;  %v1401_v53 = vcombine.low %v24_v47, %v28_v48  ;;  %v35_v57 = vld [vmem:[%s2488_s0 + $0xa0] sm:$0xff]  ;;  %v36_v59 = vld [vmem:[%s2488_s0 + $0xa8] sm:$0xff]  ;;  %v1909_v33 = vld [vmem:[%s2487_s1 + $0x190] sm:$0xff]  }
  0x13   :  { %1047 = vmatprep.mubr.bf16.mxu1 %v1394_v39  ;;  %v1408_v60 = vcombine.high %v31_v56, %v35_v57  ;;  %v1410_v61 = vcombine.high %v32_v58, %v36_v59  ;;  %v1894_v62 = vld [vmem:[%s2487_s1 + $0x168] sm:$0xff]   ;;  %v1407_v2 = vcombine.low %v31_v56, %v35_v57  ;;  %v39_v3 = vld [vmem:[%s2488_s0 + $0xc0] sm:$0xff]  ;;  %v1409_v6 = vcombine.low %v32_v58, %v36_v59 }
  0x14   :  { %1607 = vmatpush3.bf16.msra.mxu0 %v1872_v18  ;;  %v1895_v63 = vld [vmem:[%s2487_s1 + $0x128] sm:$0xff]   ;;  %v43_v4 = vld [vmem:[%s2488_s0 + $0xe0] sm:$0xff]  ;;  %v1902_v18 = vld [vmem:[%s2487_s1 + $0x158] sm:$0xff]  }
  0x15   :  { %1671 = vmatpush3.bf16.msra.mxu1 %v1873_v19  ;;  %1608 = vmatprep.subr.bf16.mxu0 %v1874_v20  ;;  %v1896_v0 = vld [vmem:[%s2487_s1 + $0x1e8] sm:$0xff]   ;;  %v1416_v7 = vcombine.high %v39_v3, %v43_v4  ;;  %v1898_v10 = vld [vmem:[%s2487_s1 + $0x160] sm:$0xff]   ;;  %v1415_v19 = vcombine.low %v39_v3, %v43_v4  ;;  %v1903_v20 = vld [vmem:[%s2487_s1 + $0x118] sm:$0xff]  }
  0x16   :  { %1672 = vmatprep.subr.bf16.mxu1 %v1875_v21  ;;  %v1897_v1 = vld [vmem:[%s2487_s1 + $0x1a8] sm:$0xff]   ;;  %v1899_v11 = vld [vmem:[%s2487_s1 + $0x120] sm:$0xff]  }
  0x17   :  { %v40_v5 = vld [vmem:[%s2488_s0 + $0xc8] sm:$0xff]  ;;  %v1900_v12 = vld [vmem:[%s2487_s1 + $0x1e0] sm:$0xff]  }
  0x18   :  { %1609 = vmatpush3.bf16.msra.mxu0 %v1876_v22  ;;  %v44_v8 = vld [vmem:[%s2488_s0 + $0xe8] sm:$0xff]  ;;  %v1901_v13 = vld [vmem:[%s2487_s1 + $0x1a0] sm:$0xff]  }
  0x19   :  { %1673 = vmatpush3.bf16.msra.mxu1 %v1877_v23  ;;  %1610 = vmatprep.subr.bf16.mxu0 %v1878_v24  ;;  %v1418_v9 = vcombine.high %v40_v5, %v44_v8  ;;  %v47_v14 = vld [vmem:[%s2488_s0 + $0x100] sm:$0xff]  ;;  %v48_v16 = vld [vmem:[%s2488_s0 + $0x108] sm:$0xff]  ;;  %v1417_v21 = vcombine.low %v40_v5, %v44_v8  ;;  %v1904_v23 = vld [vmem:[%s2487_s1 + $0x1d8] sm:$0xff]  }
  0x1a   :  { %1674 = vmatprep.subr.bf16.mxu1 %v1879_v25  ;;  %v51_v15 = vld [vmem:[%s2488_s0 + $0x120] sm:$0xff]  ;;  %v52_v17 = vld [vmem:[%s2488_s0 + $0x128] sm:$0xff]  ;;  %v1905_v25 = vld [vmem:[%s2487_s1 + $0x198] sm:$0xff]  }
  0x1b   :  { %v1424_v22 = vcombine.high %v47_v14, %v51_v15  ;;  %v1426_v24 = vcombine.high %v48_v16, %v52_v17  ;;  %v1423_v34 = vcombine.low %v47_v14, %v51_v15  ;;  %v1911_v39 = vld [vmem:[%s2487_s1 + $0x108] sm:$0xff]   ;;  %v1915_v48 = vld [vmem:[%s2487_s1 + $0x100] sm:$0xff]   ;;  %v26_v8 = vld [vmem:[%s2488_s0 + $0x58] sm:$0xff] }
  0x1c   :  { %1611 = vmatpush3.bf16.msra.mxu0 %v1880_v26  ;;  %v55_v26 = vld [vmem:[%s2488_s0 + $0x140] sm:$0xff]  ;;  %v64_v44 = vld [vmem:[%s2488_s0 + $0x188] sm:$0xff]  ;;  %v33_v14 = vld [vmem:[%s2488_s0 + $0x90] sm:$0xff] }
  0x1d   :  { %1675 = vmatpush3.bf16.msra.mxu1 %v1881_v27  ;;  %1612 = vmatprep.subr.bf16.mxu0 %v1882_v28  ;;  %v59_v27 = vld [vmem:[%s2488_s0 + $0x160] sm:$0xff]  ;;  %v1906_v28 = vld [vmem:[%s2487_s1 + $0x150] sm:$0xff]   ;;  %v68_v45 = vld [vmem:[%s2488_s0 + $0x1a8] sm:$0xff] }
  0x1e   :  { %1676 = vmatprep.subr.bf16.mxu1 %v1883_v29  ;;  %v56_v29 = vld [vmem:[%s2488_s0 + $0x148] sm:$0xff]  ;;  %v1432_v36 = vcombine.high %v55_v26, %v59_v27  ;;  %v1431_v47 = vcombine.low %v55_v26, %v59_v27  ;;  %v1441_v59 = vcombine.low %v64_v44, %v68_v45  ;;  %v37_v15 = vld [vmem:[%s2488_s0 + $0xb0] sm:$0xff] }
  0x1f   :  { %v72_v56 = vld [vmem:[%s2488_s0 + $0x1c8] sm:$0xff]  ;;  %v1411_v26 = vcombine.low %v33_v14, %v37_v15 }
  0x20   :  { %1613 = vmatpush3.bf16.msra.mxu0 %v1884_v30  ;;  %v60_v30 = vld [vmem:[%s2488_s0 + $0x168] sm:$0xff] }
  0x21   :  { %1677 = vmatpush3.bf16.msra.mxu1 %v1885_v31  ;;  %1726 = vmatprep.subr.bf16.mxu0 %v1886_v40  ;;  %v1907_v31 = vld [vmem:[%s2487_s1 + $0x110] sm:$0xff]   ;;  %v1434_v37 = vcombine.high %v56_v29, %v60_v30  ;;  %v1912_v40 = vld [vmem:[%s2487_s1 + $0x1c8] sm:$0xff]  }
  0x22   :  { %1790 = vmatprep.subr.bf16.mxu1 %v1888_v42  ;;  %v67_v42 = vld [vmem:[%s2488_s0 + $0x1a0] sm:$0xff]  ;;  %v76_v57 = vld [vmem:[%s2488_s0 + $0x1e8] sm:$0xff] }
  0x23   :  { %951 = vmatmul.mubr.bf16.vlgmr.msra.gmra.mxu0 %v1391_v35  ;;  %v1425_v35 = vcombine.low %v48_v16, %v52_v17  ;;  %v1449_v3 = vcombine.low %v72_v56, %v76_v57  ;;  %v34_v16 = vld [vmem:[%s2488_s0 + $0x98] sm:$0xff] }
  0x24   :  { %1048 = vmatmul.mubr.bf16.vlgmr.msra.gmra.mxu1 %v1393_v38  ;;  %1727 = vmatpush3.bf16.msra.mxu0 %v1887_v41  ;;  %v1910_v38 = vld [vmem:[%s2487_s1 + $0x148] sm:$0xff]   ;;  %v63_v41 = vld [vmem:[%s2488_s0 + $0x180] sm:$0xff]  ;;  %v38_v17 = vld [vmem:[%s2488_s0 + $0xb8] sm:$0xff] }
  0x25   :  { %1791 = vmatpush3.bf16.msra.mxu1 %v1889_v43  ;;  %958 = vmatprep.mubr.bf16.mxu0 %v1400_v46  ;;  %v1913_v43 = vld [vmem:[%s2487_s1 + $0x188] sm:$0xff]   ;;  %v1914_v46 = vld [vmem:[%s2487_s1 + $0x140] sm:$0xff]   ;;  %v1439_v58 = vcombine.low %v63_v41, %v67_v42  ;;  %v1413_v27 = vcombine.low %v34_v16, %v38_v17 }
  0x26   :  { %1055 = vmatprep.mubr.bf16.mxu1 %v1402_v49  ;;  %1728 = vmatprep.subr.bf16.mxu0 %v1890_v50  ;;  %v1433_v49 = vcombine.low %v56_v29, %v60_v30  ;;  %v1440_v50 = vcombine.high %v63_v41, %v67_v42  ;;  %v49_v30 = vld [vmem:[%s2488_s0 + $0x110] sm:$0xff]  ;;  %v62_v41 = vld [vmem:[%s2488_s0 + $0x178] sm:$0xff] }
  0x27   :  { %1792 = vmatprep.subr.bf16.mxu1 %v1892_v54  ;;  %v71_v54 = vld [vmem:[%s2488_s0 + $0x1c0] sm:$0xff] }
  0x28   :  { %1729 = vmatpush3.bf16.msra.mxu0 %v1891_v52  ;;  %v1442_v52 = vcombine.high %v64_v44, %v68_v45 }
  0x29   :  { %1793 = vmatpush3.bf16.msra.mxu1 %v1893_v55  ;;  %1730 = vmatprep.subr.bf16.mxu0 %v1894_v62  ;;  %v75_v55 = vld [vmem:[%s2488_s0 + $0x1e0] sm:$0xff]  ;;  %v17_v62 = vld [vmem:[%s2488_s0 + $0x10] sm:$0xff] }
  0x2a   :  { %1794 = vmatprep.subr.bf16.mxu1 %v1896_v0  ;;  %v18_v0 = vld [vmem:[%s2488_s0 + $0x18] sm:$0xff] }
  0x2b   :  { %959 = vmatmul.mubr.bf16.gmra.mxu0 %v1399_v51  ;;  %v1916_v51 = vld [vmem:[%s2487_s1 + $0x1c0] sm:$0xff]  }
  0x2c   :  { %1056 = vmatmul.mubr.bf16.gmra.mxu1 %v1401_v53  ;;  %966 = vmatprep.mubr.bf16.mxu0 %v1408_v60  ;;  %v1917_v53 = vld [vmem:[%s2487_s1 + $0x180] sm:$0xff]   ;;  %v1448_v60 = vcombine.high %v71_v54, %v75_v55 }
  0x2d   :  { %1063 = vmatprep.mubr.bf16.mxu1 %v1410_v61  ;;  %1731 = vmatpush3.bf16.msra.mxu0 %v1895_v63  ;;  %v1450_v61 = vcombine.high %v72_v56, %v76_v57  ;;  %v21_v63 = vld [vmem:[%s2488_s0 + $0x30] sm:$0xff]  ;;  %v74_v56 = vld [vmem:[%s2488_s0 + $0x1d8] sm:$0xff] }
  0x2e   :  { %1795 = vmatpush3.bf16.msra.mxu1 %v1897_v1  ;;  %1732 = vmatprep.subr.bf16.mxu0 %v1898_v10  ;;  %v22_v1 = vld [vmem:[%s2488_s0 + $0x38] sm:$0xff]  ;;  %v1396_v4 = vcombine.high %v17_v62, %v21_v63  ;;  %v1395_v10 = vcombine.low %v17_v62, %v21_v63 }
  0x2f   :  { %1796 = vmatprep.subr.bf16.mxu1 %v1900_v12  ;;  %v1398_v5 = vcombine.high %v18_v0, %v22_v1  ;;  %v78_v57 = vld [vmem:[%s2488_s0 + $0x1f8] sm:$0xff] }
  0x30   :  { %v1453_v63 = vcombine.low %v74_v56, %v78_v57 }
  0x31   :  { %1733 = vmatpush3.bf16.msra.mxu0 %v1899_v11  ;;  %v1397_v11 = vcombine.low %v18_v0, %v22_v1 }
  0x32   :  { %1797 = vmatpush3.bf16.msra.mxu1 %v1901_v13  ;;  %1734 = vmatprep.subr.bf16.mxu0 %v1902_v18 }
  0x33   :  { %967 = vmatmul.mubr.bf16.gmra.mxu0 %v1407_v2  ;;  %1798 = vmatprep.subr.bf16.mxu1 %v1904_v23  ;;  %v1447_v2 = vcombine.low %v71_v54, %v75_v55  ;;  %v45_v23 = vld [vmem:[%s2488_s0 + $0xf0] sm:$0xff] }
  0x34   :  { %1064 = vmatmul.mubr.bf16.gmra.mxu1 %v1409_v6  ;;  %974 = vmatprep.mubr.bf16.mxu0 %v1416_v7  ;;  %v25_v6 = vld [vmem:[%s2488_s0 + $0x50] sm:$0xff] }
  0x35   :  { %1071 = vmatprep.mubr.bf16.mxu1 %v1418_v9  ;;  %1735 = vmatpush3.bf16.msra.mxu0 %v1903_v20  ;;  %v29_v7 = vld [vmem:[%s2488_s0 + $0x70] sm:$0xff]  ;;  %v30_v9 = vld [vmem:[%s2488_s0 + $0x78] sm:$0xff]  ;;  %v1412_v20 = vcombine.high %v33_v14, %v37_v15 }
  0x36   :  { %1799 = vmatpush3.bf16.msra.mxu1 %v1905_v25  ;;  %1736 = vmatprep.subr.bf16.mxu0 %v1906_v28  ;;  %v1404_v12 = vcombine.high %v25_v6, %v29_v7  ;;  %v1406_v13 = vcombine.high %v26_v8, %v30_v9  ;;  %v1403_v18 = vcombine.low %v25_v6, %v29_v7  ;;  %v46_v25 = vld [vmem:[%s2488_s0 + $0xf8] sm:$0xff]  ;;  %v73_v54 = vld [vmem:[%s2488_s0 + $0x1d0] sm:$0xff] }
  0x37   :  { %1800 = vmatprep.subr.bf16.mxu1 %v1908_v32  ;;  %v50_v32 = vld [vmem:[%s2488_s0 + $0x118] sm:$0xff]  ;;  %v77_v55 = vld [vmem:[%s2488_s0 + $0x1f0] sm:$0xff] }
  0x38   :  { %v1451_v62 = vcombine.low %v73_v54, %v77_v55 }
  0x39   :  { %1737 = vmatpush3.bf16.msra.mxu0 %v1907_v31  ;;  %v53_v31 = vld [vmem:[%s2488_s0 + $0x130] sm:$0xff] }
  0x3a   :  { %1801 = vmatpush3.bf16.msra.mxu1 %v1909_v33  ;;  %1738 = vmatprep.subr.bf16.mxu0 %v1910_v38  ;;  %v54_v33 = vld [vmem:[%s2488_s0 + $0x138] sm:$0xff]  ;;  %v57_v38 = vld [vmem:[%s2488_s0 + $0x150] sm:$0xff]  ;;  %v1427_v42 = vcombine.low %v49_v30, %v53_v31 }
  0x3b   :  { %975 = vmatmul.mubr.bf16.gmra.mxu0 %v1415_v19  ;;  %1802 = vmatprep.subr.bf16.mxu1 %v1912_v40  ;;  %v1405_v19 = vcombine.low %v26_v8, %v30_v9  ;;  %v58_v40 = vld [vmem:[%s2488_s0 + $0x158] sm:$0xff] }
  0x3c   :  { %1072 = vmatmul.mubr.bf16.gmra.mxu1 %v1417_v21  ;;  %982 = vmatprep.mubr.bf16.mxu0 %v1424_v22  ;;  %v1414_v21 = vcombine.high %v34_v16, %v38_v17  ;;  %v41_v22 = vld [vmem:[%s2488_s0 + $0xd0] sm:$0xff]  ;;  %v1438_v45 = vcombine.high %v58_v40, %v62_v41 }
  0x3d   :  { %1079 = vmatprep.mubr.bf16.mxu1 %v1426_v24  ;;  %1739 = vmatpush3.bf16.msra.mxu0 %v1911_v39  ;;  %v42_v24 = vld [vmem:[%s2488_s0 + $0xd8] sm:$0xff]  ;;  %v1420_v28 = vcombine.high %v41_v22, %v45_v23  ;;  %v61_v39 = vld [vmem:[%s2488_s0 + $0x170] sm:$0xff] }
  0x3e   :  { %1803 = vmatpush3.bf16.msra.mxu1 %v1913_v43  ;;  %1740 = vmatprep.subr.bf16.mxu0 %v1914_v46  ;;  %v1422_v29 = vcombine.high %v42_v24, %v46_v25  ;;  %v1429_v43 = vcombine.low %v50_v32, %v54_v33  ;;  %v1436_v44 = vcombine.high %v57_v38, %v61_v39  ;;  %v65_v46 = vld [vmem:[%s2488_s0 + $0x190] sm:$0xff] }
  0x3f   :  { %1804 = vmatprep.subr.bf16.mxu1 %v1916_v51  ;;  %v1437_v51 = vcombine.low %v58_v40, %v62_v41 }
  0x41   :  { %1741 = vmatpush3.bf16.msra.mxu0 %v1915_v48  ;;  %v66_v48 = vld [vmem:[%s2488_s0 + $0x198] sm:$0xff] }
  0x42   :  { %1805 = vmatpush3.bf16.msra.mxu1 %v1917_v53 }
  0x43   :  { %983 = vmatmul.mubr.bf16.gmra.mxu0 %v1423_v34  ;;  %v1419_v34 = vcombine.low %v41_v22, %v45_v23 }
  0x44   :  { %1080 = vmatmul.mubr.bf16.gmra.mxu1 %v1425_v35  ;;  %990 = vmatprep.mubr.bf16.mxu0 %v1432_v36  ;;  %v1421_v35 = vcombine.low %v42_v24, %v46_v25  ;;  %v1428_v36 = vcombine.high %v49_v30, %v53_v31 }
  0x45   :  { %1087 = vmatprep.mubr.bf16.mxu1 %v1434_v37  ;;  %v1430_v37 = vcombine.high %v50_v32, %v54_v33 }
  0x4b   :  { %991 = vmatmul.mubr.bf16.gmra.mxu0 %v1431_v47  ;;  %v69_v47 = vld [vmem:[%s2488_s0 + $0x1b0] sm:$0xff] }
  0x4c   :  { %1088 = vmatmul.mubr.bf16.gmra.mxu1 %v1433_v49  ;;  %998 = vmatprep.mubr.bf16.mxu0 %v1440_v50  ;;  %v70_v49 = vld [vmem:[%s2488_s0 + $0x1b8] sm:$0xff]  ;;  %v1435_v50 = vcombine.low %v57_v38, %v61_v39 }
  0x4d   :  { %1095 = vmatprep.mubr.bf16.mxu1 %v1442_v52  ;;  %v1444_v52 = vcombine.high %v65_v46, %v69_v47  ;;  %v1446_v53 = vcombine.high %v66_v48, %v70_v49 }
  0x53   :  { %999 = vmatmul.mubr.bf16.gmra.mxu0 %v1439_v58  ;;  %v1443_v58 = vcombine.low %v65_v46, %v69_v47 }
  0x54   :  { %1096 = vmatmul.mubr.bf16.gmra.mxu1 %v1441_v59  ;;  %1006 = vmatprep.mubr.bf16.mxu0 %v1448_v60  ;;  %v1445_v59 = vcombine.low %v66_v48, %v70_v49  ;;  %v1452_v60 = vcombine.high %v73_v54, %v77_v55 }
  0x55   :  { %1103 = vmatprep.mubr.bf16.mxu1 %v1450_v61  ;;  %v1454_v61 = vcombine.high %v74_v56, %v78_v57 }
  0x5b   :  { %1007 = vmatmul.mubr.bf16.gmra.mxu0 %v1447_v2  ;;  %v2325_v2 = vld [vmem:[%s2489_s2] ss:$0 sm:$0xff] }
  0x5c   :  { %1104 = vmatmul.mubr.bf16.gmra.mxu1 %v1449_v3  ;;  %1144 = vmatprep.mubr.bf16.mxu0 %v1396_v4 }
  0x5d   :  { %1241 = vmatprep.mubr.bf16.mxu1 %v1398_v5 }
  0x63   :  { %1145 = vmatmul.mubr.bf16.vlgmr.msra.gmra.mxu0 %v1395_v10 }
  0x64   :  { %1242 = vmatmul.mubr.bf16.vlgmr.msra.gmra.mxu1 %v1397_v11  ;;  %1152 = vmatprep.mubr.bf16.mxu0 %v1404_v12 }
  0x65   :  { %1249 = vmatprep.mubr.bf16.mxu1 %v1406_v13 }
  0x6b   :  { %1153 = vmatmul.mubr.bf16.gmra.mxu0 %v1403_v18 }
  0x6c   :  { %1250 = vmatmul.mubr.bf16.gmra.mxu1 %v1405_v19  ;;  %1160 = vmatprep.mubr.bf16.mxu0 %v1412_v20 }
  0x6d   :  { %1257 = vmatprep.mubr.bf16.mxu1 %v1414_v21 }
  0x73   :  { %1161 = vmatmul.mubr.bf16.gmra.mxu0 %v1411_v26 }
  0x74   :  { %1258 = vmatmul.mubr.bf16.gmra.mxu1 %v1413_v27  ;;  %1168 = vmatprep.mubr.bf16.mxu0 %v1420_v28 }
  0x75   :  { %1265 = vmatprep.mubr.bf16.mxu1 %v1422_v29 }
  0x7b   :  { %1169 = vmatmul.mubr.bf16.gmra.mxu0 %v1419_v34 }
  0x7c   :  { %1266 = vmatmul.mubr.bf16.gmra.mxu1 %v1421_v35  ;;  %1176 = vmatprep.mubr.bf16.mxu0 %v1428_v36 }
  0x7d   :  { %1273 = vmatprep.mubr.bf16.mxu1 %v1430_v37 }
  0x83   :  { %1177 = vmatmul.mubr.bf16.gmra.mxu0 %v1427_v42 }
  0x84   :  { %1274 = vmatmul.mubr.bf16.gmra.mxu1 %v1429_v43  ;;  %1184 = vmatprep.mubr.bf16.mxu0 %v1436_v44 }
  0x85   :  { %1281 = vmatprep.mubr.bf16.mxu1 %v1438_v45 }
  0x8b   :  { %1185 = vmatmul.mubr.bf16.gmra.mxu0 %v1435_v50 }
  0x8c   :  { %1282 = vmatmul.mubr.bf16.gmra.mxu1 %v1437_v51  ;;  %1192 = vmatprep.mubr.bf16.mxu0 %v1444_v52 }
  0x8d   :  { %1289 = vmatprep.mubr.bf16.mxu1 %v1446_v53 }
  0x93   :  { %1193 = vmatmul.mubr.bf16.gmra.mxu0 %v1443_v58 }
  0x94   :  { %1290 = vmatmul.mubr.bf16.gmra.mxu1 %v1445_v59  ;;  %1200 = vmatprep.mubr.bf16.mxu0 %v1452_v60 }
  0x95   :  { %1297 = vmatprep.mubr.bf16.mxu1 %v1454_v61 }
  0x9b   :  { %1201 = vmatmul.mubr.bf16.gmra.mxu0 %v1451_v62 }
  0x9c   :  { %1298 = vmatmul.mubr.bf16.gmra.mxu1 %v1453_v63 }
  0xe3   :  { %v1614_v0 = vpop.f32.mrf.mxu0 }
  0xe4   :  { %v1678_v1 = vpop.f32.mrf.mxu1 }
  0xe5   :  { %v1615_v3 = vpop.f32.mrf.mxu0 }
  0xe6   :  { %v1616_v4 = vadd.f32 %v1615_v3, %v1614_v0  ;;  %v1679_v5 = vpop.f32.mrf.mxu1 }
  0xe7   :  { %v1680_v6 = vadd.f32 %v1679_v5, %v1678_v1  ;;  %v2327_v7 = vpop.f32.mrf.mxu0 }
  0xe8   :  { %v953_v8 = vadd.f32 %v1616_v4, %v2325_v2  ;;  %v2330_v9 = vpop.f32.mrf.mxu1 }
  0xe9   :  { %v2332_v10 = vpop.f32.mrf.mxu0 }
  0xea   :  { %v2334_v11 = vadd.f32 %v1680_v6, %v953_v8  ;;  %v2336_v12 = vpop.f32.mrf.mxu1 }
  0xeb   :  { %v1620_v13 = vpop.f32.mrf.mxu0 }
  0xec   :  { %v1684_v14 = vpop.f32.mrf.mxu1 }
  0xed   :  { %v1621_v15 = vpop.f32.mrf.mxu0 }
  0xee   :  { %v1622_v16 = vadd.f32 %v1621_v15, %v1620_v13  ;;  %v1685_v17 = vpop.f32.mrf.mxu1 }
  0xef   :  { %v1686_v18 = vadd.f32 %v1685_v17, %v1684_v14  ;;  %v2338_v19 = vpop.f32.mrf.mxu0 }
  0xf0   :  { %v961_v20 = vadd.f32 %v1622_v16, %v2325_v2  ;;  %v2341_v21 = vpop.f32.mrf.mxu1 }
  0xf1   :  { %v2343_v22 = vpop.f32.mrf.mxu0 }
  0xf2   :  { %v2345_v23 = vadd.f32 %v1686_v18, %v961_v20  ;;  %v2347_v24 = vpop.f32.mrf.mxu1 }
  0xf3   :  { %v1626_v25 = vpop.f32.mrf.mxu0 }
  0xf4   :  { %v1690_v26 = vpop.f32.mrf.mxu1 }
  0xf5   :  { %v1627_v27 = vpop.f32.mrf.mxu0 }
  0xf6   :  { %v1628_v28 = vadd.f32 %v1627_v27, %v1626_v25  ;;  %v1691_v29 = vpop.f32.mrf.mxu1 }
  0xf7   :  { %v1692_v30 = vadd.f32 %v1691_v29, %v1690_v26  ;;  %v2349_v31 = vpop.f32.mrf.mxu0 }
  0xf8   :  { %v969_v32 = vadd.f32 %v1628_v28, %v2325_v2  ;;  %v2352_v33 = vpop.f32.mrf.mxu1 }
  0xf9   :  { %v2354_v34 = vpop.f32.mrf.mxu0 }
  0xfa   :  { %v2356_v35 = vadd.f32 %v1692_v30, %v969_v32  ;;  %v2358_v36 = vpop.f32.mrf.mxu1 }
  0xfb   :  { %v1632_v37 = vpop.f32.mrf.mxu0 }
  0xfc   :  { %v1696_v38 = vpop.f32.mrf.mxu1 }
  0xfd   :  { %v1633_v39 = vpop.f32.mrf.mxu0 }
  0xfe   :  { %v1634_v40 = vadd.f32 %v1633_v39, %v1632_v37  ;;  %v1697_v41 = vpop.f32.mrf.mxu1 }
  0xff   :  { %v1698_v42 = vadd.f32 %v1697_v41, %v1696_v38  ;;  %v2360_v43 = vpop.f32.mrf.mxu0 }
 0x100   :  { %v977_v44 = vadd.f32 %v1634_v40, %v2325_v2  ;;  %v2363_v45 = vpop.f32.mrf.mxu1 }
 0x101   :  { %v2365_v46 = vpop.f32.mrf.mxu0 }
 0x102   :  { %v2367_v47 = vadd.f32 %v1698_v42, %v977_v44  ;;  %v2369_v48 = vpop.f32.mrf.mxu1 }
 0x103   :  { %v1638_v49 = vpop.f32.mrf.mxu0 }
 0x104   :  { %v1702_v50 = vpop.f32.mrf.mxu1 }
 0x105   :  { %v1639_v51 = vpop.f32.mrf.mxu0 }
 0x106   :  { %v1640_v52 = vadd.f32 %v1639_v51, %v1638_v49  ;;  %v1703_v53 = vpop.f32.mrf.mxu1 }
 0x107   :  { %v1704_v54 = vadd.f32 %v1703_v53, %v1702_v50  ;;  %v2371_v55 = vpop.f32.mrf.mxu0 }
 0x108   :  { %v985_v56 = vadd.f32 %v1640_v52, %v2325_v2  ;;  %v2374_v57 = vpop.f32.mrf.mxu1  ;;  %v1619_v52 = vadd.f32 %v2332_v10, %v2327_v7  ;;  %v1625_v7 = vadd.f32 %v2343_v22, %v2338_v19  ;;  %v1689_v19 = vadd.f32 %v2347_v24, %v2341_v21 }
 0x109   :  { %v2376_v58 = vpop.f32.mrf.mxu0 }
 0x10a   :  { %v2378_v59 = vadd.f32 %v1704_v54, %v985_v56  ;;  %v2380_v60 = vpop.f32.mrf.mxu1 }
 0x10b   :  { %v1644_v61 = vpop.f32.mrf.mxu0 }
 0x10c   :  { %v1708_v62 = vpop.f32.mrf.mxu1 }
 0x10d   :  { %v1645_v63 = vpop.f32.mrf.mxu0 }
 0x10e   :  { %v1646_v0 = vadd.f32 %v1645_v63, %v1644_v61  ;;  %v1709_v1 = vpop.f32.mrf.mxu1  ;;  %v956_v63 = vadd.f32 %v1619_v52, %v2325_v2 }
 0x10f   :  { %v1710_v3 = vadd.f32 %v1709_v1, %v1708_v62  ;;  %v2382_v4 = vpop.f32.mrf.mxu0 }
 0x110   :  { %v993_v5 = vadd.f32 %v1646_v0, %v2325_v2  ;;  %v2385_v6 = vpop.f32.mrf.mxu1 }
 0x111   :  { %v2387_v8 = vpop.f32.mrf.mxu0 }
 0x112   :  { %v2389_v13 = vadd.f32 %v1710_v3, %v993_v5  ;;  %v2391_v14 = vpop.f32.mrf.mxu1  ;;  %v1683_v5 = vadd.f32 %v2336_v12, %v2330_v9 }
 0x113   :  { %v1650_v15 = vpop.f32.mrf.mxu0 }
 0x114   :  { %v1714_v16 = vpop.f32.mrf.mxu1 }
 0x115   :  { %v1651_v17 = vpop.f32.mrf.mxu0 }
 0x116   :  { %v1652_v18 = vadd.f32 %v1651_v17, %v1650_v15  ;;  %v1715_v20 = vpop.f32.mrf.mxu1  ;;  %v1053_v17 = vadd.f32 %v1683_v5, %v956_v63 }
 0x117   :  { %v1716_v25 = vadd.f32 %v1715_v20, %v1714_v16  ;;  %v2393_v26 = vpop.f32.mrf.mxu0 }
 0x118   :  { %v1001_v27 = vadd.f32 %v1652_v18, %v2325_v2  ;;  %v2396_v28 = vpop.f32.mrf.mxu1 }
 0x119   :  { %v2398_v29 = vpop.f32.mrf.mxu0 }
 0x11a   :  { %v2400_v30 = vadd.f32 %v1716_v25, %v1001_v27  ;;  %v2402_v32 = vpop.f32.mrf.mxu1 }
 0x11b   :  { %v1656_v37 = vpop.f32.mrf.mxu0 }
 0x11c   :  { %v1720_v38 = vpop.f32.mrf.mxu1 }
 0x11d   :  { %v1657_v39 = vpop.f32.mrf.mxu0 }
 0x11e   :  { %v1658_v40 = vadd.f32 %v1657_v39, %v1656_v37  ;;  %v1721_v41 = vpop.f32.mrf.mxu1 }
 0x11f   :  { %v1722_v42 = vadd.f32 %v1721_v41, %v1720_v38  ;;  %v2404_v44 = vpop.f32.mrf.mxu0  ;;  %v964_v41 = vadd.f32 %v1625_v7, %v2325_v2 }
 0x120   :  { %v1009_v49 = vadd.f32 %v1658_v40, %v2325_v2  ;;  %v2407_v50 = vpop.f32.mrf.mxu1 }
 0x121   :  { %v2409_v51 = vpop.f32.mrf.mxu0 }
 0x122   :  { %v2413_v53 = vadd.f32 %v1722_v42, %v1009_v49  ;;  %v2415_v54 = vpop.f32.mrf.mxu1 }
 0x123   :  { %v1742_v56 = vpop.f32.mrf.mxu0 }
 0x124   :  { %v1806_v61 = vpop.f32.mrf.mxu1 }
 0x125   :  { %v1743_v62 = vpop.f32.mrf.mxu0 }
 0x126   :  { %v1744_v0 = vadd.f32 %v1743_v62, %v1742_v56  ;;  %v1807_v1 = vpop.f32.mrf.mxu1  ;;  %v1061_v62 = vadd.f32 %v1689_v19, %v964_v41 }
 0x127   :  { %v1745_v3 = vpop.f32.mrf.mxu0  ;;  %v1808_v27 = vadd.f32 %v1807_v1, %v1806_v61  ;;  %v1631_v61 = vadd.f32 %v2354_v34, %v2349_v31 }
 0x128   :  { %v1809_v15 = vpop.f32.mrf.mxu1  ;;  %v1147_v10 = vadd.f32 %v1744_v0, %v2334_v11 }
 0x129   :  { %v1746_v16 = vpop.f32.mrf.mxu0 }
 0x12a   :  { %v1747_v18 = vadd.f32 %v1746_v16, %v1745_v3  ;;  %v1810_v20 = vpop.f32.mrf.mxu1  ;;  %v1244_v42 = vadd.f32 %v1808_v27, %v1147_v10 }
 0x12b   :  { %v1748_v25 = vpop.f32.mrf.mxu0  ;;  %v1811_v38 = vadd.f32 %v1810_v20, %v1809_v15  ;;  %v1695_v20 = vadd.f32 %v2358_v36, %v2352_v33 }
 0x12c   :  { %v1150_v37 = vadd.f32 %v1747_v18, %v1053_v17  ;;  %v1812_v39 = vpop.f32.mrf.mxu1  ;;  %v972_v17 = vadd.f32 %v1631_v61, %v2325_v2 }
 0x12d   :  { %v1749_v40 = vpop.f32.mrf.mxu0 }
 0x12e   :  { %v1247_v9 = vadd.f32 %v1811_v38, %v1150_v37  ;;  %v1750_v12 = vadd.f32 %v1749_v40, %v1748_v25  ;;  %v1813_v49 = vpop.f32.mrf.mxu1  ;;  %v1069_v37 = vadd.f32 %v1695_v20, %v972_v17  ;;  %v1637_v38 = vadd.f32 %v2365_v46, %v2360_v43 }
 0x12f   :  { %v1751_v52 = vpop.f32.mrf.mxu0  ;;  %v1814_v5 = vadd.f32 %v1813_v49, %v1812_v39 }
 0x130   :  { %v1554_v22 = vpack.c.bf16 %v1247_v9, %v1244_v42  ;;  %v1815_v11 = vpop.f32.mrf.mxu1  ;;  %v1155_v63 = vadd.f32 %v1750_v12, %v2345_v23 }
 0x131   :  { %v1752_v56 = vpop.f32.mrf.mxu0 }
 0x132   :  { %1555 = vst [vmem:[%s2490_s3] sm:$0xff] %v1554_v22   ;;  %v1753_v0 = vadd.f32 %v1752_v56, %v1751_v52  ;;  %v1816_v1 = vpop.f32.mrf.mxu1  ;;  %v1252_v7 = vadd.f32 %v1814_v5, %v1155_v63  ;;  %v980_v52 = vadd.f32 %v1637_v38, %v2325_v2  ;;  %v1701_v56 = vadd.f32 %v2369_v48, %v2363_v45 }
 0x133   :  { %v1754_v3 = vpop.f32.mrf.mxu0  ;;  %v1817_v16 = vadd.f32 %v1816_v1, %v1815_v11 }
 0x134   :  { %v1158_v15 = vadd.f32 %v1753_v0, %v1061_v62  ;;  %v1818_v21 = vpop.f32.mrf.mxu1  ;;  %v1077_v63 = vadd.f32 %v1701_v56, %v980_v52  ;;  %v1643_v0 = vadd.f32 %v2376_v58, %v2371_v55 }
 0x135   :  { %v1755_v24 = vpop.f32.mrf.mxu0 }
 0x136   :  { %v1255_v10 = vadd.f32 %v1817_v16, %v1158_v15  ;;  %v1756_v18 = vadd.f32 %v1755_v24, %v1754_v3  ;;  %v1819_v31 = vpop.f32.mrf.mxu1  ;;  %v988_v17 = vadd.f32 %v1643_v0, %v2325_v2 }
 0x137   :  { %v1757_v34 = vpop.f32.mrf.mxu0  ;;  %v1820_v9 = vadd.f32 %v1819_v31, %v1818_v21  ;;  %v1707_v31 = vadd.f32 %v2380_v60, %v2374_v57 }
 0x138   :  { %v1559_v25 = vpack.c.bf16 %v1255_v10, %v1252_v7  ;;  %v1821_v23 = vpop.f32.mrf.mxu1  ;;  %v1163_v39 = vadd.f32 %v1756_v18, %v2356_v35 }
 0x139   :  { %v1758_v27 = vpop.f32.mrf.mxu0 }
 0x13a   :  { %1591 = vst [vmem:[%s2490_s3 + $0x8] sm:$0xff] %v1559_v25   ;;  %v1759_v40 = vadd.f32 %v1758_v27, %v1757_v34  ;;  %v1822_v41 = vpop.f32.mrf.mxu1  ;;  %v1260_v19 = vadd.f32 %v1820_v9, %v1163_v39  ;;  %v1085_v25 = vadd.f32 %v1707_v31, %v988_v17 }
 0x13b   :  { %v1760_v42 = vpop.f32.mrf.mxu0  ;;  %v1823_v49 = vadd.f32 %v1822_v41, %v1821_v23  ;;  %v1649_v23 = vadd.f32 %v2387_v8, %v2382_v4 }
 0x13c   :  { %v1166_v12 = vadd.f32 %v1759_v40, %v1069_v37  ;;  %v1824_v33 = vpop.f32.mrf.mxu1 }
 0x13d   :  { %v1761_v36 = vpop.f32.mrf.mxu0  ;;  %v996_v9 = vadd.f32 %v1649_v23, %v2325_v2 }
 0x13e   :  { %v1263_v22 = vadd.f32 %v1823_v49, %v1166_v12  ;;  %v1762_v11 = vadd.f32 %v1761_v36, %v1760_v42  ;;  %v1825_v43 = vpop.f32.mrf.mxu1  ;;  %v1713_v36 = vadd.f32 %v2391_v14, %v2385_v6 }
 0x13f   :  { %v1763_v46 = vpop.f32.mrf.mxu0  ;;  %v1826_v16 = vadd.f32 %v1825_v43, %v1824_v33 }
 0x140   :  { %v1564_v62 = vpack.c.bf16 %v1263_v22, %v1260_v19  ;;  %v1827_v35 = vpop.f32.mrf.mxu1  ;;  %v1171_v1 = vadd.f32 %v1762_v11, %v2367_v47  ;;  %v1093_v22 = vadd.f32 %v1713_v36, %v996_v9  ;;  %v1655_v11 = vadd.f32 %v2398_v29, %v2393_v26 }
 0x141   :  { %v1764_v61 = vpop.f32.mrf.mxu0 }
 0x142   :  { %1592 = vst [vmem:[%s2490_s3 + $0x10] sm:$0xff] %v1564_v62   ;;  %v1765_v3 = vadd.f32 %v1764_v61, %v1763_v46  ;;  %v1828_v5 = vpop.f32.mrf.mxu1  ;;  %v1268_v7 = vadd.f32 %v1826_v16, %v1171_v1  ;;  %v1004_v0 = vadd.f32 %v1655_v11, %v2325_v2 }
 0x143   :  { %v1766_v15 = vpop.f32.mrf.mxu0  ;;  %v1829_v24 = vadd.f32 %v1828_v5, %v1827_v35 }
 0x144   :  { %v1174_v21 = vadd.f32 %v1765_v3, %v1077_v63  ;;  %v1830_v45 = vpop.f32.mrf.mxu1 }
 0x145   :  { %v1767_v48 = vpop.f32.mrf.mxu0 }
 0x146   :  { %v1271_v10 = vadd.f32 %v1829_v24, %v1174_v21  ;;  %v1768_v18 = vadd.f32 %v1767_v48, %v1766_v15  ;;  %v1831_v55 = vpop.f32.mrf.mxu1  ;;  %v1719_v15 = vadd.f32 %v2402_v32, %v2396_v28 }
 0x147   :  { %v1769_v58 = vpop.f32.mrf.mxu0  ;;  %v1832_v40 = vadd.f32 %v1831_v55, %v1830_v45  ;;  %v1661_v45 = vadd.f32 %v2409_v51, %v2404_v44 }
 0x148   :  { %v1569_v34 = vpack.c.bf16 %v1271_v10, %v1268_v7  ;;  %v1833_v47 = vpop.f32.mrf.mxu1  ;;  %v1179_v27 = vadd.f32 %v1768_v18, %v2378_v59  ;;  %v1101_v24 = vadd.f32 %v1719_v15, %v1004_v0 }
 0x149   :  { %v1770_v20 = vpop.f32.mrf.mxu0  ;;  %v1012_v31 = vadd.f32 %v1661_v45, %v2325_v2 }
 0x14a   :  { %1593 = vst [vmem:[%s2490_s3 + $0x18] sm:$0xff] %v1569_v34   ;;  %v1771_v37 = vadd.f32 %v1770_v20, %v1769_v58  ;;  %v1834_v38 = vpop.f32.mrf.mxu1  ;;  %v1276_v12 = vadd.f32 %v1832_v40, %v1179_v27 }
 0x14b   :  { %v1772_v39 = vpop.f32.mrf.mxu0  ;;  %v1835_v42 = vadd.f32 %v1834_v38, %v1833_v47 }
 0x14c   :  { %v1182_v41 = vadd.f32 %v1771_v37, %v1085_v25  ;;  %v1836_v57 = vpop.f32.mrf.mxu1  ;;  %v1725_v25 = vadd.f32 %v2415_v54, %v2407_v50 }
 0x14d   :  { %v1773_v60 = vpop.f32.mrf.mxu0 }
 0x14e   :  { %v1279_v49 = vadd.f32 %v1835_v42, %v1182_v41  ;;  %v1774_v33 = vadd.f32 %v1773_v60, %v1772_v39  ;;  %v1837_v4 = vpop.f32.mrf.mxu1  ;;  %v1109_v37 = vadd.f32 %v1725_v25, %v1012_v31 }
 0x14f   :  { %v1775_v8 = vpop.f32.mrf.mxu0  ;;  %v1838_v35 = vadd.f32 %v1837_v4, %v1836_v57 }
 0x150   :  { %v1574_v52 = vpack.c.bf16 %v1279_v49, %v1276_v12  ;;  %v1839_v59 = vpop.f32.mrf.mxu1  ;;  %v1187_v43 = vadd.f32 %v1774_v33, %v2389_v13 }
 0x151   :  { %v1776_v19 = vpop.f32.mrf.mxu0 }
 0x152   :  { %1594 = vst [vmem:[%s2490_s3 + $0x20] sm:$0xff] %v1574_v52   ;;  %v1777_v46 = vadd.f32 %v1776_v19, %v1775_v8  ;;  %v1840_v56 = vpop.f32.mrf.mxu1  ;;  %v1284_v1 = vadd.f32 %v1838_v35, %v1187_v43 }
 0x153   :  { %v1778_v62 = vpop.f32.mrf.mxu0  ;;  %v1841_v63 = vadd.f32 %v1840_v56, %v1839_v59 }
 0x154   :  { %v1190_v61 = vadd.f32 %v1777_v46, %v1093_v22  ;;  %v1842_v6 = vpop.f32.mrf.mxu1 }
 0x155   :  { %v1779_v14 = vpop.f32.mrf.mxu0 }
 0x156   :  { %v1287_v3 = vadd.f32 %v1841_v63, %v1190_v61  ;;  %v1780_v5 = vadd.f32 %v1779_v14, %v1778_v62  ;;  %v1843_v26 = vpop.f32.mrf.mxu1 }
 0x157   :  { %v1781_v29 = vpop.f32.mrf.mxu0  ;;  %v1844_v18 = vadd.f32 %v1843_v26, %v1842_v6 }
 0x158   :  { %v1579_v16 = vpack.c.bf16 %v1287_v3, %v1284_v1  ;;  %v1845_v13 = vpop.f32.mrf.mxu1  ;;  %v1195_v48 = vadd.f32 %v1780_v5, %v2400_v30 }
 0x159   :  { %v1782_v21 = vpop.f32.mrf.mxu0 }
 0x15a   :  { %1595 = vst [vmem:[%s2490_s3 + $0x28] sm:$0xff] %v1579_v16   ;;  %v1783_v17 = vadd.f32 %v1782_v21, %v1781_v29  ;;  %v1846_v7 = vpop.f32.mrf.mxu1  ;;  %v1292_v34 = vadd.f32 %v1844_v18, %v1195_v48 }
 0x15b   :  { %v1784_v10 = vpop.f32.mrf.mxu0  ;;  %v1847_v58 = vadd.f32 %v1846_v7, %v1845_v13 }
 0x15c   :  { %v1198_v55 = vadd.f32 %v1783_v17, %v1101_v24  ;;  %v1848_v28 = vpop.f32.mrf.mxu1 }
 0x15d   :  { %v1785_v32 = vpop.f32.mrf.mxu0 }
 0x15e   :  { %v1295_v47 = vadd.f32 %v1847_v58, %v1198_v55  ;;  %v1786_v20 = vadd.f32 %v1785_v32, %v1784_v10  ;;  %v1849_v44 = vpop.f32.mrf.mxu1 }
 0x15f   :  { %v1787_v51 = vpop.f32.mrf.mxu0  ;;  %v1850_v40 = vadd.f32 %v1849_v44, %v1848_v28 }
 0x160   :  { %v1584_v23 = vpack.c.bf16 %v1295_v47, %v1292_v34  ;;  %v1851_v30 = vpop.f32.mrf.mxu1  ;;  %v1203_v38 = vadd.f32 %v1786_v20, %v2413_v53 }
 0x161   :  { %v1788_v27 = vpop.f32.mrf.mxu0 }
 0x162   :  { %1596 = vst [vmem:[%s2490_s3 + $0x30] sm:$0xff] %v1584_v23   ;;  %v1789_v39 = vadd.f32 %v1788_v27, %v1787_v51  ;;  %v1852_v2 = vpop.f32.mrf.mxu1  ;;  %v1300_v57 = vadd.f32 %v1850_v40, %v1203_v38 }
 0x163   :  { %v1853_v42 = vadd.f32 %v1852_v2, %v1851_v30 }
 0x164   :  { %v1206_v41 = vadd.f32 %v1789_v39, %v1109_v37 }
 0x166   :  { %v1303_v60 = vadd.f32 %v1853_v42, %v1206_v41 }
 0x168   :  { %v1589_v9 = vpack.c.bf16 %v1303_v60, %v1300_v57 }
 0x16a   :  { %1597 = vst [vmem:[%s2490_s3 + $0x38] sm:$0xff] %v1589_v9  }

// kernel: discriminator_global.12
= control target key start
LH: loop header
LB: loop body
LE: loop exit
PB: predicated region body
PF: predicated region fallthrough
CT: control target
= control target key end

     0   :  { %s542_s6 = smov 0   ;;  %s544_s7 = smov 0   ;;  %s642_s0 = inlined_call_operand.vmem [shape: bf16[2,4,4,256], index: 0, kind: input, shape index: {}]   ;;  %s643_s1 = inlined_call_operand.vmem [shape: bf16[2,4,4,256], index: 1, kind: output, shape index: {}]  }
   0x1   :  { %s546_s8 = smov 0   ;;  %s548_s9 = smov 0  }
   0x2   :  { %s550_s10 = smov 0   ;;  %s552_s11 = smov 0  }
   0x3   :  { %s554_s12 = smov 0  }
   0x4 LB: > { %s20_s13 = sadd.s32 1, %s522_s10  ;;  %s23_s14 = sadd.s32 1, %s526_s11  ;;  %s530_s12 = sphi %s554_s12, %s11_s12   ;;  %s526_s11 = sphi %s552_s11, %s650_s11   ;;  %s522_s10 = sphi %s550_s10, %s649_s10   ;;  %s518_s9 = sphi %s548_s9, %s648_s9   ;;  %s514_s8 = sphi %s546_s8, %s647_s8   ;;  %s510_s7 = sphi %s544_s7, %s646_s7   ;;  %s506_s6 = sphi %s542_s6, %s645_s6  }
   0x5   : > { %p21_p0 = scmp.ge.s32.totalorder %s20_s13, 2  ;;  %s403_s15 = sadd.s32 4294967295, %s530_s12  }
   0x6   : > { %p39_p1 = scmp.ne.s32.totalorder %s510_s7, %s506_s6  ;;  %p40_p2 = scmp.eq.s32.totalorder %s530_s12, 0 }
   0x7   : > { %s652_s13 = smov (%p21_p0, %s20_s13), 0  ;;  %s654_s14 = smov (!%p21_p0, %s23_s14), %s526_s11 }
   0x8   : > { %p25_p3 = scmp.ge.s32.totalorder %s654_s14, 2  ;;  %p71_p4 = scmp.eq.s32.totalorder %s403_s15, 3 }
   0x9   : > { %s28_s16 = ssub.s32 %s522_s10, %s652_s13  ;;  %p41_p5 = por %p40_p2, %p39_p1 }
   0xa   : > { %s656_s14 = smov (%p25_p3, %s654_s14), 0  ;;  %p590_p6 = por %p71_p4, %p39_p1 }
   0xb   : > { %s27_s18 = ssub.s32 %s526_s11, %s656_s14  ;;  %s32_s20 = sadd.s32 1, %s510_s7 }
   0xc   : > { %s29_s19 = sor.u32 %s28_s16, %s27_s18  ;;  %p406_p8 = scmp.ge.s32.totalorder %s530_s12, 4 }
   0xd   : > { %p30_p7 = scmp.eq.s32.totalorder %s29_s19, 0 }
   0xe   : > { %93 = sbr.rel (%p406_p8) target bundleno = 27 (0x1b), region = 16 }
   0xf   : > { %s598_s21 = scalar_select %p30_p7, %s510_s7, %s32_s20  }
  0x13   : > { %96 = sbr.rel (!%p41_p5) target bundleno = 27 (0x1b), region = 20  ;;  %s98_s22 = sand.u32 (%p41_p5), 1, %s510_s7  }
  0x14   : > { %s408_s23 = sshll.u32 (%p41_p5), %s526_s11, 3  ;;  %s407_s24 = sshll.u32 (%p41_p5), %s98_s22, 3 }
  0x15   : > { %s102_s25 = sadd.s32 (%p41_p5), %s522_s10, %s408_s23  ;;  %s100_s30 = scalar_lea.vmem (%p41_p5), [#allocation2], %s407_s24 }
  0x16   : > { %s409_s26 = sshll.u32 (%p41_p5), %s102_s25, 1 }
  0x17   : > { %s104_s29 = scalar_lea.vmem (%p41_p5), %s642_s0, %s409_s26 }
  0x18   : > { %v121_v0 = vld [vmem:[%s104_s29] sm:$0x3]  ;;  %v123_v1 = vld [vmem:[%s104_s29 + $0x4] sm:$0x3]  ;;  %v125_v2 = vld [vmem:[%s104_s29 + $0x8] sm:$0x3] }
  0x19   : > { %122 = vst [vmem:[%s100_s30] sm:$0x3] %v121_v0  ;;  %124 = vst [vmem:[%s100_s30 + $0x2] sm:$0x3] %v123_v1  ;;  %v127_v3 = vld [vmem:[%s104_s29 + $0xc] sm:$0x3] }
  0x1a   : > { %126 = vst [vmem:[%s100_s30 + $0x4] sm:$0x3] %v125_v2  ;;  %128 = vst [vmem:[%s100_s30 + $0x6] sm:$0x3] %v127_v3 }
  0x1b PF: > { %p410_p9 = scmp.ge.s32.totalorder %s530_s12, 1  ;;  %p159_p10 = scmp.lt.s32.totalorder %s530_s12, 5 }
  0x1d   : > { %p160_p11 = pnand %p410_p9, %p159_p10 }
  0x1e   : > { %s166_s2 = sand.u32 (!%p160_p11), 1, %s506_s6  }
  0x1f   : > { %163 = sbr.rel (%p160_p11) target bundleno = 99 (0x63), region = 61  ;;  %s610_s3 = sshll.u32 (!%p160_p11), %s166_s2, 3 }
  0x20   : > { %s168_s4 = scalar_lea.vmem (!%p160_p11), [#allocation2], %s610_s3  ;;  %s183_s5 = scalar_lea.vmem (!%p160_p11), [#allocation3], %s610_s3 }
  0x24   : > { %v184_v4 = vld [vmem:[%s168_s4] sm:$0x3]  ;;  %v185_v5 = vld [vmem:[%s168_s4 + $0x2] sm:$0x3]  ;;  %v186_v6 = vld [vmem:[%s168_s4 + $0x4] sm:$0x3] }
  0x25   : > { %v187_v7 = vld [vmem:[%s168_s4 + $0x6] sm:$0x3]  ;;  %v188_v8 = vunpack.c.l.bf16 %v184_v4  ;;  %v189_v9 = vunpack.c.l.bf16 %v185_v5  ;;  %v190_v10 = vunpack.c.l.bf16 %v186_v6  ;;  %s414_s6 = sshll.u32 (%p590_p6), %s518_s9, 3 }
  0x26   : > { %v191_v11 = vunpack.c.l.bf16 %v187_v7  ;;  %s275_s15 = sadd.s32 (%p590_p6), %s514_s8, %s414_s6 }
  0x27   : > { %v196_v12 = vcombine.low %v188_v8, %v189_v9  ;;  %v208_v13 = vmul.f32 %v188_v8, %v188_v8  ;;  %v209_v14 = vmul.f32 %v189_v9, %v189_v9  ;;  %v210_v15 = vmul.f32 %v190_v10, %v190_v10  ;;  %s415_s16 = sshll.u32 (%p590_p6), %s275_s15, 1 }
  0x28   : > { %v197_v16 = vcombine.low %v190_v10, %v191_v11  ;;  %v211_v17 = vmul.f32 %v191_v11, %v191_v11  ;;  %s277_s20 = scalar_lea.vmem (%p590_p6), %s643_s1, %s415_s16 }
  0x29   : > { %v216_v18 = vcombine.low %v208_v13, %v209_v14 }
  0x2a   : > { %v200_v19 = vadd.f32 %v197_v16, %v196_v12  ;;  %v217_v20 = vcombine.low %v210_v15, %v211_v17 }
  0x2c   : > { %v201_v21 = vrot.slane %v200_v19, 4  ;;  %v220_v22 = vadd.f32 %v217_v20, %v216_v18 }
  0x2e   : > { %v202_v23 = vadd.f32 %v201_v21, %v200_v19  ;;  %v221_v24 = vrot.slane %v220_v22, 4 }
  0x30   : > { %v203_v25 = vrot.slane %v202_v23, 2  ;;  %v222_v26 = vadd.f32 %v221_v24, %v220_v22 }
  0x32   : > { %v204_v27 = vadd.f32 %v203_v25, %v202_v23  ;;  %v223_v28 = vrot.slane %v222_v26, 2 }
  0x34   : > { %v205_v29 = vrot.slane %v204_v27, 1  ;;  %v224_v30 = vadd.f32 %v223_v28, %v222_v26 }
  0x36   : > { %v206_v31 = vadd.f32 %v205_v29, %v204_v27  ;;  %v225_v32 = vrot.slane %v224_v30, 1 }
  0x38   : > { %v207_v33 = vmul.f32 0.0625, %v206_v31  ;;  %v226_v34 = vadd.f32 %v225_v32, %v224_v30 }
  0x3a   : > { %v227_v35 = vmul.f32 0.0625, %v226_v34  ;;  %v228_v36 = vmul.f32 %v207_v33, %v207_v33  ;;  %v232_v40 = vcombine.high %v207_v33, %v207_v33  ;;  %v234_v41 = vsub.f32 %v188_v8, %v207_v33 }
  0x3b   : > { %v236_v42 = vsub.f32 %v190_v10, %v207_v33 }
  0x3c   : > { %v229_v37 = vsub.f32 %v227_v35, %v228_v36  ;;  %v235_v43 = vsub.f32 %v189_v9, %v232_v40  ;;  %v237_v45 = vsub.f32 %v191_v11, %v232_v40 }
  0x3e   : > { %v230_v38 = vmax.f32 %v229_v37, 0.0 }
  0x40   : > { %v238_v39 = vadd.f32 1e-05, %v230_v38 }
  0x42   : > { %474 = vrsqrt.f32 %v238_v39 }
  0x4f   : > { %v475_v44 = vpop.eup %474 }
  0x50   : > { %v243_v46 = vmul.f32 %v475_v44, %v234_v41  ;;  %v241_v47 = vcombine.high %v475_v44, %v475_v44  ;;  %v245_v48 = vmul.f32 %v475_v44, %v236_v42 }
  0x52   : > { %vm247_vm0 = vcmp.ge.f32.partialorder %v243_v46, 0.0  ;;  %v251_v49 = vmul.f32 0.2, %v243_v46  ;;  %v244_v50 = vmul.f32 %v241_v47, %v235_v43  ;;  %vm249_vm1 = vcmp.ge.f32.partialorder %v245_v48, 0.0 }
  0x53   : > { %v253_v51 = vmul.f32 0.2, %v245_v48  ;;  %v246_v52 = vmul.f32 %v241_v47, %v237_v45 }
  0x54   : > { %v255_v53 = vsel %vm247_vm0, %v243_v46, %v251_v49  ;;  %vm248_vm2 = vcmp.ge.f32.partialorder %v244_v50, 0.0  ;;  %v252_v54 = vmul.f32 0.2, %v244_v50 }
  0x55   : > { %v259_v55 = vpack.c.bf16 %v255_v53, %v255_v53  ;;  %v257_v56 = vsel %vm249_vm1, %v245_v48, %v253_v51  ;;  %vm250_vm3 = vcmp.ge.f32.partialorder %v246_v52, 0.0  ;;  %v254_v57 = vmul.f32 0.2, %v246_v52 }
  0x56   : > { %v256_v58 = vsel %vm248_vm2, %v244_v50, %v252_v54  ;;  %v261_v59 = vpack.c.bf16 %v257_v56, %v257_v56  ;;  %273 = sbr.rel (!%p590_p6) target bundleno = 99 (0x63), region = 69 }
  0x57   : > { %263 = vst [vmem:[%s183_s5] sm:$0x3] %v259_v55  ;;  %v260_v60 = vpack.c.bf16 %v256_v58, %v256_v58  ;;  %v258_v61 = vsel %vm250_vm3, %v246_v52, %v254_v57 }
  0x58   : > { %265 = vst [vmem:[%s183_s5 + $0x4] sm:$0x3] %v261_v59  ;;  %v262_v62 = vpack.c.bf16 %v258_v61, %v258_v61 }
  0x59   : > { %264 = vst [vmem:[%s183_s5 + $0x2] sm:$0x3] %v260_v60 }
  0x5a   : > { %266 = vst [vmem:[%s183_s5 + $0x6] sm:$0x3] %v262_v62 }
  0x5e   : > { %v294_v63 = vld [vmem:[%s183_s5] sm:$0x3] }
  0x5f   : > { %v298_v1 = vld [vmem:[%s183_s5 + $0x4] sm:$0x3]  ;;  %295 = vst [vmem:[%s277_s20] sm:$0x3] %v294_v63 }
  0x60   : > { %v296_v0 = vld [vmem:[%s183_s5 + $0x2] sm:$0x3]  ;;  %299 = vst [vmem:[%s277_s20 + $0x8] sm:$0x3] %v298_v1 }
  0x61   : > { %v300_v2 = vld [vmem:[%s183_s5 + $0x6] sm:$0x3]  ;;  %297 = vst [vmem:[%s277_s20 + $0x4] sm:$0x3] %v296_v0 }
  0x62   : > { %301 = vst [vmem:[%s277_s20 + $0xc] sm:$0x3] %v300_v2 }
  0x63 PF: > { %s11_s12 = sadd.s32 1, %s530_s12   ;;  %s645_s6 = smov %s510_s7 }
  0x64   : > { %p8_p12 = scmp.ge.s32.totalorder %s11_s12, 6   ;;  %s646_s7 = smov %s598_s21 }
  0x65   : > { %s647_s8 = smov %s522_s10  ;;  %s648_s9 = smov %s526_s11 }
  0x66   : > { %s649_s10 = smov %s652_s13  ;;  %s650_s11 = smov %s656_s14 }
  0x67   :  { %10 = sbr.rel (!%p8_p12) target bundleno = 4 (0x4), region = 141 }

// kernel: discriminator_global.11
= control target key start
LH: loop header
LB: loop body
LE: loop exit
PB: predicated region body
PF: predicated region fallthrough
CT: control target
= control target key end

     0   :  { %s3858_s1 = inlined_call_operand.vmem [shape: bf16[2048,256], index: 1, kind: input, shape index: {}]   ;;  %s3859_s0 = inlined_call_operand.vmem [shape: bf16[32,2048], index: 0, kind: input, shape index: {}]   ;;  %s3860_s2 = inlined_call_operand.vmem [shape: f32[1,256], index: 2, kind: input, shape index: {}]   ;;  %s3861_s3 = inlined_call_operand.vmem [shape: bf16[32,256], index: 3, kind: output, shape index: {}]  }
   0x1   :  { %v2506_v0 = vld [vmem:[%s3858_s1 + $0x74] ss:$8 sps:$4 sm:$0xff]   ;;  %v2510_v2 = vld [vmem:[%s3858_s1 + $0x70] ss:$8 sps:$4 sm:$0xff]   ;;  %v2512_v4 = vld [vmem:[%s3858_s1 + $0x64] ss:$8 sps:$4 sm:$0xff]  }
   0x2   :  { %v2508_v1 = vld [vmem:[%s3858_s1 + $0x174] ss:$8 sps:$4 sm:$0xff]   ;;  %1754 = vmatprep.subr.bf16.mxu0 %v2506_v0  ;;  %v2511_v3 = vld [vmem:[%s3858_s1 + $0x170] ss:$8 sps:$4 sm:$0xff]   ;;  %v2514_v5 = vld [vmem:[%s3858_s1 + $0x164] ss:$8 sps:$4 sm:$0xff]  }
   0x3   :  { %1807 = vmatprep.subr.bf16.mxu1 %v2508_v1  ;;  %1755 = vmatpush1.bf16.msra.mxu0 %v2510_v2  ;;  %v2516_v6 = vld [vmem:[%s3858_s1 + $0x60] ss:$8 sps:$4 sm:$0xff]   ;;  %v2518_v8 = vld [vmem:[%s3858_s1 + $0x54] ss:$8 sps:$4 sm:$0xff]   ;;  %v2522_v10 = vld [vmem:[%s3858_s1 + $0x50] ss:$8 sps:$4 sm:$0xff]  }
   0x4   :  { %1808 = vmatpush1.bf16.msra.mxu1 %v2511_v3  ;;  %1756 = vmatprep.subr.bf16.mxu0 %v2512_v4  ;;  %v2517_v7 = vld [vmem:[%s3858_s1 + $0x160] ss:$8 sps:$4 sm:$0xff]   ;;  %v2520_v9 = vld [vmem:[%s3858_s1 + $0x154] ss:$8 sps:$4 sm:$0xff]   ;;  %v2523_v11 = vld [vmem:[%s3858_s1 + $0x150] ss:$8 sps:$4 sm:$0xff]  }
   0x5   :  { %1809 = vmatprep.subr.bf16.mxu1 %v2514_v5  ;;  %v2524_v12 = vld [vmem:[%s3858_s1 + $0x44] ss:$8 sps:$4 sm:$0xff]   ;;  %v2528_v14 = vld [vmem:[%s3858_s1 + $0x40] ss:$8 sps:$4 sm:$0xff]   ;;  %v2530_v16 = vld [vmem:[%s3858_s1 + $0x34] ss:$8 sps:$4 sm:$0xff]  }
   0x6   :  { %v2526_v13 = vld [vmem:[%s3858_s1 + $0x144] ss:$8 sps:$4 sm:$0xff]   ;;  %v2529_v15 = vld [vmem:[%s3858_s1 + $0x140] ss:$8 sps:$4 sm:$0xff]   ;;  %v2532_v17 = vld [vmem:[%s3858_s1 + $0x134] ss:$8 sps:$4 sm:$0xff]  }
   0x7   :  { %1757 = vmatpush1.bf16.msra.mxu0 %v2516_v6  ;;  %v2534_v18 = vld [vmem:[%s3858_s1 + $0x30] ss:$8 sps:$4 sm:$0xff]   ;;  %v2536_v20 = vld [vmem:[%s3858_s1 + $0x24] ss:$8 sps:$4 sm:$0xff]   ;;  %v2540_v22 = vld [vmem:[%s3858_s1 + $0x20] ss:$8 sps:$4 sm:$0xff]  }
   0x8   :  { %1810 = vmatpush1.bf16.msra.mxu1 %v2517_v7  ;;  %1758 = vmatprep.subr.bf16.mxu0 %v2518_v8  ;;  %v2535_v19 = vld [vmem:[%s3858_s1 + $0x130] ss:$8 sps:$4 sm:$0xff]   ;;  %v2538_v21 = vld [vmem:[%s3858_s1 + $0x124] ss:$8 sps:$4 sm:$0xff]   ;;  %v2541_v23 = vld [vmem:[%s3858_s1 + $0x120] ss:$8 sps:$4 sm:$0xff]  }
   0x9   :  { %1811 = vmatprep.subr.bf16.mxu1 %v2520_v9  ;;  %v2542_v24 = vld [vmem:[%s3858_s1 + $0x14] ss:$8 sps:$4 sm:$0xff]   ;;  %v2546_v26 = vld [vmem:[%s3858_s1 + $0x10] ss:$8 sps:$4 sm:$0xff]   ;;  %v2548_v28 = vld [vmem:[%s3858_s1 + $0x4] ss:$8 sps:$4 sm:$0xff]  }
   0xa   :  { %v2544_v25 = vld [vmem:[%s3858_s1 + $0x114] ss:$8 sps:$4 sm:$0xff]   ;;  %v2547_v27 = vld [vmem:[%s3858_s1 + $0x110] ss:$8 sps:$4 sm:$0xff]   ;;  %v2550_v29 = vld [vmem:[%s3858_s1 + $0x104] ss:$8 sps:$4 sm:$0xff]  }
   0xb   :  { %1759 = vmatpush1.bf16.msra.mxu0 %v2522_v10  ;;  %v2552_v30 = vld [vmem:[%s3858_s1] ss:$8 sps:$4 sm:$0xff]   ;;  %v2554_v32 = vld [vmem:[%s3858_s1 + $0xf4] ss:$8 sps:$4 sm:$0xff]   ;;  %v2558_v34 = vld [vmem:[%s3858_s1 + $0xf0] ss:$8 sps:$4 sm:$0xff]  }
   0xc   :  { %1812 = vmatpush1.bf16.msra.mxu1 %v2523_v11  ;;  %1760 = vmatprep.subr.bf16.mxu0 %v2524_v12  ;;  %v2553_v31 = vld [vmem:[%s3858_s1 + $0x100] ss:$8 sps:$4 sm:$0xff]   ;;  %v2556_v33 = vld [vmem:[%s3858_s1 + $0x1f4] ss:$8 sps:$4 sm:$0xff]   ;;  %v2559_v35 = vld [vmem:[%s3858_s1 + $0x1f0] ss:$8 sps:$4 sm:$0xff]  }
   0xd   :  { %1813 = vmatprep.subr.bf16.mxu1 %v2526_v13  ;;  %v2560_v36 = vld [vmem:[%s3858_s1 + $0xe4] ss:$8 sps:$4 sm:$0xff]   ;;  %v2564_v38 = vld [vmem:[%s3858_s1 + $0xe0] ss:$8 sps:$4 sm:$0xff]   ;;  %v2566_v40 = vld [vmem:[%s3858_s1 + $0xd4] ss:$8 sps:$4 sm:$0xff]  }
   0xe   :  { %v2562_v37 = vld [vmem:[%s3858_s1 + $0x1e4] ss:$8 sps:$4 sm:$0xff]   ;;  %v2565_v39 = vld [vmem:[%s3858_s1 + $0x1e0] ss:$8 sps:$4 sm:$0xff]   ;;  %v2568_v41 = vld [vmem:[%s3858_s1 + $0x1d4] ss:$8 sps:$4 sm:$0xff]  }
   0xf   :  { %1761 = vmatpush1.bf16.msra.mxu0 %v2528_v14  ;;  %v2570_v42 = vld [vmem:[%s3858_s1 + $0xd0] ss:$8 sps:$4 sm:$0xff]   ;;  %v2572_v44 = vld [vmem:[%s3858_s1 + $0xc4] ss:$8 sps:$4 sm:$0xff]   ;;  %v2576_v46 = vld [vmem:[%s3858_s1 + $0xc0] ss:$8 sps:$4 sm:$0xff]  }
  0x10   :  { %1814 = vmatpush1.bf16.msra.mxu1 %v2529_v15  ;;  %1762 = vmatprep.subr.bf16.mxu0 %v2530_v16  ;;  %v2571_v43 = vld [vmem:[%s3858_s1 + $0x1d0] ss:$8 sps:$4 sm:$0xff]   ;;  %v2574_v45 = vld [vmem:[%s3858_s1 + $0x1c4] ss:$8 sps:$4 sm:$0xff]   ;;  %v2577_v47 = vld [vmem:[%s3858_s1 + $0x1c0] ss:$8 sps:$4 sm:$0xff]  }
  0x11   :  { %1815 = vmatprep.subr.bf16.mxu1 %v2532_v17  ;;  %v14_v48 = vld [vmem:[%s3859_s0] sm:$0xff]  ;;  %v15_v50 = vld [vmem:[%s3859_s0 + $0x8] sm:$0xff]  ;;  %v2578_v52 = vld [vmem:[%s3858_s1 + $0xb4] ss:$8 sps:$4 sm:$0xff]  }
  0x12   :  { %v22_v49 = vld [vmem:[%s3859_s0 + $0x40] sm:$0xff]  ;;  %v23_v51 = vld [vmem:[%s3859_s0 + $0x48] sm:$0xff]  ;;  %v2580_v54 = vld [vmem:[%s3858_s1 + $0x1b4] ss:$8 sps:$4 sm:$0xff]  }
  0x13   :  { %1763 = vmatpush1.bf16.msra.mxu0 %v2534_v18  ;;  %v2211_v53 = vcombine.high %v14_v48, %v22_v49  ;;  %v2213_v55 = vcombine.high %v15_v50, %v23_v51  ;;  %v2582_v56 = vld [vmem:[%s3858_s1 + $0xb0] ss:$8 sps:$4 sm:$0xff]   ;;  %v2584_v58 = vld [vmem:[%s3858_s1 + $0xa4] ss:$8 sps:$4 sm:$0xff]   ;;  %v2588_v60 = vld [vmem:[%s3858_s1 + $0xa0] ss:$8 sps:$4 sm:$0xff]   ;;  %v2210_v8 = vcombine.low %v14_v48, %v22_v49  ;;  %v2212_v9 = vcombine.low %v15_v50, %v23_v51 }
  0x14   :  { %1816 = vmatpush1.bf16.msra.mxu1 %v2535_v19  ;;  %1764 = vmatprep.subr.bf16.mxu0 %v2536_v20  ;;  %v2583_v57 = vld [vmem:[%s3858_s1 + $0x1b0] ss:$8 sps:$4 sm:$0xff]   ;;  %v2586_v59 = vld [vmem:[%s3858_s1 + $0x1a4] ss:$8 sps:$4 sm:$0xff]   ;;  %v2589_v61 = vld [vmem:[%s3858_s1 + $0x1a0] ss:$8 sps:$4 sm:$0xff]  }
  0x15   :  { %1817 = vmatprep.subr.bf16.mxu1 %v2538_v21  ;;  %1786 = vmatprep.mubr.bf16.mxu0 %v2211_v53  ;;  %v2590_v62 = vld [vmem:[%s3858_s1 + $0x94] ss:$8 sps:$4 sm:$0xff]   ;;  %v2594_v0 = vld [vmem:[%s3858_s1 + $0x90] ss:$8 sps:$4 sm:$0xff]   ;;  %v2596_v2 = vld [vmem:[%s3858_s1 + $0x84] ss:$8 sps:$4 sm:$0xff]  }
  0x16   :  { %1839 = vmatprep.mubr.bf16.mxu1 %v2213_v55  ;;  %v2592_v63 = vld [vmem:[%s3858_s1 + $0x194] ss:$8 sps:$4 sm:$0xff]   ;;  %v2595_v1 = vld [vmem:[%s3858_s1 + $0x190] ss:$8 sps:$4 sm:$0xff]   ;;  %v2598_v3 = vld [vmem:[%s3858_s1 + $0x184] ss:$8 sps:$4 sm:$0xff]  }
  0x17   :  { %1765 = vmatpush1.bf16.msra.mxu0 %v2540_v22  ;;  %v2600_v4 = vld [vmem:[%s3858_s1 + $0x80] ss:$8 sps:$4 sm:$0xff]   ;;  %v2604_v6 = vld [vmem:[%s3858_s1 + $0x274] ss:$8 sps:$4 sm:$0xff]   ;;  %v2602_v10 = vld [vmem:[%s3858_s1 + $0x270] ss:$8 sps:$4 sm:$0xff]  }
  0x18   :  { %1818 = vmatpush1.bf16.msra.mxu1 %v2541_v23  ;;  %1766 = vmatprep.subr.bf16.mxu0 %v2542_v24  ;;  %v2601_v5 = vld [vmem:[%s3858_s1 + $0x180] ss:$8 sps:$4 sm:$0xff]   ;;  %v2607_v7 = vld [vmem:[%s3858_s1 + $0x374] ss:$8 sps:$4 sm:$0xff]   ;;  %v2605_v11 = vld [vmem:[%s3858_s1 + $0x370] ss:$8 sps:$4 sm:$0xff]  }
  0x19   :  { %1819 = vmatprep.subr.bf16.mxu1 %v2544_v25  ;;  %v2610_v12 = vld [vmem:[%s3858_s1 + $0x264] ss:$8 sps:$4 sm:$0xff]   ;;  %v2608_v14 = vld [vmem:[%s3858_s1 + $0x260] ss:$8 sps:$4 sm:$0xff]   ;;  %v2616_v16 = vld [vmem:[%s3858_s1 + $0x254] ss:$8 sps:$4 sm:$0xff]  }
  0x1a   :  { %v2613_v13 = vld [vmem:[%s3858_s1 + $0x364] ss:$8 sps:$4 sm:$0xff]   ;;  %v2611_v15 = vld [vmem:[%s3858_s1 + $0x360] ss:$8 sps:$4 sm:$0xff]   ;;  %v2619_v17 = vld [vmem:[%s3858_s1 + $0x354] ss:$8 sps:$4 sm:$0xff]  }
  0x1b   :  { %1767 = vmatpush1.bf16.msra.mxu0 %v2546_v26  ;;  %v2614_v18 = vld [vmem:[%s3858_s1 + $0x250] ss:$8 sps:$4 sm:$0xff]   ;;  %v2622_v20 = vld [vmem:[%s3858_s1 + $0x244] ss:$8 sps:$4 sm:$0xff]   ;;  %v2620_v22 = vld [vmem:[%s3858_s1 + $0x240] ss:$8 sps:$4 sm:$0xff]  }
  0x1c   :  { %1820 = vmatpush1.bf16.msra.mxu1 %v2547_v27  ;;  %1768 = vmatprep.subr.bf16.mxu0 %v2548_v28  ;;  %v2617_v19 = vld [vmem:[%s3858_s1 + $0x350] ss:$8 sps:$4 sm:$0xff]   ;;  %v2625_v21 = vld [vmem:[%s3858_s1 + $0x344] ss:$8 sps:$4 sm:$0xff]   ;;  %v2623_v23 = vld [vmem:[%s3858_s1 + $0x340] ss:$8 sps:$4 sm:$0xff]  }
  0x1d   :  { %1821 = vmatprep.subr.bf16.mxu1 %v2550_v29  ;;  %v2628_v24 = vld [vmem:[%s3858_s1 + $0x234] ss:$8 sps:$4 sm:$0xff]   ;;  %v2626_v26 = vld [vmem:[%s3858_s1 + $0x230] ss:$8 sps:$4 sm:$0xff]   ;;  %v30_v28 = vld [vmem:[%s3859_s0 + $0x80] sm:$0xff] }
  0x1e   :  { %v2631_v25 = vld [vmem:[%s3858_s1 + $0x334] ss:$8 sps:$4 sm:$0xff]   ;;  %v2629_v27 = vld [vmem:[%s3858_s1 + $0x330] ss:$8 sps:$4 sm:$0xff]   ;;  %v38_v29 = vld [vmem:[%s3859_s0 + $0xc0] sm:$0xff] }
  0x1f   :  { %1769 = vmatpush1.bf16.msra.mxu0 %v2552_v30  ;;  %v31_v30 = vld [vmem:[%s3859_s0 + $0x88] sm:$0xff]  ;;  %v3229_v48 = vld [vmem:[%s3859_s0 + $0x18] sm:$0xff] }
  0x20   :  { %1822 = vmatpush1.bf16.msra.mxu1 %v2553_v31  ;;  %1770 = vmatprep.subr.bf16.mxu0 %v2554_v32  ;;  %v39_v31 = vld [vmem:[%s3859_s0 + $0xc8] sm:$0xff]  ;;  %v3236_v50 = vld [vmem:[%s3859_s0 + $0x58] sm:$0xff] }
  0x21   :  { %1823 = vmatprep.subr.bf16.mxu1 %v2556_v33  ;;  %v2634_v32 = vld [vmem:[%s3858_s1 + $0x224] ss:$8 sps:$4 sm:$0xff]   ;;  %v2227_v33 = vcombine.high %v30_v28, %v38_v29  ;;  %v2217_v51 = vcombine.high %v3229_v48, %v3236_v50  ;;  %v2647_v53 = vld [vmem:[%s3858_s1 + $0x300] ss:$8 sps:$4 sm:$0xff]   ;;  %v2655_v55 = vld [vmem:[%s3858_s1 + $0x3f4] ss:$8 sps:$4 sm:$0xff]  }
  0x23   :  { %1771 = vmatpush2.bf16.msra.mxu0 %v2558_v34  ;;  %v2226_v34 = vcombine.low %v30_v28, %v38_v29  ;;  %v2216_v29 = vcombine.low %v3229_v48, %v3236_v50  ;;  %v2718_v48 = vld [vmem:[%s3858_s1 + $0x444] ss:$8 sps:$4 sm:$0xff]  }
  0x24   :  { %1824 = vmatpush2.bf16.msra.mxu1 %v2559_v35  ;;  %1772 = vmatprep.subr.bf16.mxu0 %v2560_v36  ;;  %v2229_v35 = vcombine.high %v31_v30, %v39_v31  ;;  %v2637_v36 = vld [vmem:[%s3858_s1 + $0x324] ss:$8 sps:$4 sm:$0xff]  }
  0x25   :  { %1825 = vmatprep.subr.bf16.mxu1 %v2562_v37  ;;  %v2228_v37 = vcombine.low %v31_v30, %v39_v31  ;;  %v33_v30 = vld [vmem:[%s3859_s0 + $0x98] sm:$0xff] }
  0x26   :  { %v41_v31 = vld [vmem:[%s3859_s0 + $0xd8] sm:$0xff] }
  0x27   :  { %1773 = vmatpush2.bf16.msra.mxu0 %v2564_v38  ;;  %v2632_v38 = vld [vmem:[%s3858_s1 + $0x220] ss:$8 sps:$4 sm:$0xff]  }
  0x28   :  { %1826 = vmatpush2.bf16.msra.mxu1 %v2565_v39  ;;  %1774 = vmatprep.subr.bf16.mxu0 %v2566_v40  ;;  %v2635_v39 = vld [vmem:[%s3858_s1 + $0x320] ss:$8 sps:$4 sm:$0xff]   ;;  %v2640_v40 = vld [vmem:[%s3858_s1 + $0x214] ss:$8 sps:$4 sm:$0xff]  }
  0x29   :  { %1827 = vmatprep.subr.bf16.mxu1 %v2568_v41  ;;  %v2643_v41 = vld [vmem:[%s3858_s1 + $0x314] ss:$8 sps:$4 sm:$0xff]  }
  0x2b   :  { %1775 = vmatpush2.bf16.msra.mxu0 %v2570_v42  ;;  %v2638_v42 = vld [vmem:[%s3858_s1 + $0x210] ss:$8 sps:$4 sm:$0xff]  }
  0x2c   :  { %1828 = vmatpush2.bf16.msra.mxu1 %v2571_v43  ;;  %1776 = vmatprep.subr.bf16.mxu0 %v2572_v44  ;;  %v2641_v43 = vld [vmem:[%s3858_s1 + $0x310] ss:$8 sps:$4 sm:$0xff]   ;;  %v2646_v44 = vld [vmem:[%s3858_s1 + $0x204] ss:$8 sps:$4 sm:$0xff]  }
  0x2d   :  { %1829 = vmatprep.subr.bf16.mxu1 %v2574_v45  ;;  %v2649_v45 = vld [vmem:[%s3858_s1 + $0x304] ss:$8 sps:$4 sm:$0xff]  }
  0x2f   :  { %1777 = vmatpush2.bf16.msra.mxu0 %v2576_v46  ;;  %v3219_v46 = vld [vmem:[%s3859_s0 + $0x10] sm:$0xff] }
  0x30   :  { %1830 = vmatpush2.bf16.msra.mxu1 %v2577_v47  ;;  %1778 = vmatprep.subr.bf16.mxu0 %v2578_v52  ;;  %v3224_v47 = vld [vmem:[%s3859_s0 + $0x50] sm:$0xff]  ;;  %v2644_v52 = vld [vmem:[%s3858_s1 + $0x200] ss:$8 sps:$4 sm:$0xff]  }
  0x31   :  { %1831 = vmatprep.subr.bf16.mxu1 %v2580_v54  ;;  %v2215_v49 = vcombine.high %v3219_v46, %v3224_v47  ;;  %v2652_v54 = vld [vmem:[%s3858_s1 + $0x2f4] ss:$8 sps:$4 sm:$0xff]   ;;  %v2214_v28 = vcombine.low %v3219_v46, %v3224_v47  ;;  %v3407_v46 = vld [vmem:[%s3859_s0 + $0x28] sm:$0xff] }
  0x32   :  { %v3412_v47 = vld [vmem:[%s3859_s0 + $0x68] sm:$0xff] }
  0x33   :  { %1779 = vmatpush2.bf16.msra.mxu0 %v2582_v56  ;;  %v2650_v56 = vld [vmem:[%s3858_s1 + $0x2f0] ss:$8 sps:$4 sm:$0xff]  }
  0x34   :  { %1832 = vmatpush2.bf16.msra.mxu1 %v2583_v57  ;;  %1780 = vmatprep.subr.bf16.mxu0 %v2584_v58  ;;  %v2653_v57 = vld [vmem:[%s3858_s1 + $0x3f0] ss:$8 sps:$4 sm:$0xff]   ;;  %v2658_v58 = vld [vmem:[%s3858_s1 + $0x2e4] ss:$8 sps:$4 sm:$0xff]  }
  0x35   :  { %1833 = vmatprep.subr.bf16.mxu1 %v2586_v59  ;;  %v2661_v59 = vld [vmem:[%s3858_s1 + $0x3e4] ss:$8 sps:$4 sm:$0xff]  }
  0x37   :  { %1781 = vmatpush2.bf16.msra.mxu0 %v2588_v60  ;;  %v2656_v60 = vld [vmem:[%s3858_s1 + $0x2e0] ss:$8 sps:$4 sm:$0xff]  }
  0x38   :  { %1834 = vmatpush2.bf16.msra.mxu1 %v2589_v61  ;;  %1782 = vmatprep.subr.bf16.mxu0 %v2590_v62  ;;  %v2659_v61 = vld [vmem:[%s3858_s1 + $0x3e0] ss:$8 sps:$4 sm:$0xff]   ;;  %v2664_v62 = vld [vmem:[%s3858_s1 + $0x2d4] ss:$8 sps:$4 sm:$0xff]  }
  0x39   :  { %1835 = vmatprep.subr.bf16.mxu1 %v2592_v63  ;;  %v2667_v63 = vld [vmem:[%s3858_s1 + $0x3d4] ss:$8 sps:$4 sm:$0xff]  }
  0x3b   :  { %1783 = vmatpush2.bf16.msra.mxu0 %v2594_v0  ;;  %v2662_v0 = vld [vmem:[%s3858_s1 + $0x2d0] ss:$8 sps:$4 sm:$0xff]  }
  0x3c   :  { %1836 = vmatpush2.bf16.msra.mxu1 %v2595_v1  ;;  %1784 = vmatprep.subr.bf16.mxu0 %v2596_v2  ;;  %v2665_v1 = vld [vmem:[%s3858_s1 + $0x3d0] ss:$8 sps:$4 sm:$0xff]   ;;  %v2670_v2 = vld [vmem:[%s3858_s1 + $0x2c4] ss:$8 sps:$4 sm:$0xff]  }
  0x3d   :  { %1837 = vmatprep.subr.bf16.mxu1 %v2598_v3  ;;  %v2673_v3 = vld [vmem:[%s3858_s1 + $0x3c4] ss:$8 sps:$4 sm:$0xff]  }
  0x3f   :  { %1785 = vmatpush2.bf16.msra.mxu0 %v2600_v4  ;;  %v2668_v4 = vld [vmem:[%s3858_s1 + $0x2c0] ss:$8 sps:$4 sm:$0xff]  }
  0x40   :  { %1838 = vmatpush2.bf16.msra.mxu1 %v2601_v5  ;;  %1860 = vmatprep.subr.bf16.mxu0 %v2604_v6  ;;  %v2671_v5 = vld [vmem:[%s3858_s1 + $0x3c0] ss:$8 sps:$4 sm:$0xff]   ;;  %v2676_v6 = vld [vmem:[%s3858_s1 + $0x2b4] ss:$8 sps:$4 sm:$0xff]  }
  0x41   :  { %1913 = vmatprep.subr.bf16.mxu1 %v2607_v7  ;;  %v2679_v7 = vld [vmem:[%s3858_s1 + $0x3b4] ss:$8 sps:$4 sm:$0xff]  }
  0x42   :  { %1787 = vmatmul.mubr.bf16.vlgmr.msra.gmra.mxu0 %v2210_v8  ;;  %v2674_v8 = vld [vmem:[%s3858_s1 + $0x2b0] ss:$8 sps:$4 sm:$0xff]  }
  0x43   :  { %1840 = vmatmul.mubr.bf16.vlgmr.msra.gmra.mxu1 %v2212_v9  ;;  %1861 = vmatpush1.bf16.msra.mxu0 %v2602_v10  ;;  %v2677_v9 = vld [vmem:[%s3858_s1 + $0x3b0] ss:$8 sps:$4 sm:$0xff]   ;;  %v2682_v10 = vld [vmem:[%s3858_s1 + $0x2a4] ss:$8 sps:$4 sm:$0xff]  }
  0x44   :  { %1914 = vmatpush1.bf16.msra.mxu1 %v2605_v11  ;;  %1862 = vmatprep.subr.bf16.mxu0 %v2610_v12  ;;  %v2685_v11 = vld [vmem:[%s3858_s1 + $0x3a4] ss:$8 sps:$4 sm:$0xff]   ;;  %v2680_v12 = vld [vmem:[%s3858_s1 + $0x2a0] ss:$8 sps:$4 sm:$0xff]  }
  0x45   :  { %1915 = vmatprep.subr.bf16.mxu1 %v2613_v13  ;;  %1796 = vmatprep.mubr.bf16.mxu0 %v2227_v33  ;;  %v2683_v13 = vld [vmem:[%s3858_s1 + $0x3a0] ss:$8 sps:$4 sm:$0xff]   ;;  %v2709_v33 = vld [vmem:[%s3858_s1 + $0x564] ss:$8 sps:$4 sm:$0xff]  }
  0x46   :  { %1849 = vmatprep.mubr.bf16.mxu1 %v2229_v35  ;;  %v2233_v35 = vcombine.high %v33_v30, %v41_v31 }
  0x47   :  { %1863 = vmatpush1.bf16.msra.mxu0 %v2608_v14  ;;  %v2688_v14 = vld [vmem:[%s3858_s1 + $0x294] ss:$8 sps:$4 sm:$0xff]  }
  0x48   :  { %1916 = vmatpush1.bf16.msra.mxu1 %v2611_v15  ;;  %1864 = vmatprep.subr.bf16.mxu0 %v2616_v16  ;;  %v2691_v15 = vld [vmem:[%s3858_s1 + $0x394] ss:$8 sps:$4 sm:$0xff]   ;;  %v2686_v16 = vld [vmem:[%s3858_s1 + $0x290] ss:$8 sps:$4 sm:$0xff]  }
  0x49   :  { %1917 = vmatprep.subr.bf16.mxu1 %v2619_v17  ;;  %v2689_v17 = vld [vmem:[%s3858_s1 + $0x390] ss:$8 sps:$4 sm:$0xff]  }
  0x4a   :  { %1797 = vmatmul.mubr.bf16.gmra.mxu0 %v2226_v34 }
  0x4b   :  { %1865 = vmatpush1.bf16.msra.mxu0 %v2614_v18  ;;  %1850 = vmatmul.mubr.bf16.gmra.mxu1 %v2228_v37  ;;  %v2694_v18 = vld [vmem:[%s3858_s1 + $0x284] ss:$8 sps:$4 sm:$0xff]   ;;  %v2707_v37 = vld [vmem:[%s3858_s1 + $0x560] ss:$8 sps:$4 sm:$0xff]  }
  0x4c   :  { %1918 = vmatpush1.bf16.msra.mxu1 %v2617_v19  ;;  %1866 = vmatprep.subr.bf16.mxu0 %v2622_v20  ;;  %v2697_v19 = vld [vmem:[%s3858_s1 + $0x384] ss:$8 sps:$4 sm:$0xff]   ;;  %v2692_v20 = vld [vmem:[%s3858_s1 + $0x280] ss:$8 sps:$4 sm:$0xff]  }
  0x4d   :  { %1919 = vmatprep.subr.bf16.mxu1 %v2625_v21  ;;  %1892 = vmatprep.mubr.bf16.mxu0 %v2215_v49  ;;  %v2695_v21 = vld [vmem:[%s3858_s1 + $0x380] ss:$8 sps:$4 sm:$0xff]   ;;  %v2721_v49 = vld [vmem:[%s3858_s1 + $0x544] ss:$8 sps:$4 sm:$0xff]  }
  0x4e   :  { %1945 = vmatprep.mubr.bf16.mxu1 %v2217_v51  ;;  %v2221_v51 = vcombine.high %v3407_v46, %v3412_v47 }
  0x4f   :  { %1867 = vmatpush1.bf16.msra.mxu0 %v2620_v22  ;;  %v2700_v22 = vld [vmem:[%s3858_s1 + $0x474] ss:$8 sps:$4 sm:$0xff]  }
  0x50   :  { %1920 = vmatpush1.bf16.msra.mxu1 %v2623_v23  ;;  %1868 = vmatprep.subr.bf16.mxu0 %v2628_v24  ;;  %v2703_v23 = vld [vmem:[%s3858_s1 + $0x574] ss:$8 sps:$4 sm:$0xff]   ;;  %v2698_v24 = vld [vmem:[%s3858_s1 + $0x470] ss:$8 sps:$4 sm:$0xff]  }
  0x51   :  { %1921 = vmatprep.subr.bf16.mxu1 %v2631_v25  ;;  %v2701_v25 = vld [vmem:[%s3858_s1 + $0x570] ss:$8 sps:$4 sm:$0xff]  }
  0x53   :  { %1869 = vmatpush1.bf16.msra.mxu0 %v2626_v26  ;;  %v32_v26 = vld [vmem:[%s3859_s0 + $0x90] sm:$0xff] }
  0x54   :  { %1922 = vmatpush1.bf16.msra.mxu1 %v2629_v27  ;;  %1870 = vmatprep.subr.bf16.mxu0 %v2634_v32  ;;  %v40_v27 = vld [vmem:[%s3859_s0 + $0xd0] sm:$0xff]  ;;  %v2706_v32 = vld [vmem:[%s3858_s1 + $0x464] ss:$8 sps:$4 sm:$0xff]  }
  0x55   :  { %1923 = vmatprep.subr.bf16.mxu1 %v2637_v36  ;;  %v2231_v34 = vcombine.high %v32_v26, %v40_v27  ;;  %v2704_v36 = vld [vmem:[%s3858_s1 + $0x460] ss:$8 sps:$4 sm:$0xff]  }
  0x57   :  { %1871 = vmatpush1.bf16.msra.mxu0 %v2632_v38  ;;  %v2712_v38 = vld [vmem:[%s3858_s1 + $0x454] ss:$8 sps:$4 sm:$0xff]  }
  0x58   :  { %1924 = vmatpush1.bf16.msra.mxu1 %v2635_v39  ;;  %1872 = vmatprep.subr.bf16.mxu0 %v2640_v40  ;;  %v2715_v39 = vld [vmem:[%s3858_s1 + $0x554] ss:$8 sps:$4 sm:$0xff]   ;;  %v2710_v40 = vld [vmem:[%s3858_s1 + $0x450] ss:$8 sps:$4 sm:$0xff]  }
  0x59   :  { %1925 = vmatprep.subr.bf16.mxu1 %v2643_v41  ;;  %v2713_v41 = vld [vmem:[%s3858_s1 + $0x550] ss:$8 sps:$4 sm:$0xff]  }
  0x5b   :  { %1873 = vmatpush1.bf16.msra.mxu0 %v2638_v42  ;;  %v3397_v42 = vld [vmem:[%s3859_s0 + $0x20] sm:$0xff] }
  0x5c   :  { %1926 = vmatpush1.bf16.msra.mxu1 %v2641_v43  ;;  %1874 = vmatprep.subr.bf16.mxu0 %v2646_v44  ;;  %v3402_v43 = vld [vmem:[%s3859_s0 + $0x60] sm:$0xff]  ;;  %v2230_v44 = vcombine.low %v32_v26, %v40_v27 }
  0x5d   :  { %1927 = vmatprep.subr.bf16.mxu1 %v2649_v45  ;;  %v2232_v45 = vcombine.low %v33_v30, %v41_v31  ;;  %v2219_v50 = vcombine.high %v3397_v42, %v3402_v43  ;;  %v2778_v26 = vld [vmem:[%s3858_s1 + $0x4a4] ss:$8 sps:$4 sm:$0xff]   ;;  %v2784_v30 = vld [vmem:[%s3858_s1 + $0x494] ss:$8 sps:$4 sm:$0xff]  }
  0x5e   :  { %v2781_v27 = vld [vmem:[%s3858_s1 + $0x5a4] ss:$8 sps:$4 sm:$0xff]   ;;  %v2787_v31 = vld [vmem:[%s3858_s1 + $0x594] ss:$8 sps:$4 sm:$0xff]  }
  0x5f   :  { %1875 = vmatpush1.bf16.msra.mxu0 %v2644_v52  ;;  %v2716_v52 = vld [vmem:[%s3858_s1 + $0x440] ss:$8 sps:$4 sm:$0xff]  }
  0x60   :  { %1928 = vmatpush1.bf16.msra.mxu1 %v2647_v53  ;;  %1876 = vmatprep.subr.bf16.mxu0 %v2652_v54  ;;  %v2719_v53 = vld [vmem:[%s3858_s1 + $0x540] ss:$8 sps:$4 sm:$0xff]   ;;  %v2724_v54 = vld [vmem:[%s3858_s1 + $0x434] ss:$8 sps:$4 sm:$0xff]  }
  0x61   :  { %1929 = vmatprep.subr.bf16.mxu1 %v2655_v55  ;;  %v2727_v55 = vld [vmem:[%s3858_s1 + $0x534] ss:$8 sps:$4 sm:$0xff]  }
  0x63   :  { %1877 = vmatpush2.bf16.msra.mxu0 %v2650_v56  ;;  %v2722_v56 = vld [vmem:[%s3858_s1 + $0x430] ss:$8 sps:$4 sm:$0xff]  }
  0x64   :  { %1930 = vmatpush2.bf16.msra.mxu1 %v2653_v57  ;;  %1878 = vmatprep.subr.bf16.mxu0 %v2658_v58  ;;  %v2725_v57 = vld [vmem:[%s3858_s1 + $0x530] ss:$8 sps:$4 sm:$0xff]   ;;  %v2730_v58 = vld [vmem:[%s3858_s1 + $0x424] ss:$8 sps:$4 sm:$0xff]  }
  0x65   :  { %1931 = vmatprep.subr.bf16.mxu1 %v2661_v59  ;;  %v2733_v59 = vld [vmem:[%s3858_s1 + $0x524] ss:$8 sps:$4 sm:$0xff]  }
  0x67   :  { %1879 = vmatpush2.bf16.msra.mxu0 %v2656_v60  ;;  %v2728_v60 = vld [vmem:[%s3858_s1 + $0x420] ss:$8 sps:$4 sm:$0xff]  }
  0x68   :  { %1932 = vmatpush2.bf16.msra.mxu1 %v2659_v61  ;;  %1880 = vmatprep.subr.bf16.mxu0 %v2664_v62  ;;  %v2731_v61 = vld [vmem:[%s3858_s1 + $0x520] ss:$8 sps:$4 sm:$0xff]   ;;  %v2736_v62 = vld [vmem:[%s3858_s1 + $0x414] ss:$8 sps:$4 sm:$0xff]  }
  0x69   :  { %1933 = vmatprep.subr.bf16.mxu1 %v2667_v63  ;;  %v2739_v63 = vld [vmem:[%s3858_s1 + $0x514] ss:$8 sps:$4 sm:$0xff]  }
  0x6b   :  { %1881 = vmatpush2.bf16.msra.mxu0 %v2662_v0  ;;  %v2734_v0 = vld [vmem:[%s3858_s1 + $0x410] ss:$8 sps:$4 sm:$0xff]  }
  0x6c   :  { %1934 = vmatpush2.bf16.msra.mxu1 %v2665_v1  ;;  %1882 = vmatprep.subr.bf16.mxu0 %v2670_v2  ;;  %v2737_v1 = vld [vmem:[%s3858_s1 + $0x510] ss:$8 sps:$4 sm:$0xff]   ;;  %v2742_v2 = vld [vmem:[%s3858_s1 + $0x404] ss:$8 sps:$4 sm:$0xff]  }
  0x6d   :  { %1935 = vmatprep.subr.bf16.mxu1 %v2673_v3  ;;  %v2745_v3 = vld [vmem:[%s3858_s1 + $0x504] ss:$8 sps:$4 sm:$0xff]  }
  0x6f   :  { %1883 = vmatpush2.bf16.msra.mxu0 %v2668_v4  ;;  %v2740_v4 = vld [vmem:[%s3858_s1 + $0x400] ss:$8 sps:$4 sm:$0xff]  }
  0x70   :  { %1936 = vmatpush2.bf16.msra.mxu1 %v2671_v5  ;;  %1884 = vmatprep.subr.bf16.mxu0 %v2676_v6  ;;  %v2743_v5 = vld [vmem:[%s3858_s1 + $0x500] ss:$8 sps:$4 sm:$0xff]   ;;  %v2748_v6 = vld [vmem:[%s3858_s1 + $0x4f4] ss:$8 sps:$4 sm:$0xff]  }
  0x71   :  { %1937 = vmatprep.subr.bf16.mxu1 %v2679_v7  ;;  %v2751_v7 = vld [vmem:[%s3858_s1 + $0x5f4] ss:$8 sps:$4 sm:$0xff]  }
  0x73   :  { %1885 = vmatpush2.bf16.msra.mxu0 %v2674_v8  ;;  %v2746_v8 = vld [vmem:[%s3858_s1 + $0x4f0] ss:$8 sps:$4 sm:$0xff]  }
  0x74   :  { %1938 = vmatpush2.bf16.msra.mxu1 %v2677_v9  ;;  %1886 = vmatprep.subr.bf16.mxu0 %v2682_v10  ;;  %v2749_v9 = vld [vmem:[%s3858_s1 + $0x5f0] ss:$8 sps:$4 sm:$0xff]   ;;  %v2754_v10 = vld [vmem:[%s3858_s1 + $0x4e4] ss:$8 sps:$4 sm:$0xff]  }
  0x75   :  { %1939 = vmatprep.subr.bf16.mxu1 %v2685_v11  ;;  %v2757_v11 = vld [vmem:[%s3858_s1 + $0x5e4] ss:$8 sps:$4 sm:$0xff]  }
  0x77   :  { %1887 = vmatpush2.bf16.msra.mxu0 %v2680_v12  ;;  %v2752_v12 = vld [vmem:[%s3858_s1 + $0x4e0] ss:$8 sps:$4 sm:$0xff]  }
  0x78   :  { %1940 = vmatpush2.bf16.msra.mxu1 %v2683_v13  ;;  %1888 = vmatprep.subr.bf16.mxu0 %v2688_v14  ;;  %v2755_v13 = vld [vmem:[%s3858_s1 + $0x5e0] ss:$8 sps:$4 sm:$0xff]   ;;  %v2760_v14 = vld [vmem:[%s3858_s1 + $0x4d4] ss:$8 sps:$4 sm:$0xff]  }
  0x79   :  { %1941 = vmatprep.subr.bf16.mxu1 %v2691_v15  ;;  %v2763_v15 = vld [vmem:[%s3858_s1 + $0x5d4] ss:$8 sps:$4 sm:$0xff]  }
  0x7b   :  { %1889 = vmatpush2.bf16.msra.mxu0 %v2686_v16  ;;  %v2758_v16 = vld [vmem:[%s3858_s1 + $0x4d0] ss:$8 sps:$4 sm:$0xff]  }
  0x7c   :  { %1942 = vmatpush2.bf16.msra.mxu1 %v2689_v17  ;;  %1890 = vmatprep.subr.bf16.mxu0 %v2694_v18  ;;  %v2761_v17 = vld [vmem:[%s3858_s1 + $0x5d0] ss:$8 sps:$4 sm:$0xff]   ;;  %v2766_v18 = vld [vmem:[%s3858_s1 + $0x4c4] ss:$8 sps:$4 sm:$0xff]  }
  0x7d   :  { %1943 = vmatprep.subr.bf16.mxu1 %v2697_v19  ;;  %v2769_v19 = vld [vmem:[%s3858_s1 + $0x5c4] ss:$8 sps:$4 sm:$0xff]  }
  0x7f   :  { %1891 = vmatpush2.bf16.msra.mxu0 %v2692_v20  ;;  %v2764_v20 = vld [vmem:[%s3858_s1 + $0x4c0] ss:$8 sps:$4 sm:$0xff]  }
  0x80   :  { %1944 = vmatpush2.bf16.msra.mxu1 %v2695_v21  ;;  %1966 = vmatprep.subr.bf16.mxu0 %v2700_v22  ;;  %v2767_v21 = vld [vmem:[%s3858_s1 + $0x5c0] ss:$8 sps:$4 sm:$0xff]   ;;  %v2772_v22 = vld [vmem:[%s3858_s1 + $0x4b4] ss:$8 sps:$4 sm:$0xff]  }
  0x81   :  { %2019 = vmatprep.subr.bf16.mxu1 %v2703_v23  ;;  %v2775_v23 = vld [vmem:[%s3858_s1 + $0x5b4] ss:$8 sps:$4 sm:$0xff]  }
  0x82   :  { %1893 = vmatmul.mubr.bf16.vlgmr.msra.gmra.mxu0 %v2214_v28  ;;  %v2776_v28 = vld [vmem:[%s3858_s1 + $0x4a0] ss:$8 sps:$4 sm:$0xff]  }
  0x83   :  { %1946 = vmatmul.mubr.bf16.vlgmr.msra.gmra.mxu1 %v2216_v29  ;;  %1967 = vmatpush1.bf16.msra.mxu0 %v2698_v24  ;;  %v2770_v24 = vld [vmem:[%s3858_s1 + $0x4b0] ss:$8 sps:$4 sm:$0xff]   ;;  %v2779_v29 = vld [vmem:[%s3858_s1 + $0x5a0] ss:$8 sps:$4 sm:$0xff]  }
  0x84   :  { %2020 = vmatpush1.bf16.msra.mxu1 %v2701_v25  ;;  %1968 = vmatprep.subr.bf16.mxu0 %v2706_v32  ;;  %v2773_v25 = vld [vmem:[%s3858_s1 + $0x5b0] ss:$8 sps:$4 sm:$0xff]  }
  0x85   :  { %2021 = vmatprep.subr.bf16.mxu1 %v2709_v33  ;;  %1902 = vmatprep.mubr.bf16.mxu0 %v2231_v34  ;;  %v2782_v32 = vld [vmem:[%s3858_s1 + $0x490] ss:$8 sps:$4 sm:$0xff]   ;;  %v2790_v34 = vld [vmem:[%s3858_s1 + $0x484] ss:$8 sps:$4 sm:$0xff]  }
  0x86   :  { %1955 = vmatprep.mubr.bf16.mxu1 %v2233_v35  ;;  %v2785_v33 = vld [vmem:[%s3858_s1 + $0x590] ss:$8 sps:$4 sm:$0xff]   ;;  %v2793_v35 = vld [vmem:[%s3858_s1 + $0x584] ss:$8 sps:$4 sm:$0xff]  }
  0x87   :  { %1969 = vmatpush1.bf16.msra.mxu0 %v2704_v36  ;;  %v2788_v36 = vld [vmem:[%s3858_s1 + $0x480] ss:$8 sps:$4 sm:$0xff]  }
  0x88   :  { %2022 = vmatpush1.bf16.msra.mxu1 %v2707_v37  ;;  %1970 = vmatprep.subr.bf16.mxu0 %v2712_v38  ;;  %v2791_v37 = vld [vmem:[%s3858_s1 + $0x580] ss:$8 sps:$4 sm:$0xff]   ;;  %v2796_v38 = vld [vmem:[%s3858_s1 + $0x674] ss:$8 sps:$4 sm:$0xff]  }
  0x89   :  { %2023 = vmatprep.subr.bf16.mxu1 %v2715_v39  ;;  %v2799_v39 = vld [vmem:[%s3858_s1 + $0x774] ss:$8 sps:$4 sm:$0xff]  }
  0x8a   :  { %1903 = vmatmul.mubr.bf16.gmra.mxu0 %v2230_v44  ;;  %v2220_v44 = vcombine.low %v3407_v46, %v3412_v47  ;;  %v2802_v46 = vld [vmem:[%s3858_s1 + $0x664] ss:$8 sps:$4 sm:$0xff]  }
  0x8b   :  { %1956 = vmatmul.mubr.bf16.gmra.mxu1 %v2232_v45  ;;  %1971 = vmatpush1.bf16.msra.mxu0 %v2710_v40  ;;  %v34_v40 = vld [vmem:[%s3859_s0 + $0xa0] sm:$0xff] }
  0x8c   :  { %2024 = vmatpush1.bf16.msra.mxu1 %v2713_v41  ;;  %1972 = vmatprep.subr.bf16.mxu0 %v2718_v48  ;;  %v2218_v41 = vcombine.low %v3397_v42, %v3402_v43  ;;  %v42_v45 = vld [vmem:[%s3859_s0 + $0xe0] sm:$0xff]  ;;  %v35_v48 = vld [vmem:[%s3859_s0 + $0xa8] sm:$0xff]  ;;  %v2794_v42 = vld [vmem:[%s3858_s1 + $0x670] ss:$8 sps:$4 sm:$0xff]  }
  0x8d   :  { %2025 = vmatprep.subr.bf16.mxu1 %v2721_v49  ;;  %1998 = vmatprep.mubr.bf16.mxu0 %v2219_v50  ;;  %v43_v49 = vld [vmem:[%s3859_s0 + $0xe8] sm:$0xff]  ;;  %v2797_v43 = vld [vmem:[%s3858_s1 + $0x770] ss:$8 sps:$4 sm:$0xff]   ;;  %v2235_v50 = vcombine.high %v34_v40, %v42_v45 }
  0x8e   :  { %2051 = vmatprep.mubr.bf16.mxu1 %v2221_v51  ;;  %v2805_v47 = vld [vmem:[%s3858_s1 + $0x764] ss:$8 sps:$4 sm:$0xff]   ;;  %v2237_v51 = vcombine.high %v35_v48, %v43_v49 }
  0x8f   :  { %1973 = vmatpush1.bf16.msra.mxu0 %v2716_v52  ;;  %v2800_v52 = vld [vmem:[%s3858_s1 + $0x660] ss:$8 sps:$4 sm:$0xff]  }
  0x90   :  { %2026 = vmatpush1.bf16.msra.mxu1 %v2719_v53  ;;  %1974 = vmatprep.subr.bf16.mxu0 %v2724_v54  ;;  %v2803_v53 = vld [vmem:[%s3858_s1 + $0x760] ss:$8 sps:$4 sm:$0xff]   ;;  %v2808_v54 = vld [vmem:[%s3858_s1 + $0x654] ss:$8 sps:$4 sm:$0xff]  }
  0x91   :  { %2027 = vmatprep.subr.bf16.mxu1 %v2727_v55  ;;  %v2811_v55 = vld [vmem:[%s3858_s1 + $0x754] ss:$8 sps:$4 sm:$0xff]  }
  0x93   :  { %1975 = vmatpush1.bf16.msra.mxu0 %v2722_v56  ;;  %v3623_v56 = vld [vmem:[%s3859_s0 + $0x30] sm:$0xff] }
  0x94   :  { %2028 = vmatpush1.bf16.msra.mxu1 %v2725_v57  ;;  %1976 = vmatprep.subr.bf16.mxu0 %v2730_v58  ;;  %v2234_v57 = vcombine.low %v34_v40, %v42_v45  ;;  %v2236_v58 = vcombine.low %v35_v48, %v43_v49  ;;  %v2866_v40 = vld [vmem:[%s3858_s1 + $0x6b0] ss:$8 sps:$4 sm:$0xff]   ;;  %v2877_v45 = vld [vmem:[%s3858_s1 + $0x7a4] ss:$8 sps:$4 sm:$0xff]   ;;  %v2872_v48 = vld [vmem:[%s3858_s1 + $0x6a0] ss:$8 sps:$4 sm:$0xff]  }
  0x95   :  { %2029 = vmatprep.subr.bf16.mxu1 %v2733_v59  ;;  %v3628_v59 = vld [vmem:[%s3859_s0 + $0x70] sm:$0xff]  ;;  %v2875_v49 = vld [vmem:[%s3858_s1 + $0x7a0] ss:$8 sps:$4 sm:$0xff]  }
  0x97   :  { %1977 = vmatpush1.bf16.msra.mxu0 %v2728_v60  ;;  %v3633_v60 = vld [vmem:[%s3859_s0 + $0x38] sm:$0xff] }
  0x98   :  { %2030 = vmatpush1.bf16.msra.mxu1 %v2731_v61  ;;  %1978 = vmatprep.subr.bf16.mxu0 %v2736_v62  ;;  %v3638_v61 = vld [vmem:[%s3859_s0 + $0x78] sm:$0xff] }
  0x99   :  { %2031 = vmatprep.subr.bf16.mxu1 %v2739_v63  ;;  %v2806_v62 = vld [vmem:[%s3858_s1 + $0x650] ss:$8 sps:$4 sm:$0xff]  }
  0x9a   :  { %v2809_v63 = vld [vmem:[%s3858_s1 + $0x750] ss:$8 sps:$4 sm:$0xff]  }
  0x9b   :  { %1979 = vmatpush1.bf16.msra.mxu0 %v2734_v0  ;;  %v2814_v0 = vld [vmem:[%s3858_s1 + $0x644] ss:$8 sps:$4 sm:$0xff]  }
  0x9c   :  { %2032 = vmatpush1.bf16.msra.mxu1 %v2737_v1  ;;  %1980 = vmatprep.subr.bf16.mxu0 %v2742_v2  ;;  %v2817_v1 = vld [vmem:[%s3858_s1 + $0x744] ss:$8 sps:$4 sm:$0xff]   ;;  %v2223_v2 = vcombine.high %v3623_v56, %v3628_v59 }
  0x9d   :  { %2033 = vmatprep.subr.bf16.mxu1 %v2745_v3  ;;  %v2225_v3 = vcombine.high %v3633_v60, %v3638_v61 }
  0x9f   :  { %1981 = vmatpush1.bf16.msra.mxu0 %v2740_v4  ;;  %v2812_v4 = vld [vmem:[%s3858_s1 + $0x640] ss:$8 sps:$4 sm:$0xff]  }
  0xa0   :  { %2034 = vmatpush1.bf16.msra.mxu1 %v2743_v5  ;;  %1982 = vmatprep.subr.bf16.mxu0 %v2748_v6  ;;  %v2815_v5 = vld [vmem:[%s3858_s1 + $0x740] ss:$8 sps:$4 sm:$0xff]   ;;  %v2820_v6 = vld [vmem:[%s3858_s1 + $0x634] ss:$8 sps:$4 sm:$0xff]  }
  0xa1   :  { %2035 = vmatprep.subr.bf16.mxu1 %v2751_v7  ;;  %v2823_v7 = vld [vmem:[%s3858_s1 + $0x734] ss:$8 sps:$4 sm:$0xff]  }
  0xa3   :  { %1983 = vmatpush2.bf16.msra.mxu0 %v2746_v8  ;;  %v2818_v8 = vld [vmem:[%s3858_s1 + $0x630] ss:$8 sps:$4 sm:$0xff]  }
  0xa4   :  { %2036 = vmatpush2.bf16.msra.mxu1 %v2749_v9  ;;  %1984 = vmatprep.subr.bf16.mxu0 %v2754_v10  ;;  %v2821_v9 = vld [vmem:[%s3858_s1 + $0x730] ss:$8 sps:$4 sm:$0xff]   ;;  %v2826_v10 = vld [vmem:[%s3858_s1 + $0x624] ss:$8 sps:$4 sm:$0xff]  }
  0xa5   :  { %2037 = vmatprep.subr.bf16.mxu1 %v2757_v11  ;;  %v2829_v11 = vld [vmem:[%s3858_s1 + $0x724] ss:$8 sps:$4 sm:$0xff]  }
  0xa7   :  { %1985 = vmatpush2.bf16.msra.mxu0 %v2752_v12  ;;  %v2824_v12 = vld [vmem:[%s3858_s1 + $0x620] ss:$8 sps:$4 sm:$0xff]  }
  0xa8   :  { %2038 = vmatpush2.bf16.msra.mxu1 %v2755_v13  ;;  %1986 = vmatprep.subr.bf16.mxu0 %v2760_v14  ;;  %v2827_v13 = vld [vmem:[%s3858_s1 + $0x720] ss:$8 sps:$4 sm:$0xff]   ;;  %v2832_v14 = vld [vmem:[%s3858_s1 + $0x614] ss:$8 sps:$4 sm:$0xff]  }
  0xa9   :  { %2039 = vmatprep.subr.bf16.mxu1 %v2763_v15  ;;  %v2835_v15 = vld [vmem:[%s3858_s1 + $0x714] ss:$8 sps:$4 sm:$0xff]  }
  0xab   :  { %1987 = vmatpush2.bf16.msra.mxu0 %v2758_v16  ;;  %v2830_v16 = vld [vmem:[%s3858_s1 + $0x610] ss:$8 sps:$4 sm:$0xff]  }
  0xac   :  { %2040 = vmatpush2.bf16.msra.mxu1 %v2761_v17  ;;  %1988 = vmatprep.subr.bf16.mxu0 %v2766_v18  ;;  %v2833_v17 = vld [vmem:[%s3858_s1 + $0x710] ss:$8 sps:$4 sm:$0xff]   ;;  %v2838_v18 = vld [vmem:[%s3858_s1 + $0x604] ss:$8 sps:$4 sm:$0xff]  }
  0xad   :  { %2041 = vmatprep.subr.bf16.mxu1 %v2769_v19  ;;  %v2841_v19 = vld [vmem:[%s3858_s1 + $0x704] ss:$8 sps:$4 sm:$0xff]  }
  0xaf   :  { %1989 = vmatpush2.bf16.msra.mxu0 %v2764_v20  ;;  %v2836_v20 = vld [vmem:[%s3858_s1 + $0x600] ss:$8 sps:$4 sm:$0xff]  }
  0xb0   :  { %2042 = vmatpush2.bf16.msra.mxu1 %v2767_v21  ;;  %1990 = vmatprep.subr.bf16.mxu0 %v2772_v22  ;;  %v2839_v21 = vld [vmem:[%s3858_s1 + $0x700] ss:$8 sps:$4 sm:$0xff]   ;;  %v2844_v22 = vld [vmem:[%s3858_s1 + $0x6f4] ss:$8 sps:$4 sm:$0xff]  }
  0xb1   :  { %2043 = vmatprep.subr.bf16.mxu1 %v2775_v23  ;;  %v2847_v23 = vld [vmem:[%s3858_s1 + $0x7f4] ss:$8 sps:$4 sm:$0xff]  }
  0xb3   :  { %1991 = vmatpush2.bf16.msra.mxu0 %v2770_v24  ;;  %v2842_v24 = vld [vmem:[%s3858_s1 + $0x6f0] ss:$8 sps:$4 sm:$0xff]  }
  0xb4   :  { %2044 = vmatpush2.bf16.msra.mxu1 %v2773_v25  ;;  %1992 = vmatprep.subr.bf16.mxu0 %v2778_v26  ;;  %v2845_v25 = vld [vmem:[%s3858_s1 + $0x7f0] ss:$8 sps:$4 sm:$0xff]   ;;  %v2850_v26 = vld [vmem:[%s3858_s1 + $0x6e4] ss:$8 sps:$4 sm:$0xff]  }
  0xb5   :  { %2045 = vmatprep.subr.bf16.mxu1 %v2781_v27  ;;  %v2853_v27 = vld [vmem:[%s3858_s1 + $0x7e4] ss:$8 sps:$4 sm:$0xff]  }
  0xb7   :  { %1993 = vmatpush2.bf16.msra.mxu0 %v2776_v28  ;;  %v2848_v28 = vld [vmem:[%s3858_s1 + $0x6e0] ss:$8 sps:$4 sm:$0xff]  }
  0xb8   :  { %2046 = vmatpush2.bf16.msra.mxu1 %v2779_v29  ;;  %1994 = vmatprep.subr.bf16.mxu0 %v2784_v30  ;;  %v2851_v29 = vld [vmem:[%s3858_s1 + $0x7e0] ss:$8 sps:$4 sm:$0xff]   ;;  %v2856_v30 = vld [vmem:[%s3858_s1 + $0x6d4] ss:$8 sps:$4 sm:$0xff]  }
  0xb9   :  { %2047 = vmatprep.subr.bf16.mxu1 %v2787_v31  ;;  %v2859_v31 = vld [vmem:[%s3858_s1 + $0x7d4] ss:$8 sps:$4 sm:$0xff]  }
  0xbb   :  { %1995 = vmatpush2.bf16.msra.mxu0 %v2782_v32  ;;  %v2854_v32 = vld [vmem:[%s3858_s1 + $0x6d0] ss:$8 sps:$4 sm:$0xff]  }
  0xbc   :  { %2048 = vmatpush2.bf16.msra.mxu1 %v2785_v33  ;;  %1996 = vmatprep.subr.bf16.mxu0 %v2790_v34  ;;  %v2857_v33 = vld [vmem:[%s3858_s1 + $0x7d0] ss:$8 sps:$4 sm:$0xff]   ;;  %v2862_v34 = vld [vmem:[%s3858_s1 + $0x6c4] ss:$8 sps:$4 sm:$0xff]  }
  0xbd   :  { %2049 = vmatprep.subr.bf16.mxu1 %v2793_v35  ;;  %v2865_v35 = vld [vmem:[%s3858_s1 + $0x7c4] ss:$8 sps:$4 sm:$0xff]  }
  0xbf   :  { %1997 = vmatpush2.bf16.msra.mxu0 %v2788_v36  ;;  %v2860_v36 = vld [vmem:[%s3858_s1 + $0x6c0] ss:$8 sps:$4 sm:$0xff]  }
  0xc0   :  { %2050 = vmatpush2.bf16.msra.mxu1 %v2791_v37  ;;  %2072 = vmatprep.subr.bf16.mxu0 %v2796_v38  ;;  %v2863_v37 = vld [vmem:[%s3858_s1 + $0x7c0] ss:$8 sps:$4 sm:$0xff]   ;;  %v2868_v38 = vld [vmem:[%s3858_s1 + $0x6b4] ss:$8 sps:$4 sm:$0xff]  }
  0xc1   :  { %2125 = vmatprep.subr.bf16.mxu1 %v2799_v39  ;;  %v2871_v39 = vld [vmem:[%s3858_s1 + $0x7b4] ss:$8 sps:$4 sm:$0xff]  }
  0xc2   :  { %1999 = vmatmul.mubr.bf16.vlgmr.msra.gmra.mxu0 %v2218_v41  ;;  %v2869_v41 = vld [vmem:[%s3858_s1 + $0x7b0] ss:$8 sps:$4 sm:$0xff]  }
  0xc3   :  { %2052 = vmatmul.mubr.bf16.vlgmr.msra.gmra.mxu1 %v2220_v44  ;;  %2073 = vmatpush1.bf16.msra.mxu0 %v2794_v42  ;;  %v2874_v44 = vld [vmem:[%s3858_s1 + $0x6a4] ss:$8 sps:$4 sm:$0xff]   ;;  %v2880_v42 = vld [vmem:[%s3858_s1 + $0x694] ss:$8 sps:$4 sm:$0xff]  }
  0xc4   :  { %2126 = vmatpush1.bf16.msra.mxu1 %v2797_v43  ;;  %2074 = vmatprep.subr.bf16.mxu0 %v2802_v46  ;;  %v2883_v43 = vld [vmem:[%s3858_s1 + $0x794] ss:$8 sps:$4 sm:$0xff]   ;;  %v2878_v46 = vld [vmem:[%s3858_s1 + $0x690] ss:$8 sps:$4 sm:$0xff]  }
  0xc5   :  { %2127 = vmatprep.subr.bf16.mxu1 %v2805_v47  ;;  %2008 = vmatprep.mubr.bf16.mxu0 %v2235_v50  ;;  %v2881_v47 = vld [vmem:[%s3858_s1 + $0x790] ss:$8 sps:$4 sm:$0xff]   ;;  %v2886_v50 = vld [vmem:[%s3858_s1 + $0x684] ss:$8 sps:$4 sm:$0xff]  }
  0xc6   :  { %2061 = vmatprep.mubr.bf16.mxu1 %v2237_v51  ;;  %v2889_v51 = vld [vmem:[%s3858_s1 + $0x784] ss:$8 sps:$4 sm:$0xff]  }
  0xc7   :  { %2075 = vmatpush1.bf16.msra.mxu0 %v2800_v52  ;;  %v2884_v52 = vld [vmem:[%s3858_s1 + $0x680] ss:$8 sps:$4 sm:$0xff]  }
  0xc8   :  { %2128 = vmatpush1.bf16.msra.mxu1 %v2803_v53  ;;  %2076 = vmatprep.subr.bf16.mxu0 %v2808_v54  ;;  %v2887_v53 = vld [vmem:[%s3858_s1 + $0x780] ss:$8 sps:$4 sm:$0xff]   ;;  %v36_v54 = vld [vmem:[%s3859_s0 + $0xb0] sm:$0xff] }
  0xc9   :  { %2129 = vmatprep.subr.bf16.mxu1 %v2811_v55  ;;  %v44_v55 = vld [vmem:[%s3859_s0 + $0xf0] sm:$0xff] }
  0xca   :  { %2009 = vmatmul.mubr.bf16.gmra.mxu0 %v2234_v57  ;;  %v37_v57 = vld [vmem:[%s3859_s0 + $0xb8] sm:$0xff] }
  0xcb   :  { %2062 = vmatmul.mubr.bf16.gmra.mxu1 %v2236_v58  ;;  %2077 = vmatpush1.bf16.msra.mxu0 %v2806_v62  ;;  %v45_v58 = vld [vmem:[%s3859_s0 + $0xf8] sm:$0xff]  ;;  %v2222_v62 = vcombine.low %v3623_v56, %v3628_v59 }
  0xcc   :  { %2130 = vmatpush1.bf16.msra.mxu1 %v2809_v63  ;;  %2078 = vmatprep.subr.bf16.mxu0 %v2814_v0  ;;  %v2224_v63 = vcombine.low %v3633_v60, %v3638_v61  ;;  %v2239_v0 = vcombine.high %v36_v54, %v44_v55 }
  0xcd   :  { %2131 = vmatprep.subr.bf16.mxu1 %v2817_v1  ;;  %2104 = vmatprep.mubr.bf16.mxu0 %v2223_v2  ;;  %v2241_v1 = vcombine.high %v37_v57, %v45_v58  ;;  %v2238_v2 = vcombine.low %v36_v54, %v44_v55 }
  0xce   :  { %2157 = vmatprep.mubr.bf16.mxu1 %v2225_v3  ;;  %v2240_v3 = vcombine.low %v37_v57, %v45_v58 }
  0xcf   :  { %2079 = vmatpush1.bf16.msra.mxu0 %v2812_v4 }
  0xd0   :  { %2132 = vmatpush1.bf16.msra.mxu1 %v2815_v5  ;;  %2080 = vmatprep.subr.bf16.mxu0 %v2820_v6 }
  0xd1   :  { %2133 = vmatprep.subr.bf16.mxu1 %v2823_v7 }
  0xd3   :  { %2081 = vmatpush1.bf16.msra.mxu0 %v2818_v8 }
  0xd4   :  { %2134 = vmatpush1.bf16.msra.mxu1 %v2821_v9  ;;  %2082 = vmatprep.subr.bf16.mxu0 %v2826_v10 }
  0xd5   :  { %2135 = vmatprep.subr.bf16.mxu1 %v2829_v11 }
  0xd7   :  { %2083 = vmatpush1.bf16.msra.mxu0 %v2824_v12 }
  0xd8   :  { %2136 = vmatpush1.bf16.msra.mxu1 %v2827_v13  ;;  %2084 = vmatprep.subr.bf16.mxu0 %v2832_v14 }
  0xd9   :  { %2137 = vmatprep.subr.bf16.mxu1 %v2835_v15 }
  0xdb   :  { %2085 = vmatpush1.bf16.msra.mxu0 %v2830_v16 }
  0xdc   :  { %2138 = vmatpush1.bf16.msra.mxu1 %v2833_v17  ;;  %2086 = vmatprep.subr.bf16.mxu0 %v2838_v18 }
  0xdd   :  { %2139 = vmatprep.subr.bf16.mxu1 %v2841_v19 }
  0xdf   :  { %2087 = vmatpush1.bf16.msra.mxu0 %v2836_v20 }
  0xe0   :  { %2140 = vmatpush1.bf16.msra.mxu1 %v2839_v21  ;;  %2088 = vmatprep.subr.bf16.mxu0 %v2844_v22 }
  0xe1   :  { %2141 = vmatprep.subr.bf16.mxu1 %v2847_v23 }
  0xe3   :  { %2089 = vmatpush2.bf16.msra.mxu0 %v2842_v24 }
  0xe4   :  { %2142 = vmatpush2.bf16.msra.mxu1 %v2845_v25  ;;  %2090 = vmatprep.subr.bf16.mxu0 %v2850_v26 }
  0xe5   :  { %2143 = vmatprep.subr.bf16.mxu1 %v2853_v27 }
  0xe7   :  { %2091 = vmatpush2.bf16.msra.mxu0 %v2848_v28 }
  0xe8   :  { %2144 = vmatpush2.bf16.msra.mxu1 %v2851_v29  ;;  %2092 = vmatprep.subr.bf16.mxu0 %v2856_v30  ;;  %v304_v30 = vlaneseq }
  0xe9   :  { %2145 = vmatprep.subr.bf16.mxu1 %v2859_v31 }
  0xeb   :  { %2093 = vmatpush2.bf16.msra.mxu0 %v2854_v32 }
  0xec   :  { %2146 = vmatpush2.bf16.msra.mxu1 %v2857_v33  ;;  %2094 = vmatprep.subr.bf16.mxu0 %v2862_v34  ;;  %v305_v34 = vshrl.u32 %v304_v30, 7 }
  0xed   :  { %2147 = vmatprep.subr.bf16.mxu1 %v2865_v35 }
  0xef   :  { %2095 = vmatpush2.bf16.msra.mxu0 %v2860_v36 }
  0xf0   :  { %2148 = vmatpush2.bf16.msra.mxu1 %v2863_v37  ;;  %2096 = vmatprep.subr.bf16.mxu0 %v2868_v38  ;;  %v306_v37 = vsub.s32 0, %v305_v34  ;;  %v302_v38 = vld [vmem:[%s3860_s2] sm:$0x3] }
  0xf1   :  { %2149 = vmatprep.subr.bf16.mxu1 %v2871_v39 }
  0xf3   :  { %2097 = vmatpush2.bf16.msra.mxu0 %v2866_v40  ;;  %v310_v40 = vsub.s32 1, %v305_v34 }
  0xf4   :  { %2150 = vmatpush2.bf16.msra.mxu1 %v2869_v41  ;;  %2098 = vmatprep.subr.bf16.mxu0 %v2874_v44  ;;  %v307_v44 = vrot.slane %v302_v38, %v306_v37 }
  0xf5   :  { %2151 = vmatprep.subr.bf16.mxu1 %v2877_v45 }
  0xf7   :  { %2099 = vmatpush2.bf16.msra.mxu0 %v2872_v48  ;;  %v311_v48 = vrot.slane %v302_v38, %v310_v40 }
  0xf8   :  { %2152 = vmatpush2.bf16.msra.mxu1 %v2875_v49  ;;  %2100 = vmatprep.subr.bf16.mxu0 %v2880_v42 }
  0xf9   :  { %2153 = vmatprep.subr.bf16.mxu1 %v2883_v43 }
  0xfb   :  { %2101 = vmatpush2.bf16.msra.mxu0 %v2878_v46 }
  0xfc   :  { %2154 = vmatpush2.bf16.msra.mxu1 %v2881_v47  ;;  %2102 = vmatprep.subr.bf16.mxu0 %v2886_v50 }
  0xfd   :  { %2155 = vmatprep.subr.bf16.mxu1 %v2889_v51 }
  0xff   :  { %2103 = vmatpush2.bf16.msra.mxu0 %v2884_v52 }
 0x100   :  { %2156 = vmatpush2.bf16.msra.mxu1 %v2887_v53 }
 0x102   :  { %2105 = vmatmul.mubr.bf16.vlgmr.msra.gmra.mxu0 %v2222_v62  ;;  %v1788_v4 = vpop.f32.mrf.mxu0 }
 0x103   :  { %2158 = vmatmul.mubr.bf16.vlgmr.msra.gmra.mxu1 %v2224_v63  ;;  %2114 = vmatprep.mubr.bf16.mxu0 %v2239_v0  ;;  %v1841_v5 = vpop.f32.mrf.mxu1  ;;  %v1789_v42 = vadd.f32 %v1788_v4, %v307_v44 }
 0x104   :  { %2167 = vmatprep.mubr.bf16.mxu1 %v2241_v1  ;;  %v1790_v6 = vpop.f32.mrf.mxu0 }
 0x105   :  { %v1843_v7 = vpop.f32.mrf.mxu1  ;;  %v1791_v46 = vadd.f32 %v1790_v6, %v311_v48  ;;  %v1842_v51 = vadd.f32 %v1841_v5, %v1789_v42 }
 0x106   :  { %v1792_v56 = vpop.f32.mrf.mxu0 }
 0x107   :  { %v1845_v59 = vpop.f32.mrf.mxu1  ;;  %v1793_v52 = vadd.f32 %v1792_v56, %v307_v44  ;;  %v1844_v53 = vadd.f32 %v1843_v7, %v1791_v46 }
 0x108   :  { %v1794_v8 = vpop.f32.mrf.mxu0 }
 0x109   :  { %v1847_v61 = vpop.f32.mrf.mxu1  ;;  %v1795_v54 = vadd.f32 %v1794_v8, %v311_v48  ;;  %v1846_v62 = vadd.f32 %v1845_v59, %v1793_v52 }
 0x10a   :  { %2115 = vmatmul.mubr.bf16.gmra.mxu0 %v2238_v2  ;;  %v1798_v60 = vpop.f32.mrf.mxu0 }
 0x10b   :  { %2168 = vmatmul.mubr.bf16.gmra.mxu1 %v2240_v3  ;;  %v1851_v10 = vpop.f32.mrf.mxu1  ;;  %v1799_v63 = vadd.f32 %v1798_v60, %v307_v44  ;;  %v1848_v2 = vadd.f32 %v1847_v61, %v1795_v54 }
 0x10c   :  { %v1800_v9 = vpop.f32.mrf.mxu0 }
 0x10d   :  { %v1853_v12 = vpop.f32.mrf.mxu1  ;;  %v1801_v1 = vadd.f32 %v1800_v9, %v311_v48  ;;  %v1852_v6 = vadd.f32 %v1851_v10, %v1799_v63 }
 0x10e   :  { %v1802_v11 = vpop.f32.mrf.mxu0 }
 0x10f   :  { %v3822_v14 = vpop.f32.mrf.mxu1  ;;  %v1803_v34 = vadd.f32 %v1802_v11, %v307_v44  ;;  %v1854_v56 = vadd.f32 %v1853_v12, %v1801_v1 }
 0x110   :  { %v1804_v13 = vpop.f32.mrf.mxu0 }
 0x111   :  { %v3824_v16 = vpop.f32.mrf.mxu1  ;;  %v1805_v7 = vadd.f32 %v1804_v13, %v311_v48  ;;  %v1856_v59 = vadd.f32 %v3822_v14, %v1803_v34 }
 0x113   :  { %v1858_v11 = vadd.f32 %v3824_v16, %v1805_v7 }
 0x142   :  { %v1894_v15 = vpop.f32.mrf.mxu0 }
 0x143   :  { %v1947_v17 = vpop.f32.mrf.mxu1  ;;  %v1895_v55 = vadd.f32 %v1894_v15, %v1842_v51 }
 0x144   :  { %v1896_v18 = vpop.f32.mrf.mxu0 }
 0x145   :  { %v1949_v19 = vpop.f32.mrf.mxu1  ;;  %v1897_v0 = vadd.f32 %v1896_v18, %v1844_v53  ;;  %v1948_v3 = vadd.f32 %v1947_v17, %v1895_v55 }
 0x146   :  { %v1898_v20 = vpop.f32.mrf.mxu0 }
 0x147   :  { %v1951_v21 = vpop.f32.mrf.mxu1  ;;  %v1899_v30 = vadd.f32 %v1898_v20, %v1846_v62  ;;  %v1950_v38 = vadd.f32 %v1949_v19, %v1897_v0 }
 0x148   :  { %v1900_v22 = vpop.f32.mrf.mxu0 }
 0x149   :  { %v1953_v23 = vpop.f32.mrf.mxu1  ;;  %v1901_v40 = vadd.f32 %v1900_v22, %v1848_v2  ;;  %v1952_v8 = vadd.f32 %v1951_v21, %v1899_v30 }
 0x14a   :  { %v1904_v24 = vpop.f32.mrf.mxu0 }
 0x14b   :  { %v3826_v25 = vpop.f32.mrf.mxu1  ;;  %v1905_v15 = vadd.f32 %v1904_v24, %v1852_v6  ;;  %v1954_v61 = vadd.f32 %v1953_v23, %v1901_v40 }
 0x14c   :  { %v1906_v26 = vpop.f32.mrf.mxu0 }
 0x14d   :  { %v3828_v27 = vpop.f32.mrf.mxu1  ;;  %v1907_v60 = vadd.f32 %v1906_v26, %v1854_v56  ;;  %v1958_v22 = vadd.f32 %v3826_v25, %v1905_v15 }
 0x14e   :  { %v1908_v28 = vpop.f32.mrf.mxu0 }
 0x14f   :  { %v3830_v29 = vpop.f32.mrf.mxu1  ;;  %v1909_v44 = vadd.f32 %v1908_v28, %v1856_v59  ;;  %v1960_v24 = vadd.f32 %v3828_v27, %v1907_v60 }
 0x150   :  { %v3832_v31 = vpop.f32.mrf.mxu0 }
 0x151   :  { %v3834_v32 = vpop.f32.mrf.mxu1  ;;  %v1911_v14 = vadd.f32 %v3832_v31, %v1858_v11 }
 0x182   :  { %v2000_v33 = vpop.f32.mrf.mxu0 }
 0x183   :  { %v2053_v35 = vpop.f32.mrf.mxu1  ;;  %v2001_v5 = vadd.f32 %v2000_v33, %v1948_v3 }
 0x184   :  { %v2002_v36 = vpop.f32.mrf.mxu0 }
 0x185   :  { %v2055_v39 = vpop.f32.mrf.mxu1  ;;  %v2003_v42 = vadd.f32 %v2002_v36, %v1950_v38  ;;  %v2054_v17 = vadd.f32 %v2053_v35, %v2001_v5 }
 0x186   :  { %v2004_v41 = vpop.f32.mrf.mxu0 }
 0x187   :  { %v2057_v45 = vpop.f32.mrf.mxu1  ;;  %v2005_v20 = vadd.f32 %v2004_v41, %v1952_v8  ;;  %v2056_v12 = vadd.f32 %v2055_v39, %v2003_v42  ;;  %v1962_v41 = vadd.f32 %v3830_v29, %v1909_v44 }
 0x188   :  { %v2006_v49 = vpop.f32.mrf.mxu0 }
 0x189   :  { %v2059_v43 = vpop.f32.mrf.mxu1  ;;  %v2007_v13 = vadd.f32 %v2006_v49, %v1954_v61  ;;  %v2058_v36 = vadd.f32 %v2057_v45, %v2005_v20  ;;  %v1964_v49 = vadd.f32 %v3834_v32, %v1911_v14 }
 0x18a   :  { %v2010_v47 = vpop.f32.mrf.mxu0 }
 0x18b   :  { %v2063_v50 = vpop.f32.mrf.mxu1  ;;  %v2011_v23 = vadd.f32 %v2010_v47, %v1958_v22  ;;  %v2060_v46 = vadd.f32 %v2059_v43, %v2007_v13 }
 0x18c   :  { %v2012_v57 = vpop.f32.mrf.mxu0 }
 0x18d   :  { %v2065_v58 = vpop.f32.mrf.mxu1  ;;  %v2013_v16 = vadd.f32 %v2012_v57, %v1960_v24  ;;  %v2064_v53 = vadd.f32 %v2063_v50, %v2011_v23 }
 0x18e   :  { %v2014_v4 = vpop.f32.mrf.mxu0 }
 0x18f   :  { %v2067_v37 = vpop.f32.mrf.mxu1  ;;  %v2015_v31 = vadd.f32 %v2014_v4, %v1962_v41  ;;  %v2066_v45 = vadd.f32 %v2065_v58, %v2013_v16 }
 0x190   :  { %v2016_v18 = vpop.f32.mrf.mxu0 }
 0x191   :  { %v2069_v9 = vpop.f32.mrf.mxu1  ;;  %v2017_v63 = vadd.f32 %v2016_v18, %v1964_v49  ;;  %v2068_v32 = vadd.f32 %v2067_v37, %v2015_v31 }
 0x193   :  { %v2070_v34 = vadd.f32 %v2069_v9, %v2017_v63 }
 0x1c2   :  { %v2106_v10 = vpop.f32.mrf.mxu0 }
 0x1c3   :  { %v2159_v19 = vpop.f32.mrf.mxu1  ;;  %v2107_v21 = vadd.f32 %v2106_v10, %v2054_v17 }
 0x1c4   :  { %v2108_v26 = vpop.f32.mrf.mxu0 }
 0x1c5   :  { %v2161_v33 = vpop.f32.mrf.mxu1  ;;  %v2109_v35 = vadd.f32 %v2108_v26, %v2056_v12  ;;  %v2160_v51 = vadd.f32 %v2159_v19, %v2107_v21 }
 0x1c6   :  { %v2110_v28 = vpop.f32.mrf.mxu0 }
 0x1c7   :  { %v2163_v48 = vpop.f32.mrf.mxu1  ;;  %v2162_v25 = vadd.f32 %v2161_v33, %v2109_v35  ;;  %v2111_v39 = vadd.f32 %v2110_v28, %v2058_v36 }
 0x1c8   :  { %v2112_v52 = vpop.f32.mrf.mxu0 }
 0x1c9   :  { %v2165_v27 = vpop.f32.mrf.mxu1  ;;  %v2502_v54 = vpack.c.bf16 %v2162_v25, %v2160_v51  ;;  %v2113_v55 = vadd.f32 %v2112_v52, %v2060_v46  ;;  %v2164_v29 = vadd.f32 %v2163_v48, %v2111_v39 }
 0x1ca   :  { %v2116_v47 = vpop.f32.mrf.mxu0 }
 0x1cb   :  { %v2169_v62 = vpop.f32.mrf.mxu1  ;;  %2202 = vst [vmem:[%s3861_s3] sm:$0xff] %v2502_v54  ;;  %v2166_v43 = vadd.f32 %v2165_v27, %v2113_v55  ;;  %v2117_v57 = vadd.f32 %v2116_v47, %v2064_v53 }
 0x1cc   :  { %v2118_v0 = vpop.f32.mrf.mxu0 }
 0x1cd   :  { %v2171_v1 = vpop.f32.mrf.mxu1  ;;  %v2503_v2 = vpack.c.bf16 %v2166_v43, %v2164_v29  ;;  %v2119_v3 = vadd.f32 %v2118_v0, %v2066_v45  ;;  %v2170_v58 = vadd.f32 %v2169_v62, %v2117_v57 }
 0x1ce   :  { %v2120_v50 = vpop.f32.mrf.mxu0 }
 0x1cf   :  { %v2173_v30 = vpop.f32.mrf.mxu1  ;;  %2203 = vst [vmem:[%s3861_s3 + $0x8] sm:$0xff] %v2503_v2  ;;  %v2172_v4 = vadd.f32 %v2171_v1, %v2119_v3  ;;  %v2121_v6 = vadd.f32 %v2120_v50, %v2068_v32 }
 0x1d0   :  { %v2122_v38 = vpop.f32.mrf.mxu0 }
 0x1d1   :  { %v2504_v40 = vpack.c.bf16 %v2172_v4, %v2170_v58  ;;  %v2123_v5 = vadd.f32 %v2122_v38, %v2070_v34  ;;  %v2175_v56 = vpop.f32.mrf.mxu1  ;;  %v2174_v37 = vadd.f32 %v2173_v30, %v2121_v6 }
 0x1d3   :  { %2204 = vst [vmem:[%s3861_s3 + $0x10] sm:$0xff] %v2504_v40  ;;  %v2176_v7 = vadd.f32 %v2175_v56, %v2123_v5 }
 0x1d5   :  { %v2505_v8 = vpack.c.bf16 %v2176_v7, %v2174_v37 }
 0x1d7   :  { %2205 = vst [vmem:[%s3861_s3 + $0x18] sm:$0xff] %v2505_v8 }

// kernel: discriminator_global.14
= control target key start
LH: loop header
LB: loop body
LE: loop exit
PB: predicated region body
PF: predicated region fallthrough
CT: control target
= control target key end

     0   :  { %s509_s6 = smov 0   ;;  %s511_s7 = smov 0   ;;  %s609_s0 = inlined_call_operand.vmem [shape: bf16[2,2,2,512], index: 0, kind: input, shape index: {}]   ;;  %s610_s1 = inlined_call_operand.vmem [shape: bf16[2,2,2,512], index: 1, kind: output, shape index: {}]  }
   0x1   :  { %s513_s8 = smov 0   ;;  %s515_s9 = smov 0  }
   0x2   :  { %s517_s10 = smov 0   ;;  %s519_s11 = smov 0  }
   0x3   :  { %s521_s12 = smov 0  }
   0x4 LB: > { %s20_s13 = sadd.s32 1, %s488_s10  ;;  %s23_s14 = sadd.s32 1, %s492_s11  ;;  %s496_s12 = sphi %s521_s12, %s11_s12   ;;  %s492_s11 = sphi %s519_s11, %s617_s11   ;;  %s488_s10 = sphi %s517_s10, %s616_s10   ;;  %s484_s9 = sphi %s515_s9, %s615_s9   ;;  %s480_s8 = sphi %s513_s8, %s614_s8   ;;  %s476_s7 = sphi %s511_s7, %s613_s7   ;;  %s472_s6 = sphi %s509_s6, %s612_s6  }
   0x5   : > { %p21_p0 = scmp.ge.s32.totalorder %s20_s13, 4  ;;  %s370_s15 = sadd.s32 4294967295, %s496_s12  }
   0x6   : > { %p39_p1 = scmp.ne.s32.totalorder %s476_s7, %s472_s6  ;;  %p40_p2 = scmp.eq.s32.totalorder %s496_s12, 0 }
   0x7   : > { %s619_s13 = smov (%p21_p0, %s20_s13), 0  ;;  %s621_s14 = smov (!%p21_p0, %s23_s14), %s492_s11 }
   0x8   : > { %p25_p3 = scmp.ge.s32.totalorder %s621_s14, 2  ;;  %p71_p4 = scmp.eq.s32.totalorder %s370_s15, 7 }
   0x9   : > { %s28_s16 = ssub.s32 %s488_s10, %s619_s13  ;;  %p41_p5 = por %p40_p2, %p39_p1 }
   0xa   : > { %s623_s14 = smov (%p25_p3, %s621_s14), 0  ;;  %p557_p6 = por %p71_p4, %p39_p1 }
   0xb   : > { %s27_s18 = ssub.s32 %s492_s11, %s623_s14  ;;  %s32_s20 = sadd.s32 1, %s476_s7 }
   0xc   : > { %s29_s19 = sor.u32 %s28_s16, %s27_s18  ;;  %p373_p8 = scmp.ge.s32.totalorder %s496_s12, 8 }
   0xd   : > { %p30_p7 = scmp.eq.s32.totalorder %s29_s19, 0 }
   0xe   : > { %93 = sbr.rel (%p373_p8) target bundleno = 25 (0x19), region = 16 }
   0xf   : > { %s565_s21 = scalar_select %p30_p7, %s476_s7, %s32_s20  }
  0x13   : > { %96 = sbr.rel (!%p41_p5) target bundleno = 25 (0x19), region = 20  ;;  %s98_s22 = sand.u32 (%p41_p5), 1, %s476_s7  }
  0x14   : > { %s375_s23 = sshll.u32 (%p41_p5), %s492_s11, 3  ;;  %s374_s24 = sshll.u32 (%p41_p5), %s98_s22, 1 }
  0x15   : > { %s102_s25 = sadd.s32 (%p41_p5), %s488_s10, %s375_s23  ;;  %s100_s29 = scalar_lea.vmem (%p41_p5), [#allocation2], %s374_s24 }
  0x16   : > { %s103_s28 = scalar_lea.vmem (%p41_p5), %s609_s0, %s102_s25 }
  0x17   : > { %v120_v0 = vld [vmem:[%s103_s28] sm:$0x1] (%p41_p5)  ;;  %v122_v1 = vld [vmem:[%s103_s28 + $0x4] sm:$0x1] (%p41_p5) }
  0x18   : > { %121 = vst [vmem:[%s100_s29] sm:$0x1] %v120_v0  ;;  %123 = vst [vmem:[%s100_s29 + $0x1] sm:$0x1] %v122_v1 }
  0x19 PF: > { %p376_p9 = scmp.ge.s32.totalorder %s496_s12, 1  ;;  %p142_p10 = scmp.lt.s32.totalorder %s496_s12, 9 }
  0x1b   : > { %p143_p11 = pnand %p376_p9, %p142_p10 }
  0x1c   : > { %s149_s30 = sand.u32 (!%p143_p11), 1, %s472_s6  }
  0x1d   : > { %146 = sbr.rel (%p143_p11) target bundleno = 100 (0x64), region = 54  ;;  %s577_s2 = sshll.u32 (!%p143_p11), %s149_s30, 1 }
  0x1e   : > { %s151_s3 = scalar_lea.vmem (!%p143_p11), [#allocation2], %s577_s2  ;;  %s166_s4 = scalar_lea.vmem (!%p143_p11), [#allocation3], %s577_s2 }
  0x22   : > { %v177_v2 = vlaneseq  ;;  %v498_v3 = vmov 1983009808   ;;  %v167_v6 = vld [vmem:[%s151_s3] sm:$0x1]  ;;  %v168_v7 = vld [vmem:[%s151_s3 + $0x1] sm:$0x1] }
  0x23   : > { %v175_v4 = vunpack.c.l.s4 %v498_v3  ;;  %v169_v9 = vunpack.c.l.bf16 %v167_v6  ;;  %v170_v10 = vunpack.c.l.bf16 %v168_v7  ;;  %vm182_vm0 = vcmask 1043456   ;;  %s380_s5 = sshll.u32 (%p557_p6), %s484_s9, 3 }
  0x24   : > { %v178_v5 = vshrl.u32 %v177_v2, 7  ;;  %s261_s6 = sadd.s32 (%p557_p6), %s480_s8, %s380_s5 }
  0x25   : > { %v176_v8 = vunpack.c.0.s8 %v175_v4  ;;  %v173_v12 = vcombine.low %v169_v9, %v170_v10  ;;  %v191_v13 = vmul.f32 %v169_v9, %v169_v9  ;;  %v192_v14 = vmul.f32 %v170_v10, %v170_v10  ;;  %s262_s18 = scalar_lea.vmem (%p557_p6), %s610_s1, %s261_s6 }
  0x27   : > { %v179_v11 = vsub.s32 %v176_v8, %v178_v5  ;;  %v195_v16 = vcombine.low %v191_v13, %v192_v14 }
  0x29   : > { %v180_v15 = vrot.slane %v173_v12, %v179_v11  ;;  %v202_v18 = vrot.slane %v195_v16, %v179_v11 }
  0x2b   : > { %v183_v17 = vsel %vm182_vm0, %v180_v15, 0.0  ;;  %v204_v20 = vsel %vm182_vm0, %v202_v18, 0.0 }
  0x2c   : > { %v184_v19 = vrot.slane %v183_v17, 4  ;;  %v205_v22 = vrot.slane %v204_v20, 4 }
  0x2e   : > { %v185_v21 = vadd.f32 %v184_v19, %v183_v17  ;;  %v206_v24 = vadd.f32 %v205_v22, %v204_v20 }
  0x30   : > { %v186_v23 = vrot.slane %v185_v21, 2  ;;  %v207_v26 = vrot.slane %v206_v24, 2 }
  0x32   : > { %v187_v25 = vadd.f32 %v186_v23, %v185_v21  ;;  %v208_v28 = vadd.f32 %v207_v26, %v206_v24 }
  0x34   : > { %v188_v27 = vrot.slane %v187_v25, 1  ;;  %v209_v30 = vrot.slane %v208_v28, 1 }
  0x36   : > { %v189_v29 = vadd.f32 %v188_v27, %v187_v25  ;;  %v210_v32 = vadd.f32 %v209_v30, %v208_v28 }
  0x38   : > { %v190_v31 = vmul.f32 0.25, %v189_v29  ;;  %v211_v33 = vmul.f32 0.25, %v210_v32 }
  0x3a   : > { %v212_v34 = vmul.f32 %v190_v31, %v190_v31  ;;  %v222_v38 = vrot.slane %v190_v31, %v179_v11 }
  0x3c   : > { %v213_v35 = vsub.f32 %v211_v33, %v212_v34  ;;  %v223_v39 = vcombine.high %v222_v38, %v222_v38  ;;  %v226_v40 = vsub.f32 %v169_v9, %v222_v38 }
  0x3e   : > { %v214_v36 = vmax.f32 %v213_v35, 0.0  ;;  %v227_v43 = vsub.f32 %v170_v10, %v223_v39 }
  0x40   : > { %v228_v37 = vadd.f32 1e-05, %v214_v36 }
  0x42   : > { %440 = vrsqrt.f32 %v228_v37 }
  0x4f   : > { %v441_v41 = vpop.eup %440 }
  0x50   : > { %v237_v42 = vrot.slane %v441_v41, %v179_v11 }
  0x52   : > { %v241_v44 = vmul.f32 %v237_v42, %v226_v40  ;;  %v238_v45 = vcombine.high %v237_v42, %v237_v42 }
  0x54   : > { %vm243_vm1 = vcmp.ge.f32.partialorder %v241_v44, 0.0  ;;  %v245_v46 = vmul.f32 0.2, %v241_v44  ;;  %v242_v47 = vmul.f32 %v238_v45, %v227_v43 }
  0x56   : > { %v247_v48 = vsel %vm243_vm1, %v241_v44, %v245_v46  ;;  %vm244_vm2 = vcmp.ge.f32.partialorder %v242_v47, 0.0  ;;  %v246_v49 = vmul.f32 0.2, %v242_v47 }
  0x57   : > { %v249_v50 = vpack.c.bf16 %v247_v48, %v247_v48  ;;  %259 = sbr.rel (!%p557_p6) target bundleno = 100 (0x64), region = 62 }
  0x58   : > { %v248_v51 = vsel %vm244_vm2, %v242_v47, %v246_v49 }
  0x59   : > { %251 = vst [vmem:[%s166_s4] sm:$0x1] %v249_v50  ;;  %v250_v52 = vpack.c.bf16 %v248_v51, %v248_v51 }
  0x5b   : > { %252 = vst [vmem:[%s166_s4 + $0x1] sm:$0x1] %v250_v52 }
  0x60   : > { %v279_v53 = vld [vmem:[%s166_s4] sm:$0x1] }
  0x61   : > { %280 = vst [vmem:[%s262_s18] sm:$0x1] %v279_v53 }
  0x62   : > { %v281_v54 = vld [vmem:[%s166_s4 + $0x1] sm:$0x1] }
  0x63   : > { %282 = vst [vmem:[%s262_s18 + $0x4] sm:$0x1] %v281_v54 }
  0x64 PF: > { %s11_s12 = sadd.s32 1, %s496_s12   ;;  %s612_s6 = smov %s476_s7 }
  0x65   : > { %p8_p12 = scmp.ge.s32.totalorder %s11_s12, 10   ;;  %s613_s7 = smov %s565_s21 }
  0x66   : > { %s614_s8 = smov %s488_s10  ;;  %s615_s9 = smov %s492_s11 }
  0x67   : > { %s616_s10 = smov %s619_s13  ;;  %s617_s11 = smov %s623_s14 }
  0x68   :  { %10 = sbr.rel (!%p8_p12) target bundleno = 4 (0x4), region = 127 }

// kernel: discriminator_global.13
= control target key start
LH: loop header
LB: loop body
LE: loop exit
PB: predicated region body
PF: predicated region fallthrough
CT: control target
= control target key end

     0   :  { %s9861_s12 = smov 0   ;;  %s9863_s13 = smov 0   ;;  %s11643_s0 = inlined_call_operand.vmem [shape: bf16[8,4096], index: 0, kind: input, shape index: {}]   ;;  %s11644_s1 = inlined_call_operand.vmem [shape: bf16[4096,512], index: 1, kind: input, shape index: {}]   ;;  %s11645_s2 = inlined_call_operand.vmem [shape: f32[1,512], index: 2, kind: input, shape index: {}]   ;;  %s11646_s3 = inlined_call_operand.vmem [shape: bf16[8,512], index: 3, kind: output, shape index: {}]  }
   0x1   :  { %s9865_s14 = smov 0   ;;  %s9867_s15 = smov 0  }
   0x2   :  { %s9869_s16 = smov 0  }
   0x3 LB: > { %s22_s17 = sadd.s32 1, %s9835_s15  ;;  %p65_p1 = scmp.ne.s32.totalorder %s9827_s13, %s9823_s12  ;;  %s9839_s16 = sphi %s9869_s16, %s13_s16   ;;  %s9835_s15 = sphi %s9867_s15, %s11650_s15   ;;  %s9831_s14 = sphi %s9865_s14, %s11649_s14   ;;  %s9827_s13 = sphi %s9863_s13, %s11648_s13   ;;  %s9823_s12 = sphi %s9861_s12, %s11647_s12  }
   0x4   : > { %p23_p0 = scmp.ge.s32.totalorder %s22_s17, 2  ;;  %p66_p2 = scmp.eq.s32.totalorder %s9839_s16, 0 }
   0x5   : > { %s58_s19 = sadd.s32 1, %s9827_s13  ;;  %p8403_p5 = scmp.ge.s32.totalorder %s9839_s16, 2 }
   0x6   : > { %s11652_s17 = smov (%p23_p0, %s22_s17), 0  ;;  %p67_p3 = por %p66_p2, %p65_p1 }
   0x7   : > { %s55_s18 = ssub.s32 %s9835_s15, %s11652_s17  ;;  %153 = sbr.rel (%p8403_p5) target bundleno = 272 (0x110), region = 20 }
   0x8   : > { %p56_p4 = scmp.eq.s32.totalorder %s55_s18, 0 }
   0xa   : > { %s9896_s20 = scalar_select %p56_p4, %s9827_s13, %s58_s19  }
   0xc   : > { %156 = sbr.rel (!%p67_p3) target bundleno = 272 (0x110), region = 24  ;;  %s158_s21 = sand.u32 (%p67_p3), 1, %s9827_s13  }
   0xd   : > { %s8959_s22 = sshll.u32 (%p67_p3), %s9835_s15, 3  ;;  %s8404_s23 = sshll.u32 (%p67_p3), %s158_s21, 12 }
   0xe   : > { %s9904_s26 = scalar_lea.vmem (%p67_p3), %s11644_s1, %s8959_s22  ;;  %s9909_s27 = scalar_lea.vmem (%p67_p3), [#allocation2], %s8404_s23 }
   0xf   : > { %v1217_v0 = vld [vmem:[%s9904_s26] sm:$0xff] (%p67_p3)  ;;  %v1219_v1 = vld [vmem:[%s9904_s26 + $0x10] sm:$0xff] (%p67_p3) }
  0x10   : > { %v1221_v2 = vld [vmem:[%s9904_s26 + $0x20] sm:$0xff] (%p67_p3)  ;;  %1218 = vst [vmem:[%s9909_s27] sm:$0xff] (%p67_p3), %v1217_v0  ;;  %1220 = vst [vmem:[%s9909_s27 + $0x8] sm:$0xff] (%p67_p3), %v1219_v1  ;;  %v1223_v3 = vld [vmem:[%s9904_s26 + $0x30] sm:$0xff] (%p67_p3) }
  0x11   : > { %1222 = vst [vmem:[%s9909_s27 + $0x10] sm:$0xff] %v1221_v2  ;;  %v1225_v4 = vld [vmem:[%s9904_s26 + $0x40] sm:$0xff]  ;;  %v1227_v5 = vld [vmem:[%s9904_s26 + $0x50] sm:$0xff]  ;;  %1224 = vst [vmem:[%s9909_s27 + $0x18] sm:$0xff] %v1223_v3 }
  0x12   : > { %1226 = vst [vmem:[%s9909_s27 + $0x20] sm:$0xff] %v1225_v4  ;;  %1228 = vst [vmem:[%s9909_s27 + $0x28] sm:$0xff] %v1227_v5  ;;  %v1229_v6 = vld [vmem:[%s9904_s26 + $0x60] sm:$0xff]  ;;  %v1231_v7 = vld [vmem:[%s9904_s26 + $0x70] sm:$0xff] }
  0x13   : > { %v1233_v8 = vld [vmem:[%s9904_s26 + $0x80] sm:$0xff]  ;;  %1230 = vst [vmem:[%s9909_s27 + $0x30] sm:$0xff] %v1229_v6  ;;  %1232 = vst [vmem:[%s9909_s27 + $0x38] sm:$0xff] %v1231_v7  ;;  %v1235_v9 = vld [vmem:[%s9904_s26 + $0x90] sm:$0xff] }
  0x14   : > { %1234 = vst [vmem:[%s9909_s27 + $0x40] sm:$0xff] %v1233_v8  ;;  %v1237_v10 = vld [vmem:[%s9904_s26 + $0xa0] sm:$0xff]  ;;  %v1239_v11 = vld [vmem:[%s9904_s26 + $0xb0] sm:$0xff]  ;;  %1236 = vst [vmem:[%s9909_s27 + $0x48] sm:$0xff] %v1235_v9 }
  0x15   : > { %1238 = vst [vmem:[%s9909_s27 + $0x50] sm:$0xff] %v1237_v10  ;;  %1240 = vst [vmem:[%s9909_s27 + $0x58] sm:$0xff] %v1239_v11  ;;  %v1241_v12 = vld [vmem:[%s9904_s26 + $0xc0] sm:$0xff]  ;;  %v1243_v13 = vld [vmem:[%s9904_s26 + $0xd0] sm:$0xff] }
  0x16   : > { %v1245_v14 = vld [vmem:[%s9904_s26 + $0xe0] sm:$0xff]  ;;  %1242 = vst [vmem:[%s9909_s27 + $0x60] sm:$0xff] %v1241_v12  ;;  %1244 = vst [vmem:[%s9909_s27 + $0x68] sm:$0xff] %v1243_v13  ;;  %v1247_v15 = vld [vmem:[%s9904_s26 + $0xf0] sm:$0xff] }
  0x17   : > { %1246 = vst [vmem:[%s9909_s27 + $0x70] sm:$0xff] %v1245_v14  ;;  %v1249_v16 = vld [vmem:[%s9904_s26 + $0x100] sm:$0xff]  ;;  %v1251_v17 = vld [vmem:[%s9904_s26 + $0x110] sm:$0xff]  ;;  %1248 = vst [vmem:[%s9909_s27 + $0x78] sm:$0xff] %v1247_v15 }
  0x18   : > { %1250 = vst [vmem:[%s9909_s27 + $0x80] sm:$0xff] %v1249_v16  ;;  %1252 = vst [vmem:[%s9909_s27 + $0x88] sm:$0xff] %v1251_v17  ;;  %v1253_v18 = vld [vmem:[%s9904_s26 + $0x120] sm:$0xff]  ;;  %v1255_v19 = vld [vmem:[%s9904_s26 + $0x130] sm:$0xff] }
  0x19   : > { %v1257_v20 = vld [vmem:[%s9904_s26 + $0x140] sm:$0xff]  ;;  %1254 = vst [vmem:[%s9909_s27 + $0x90] sm:$0xff] %v1253_v18  ;;  %1256 = vst [vmem:[%s9909_s27 + $0x98] sm:$0xff] %v1255_v19  ;;  %v1259_v21 = vld [vmem:[%s9904_s26 + $0x150] sm:$0xff] }
  0x1a   : > { %1258 = vst [vmem:[%s9909_s27 + $0xa0] sm:$0xff] %v1257_v20  ;;  %v1261_v22 = vld [vmem:[%s9904_s26 + $0x160] sm:$0xff]  ;;  %v1263_v23 = vld [vmem:[%s9904_s26 + $0x170] sm:$0xff]  ;;  %1260 = vst [vmem:[%s9909_s27 + $0xa8] sm:$0xff] %v1259_v21 }
  0x1b   : > { %1262 = vst [vmem:[%s9909_s27 + $0xb0] sm:$0xff] %v1261_v22  ;;  %1264 = vst [vmem:[%s9909_s27 + $0xb8] sm:$0xff] %v1263_v23  ;;  %v1265_v24 = vld [vmem:[%s9904_s26 + $0x180] sm:$0xff]  ;;  %v1267_v25 = vld [vmem:[%s9904_s26 + $0x190] sm:$0xff] }
  0x1c   : > { %v1269_v26 = vld [vmem:[%s9904_s26 + $0x1a0] sm:$0xff]  ;;  %1266 = vst [vmem:[%s9909_s27 + $0xc0] sm:$0xff] %v1265_v24  ;;  %1268 = vst [vmem:[%s9909_s27 + $0xc8] sm:$0xff] %v1267_v25  ;;  %v1271_v27 = vld [vmem:[%s9904_s26 + $0x1b0] sm:$0xff] }
  0x1d   : > { %1270 = vst [vmem:[%s9909_s27 + $0xd0] sm:$0xff] %v1269_v26  ;;  %v1273_v28 = vld [vmem:[%s9904_s26 + $0x1c0] sm:$0xff]  ;;  %v1275_v29 = vld [vmem:[%s9904_s26 + $0x1d0] sm:$0xff]  ;;  %1272 = vst [vmem:[%s9909_s27 + $0xd8] sm:$0xff] %v1271_v27 }
  0x1e   : > { %1274 = vst [vmem:[%s9909_s27 + $0xe0] sm:$0xff] %v1273_v28  ;;  %1276 = vst [vmem:[%s9909_s27 + $0xe8] sm:$0xff] %v1275_v29  ;;  %v1277_v30 = vld [vmem:[%s9904_s26 + $0x1e0] sm:$0xff]  ;;  %v1279_v31 = vld [vmem:[%s9904_s26 + $0x1f0] sm:$0xff] }
  0x1f   : > { %v1281_v32 = vld [vmem:[%s9904_s26 + $0x200] sm:$0xff]  ;;  %1278 = vst [vmem:[%s9909_s27 + $0xf0] sm:$0xff] %v1277_v30  ;;  %1280 = vst [vmem:[%s9909_s27 + $0xf8] sm:$0xff] %v1279_v31  ;;  %v1283_v33 = vld [vmem:[%s9904_s26 + $0x210] sm:$0xff] }
  0x20   : > { %1282 = vst [vmem:[%s9909_s27 + $0x100] sm:$0xff] %v1281_v32  ;;  %v1285_v34 = vld [vmem:[%s9904_s26 + $0x220] sm:$0xff]  ;;  %v1287_v35 = vld [vmem:[%s9904_s26 + $0x230] sm:$0xff]  ;;  %1284 = vst [vmem:[%s9909_s27 + $0x108] sm:$0xff] %v1283_v33 }
  0x21   : > { %1286 = vst [vmem:[%s9909_s27 + $0x110] sm:$0xff] %v1285_v34  ;;  %1288 = vst [vmem:[%s9909_s27 + $0x118] sm:$0xff] %v1287_v35  ;;  %v1289_v36 = vld [vmem:[%s9904_s26 + $0x240] sm:$0xff]  ;;  %v1291_v37 = vld [vmem:[%s9904_s26 + $0x250] sm:$0xff] }
  0x22   : > { %v1293_v38 = vld [vmem:[%s9904_s26 + $0x260] sm:$0xff]  ;;  %1290 = vst [vmem:[%s9909_s27 + $0x120] sm:$0xff] %v1289_v36  ;;  %1292 = vst [vmem:[%s9909_s27 + $0x128] sm:$0xff] %v1291_v37  ;;  %v1295_v39 = vld [vmem:[%s9904_s26 + $0x270] sm:$0xff] }
  0x23   : > { %1294 = vst [vmem:[%s9909_s27 + $0x130] sm:$0xff] %v1293_v38  ;;  %v1297_v40 = vld [vmem:[%s9904_s26 + $0x280] sm:$0xff]  ;;  %v1299_v41 = vld [vmem:[%s9904_s26 + $0x290] sm:$0xff]  ;;  %1296 = vst [vmem:[%s9909_s27 + $0x138] sm:$0xff] %v1295_v39 }
  0x24   : > { %1298 = vst [vmem:[%s9909_s27 + $0x140] sm:$0xff] %v1297_v40  ;;  %1300 = vst [vmem:[%s9909_s27 + $0x148] sm:$0xff] %v1299_v41  ;;  %v1301_v42 = vld [vmem:[%s9904_s26 + $0x2a0] sm:$0xff]  ;;  %v1303_v43 = vld [vmem:[%s9904_s26 + $0x2b0] sm:$0xff] }
  0x25   : > { %v1305_v44 = vld [vmem:[%s9904_s26 + $0x2c0] sm:$0xff]  ;;  %1302 = vst [vmem:[%s9909_s27 + $0x150] sm:$0xff] %v1301_v42  ;;  %1304 = vst [vmem:[%s9909_s27 + $0x158] sm:$0xff] %v1303_v43  ;;  %v1307_v45 = vld [vmem:[%s9904_s26 + $0x2d0] sm:$0xff] }
  0x26   : > { %1306 = vst [vmem:[%s9909_s27 + $0x160] sm:$0xff] %v1305_v44  ;;  %v1309_v46 = vld [vmem:[%s9904_s26 + $0x2e0] sm:$0xff]  ;;  %v1311_v47 = vld [vmem:[%s9904_s26 + $0x2f0] sm:$0xff]  ;;  %1308 = vst [vmem:[%s9909_s27 + $0x168] sm:$0xff] %v1307_v45 }
  0x27   : > { %1310 = vst [vmem:[%s9909_s27 + $0x170] sm:$0xff] %v1309_v46  ;;  %1312 = vst [vmem:[%s9909_s27 + $0x178] sm:$0xff] %v1311_v47  ;;  %v1313_v48 = vld [vmem:[%s9904_s26 + $0x300] sm:$0xff]  ;;  %v1315_v49 = vld [vmem:[%s9904_s26 + $0x310] sm:$0xff] }
  0x28   : > { %v1317_v50 = vld [vmem:[%s9904_s26 + $0x320] sm:$0xff]  ;;  %1314 = vst [vmem:[%s9909_s27 + $0x180] sm:$0xff] %v1313_v48  ;;  %1316 = vst [vmem:[%s9909_s27 + $0x188] sm:$0xff] %v1315_v49  ;;  %v1319_v51 = vld [vmem:[%s9904_s26 + $0x330] sm:$0xff] }
  0x29   : > { %1318 = vst [vmem:[%s9909_s27 + $0x190] sm:$0xff] %v1317_v50  ;;  %v1321_v52 = vld [vmem:[%s9904_s26 + $0x340] sm:$0xff]  ;;  %v1323_v53 = vld [vmem:[%s9904_s26 + $0x350] sm:$0xff]  ;;  %1320 = vst [vmem:[%s9909_s27 + $0x198] sm:$0xff] %v1319_v51 }
  0x2a   : > { %1322 = vst [vmem:[%s9909_s27 + $0x1a0] sm:$0xff] %v1321_v52  ;;  %1324 = vst [vmem:[%s9909_s27 + $0x1a8] sm:$0xff] %v1323_v53  ;;  %v1325_v54 = vld [vmem:[%s9904_s26 + $0x360] sm:$0xff]  ;;  %v1327_v55 = vld [vmem:[%s9904_s26 + $0x370] sm:$0xff] }
  0x2b   : > { %v1329_v56 = vld [vmem:[%s9904_s26 + $0x380] sm:$0xff]  ;;  %1326 = vst [vmem:[%s9909_s27 + $0x1b0] sm:$0xff] %v1325_v54  ;;  %1328 = vst [vmem:[%s9909_s27 + $0x1b8] sm:$0xff] %v1327_v55  ;;  %v1331_v57 = vld [vmem:[%s9904_s26 + $0x390] sm:$0xff] }
  0x2c   : > { %1330 = vst [vmem:[%s9909_s27 + $0x1c0] sm:$0xff] %v1329_v56  ;;  %v1333_v58 = vld [vmem:[%s9904_s26 + $0x3a0] sm:$0xff]  ;;  %v1335_v59 = vld [vmem:[%s9904_s26 + $0x3b0] sm:$0xff]  ;;  %1332 = vst [vmem:[%s9909_s27 + $0x1c8] sm:$0xff] %v1331_v57 }
  0x2d   : > { %1334 = vst [vmem:[%s9909_s27 + $0x1d0] sm:$0xff] %v1333_v58  ;;  %1336 = vst [vmem:[%s9909_s27 + $0x1d8] sm:$0xff] %v1335_v59  ;;  %v1337_v60 = vld [vmem:[%s9904_s26 + $0x3c0] sm:$0xff]  ;;  %v1339_v61 = vld [vmem:[%s9904_s26 + $0x3d0] sm:$0xff] }
  0x2e   : > { %v1341_v62 = vld [vmem:[%s9904_s26 + $0x3e0] sm:$0xff]  ;;  %1338 = vst [vmem:[%s9909_s27 + $0x1e0] sm:$0xff] %v1337_v60  ;;  %1340 = vst [vmem:[%s9909_s27 + $0x1e8] sm:$0xff] %v1339_v61  ;;  %v1343_v63 = vld [vmem:[%s9904_s26 + $0x3f0] sm:$0xff] }
  0x2f   : > { %1342 = vst [vmem:[%s9909_s27 + $0x1f0] sm:$0xff] %v1341_v62  ;;  %v1345_v0 = vld [vmem:[%s9904_s26 + $0x400] sm:$0xff]  ;;  %v1347_v1 = vld [vmem:[%s9904_s26 + $0x410] sm:$0xff]  ;;  %1344 = vst [vmem:[%s9909_s27 + $0x1f8] sm:$0xff] %v1343_v63 }
  0x30   : > { %1346 = vst [vmem:[%s9909_s27 + $0x200] sm:$0xff] %v1345_v0  ;;  %1348 = vst [vmem:[%s9909_s27 + $0x208] sm:$0xff] %v1347_v1  ;;  %v1349_v2 = vld [vmem:[%s9904_s26 + $0x420] sm:$0xff]  ;;  %v1351_v3 = vld [vmem:[%s9904_s26 + $0x430] sm:$0xff] }
  0x31   : > { %v1353_v4 = vld [vmem:[%s9904_s26 + $0x440] sm:$0xff]  ;;  %1350 = vst [vmem:[%s9909_s27 + $0x210] sm:$0xff] %v1349_v2  ;;  %1352 = vst [vmem:[%s9909_s27 + $0x218] sm:$0xff] %v1351_v3  ;;  %v1355_v5 = vld [vmem:[%s9904_s26 + $0x450] sm:$0xff] }
  0x32   : > { %1354 = vst [vmem:[%s9909_s27 + $0x220] sm:$0xff] %v1353_v4  ;;  %v1357_v6 = vld [vmem:[%s9904_s26 + $0x460] sm:$0xff]  ;;  %v1359_v7 = vld [vmem:[%s9904_s26 + $0x470] sm:$0xff]  ;;  %1356 = vst [vmem:[%s9909_s27 + $0x228] sm:$0xff] %v1355_v5 }
  0x33   : > { %1358 = vst [vmem:[%s9909_s27 + $0x230] sm:$0xff] %v1357_v6  ;;  %1360 = vst [vmem:[%s9909_s27 + $0x238] sm:$0xff] %v1359_v7  ;;  %v1361_v8 = vld [vmem:[%s9904_s26 + $0x480] sm:$0xff]  ;;  %v1363_v9 = vld [vmem:[%s9904_s26 + $0x490] sm:$0xff] }
  0x34   : > { %v1365_v10 = vld [vmem:[%s9904_s26 + $0x4a0] sm:$0xff]  ;;  %1362 = vst [vmem:[%s9909_s27 + $0x240] sm:$0xff] %v1361_v8  ;;  %1364 = vst [vmem:[%s9909_s27 + $0x248] sm:$0xff] %v1363_v9  ;;  %v1367_v11 = vld [vmem:[%s9904_s26 + $0x4b0] sm:$0xff] }
  0x35   : > { %1366 = vst [vmem:[%s9909_s27 + $0x250] sm:$0xff] %v1365_v10  ;;  %v1369_v12 = vld [vmem:[%s9904_s26 + $0x4c0] sm:$0xff]  ;;  %v1371_v13 = vld [vmem:[%s9904_s26 + $0x4d0] sm:$0xff]  ;;  %1368 = vst [vmem:[%s9909_s27 + $0x258] sm:$0xff] %v1367_v11 }
  0x36   : > { %1370 = vst [vmem:[%s9909_s27 + $0x260] sm:$0xff] %v1369_v12  ;;  %1372 = vst [vmem:[%s9909_s27 + $0x268] sm:$0xff] %v1371_v13  ;;  %v1373_v14 = vld [vmem:[%s9904_s26 + $0x4e0] sm:$0xff]  ;;  %v1375_v15 = vld [vmem:[%s9904_s26 + $0x4f0] sm:$0xff] }
  0x37   : > { %v1377_v16 = vld [vmem:[%s9904_s26 + $0x500] sm:$0xff]  ;;  %1374 = vst [vmem:[%s9909_s27 + $0x270] sm:$0xff] %v1373_v14  ;;  %1376 = vst [vmem:[%s9909_s27 + $0x278] sm:$0xff] %v1375_v15  ;;  %v1379_v17 = vld [vmem:[%s9904_s26 + $0x510] sm:$0xff] }
  0x38   : > { %1378 = vst [vmem:[%s9909_s27 + $0x280] sm:$0xff] %v1377_v16  ;;  %v1381_v18 = vld [vmem:[%s9904_s26 + $0x520] sm:$0xff]  ;;  %v1383_v19 = vld [vmem:[%s9904_s26 + $0x530] sm:$0xff]  ;;  %1380 = vst [vmem:[%s9909_s27 + $0x288] sm:$0xff] %v1379_v17 }
  0x39   : > { %1382 = vst [vmem:[%s9909_s27 + $0x290] sm:$0xff] %v1381_v18  ;;  %1384 = vst [vmem:[%s9909_s27 + $0x298] sm:$0xff] %v1383_v19  ;;  %v1385_v20 = vld [vmem:[%s9904_s26 + $0x540] sm:$0xff]  ;;  %v1387_v21 = vld [vmem:[%s9904_s26 + $0x550] sm:$0xff] }
  0x3a   : > { %v1389_v22 = vld [vmem:[%s9904_s26 + $0x560] sm:$0xff]  ;;  %1386 = vst [vmem:[%s9909_s27 + $0x2a0] sm:$0xff] %v1385_v20  ;;  %1388 = vst [vmem:[%s9909_s27 + $0x2a8] sm:$0xff] %v1387_v21  ;;  %v1391_v23 = vld [vmem:[%s9904_s26 + $0x570] sm:$0xff] }
  0x3b   : > { %1390 = vst [vmem:[%s9909_s27 + $0x2b0] sm:$0xff] %v1389_v22  ;;  %v1393_v24 = vld [vmem:[%s9904_s26 + $0x580] sm:$0xff]  ;;  %v1395_v25 = vld [vmem:[%s9904_s26 + $0x590] sm:$0xff]  ;;  %1392 = vst [vmem:[%s9909_s27 + $0x2b8] sm:$0xff] %v1391_v23 }
  0x3c   : > { %1394 = vst [vmem:[%s9909_s27 + $0x2c0] sm:$0xff] %v1393_v24  ;;  %1396 = vst [vmem:[%s9909_s27 + $0x2c8] sm:$0xff] %v1395_v25  ;;  %v1397_v26 = vld [vmem:[%s9904_s26 + $0x5a0] sm:$0xff]  ;;  %v1399_v27 = vld [vmem:[%s9904_s26 + $0x5b0] sm:$0xff] }
  0x3d   : > { %v1401_v28 = vld [vmem:[%s9904_s26 + $0x5c0] sm:$0xff]  ;;  %1398 = vst [vmem:[%s9909_s27 + $0x2d0] sm:$0xff] %v1397_v26  ;;  %1400 = vst [vmem:[%s9909_s27 + $0x2d8] sm:$0xff] %v1399_v27  ;;  %v1403_v29 = vld [vmem:[%s9904_s26 + $0x5d0] sm:$0xff] }
  0x3e   : > { %1402 = vst [vmem:[%s9909_s27 + $0x2e0] sm:$0xff] %v1401_v28  ;;  %v1405_v30 = vld [vmem:[%s9904_s26 + $0x5e0] sm:$0xff]  ;;  %v1407_v31 = vld [vmem:[%s9904_s26 + $0x5f0] sm:$0xff]  ;;  %1404 = vst [vmem:[%s9909_s27 + $0x2e8] sm:$0xff] %v1403_v29 }
  0x3f   : > { %1406 = vst [vmem:[%s9909_s27 + $0x2f0] sm:$0xff] %v1405_v30  ;;  %1408 = vst [vmem:[%s9909_s27 + $0x2f8] sm:$0xff] %v1407_v31  ;;  %v1409_v32 = vld [vmem:[%s9904_s26 + $0x600] sm:$0xff]  ;;  %v1411_v33 = vld [vmem:[%s9904_s26 + $0x610] sm:$0xff] }
  0x40   : > { %v1413_v34 = vld [vmem:[%s9904_s26 + $0x620] sm:$0xff]  ;;  %1410 = vst [vmem:[%s9909_s27 + $0x300] sm:$0xff] %v1409_v32  ;;  %1412 = vst [vmem:[%s9909_s27 + $0x308] sm:$0xff] %v1411_v33  ;;  %v1415_v35 = vld [vmem:[%s9904_s26 + $0x630] sm:$0xff] }
  0x41   : > { %1414 = vst [vmem:[%s9909_s27 + $0x310] sm:$0xff] %v1413_v34  ;;  %v1417_v36 = vld [vmem:[%s9904_s26 + $0x640] sm:$0xff]  ;;  %v1419_v37 = vld [vmem:[%s9904_s26 + $0x650] sm:$0xff]  ;;  %1416 = vst [vmem:[%s9909_s27 + $0x318] sm:$0xff] %v1415_v35 }
  0x42   : > { %1418 = vst [vmem:[%s9909_s27 + $0x320] sm:$0xff] %v1417_v36  ;;  %1420 = vst [vmem:[%s9909_s27 + $0x328] sm:$0xff] %v1419_v37  ;;  %v1421_v38 = vld [vmem:[%s9904_s26 + $0x660] sm:$0xff]  ;;  %v1423_v39 = vld [vmem:[%s9904_s26 + $0x670] sm:$0xff] }
  0x43   : > { %v1425_v40 = vld [vmem:[%s9904_s26 + $0x680] sm:$0xff]  ;;  %1422 = vst [vmem:[%s9909_s27 + $0x330] sm:$0xff] %v1421_v38  ;;  %1424 = vst [vmem:[%s9909_s27 + $0x338] sm:$0xff] %v1423_v39  ;;  %v1427_v41 = vld [vmem:[%s9904_s26 + $0x690] sm:$0xff] }
  0x44   : > { %1426 = vst [vmem:[%s9909_s27 + $0x340] sm:$0xff] %v1425_v40  ;;  %v1429_v42 = vld [vmem:[%s9904_s26 + $0x6a0] sm:$0xff]  ;;  %v1431_v43 = vld [vmem:[%s9904_s26 + $0x6b0] sm:$0xff]  ;;  %1428 = vst [vmem:[%s9909_s27 + $0x348] sm:$0xff] %v1427_v41 }
  0x45   : > { %1430 = vst [vmem:[%s9909_s27 + $0x350] sm:$0xff] %v1429_v42  ;;  %1432 = vst [vmem:[%s9909_s27 + $0x358] sm:$0xff] %v1431_v43  ;;  %v1433_v44 = vld [vmem:[%s9904_s26 + $0x6c0] sm:$0xff]  ;;  %v1435_v45 = vld [vmem:[%s9904_s26 + $0x6d0] sm:$0xff] }
  0x46   : > { %v1437_v46 = vld [vmem:[%s9904_s26 + $0x6e0] sm:$0xff]  ;;  %1434 = vst [vmem:[%s9909_s27 + $0x360] sm:$0xff] %v1433_v44  ;;  %1436 = vst [vmem:[%s9909_s27 + $0x368] sm:$0xff] %v1435_v45  ;;  %v1439_v47 = vld [vmem:[%s9904_s26 + $0x6f0] sm:$0xff] }
  0x47   : > { %1438 = vst [vmem:[%s9909_s27 + $0x370] sm:$0xff] %v1437_v46  ;;  %v1441_v48 = vld [vmem:[%s9904_s26 + $0x700] sm:$0xff]  ;;  %v1443_v49 = vld [vmem:[%s9904_s26 + $0x710] sm:$0xff]  ;;  %1440 = vst [vmem:[%s9909_s27 + $0x378] sm:$0xff] %v1439_v47 }
  0x48   : > { %1442 = vst [vmem:[%s9909_s27 + $0x380] sm:$0xff] %v1441_v48  ;;  %1444 = vst [vmem:[%s9909_s27 + $0x388] sm:$0xff] %v1443_v49  ;;  %v1445_v50 = vld [vmem:[%s9904_s26 + $0x720] sm:$0xff]  ;;  %v1447_v51 = vld [vmem:[%s9904_s26 + $0x730] sm:$0xff] }
  0x49   : > { %v1449_v52 = vld [vmem:[%s9904_s26 + $0x740] sm:$0xff]  ;;  %1446 = vst [vmem:[%s9909_s27 + $0x390] sm:$0xff] %v1445_v50  ;;  %1448 = vst [vmem:[%s9909_s27 + $0x398] sm:$0xff] %v1447_v51  ;;  %v1451_v53 = vld [vmem:[%s9904_s26 + $0x750] sm:$0xff] }
  0x4a   : > { %1450 = vst [vmem:[%s9909_s27 + $0x3a0] sm:$0xff] %v1449_v52  ;;  %v1453_v54 = vld [vmem:[%s9904_s26 + $0x760] sm:$0xff]  ;;  %v1455_v55 = vld [vmem:[%s9904_s26 + $0x770] sm:$0xff]  ;;  %1452 = vst [vmem:[%s9909_s27 + $0x3a8] sm:$0xff] %v1451_v53 }
  0x4b   : > { %1454 = vst [vmem:[%s9909_s27 + $0x3b0] sm:$0xff] %v1453_v54  ;;  %1456 = vst [vmem:[%s9909_s27 + $0x3b8] sm:$0xff] %v1455_v55  ;;  %v1457_v56 = vld [vmem:[%s9904_s26 + $0x780] sm:$0xff]  ;;  %v1459_v57 = vld [vmem:[%s9904_s26 + $0x790] sm:$0xff] }
  0x4c   : > { %v1461_v58 = vld [vmem:[%s9904_s26 + $0x7a0] sm:$0xff]  ;;  %1458 = vst [vmem:[%s9909_s27 + $0x3c0] sm:$0xff] %v1457_v56  ;;  %1460 = vst [vmem:[%s9909_s27 + $0x3c8] sm:$0xff] %v1459_v57  ;;  %v1463_v59 = vld [vmem:[%s9904_s26 + $0x7b0] sm:$0xff] }
  0x4d   : > { %1462 = vst [vmem:[%s9909_s27 + $0x3d0] sm:$0xff] %v1461_v58  ;;  %v1465_v60 = vld [vmem:[%s9904_s26 + $0x7c0] sm:$0xff]  ;;  %v1467_v61 = vld [vmem:[%s9904_s26 + $0x7d0] sm:$0xff]  ;;  %1464 = vst [vmem:[%s9909_s27 + $0x3d8] sm:$0xff] %v1463_v59 }
  0x4e   : > { %1466 = vst [vmem:[%s9909_s27 + $0x3e0] sm:$0xff] %v1465_v60  ;;  %1468 = vst [vmem:[%s9909_s27 + $0x3e8] sm:$0xff] %v1467_v61  ;;  %v1469_v62 = vld [vmem:[%s9904_s26 + $0x7e0] sm:$0xff]  ;;  %v1471_v63 = vld [vmem:[%s9904_s26 + $0x7f0] sm:$0xff] }
  0x4f   : > { %v1473_v0 = vld [vmem:[%s9904_s26 + $0x800] sm:$0xff]  ;;  %1470 = vst [vmem:[%s9909_s27 + $0x3f0] sm:$0xff] %v1469_v62  ;;  %1472 = vst [vmem:[%s9909_s27 + $0x3f8] sm:$0xff] %v1471_v63  ;;  %v1475_v1 = vld [vmem:[%s9904_s26 + $0x810] sm:$0xff] }
  0x50   : > { %1474 = vst [vmem:[%s9909_s27 + $0x400] sm:$0xff] %v1473_v0  ;;  %v1477_v2 = vld [vmem:[%s9904_s26 + $0x820] sm:$0xff]  ;;  %v1479_v3 = vld [vmem:[%s9904_s26 + $0x830] sm:$0xff]  ;;  %1476 = vst [vmem:[%s9909_s27 + $0x408] sm:$0xff] %v1475_v1 }
  0x51   : > { %1478 = vst [vmem:[%s9909_s27 + $0x410] sm:$0xff] %v1477_v2  ;;  %1480 = vst [vmem:[%s9909_s27 + $0x418] sm:$0xff] %v1479_v3  ;;  %v1481_v4 = vld [vmem:[%s9904_s26 + $0x840] sm:$0xff]  ;;  %v1483_v5 = vld [vmem:[%s9904_s26 + $0x850] sm:$0xff] }
  0x52   : > { %v1485_v6 = vld [vmem:[%s9904_s26 + $0x860] sm:$0xff]  ;;  %1482 = vst [vmem:[%s9909_s27 + $0x420] sm:$0xff] %v1481_v4  ;;  %1484 = vst [vmem:[%s9909_s27 + $0x428] sm:$0xff] %v1483_v5  ;;  %v1487_v7 = vld [vmem:[%s9904_s26 + $0x870] sm:$0xff] }
  0x53   : > { %1486 = vst [vmem:[%s9909_s27 + $0x430] sm:$0xff] %v1485_v6  ;;  %v1489_v8 = vld [vmem:[%s9904_s26 + $0x880] sm:$0xff]  ;;  %v1491_v9 = vld [vmem:[%s9904_s26 + $0x890] sm:$0xff]  ;;  %1488 = vst [vmem:[%s9909_s27 + $0x438] sm:$0xff] %v1487_v7 }
  0x54   : > { %1490 = vst [vmem:[%s9909_s27 + $0x440] sm:$0xff] %v1489_v8  ;;  %1492 = vst [vmem:[%s9909_s27 + $0x448] sm:$0xff] %v1491_v9  ;;  %v1493_v10 = vld [vmem:[%s9904_s26 + $0x8a0] sm:$0xff]  ;;  %v1495_v11 = vld [vmem:[%s9904_s26 + $0x8b0] sm:$0xff] }
  0x55   : > { %v1497_v12 = vld [vmem:[%s9904_s26 + $0x8c0] sm:$0xff]  ;;  %1494 = vst [vmem:[%s9909_s27 + $0x450] sm:$0xff] %v1493_v10  ;;  %1496 = vst [vmem:[%s9909_s27 + $0x458] sm:$0xff] %v1495_v11  ;;  %v1499_v13 = vld [vmem:[%s9904_s26 + $0x8d0] sm:$0xff] }
  0x56   : > { %1498 = vst [vmem:[%s9909_s27 + $0x460] sm:$0xff] %v1497_v12  ;;  %v1501_v14 = vld [vmem:[%s9904_s26 + $0x8e0] sm:$0xff]  ;;  %v1503_v15 = vld [vmem:[%s9904_s26 + $0x8f0] sm:$0xff]  ;;  %1500 = vst [vmem:[%s9909_s27 + $0x468] sm:$0xff] %v1499_v13 }
  0x57   : > { %1502 = vst [vmem:[%s9909_s27 + $0x470] sm:$0xff] %v1501_v14  ;;  %1504 = vst [vmem:[%s9909_s27 + $0x478] sm:$0xff] %v1503_v15  ;;  %v1505_v16 = vld [vmem:[%s9904_s26 + $0x900] sm:$0xff]  ;;  %v1507_v17 = vld [vmem:[%s9904_s26 + $0x910] sm:$0xff] }
  0x58   : > { %v1509_v18 = vld [vmem:[%s9904_s26 + $0x920] sm:$0xff]  ;;  %1506 = vst [vmem:[%s9909_s27 + $0x480] sm:$0xff] %v1505_v16  ;;  %1508 = vst [vmem:[%s9909_s27 + $0x488] sm:$0xff] %v1507_v17  ;;  %v1511_v19 = vld [vmem:[%s9904_s26 + $0x930] sm:$0xff] }
  0x59   : > { %1510 = vst [vmem:[%s9909_s27 + $0x490] sm:$0xff] %v1509_v18  ;;  %v1513_v20 = vld [vmem:[%s9904_s26 + $0x940] sm:$0xff]  ;;  %v1515_v21 = vld [vmem:[%s9904_s26 + $0x950] sm:$0xff]  ;;  %1512 = vst [vmem:[%s9909_s27 + $0x498] sm:$0xff] %v1511_v19 }
  0x5a   : > { %1514 = vst [vmem:[%s9909_s27 + $0x4a0] sm:$0xff] %v1513_v20  ;;  %1516 = vst [vmem:[%s9909_s27 + $0x4a8] sm:$0xff] %v1515_v21  ;;  %v1517_v22 = vld [vmem:[%s9904_s26 + $0x960] sm:$0xff]  ;;  %v1519_v23 = vld [vmem:[%s9904_s26 + $0x970] sm:$0xff] }
  0x5b   : > { %v1521_v24 = vld [vmem:[%s9904_s26 + $0x980] sm:$0xff]  ;;  %1518 = vst [vmem:[%s9909_s27 + $0x4b0] sm:$0xff] %v1517_v22  ;;  %1520 = vst [vmem:[%s9909_s27 + $0x4b8] sm:$0xff] %v1519_v23  ;;  %v1523_v25 = vld [vmem:[%s9904_s26 + $0x990] sm:$0xff] }
  0x5c   : > { %1522 = vst [vmem:[%s9909_s27 + $0x4c0] sm:$0xff] %v1521_v24  ;;  %v1525_v26 = vld [vmem:[%s9904_s26 + $0x9a0] sm:$0xff]  ;;  %v1527_v27 = vld [vmem:[%s9904_s26 + $0x9b0] sm:$0xff]  ;;  %1524 = vst [vmem:[%s9909_s27 + $0x4c8] sm:$0xff] %v1523_v25 }
  0x5d   : > { %1526 = vst [vmem:[%s9909_s27 + $0x4d0] sm:$0xff] %v1525_v26  ;;  %1528 = vst [vmem:[%s9909_s27 + $0x4d8] sm:$0xff] %v1527_v27  ;;  %v1529_v28 = vld [vmem:[%s9904_s26 + $0x9c0] sm:$0xff]  ;;  %v1531_v29 = vld [vmem:[%s9904_s26 + $0x9d0] sm:$0xff] }
  0x5e   : > { %v1533_v30 = vld [vmem:[%s9904_s26 + $0x9e0] sm:$0xff]  ;;  %1530 = vst [vmem:[%s9909_s27 + $0x4e0] sm:$0xff] %v1529_v28  ;;  %1532 = vst [vmem:[%s9909_s27 + $0x4e8] sm:$0xff] %v1531_v29  ;;  %v1535_v31 = vld [vmem:[%s9904_s26 + $0x9f0] sm:$0xff] }
  0x5f   : > { %1534 = vst [vmem:[%s9909_s27 + $0x4f0] sm:$0xff] %v1533_v30  ;;  %v1537_v32 = vld [vmem:[%s9904_s26 + $0xa00] sm:$0xff]  ;;  %v1539_v33 = vld [vmem:[%s9904_s26 + $0xa10] sm:$0xff]  ;;  %1536 = vst [vmem:[%s9909_s27 + $0x4f8] sm:$0xff] %v1535_v31 }
  0x60   : > { %1538 = vst [vmem:[%s9909_s27 + $0x500] sm:$0xff] %v1537_v32  ;;  %1540 = vst [vmem:[%s9909_s27 + $0x508] sm:$0xff] %v1539_v33  ;;  %v1541_v34 = vld [vmem:[%s9904_s26 + $0xa20] sm:$0xff]  ;;  %v1543_v35 = vld [vmem:[%s9904_s26 + $0xa30] sm:$0xff] }
  0x61   : > { %v1545_v36 = vld [vmem:[%s9904_s26 + $0xa40] sm:$0xff]  ;;  %1542 = vst [vmem:[%s9909_s27 + $0x510] sm:$0xff] %v1541_v34  ;;  %1544 = vst [vmem:[%s9909_s27 + $0x518] sm:$0xff] %v1543_v35  ;;  %v1547_v37 = vld [vmem:[%s9904_s26 + $0xa50] sm:$0xff] }
  0x62   : > { %1546 = vst [vmem:[%s9909_s27 + $0x520] sm:$0xff] %v1545_v36  ;;  %v1549_v38 = vld [vmem:[%s9904_s26 + $0xa60] sm:$0xff]  ;;  %v1551_v39 = vld [vmem:[%s9904_s26 + $0xa70] sm:$0xff]  ;;  %1548 = vst [vmem:[%s9909_s27 + $0x528] sm:$0xff] %v1547_v37 }
  0x63   : > { %1550 = vst [vmem:[%s9909_s27 + $0x530] sm:$0xff] %v1549_v38  ;;  %1552 = vst [vmem:[%s9909_s27 + $0x538] sm:$0xff] %v1551_v39  ;;  %v1553_v40 = vld [vmem:[%s9904_s26 + $0xa80] sm:$0xff]  ;;  %v1555_v41 = vld [vmem:[%s9904_s26 + $0xa90] sm:$0xff] }
  0x64   : > { %v1557_v42 = vld [vmem:[%s9904_s26 + $0xaa0] sm:$0xff]  ;;  %1554 = vst [vmem:[%s9909_s27 + $0x540] sm:$0xff] %v1553_v40  ;;  %1556 = vst [vmem:[%s9909_s27 + $0x548] sm:$0xff] %v1555_v41  ;;  %v1559_v43 = vld [vmem:[%s9904_s26 + $0xab0] sm:$0xff] }
  0x65   : > { %1558 = vst [vmem:[%s9909_s27 + $0x550] sm:$0xff] %v1557_v42  ;;  %v1561_v44 = vld [vmem:[%s9904_s26 + $0xac0] sm:$0xff]  ;;  %v1563_v45 = vld [vmem:[%s9904_s26 + $0xad0] sm:$0xff]  ;;  %1560 = vst [vmem:[%s9909_s27 + $0x558] sm:$0xff] %v1559_v43 }
  0x66   : > { %1562 = vst [vmem:[%s9909_s27 + $0x560] sm:$0xff] %v1561_v44  ;;  %1564 = vst [vmem:[%s9909_s27 + $0x568] sm:$0xff] %v1563_v45  ;;  %v1565_v46 = vld [vmem:[%s9904_s26 + $0xae0] sm:$0xff]  ;;  %v1567_v47 = vld [vmem:[%s9904_s26 + $0xaf0] sm:$0xff] }
  0x67   : > { %v1569_v48 = vld [vmem:[%s9904_s26 + $0xb00] sm:$0xff]  ;;  %1566 = vst [vmem:[%s9909_s27 + $0x570] sm:$0xff] %v1565_v46  ;;  %1568 = vst [vmem:[%s9909_s27 + $0x578] sm:$0xff] %v1567_v47  ;;  %v1571_v49 = vld [vmem:[%s9904_s26 + $0xb10] sm:$0xff] }
  0x68   : > { %1570 = vst [vmem:[%s9909_s27 + $0x580] sm:$0xff] %v1569_v48  ;;  %v1573_v50 = vld [vmem:[%s9904_s26 + $0xb20] sm:$0xff]  ;;  %v1575_v51 = vld [vmem:[%s9904_s26 + $0xb30] sm:$0xff]  ;;  %1572 = vst [vmem:[%s9909_s27 + $0x588] sm:$0xff] %v1571_v49 }
  0x69   : > { %1574 = vst [vmem:[%s9909_s27 + $0x590] sm:$0xff] %v1573_v50  ;;  %1576 = vst [vmem:[%s9909_s27 + $0x598] sm:$0xff] %v1575_v51  ;;  %v1577_v52 = vld [vmem:[%s9904_s26 + $0xb40] sm:$0xff]  ;;  %v1579_v53 = vld [vmem:[%s9904_s26 + $0xb50] sm:$0xff] }
  0x6a   : > { %v1581_v54 = vld [vmem:[%s9904_s26 + $0xb60] sm:$0xff]  ;;  %1578 = vst [vmem:[%s9909_s27 + $0x5a0] sm:$0xff] %v1577_v52  ;;  %1580 = vst [vmem:[%s9909_s27 + $0x5a8] sm:$0xff] %v1579_v53  ;;  %v1583_v55 = vld [vmem:[%s9904_s26 + $0xb70] sm:$0xff] }
  0x6b   : > { %1582 = vst [vmem:[%s9909_s27 + $0x5b0] sm:$0xff] %v1581_v54  ;;  %v1585_v56 = vld [vmem:[%s9904_s26 + $0xb80] sm:$0xff]  ;;  %v1587_v57 = vld [vmem:[%s9904_s26 + $0xb90] sm:$0xff]  ;;  %1584 = vst [vmem:[%s9909_s27 + $0x5b8] sm:$0xff] %v1583_v55 }
  0x6c   : > { %1586 = vst [vmem:[%s9909_s27 + $0x5c0] sm:$0xff] %v1585_v56  ;;  %1588 = vst [vmem:[%s9909_s27 + $0x5c8] sm:$0xff] %v1587_v57  ;;  %v1589_v58 = vld [vmem:[%s9904_s26 + $0xba0] sm:$0xff]  ;;  %v1591_v59 = vld [vmem:[%s9904_s26 + $0xbb0] sm:$0xff] }
  0x6d   : > { %v1593_v60 = vld [vmem:[%s9904_s26 + $0xbc0] sm:$0xff]  ;;  %1590 = vst [vmem:[%s9909_s27 + $0x5d0] sm:$0xff] %v1589_v58  ;;  %1592 = vst [vmem:[%s9909_s27 + $0x5d8] sm:$0xff] %v1591_v59  ;;  %v1595_v61 = vld [vmem:[%s9904_s26 + $0xbd0] sm:$0xff] }
  0x6e   : > { %1594 = vst [vmem:[%s9909_s27 + $0x5e0] sm:$0xff] %v1593_v60  ;;  %v1597_v62 = vld [vmem:[%s9904_s26 + $0xbe0] sm:$0xff]  ;;  %v1599_v63 = vld [vmem:[%s9904_s26 + $0xbf0] sm:$0xff]  ;;  %1596 = vst [vmem:[%s9909_s27 + $0x5e8] sm:$0xff] %v1595_v61 }
  0x6f   : > { %1598 = vst [vmem:[%s9909_s27 + $0x5f0] sm:$0xff] %v1597_v62  ;;  %1600 = vst [vmem:[%s9909_s27 + $0x5f8] sm:$0xff] %v1599_v63  ;;  %v1601_v0 = vld [vmem:[%s9904_s26 + $0xc00] sm:$0xff]  ;;  %v1603_v1 = vld [vmem:[%s9904_s26 + $0xc10] sm:$0xff] }
  0x70   : > { %v1605_v2 = vld [vmem:[%s9904_s26 + $0xc20] sm:$0xff]  ;;  %1602 = vst [vmem:[%s9909_s27 + $0x600] sm:$0xff] %v1601_v0  ;;  %1604 = vst [vmem:[%s9909_s27 + $0x608] sm:$0xff] %v1603_v1  ;;  %v1607_v3 = vld [vmem:[%s9904_s26 + $0xc30] sm:$0xff] }
  0x71   : > { %1606 = vst [vmem:[%s9909_s27 + $0x610] sm:$0xff] %v1605_v2  ;;  %v1609_v4 = vld [vmem:[%s9904_s26 + $0xc40] sm:$0xff]  ;;  %v1611_v5 = vld [vmem:[%s9904_s26 + $0xc50] sm:$0xff]  ;;  %1608 = vst [vmem:[%s9909_s27 + $0x618] sm:$0xff] %v1607_v3 }
  0x72   : > { %1610 = vst [vmem:[%s9909_s27 + $0x620] sm:$0xff] %v1609_v4  ;;  %1612 = vst [vmem:[%s9909_s27 + $0x628] sm:$0xff] %v1611_v5  ;;  %v1613_v6 = vld [vmem:[%s9904_s26 + $0xc60] sm:$0xff]  ;;  %v1615_v7 = vld [vmem:[%s9904_s26 + $0xc70] sm:$0xff] }
  0x73   : > { %v1617_v8 = vld [vmem:[%s9904_s26 + $0xc80] sm:$0xff]  ;;  %1614 = vst [vmem:[%s9909_s27 + $0x630] sm:$0xff] %v1613_v6  ;;  %1616 = vst [vmem:[%s9909_s27 + $0x638] sm:$0xff] %v1615_v7  ;;  %v1619_v9 = vld [vmem:[%s9904_s26 + $0xc90] sm:$0xff] }
  0x74   : > { %1618 = vst [vmem:[%s9909_s27 + $0x640] sm:$0xff] %v1617_v8  ;;  %v1621_v10 = vld [vmem:[%s9904_s26 + $0xca0] sm:$0xff]  ;;  %v1623_v11 = vld [vmem:[%s9904_s26 + $0xcb0] sm:$0xff]  ;;  %1620 = vst [vmem:[%s9909_s27 + $0x648] sm:$0xff] %v1619_v9 }
  0x75   : > { %1622 = vst [vmem:[%s9909_s27 + $0x650] sm:$0xff] %v1621_v10  ;;  %1624 = vst [vmem:[%s9909_s27 + $0x658] sm:$0xff] %v1623_v11  ;;  %v1625_v12 = vld [vmem:[%s9904_s26 + $0xcc0] sm:$0xff]  ;;  %v1627_v13 = vld [vmem:[%s9904_s26 + $0xcd0] sm:$0xff] }
  0x76   : > { %v1629_v14 = vld [vmem:[%s9904_s26 + $0xce0] sm:$0xff]  ;;  %1626 = vst [vmem:[%s9909_s27 + $0x660] sm:$0xff] %v1625_v12  ;;  %1628 = vst [vmem:[%s9909_s27 + $0x668] sm:$0xff] %v1627_v13  ;;  %v1631_v15 = vld [vmem:[%s9904_s26 + $0xcf0] sm:$0xff] }
  0x77   : > { %1630 = vst [vmem:[%s9909_s27 + $0x670] sm:$0xff] %v1629_v14  ;;  %v1633_v16 = vld [vmem:[%s9904_s26 + $0xd00] sm:$0xff]  ;;  %v1635_v17 = vld [vmem:[%s9904_s26 + $0xd10] sm:$0xff]  ;;  %1632 = vst [vmem:[%s9909_s27 + $0x678] sm:$0xff] %v1631_v15 }
  0x78   : > { %1634 = vst [vmem:[%s9909_s27 + $0x680] sm:$0xff] %v1633_v16  ;;  %1636 = vst [vmem:[%s9909_s27 + $0x688] sm:$0xff] %v1635_v17  ;;  %v1637_v18 = vld [vmem:[%s9904_s26 + $0xd20] sm:$0xff]  ;;  %v1639_v19 = vld [vmem:[%s9904_s26 + $0xd30] sm:$0xff] }
  0x79   : > { %v1641_v20 = vld [vmem:[%s9904_s26 + $0xd40] sm:$0xff]  ;;  %1638 = vst [vmem:[%s9909_s27 + $0x690] sm:$0xff] %v1637_v18  ;;  %1640 = vst [vmem:[%s9909_s27 + $0x698] sm:$0xff] %v1639_v19  ;;  %v1643_v21 = vld [vmem:[%s9904_s26 + $0xd50] sm:$0xff] }
  0x7a   : > { %1642 = vst [vmem:[%s9909_s27 + $0x6a0] sm:$0xff] %v1641_v20  ;;  %v1645_v22 = vld [vmem:[%s9904_s26 + $0xd60] sm:$0xff]  ;;  %v1647_v23 = vld [vmem:[%s9904_s26 + $0xd70] sm:$0xff]  ;;  %1644 = vst [vmem:[%s9909_s27 + $0x6a8] sm:$0xff] %v1643_v21 }
  0x7b   : > { %1646 = vst [vmem:[%s9909_s27 + $0x6b0] sm:$0xff] %v1645_v22  ;;  %1648 = vst [vmem:[%s9909_s27 + $0x6b8] sm:$0xff] %v1647_v23  ;;  %v1649_v24 = vld [vmem:[%s9904_s26 + $0xd80] sm:$0xff]  ;;  %v1651_v25 = vld [vmem:[%s9904_s26 + $0xd90] sm:$0xff] }
  0x7c   : > { %v1653_v26 = vld [vmem:[%s9904_s26 + $0xda0] sm:$0xff]  ;;  %1650 = vst [vmem:[%s9909_s27 + $0x6c0] sm:$0xff] %v1649_v24  ;;  %1652 = vst [vmem:[%s9909_s27 + $0x6c8] sm:$0xff] %v1651_v25  ;;  %v1655_v27 = vld [vmem:[%s9904_s26 + $0xdb0] sm:$0xff] }
  0x7d   : > { %1654 = vst [vmem:[%s9909_s27 + $0x6d0] sm:$0xff] %v1653_v26  ;;  %v1657_v28 = vld [vmem:[%s9904_s26 + $0xdc0] sm:$0xff]  ;;  %v1659_v29 = vld [vmem:[%s9904_s26 + $0xdd0] sm:$0xff]  ;;  %1656 = vst [vmem:[%s9909_s27 + $0x6d8] sm:$0xff] %v1655_v27 }
  0x7e   : > { %1658 = vst [vmem:[%s9909_s27 + $0x6e0] sm:$0xff] %v1657_v28  ;;  %1660 = vst [vmem:[%s9909_s27 + $0x6e8] sm:$0xff] %v1659_v29  ;;  %v1661_v30 = vld [vmem:[%s9904_s26 + $0xde0] sm:$0xff]  ;;  %v1663_v31 = vld [vmem:[%s9904_s26 + $0xdf0] sm:$0xff] }
  0x7f   : > { %v1665_v32 = vld [vmem:[%s9904_s26 + $0xe00] sm:$0xff]  ;;  %1662 = vst [vmem:[%s9909_s27 + $0x6f0] sm:$0xff] %v1661_v30  ;;  %1664 = vst [vmem:[%s9909_s27 + $0x6f8] sm:$0xff] %v1663_v31  ;;  %v1667_v33 = vld [vmem:[%s9904_s26 + $0xe10] sm:$0xff] }
  0x80   : > { %1666 = vst [vmem:[%s9909_s27 + $0x700] sm:$0xff] %v1665_v32  ;;  %v1669_v34 = vld [vmem:[%s9904_s26 + $0xe20] sm:$0xff]  ;;  %v1671_v35 = vld [vmem:[%s9904_s26 + $0xe30] sm:$0xff]  ;;  %1668 = vst [vmem:[%s9909_s27 + $0x708] sm:$0xff] %v1667_v33 }
  0x81   : > { %1670 = vst [vmem:[%s9909_s27 + $0x710] sm:$0xff] %v1669_v34  ;;  %1672 = vst [vmem:[%s9909_s27 + $0x718] sm:$0xff] %v1671_v35  ;;  %v1673_v36 = vld [vmem:[%s9904_s26 + $0xe40] sm:$0xff]  ;;  %v1675_v37 = vld [vmem:[%s9904_s26 + $0xe50] sm:$0xff] }
  0x82   : > { %v1677_v38 = vld [vmem:[%s9904_s26 + $0xe60] sm:$0xff]  ;;  %1674 = vst [vmem:[%s9909_s27 + $0x720] sm:$0xff] %v1673_v36  ;;  %1676 = vst [vmem:[%s9909_s27 + $0x728] sm:$0xff] %v1675_v37  ;;  %v1679_v39 = vld [vmem:[%s9904_s26 + $0xe70] sm:$0xff] }
  0x83   : > { %1678 = vst [vmem:[%s9909_s27 + $0x730] sm:$0xff] %v1677_v38  ;;  %v1681_v40 = vld [vmem:[%s9904_s26 + $0xe80] sm:$0xff]  ;;  %v1683_v41 = vld [vmem:[%s9904_s26 + $0xe90] sm:$0xff]  ;;  %1680 = vst [vmem:[%s9909_s27 + $0x738] sm:$0xff] %v1679_v39 }
  0x84   : > { %1682 = vst [vmem:[%s9909_s27 + $0x740] sm:$0xff] %v1681_v40  ;;  %1684 = vst [vmem:[%s9909_s27 + $0x748] sm:$0xff] %v1683_v41  ;;  %v1685_v42 = vld [vmem:[%s9904_s26 + $0xea0] sm:$0xff]  ;;  %v1687_v43 = vld [vmem:[%s9904_s26 + $0xeb0] sm:$0xff] }
  0x85   : > { %v1689_v44 = vld [vmem:[%s9904_s26 + $0xec0] sm:$0xff]  ;;  %1686 = vst [vmem:[%s9909_s27 + $0x750] sm:$0xff] %v1685_v42  ;;  %1688 = vst [vmem:[%s9909_s27 + $0x758] sm:$0xff] %v1687_v43  ;;  %v1691_v45 = vld [vmem:[%s9904_s26 + $0xed0] sm:$0xff] }
  0x86   : > { %1690 = vst [vmem:[%s9909_s27 + $0x760] sm:$0xff] %v1689_v44  ;;  %v1693_v46 = vld [vmem:[%s9904_s26 + $0xee0] sm:$0xff]  ;;  %v1695_v47 = vld [vmem:[%s9904_s26 + $0xef0] sm:$0xff]  ;;  %1692 = vst [vmem:[%s9909_s27 + $0x768] sm:$0xff] %v1691_v45 }
  0x87   : > { %1694 = vst [vmem:[%s9909_s27 + $0x770] sm:$0xff] %v1693_v46  ;;  %1696 = vst [vmem:[%s9909_s27 + $0x778] sm:$0xff] %v1695_v47  ;;  %v1697_v48 = vld [vmem:[%s9904_s26 + $0xf00] sm:$0xff]  ;;  %v1699_v49 = vld [vmem:[%s9904_s26 + $0xf10] sm:$0xff] }
  0x88   : > { %v1701_v50 = vld [vmem:[%s9904_s26 + $0xf20] sm:$0xff]  ;;  %1698 = vst [vmem:[%s9909_s27 + $0x780] sm:$0xff] %v1697_v48  ;;  %1700 = vst [vmem:[%s9909_s27 + $0x788] sm:$0xff] %v1699_v49  ;;  %v1703_v51 = vld [vmem:[%s9904_s26 + $0xf30] sm:$0xff] }
  0x89   : > { %1702 = vst [vmem:[%s9909_s27 + $0x790] sm:$0xff] %v1701_v50  ;;  %v1705_v52 = vld [vmem:[%s9904_s26 + $0xf40] sm:$0xff]  ;;  %v1707_v53 = vld [vmem:[%s9904_s26 + $0xf50] sm:$0xff]  ;;  %1704 = vst [vmem:[%s9909_s27 + $0x798] sm:$0xff] %v1703_v51 }
  0x8a   : > { %1706 = vst [vmem:[%s9909_s27 + $0x7a0] sm:$0xff] %v1705_v52  ;;  %1708 = vst [vmem:[%s9909_s27 + $0x7a8] sm:$0xff] %v1707_v53  ;;  %v1709_v54 = vld [vmem:[%s9904_s26 + $0xf60] sm:$0xff]  ;;  %v1711_v55 = vld [vmem:[%s9904_s26 + $0xf70] sm:$0xff] }
  0x8b   : > { %v1713_v56 = vld [vmem:[%s9904_s26 + $0xf80] sm:$0xff]  ;;  %1710 = vst [vmem:[%s9909_s27 + $0x7b0] sm:$0xff] %v1709_v54  ;;  %1712 = vst [vmem:[%s9909_s27 + $0x7b8] sm:$0xff] %v1711_v55  ;;  %v1715_v57 = vld [vmem:[%s9904_s26 + $0xf90] sm:$0xff] }
  0x8c   : > { %1714 = vst [vmem:[%s9909_s27 + $0x7c0] sm:$0xff] %v1713_v56  ;;  %v1717_v58 = vld [vmem:[%s9904_s26 + $0xfa0] sm:$0xff]  ;;  %v1719_v59 = vld [vmem:[%s9904_s26 + $0xfb0] sm:$0xff]  ;;  %1716 = vst [vmem:[%s9909_s27 + $0x7c8] sm:$0xff] %v1715_v57 }
  0x8d   : > { %1718 = vst [vmem:[%s9909_s27 + $0x7d0] sm:$0xff] %v1717_v58  ;;  %1720 = vst [vmem:[%s9909_s27 + $0x7d8] sm:$0xff] %v1719_v59  ;;  %v1721_v60 = vld [vmem:[%s9904_s26 + $0xfc0] sm:$0xff]  ;;  %v1723_v61 = vld [vmem:[%s9904_s26 + $0xfd0] sm:$0xff] }
  0x8e   : > { %v1725_v62 = vld [vmem:[%s9904_s26 + $0xfe0] sm:$0xff]  ;;  %1722 = vst [vmem:[%s9909_s27 + $0x7e0] sm:$0xff] %v1721_v60  ;;  %1724 = vst [vmem:[%s9909_s27 + $0x7e8] sm:$0xff] %v1723_v61  ;;  %v1727_v63 = vld [vmem:[%s9904_s26 + $0xff0] sm:$0xff] }
  0x8f   : > { %1726 = vst [vmem:[%s9909_s27 + $0x7f0] sm:$0xff] %v1725_v62  ;;  %v1729_v0 = vld [vmem:[%s9904_s26 + $0x1000] sm:$0xff]  ;;  %v1731_v1 = vld [vmem:[%s9904_s26 + $0x1010] sm:$0xff]  ;;  %1728 = vst [vmem:[%s9909_s27 + $0x7f8] sm:$0xff] %v1727_v63 }
  0x90   : > { %1730 = vst [vmem:[%s9909_s27 + $0x800] sm:$0xff] %v1729_v0  ;;  %1732 = vst [vmem:[%s9909_s27 + $0x808] sm:$0xff] %v1731_v1  ;;  %v1733_v2 = vld [vmem:[%s9904_s26 + $0x1020] sm:$0xff]  ;;  %v1735_v3 = vld [vmem:[%s9904_s26 + $0x1030] sm:$0xff] }
  0x91   : > { %v1737_v4 = vld [vmem:[%s9904_s26 + $0x1040] sm:$0xff]  ;;  %1734 = vst [vmem:[%s9909_s27 + $0x810] sm:$0xff] %v1733_v2  ;;  %1736 = vst [vmem:[%s9909_s27 + $0x818] sm:$0xff] %v1735_v3  ;;  %v1739_v5 = vld [vmem:[%s9904_s26 + $0x1050] sm:$0xff] }
  0x92   : > { %1738 = vst [vmem:[%s9909_s27 + $0x820] sm:$0xff] %v1737_v4  ;;  %v1741_v6 = vld [vmem:[%s9904_s26 + $0x1060] sm:$0xff]  ;;  %v1743_v7 = vld [vmem:[%s9904_s26 + $0x1070] sm:$0xff]  ;;  %1740 = vst [vmem:[%s9909_s27 + $0x828] sm:$0xff] %v1739_v5 }
  0x93   : > { %1742 = vst [vmem:[%s9909_s27 + $0x830] sm:$0xff] %v1741_v6  ;;  %1744 = vst [vmem:[%s9909_s27 + $0x838] sm:$0xff] %v1743_v7  ;;  %v1745_v8 = vld [vmem:[%s9904_s26 + $0x1080] sm:$0xff]  ;;  %v1747_v9 = vld [vmem:[%s9904_s26 + $0x1090] sm:$0xff] }
  0x94   : > { %v1749_v10 = vld [vmem:[%s9904_s26 + $0x10a0] sm:$0xff]  ;;  %1746 = vst [vmem:[%s9909_s27 + $0x840] sm:$0xff] %v1745_v8  ;;  %1748 = vst [vmem:[%s9909_s27 + $0x848] sm:$0xff] %v1747_v9  ;;  %v1751_v11 = vld [vmem:[%s9904_s26 + $0x10b0] sm:$0xff] }
  0x95   : > { %1750 = vst [vmem:[%s9909_s27 + $0x850] sm:$0xff] %v1749_v10  ;;  %v1753_v12 = vld [vmem:[%s9904_s26 + $0x10c0] sm:$0xff]  ;;  %v1755_v13 = vld [vmem:[%s9904_s26 + $0x10d0] sm:$0xff]  ;;  %1752 = vst [vmem:[%s9909_s27 + $0x858] sm:$0xff] %v1751_v11 }
  0x96   : > { %1754 = vst [vmem:[%s9909_s27 + $0x860] sm:$0xff] %v1753_v12  ;;  %1756 = vst [vmem:[%s9909_s27 + $0x868] sm:$0xff] %v1755_v13  ;;  %v1757_v14 = vld [vmem:[%s9904_s26 + $0x10e0] sm:$0xff]  ;;  %v1759_v15 = vld [vmem:[%s9904_s26 + $0x10f0] sm:$0xff] }
  0x97   : > { %v1761_v16 = vld [vmem:[%s9904_s26 + $0x1100] sm:$0xff]  ;;  %1758 = vst [vmem:[%s9909_s27 + $0x870] sm:$0xff] %v1757_v14  ;;  %1760 = vst [vmem:[%s9909_s27 + $0x878] sm:$0xff] %v1759_v15  ;;  %v1763_v17 = vld [vmem:[%s9904_s26 + $0x1110] sm:$0xff] }
  0x98   : > { %1762 = vst [vmem:[%s9909_s27 + $0x880] sm:$0xff] %v1761_v16  ;;  %v1765_v18 = vld [vmem:[%s9904_s26 + $0x1120] sm:$0xff]  ;;  %v1767_v19 = vld [vmem:[%s9904_s26 + $0x1130] sm:$0xff]  ;;  %1764 = vst [vmem:[%s9909_s27 + $0x888] sm:$0xff] %v1763_v17 }
  0x99   : > { %1766 = vst [vmem:[%s9909_s27 + $0x890] sm:$0xff] %v1765_v18  ;;  %1768 = vst [vmem:[%s9909_s27 + $0x898] sm:$0xff] %v1767_v19  ;;  %v1769_v20 = vld [vmem:[%s9904_s26 + $0x1140] sm:$0xff]  ;;  %v1771_v21 = vld [vmem:[%s9904_s26 + $0x1150] sm:$0xff] }
  0x9a   : > { %v1773_v22 = vld [vmem:[%s9904_s26 + $0x1160] sm:$0xff]  ;;  %1770 = vst [vmem:[%s9909_s27 + $0x8a0] sm:$0xff] %v1769_v20  ;;  %1772 = vst [vmem:[%s9909_s27 + $0x8a8] sm:$0xff] %v1771_v21  ;;  %v1775_v23 = vld [vmem:[%s9904_s26 + $0x1170] sm:$0xff] }
  0x9b   : > { %1774 = vst [vmem:[%s9909_s27 + $0x8b0] sm:$0xff] %v1773_v22  ;;  %v1777_v24 = vld [vmem:[%s9904_s26 + $0x1180] sm:$0xff]  ;;  %v1779_v25 = vld [vmem:[%s9904_s26 + $0x1190] sm:$0xff]  ;;  %1776 = vst [vmem:[%s9909_s27 + $0x8b8] sm:$0xff] %v1775_v23 }
  0x9c   : > { %1778 = vst [vmem:[%s9909_s27 + $0x8c0] sm:$0xff] %v1777_v24  ;;  %1780 = vst [vmem:[%s9909_s27 + $0x8c8] sm:$0xff] %v1779_v25  ;;  %v1781_v26 = vld [vmem:[%s9904_s26 + $0x11a0] sm:$0xff]  ;;  %v1783_v27 = vld [vmem:[%s9904_s26 + $0x11b0] sm:$0xff] }
  0x9d   : > { %v1785_v28 = vld [vmem:[%s9904_s26 + $0x11c0] sm:$0xff]  ;;  %1782 = vst [vmem:[%s9909_s27 + $0x8d0] sm:$0xff] %v1781_v26  ;;  %1784 = vst [vmem:[%s9909_s27 + $0x8d8] sm:$0xff] %v1783_v27  ;;  %v1787_v29 = vld [vmem:[%s9904_s26 + $0x11d0] sm:$0xff] }
  0x9e   : > { %1786 = vst [vmem:[%s9909_s27 + $0x8e0] sm:$0xff] %v1785_v28  ;;  %v1789_v30 = vld [vmem:[%s9904_s26 + $0x11e0] sm:$0xff]  ;;  %v1791_v31 = vld [vmem:[%s9904_s26 + $0x11f0] sm:$0xff]  ;;  %1788 = vst [vmem:[%s9909_s27 + $0x8e8] sm:$0xff] %v1787_v29 }
  0x9f   : > { %1790 = vst [vmem:[%s9909_s27 + $0x8f0] sm:$0xff] %v1789_v30  ;;  %1792 = vst [vmem:[%s9909_s27 + $0x8f8] sm:$0xff] %v1791_v31  ;;  %v1793_v32 = vld [vmem:[%s9904_s26 + $0x1200] sm:$0xff]  ;;  %v1795_v33 = vld [vmem:[%s9904_s26 + $0x1210] sm:$0xff] }
  0xa0   : > { %v1797_v34 = vld [vmem:[%s9904_s26 + $0x1220] sm:$0xff]  ;;  %1794 = vst [vmem:[%s9909_s27 + $0x900] sm:$0xff] %v1793_v32  ;;  %1796 = vst [vmem:[%s9909_s27 + $0x908] sm:$0xff] %v1795_v33  ;;  %v1799_v35 = vld [vmem:[%s9904_s26 + $0x1230] sm:$0xff] }
  0xa1   : > { %1798 = vst [vmem:[%s9909_s27 + $0x910] sm:$0xff] %v1797_v34  ;;  %v1801_v36 = vld [vmem:[%s9904_s26 + $0x1240] sm:$0xff]  ;;  %v1803_v37 = vld [vmem:[%s9904_s26 + $0x1250] sm:$0xff]  ;;  %1800 = vst [vmem:[%s9909_s27 + $0x918] sm:$0xff] %v1799_v35 }
  0xa2   : > { %1802 = vst [vmem:[%s9909_s27 + $0x920] sm:$0xff] %v1801_v36  ;;  %1804 = vst [vmem:[%s9909_s27 + $0x928] sm:$0xff] %v1803_v37  ;;  %v1805_v38 = vld [vmem:[%s9904_s26 + $0x1260] sm:$0xff]  ;;  %v1807_v39 = vld [vmem:[%s9904_s26 + $0x1270] sm:$0xff] }
  0xa3   : > { %v1809_v40 = vld [vmem:[%s9904_s26 + $0x1280] sm:$0xff]  ;;  %1806 = vst [vmem:[%s9909_s27 + $0x930] sm:$0xff] %v1805_v38  ;;  %1808 = vst [vmem:[%s9909_s27 + $0x938] sm:$0xff] %v1807_v39  ;;  %v1811_v41 = vld [vmem:[%s9904_s26 + $0x1290] sm:$0xff] }
  0xa4   : > { %1810 = vst [vmem:[%s9909_s27 + $0x940] sm:$0xff] %v1809_v40  ;;  %v1813_v42 = vld [vmem:[%s9904_s26 + $0x12a0] sm:$0xff]  ;;  %v1815_v43 = vld [vmem:[%s9904_s26 + $0x12b0] sm:$0xff]  ;;  %1812 = vst [vmem:[%s9909_s27 + $0x948] sm:$0xff] %v1811_v41 }
  0xa5   : > { %1814 = vst [vmem:[%s9909_s27 + $0x950] sm:$0xff] %v1813_v42  ;;  %1816 = vst [vmem:[%s9909_s27 + $0x958] sm:$0xff] %v1815_v43  ;;  %v1817_v44 = vld [vmem:[%s9904_s26 + $0x12c0] sm:$0xff]  ;;  %v1819_v45 = vld [vmem:[%s9904_s26 + $0x12d0] sm:$0xff] }
  0xa6   : > { %v1821_v46 = vld [vmem:[%s9904_s26 + $0x12e0] sm:$0xff]  ;;  %1818 = vst [vmem:[%s9909_s27 + $0x960] sm:$0xff] %v1817_v44  ;;  %1820 = vst [vmem:[%s9909_s27 + $0x968] sm:$0xff] %v1819_v45  ;;  %v1823_v47 = vld [vmem:[%s9904_s26 + $0x12f0] sm:$0xff] }
  0xa7   : > { %1822 = vst [vmem:[%s9909_s27 + $0x970] sm:$0xff] %v1821_v46  ;;  %v1825_v48 = vld [vmem:[%s9904_s26 + $0x1300] sm:$0xff]  ;;  %v1827_v49 = vld [vmem:[%s9904_s26 + $0x1310] sm:$0xff]  ;;  %1824 = vst [vmem:[%s9909_s27 + $0x978] sm:$0xff] %v1823_v47 }
  0xa8   : > { %1826 = vst [vmem:[%s9909_s27 + $0x980] sm:$0xff] %v1825_v48  ;;  %1828 = vst [vmem:[%s9909_s27 + $0x988] sm:$0xff] %v1827_v49  ;;  %v1829_v50 = vld [vmem:[%s9904_s26 + $0x1320] sm:$0xff]  ;;  %v1831_v51 = vld [vmem:[%s9904_s26 + $0x1330] sm:$0xff] }
  0xa9   : > { %v1833_v52 = vld [vmem:[%s9904_s26 + $0x1340] sm:$0xff]  ;;  %1830 = vst [vmem:[%s9909_s27 + $0x990] sm:$0xff] %v1829_v50  ;;  %1832 = vst [vmem:[%s9909_s27 + $0x998] sm:$0xff] %v1831_v51  ;;  %v1835_v53 = vld [vmem:[%s9904_s26 + $0x1350] sm:$0xff] }
  0xaa   : > { %1834 = vst [vmem:[%s9909_s27 + $0x9a0] sm:$0xff] %v1833_v52  ;;  %v1837_v54 = vld [vmem:[%s9904_s26 + $0x1360] sm:$0xff]  ;;  %v1839_v55 = vld [vmem:[%s9904_s26 + $0x1370] sm:$0xff]  ;;  %1836 = vst [vmem:[%s9909_s27 + $0x9a8] sm:$0xff] %v1835_v53 }
  0xab   : > { %1838 = vst [vmem:[%s9909_s27 + $0x9b0] sm:$0xff] %v1837_v54  ;;  %1840 = vst [vmem:[%s9909_s27 + $0x9b8] sm:$0xff] %v1839_v55  ;;  %v1841_v56 = vld [vmem:[%s9904_s26 + $0x1380] sm:$0xff]  ;;  %v1843_v57 = vld [vmem:[%s9904_s26 + $0x1390] sm:$0xff] }
  0xac   : > { %v1845_v58 = vld [vmem:[%s9904_s26 + $0x13a0] sm:$0xff]  ;;  %1842 = vst [vmem:[%s9909_s27 + $0x9c0] sm:$0xff] %v1841_v56  ;;  %1844 = vst [vmem:[%s9909_s27 + $0x9c8] sm:$0xff] %v1843_v57  ;;  %v1847_v59 = vld [vmem:[%s9904_s26 + $0x13b0] sm:$0xff] }
  0xad   : > { %1846 = vst [vmem:[%s9909_s27 + $0x9d0] sm:$0xff] %v1845_v58  ;;  %v1849_v60 = vld [vmem:[%s9904_s26 + $0x13c0] sm:$0xff]  ;;  %v1851_v61 = vld [vmem:[%s9904_s26 + $0x13d0] sm:$0xff]  ;;  %1848 = vst [vmem:[%s9909_s27 + $0x9d8] sm:$0xff] %v1847_v59 }
  0xae   : > { %1850 = vst [vmem:[%s9909_s27 + $0x9e0] sm:$0xff] %v1849_v60  ;;  %1852 = vst [vmem:[%s9909_s27 + $0x9e8] sm:$0xff] %v1851_v61  ;;  %v1853_v62 = vld [vmem:[%s9904_s26 + $0x13e0] sm:$0xff]  ;;  %v1855_v63 = vld [vmem:[%s9904_s26 + $0x13f0] sm:$0xff] }
  0xaf   : > { %v1857_v0 = vld [vmem:[%s9904_s26 + $0x1400] sm:$0xff]  ;;  %1854 = vst [vmem:[%s9909_s27 + $0x9f0] sm:$0xff] %v1853_v62  ;;  %1856 = vst [vmem:[%s9909_s27 + $0x9f8] sm:$0xff] %v1855_v63  ;;  %v1859_v1 = vld [vmem:[%s9904_s26 + $0x1410] sm:$0xff] }
  0xb0   : > { %1858 = vst [vmem:[%s9909_s27 + $0xa00] sm:$0xff] %v1857_v0  ;;  %v1861_v2 = vld [vmem:[%s9904_s26 + $0x1420] sm:$0xff]  ;;  %v1863_v3 = vld [vmem:[%s9904_s26 + $0x1430] sm:$0xff]  ;;  %1860 = vst [vmem:[%s9909_s27 + $0xa08] sm:$0xff] %v1859_v1 }
  0xb1   : > { %1862 = vst [vmem:[%s9909_s27 + $0xa10] sm:$0xff] %v1861_v2  ;;  %1864 = vst [vmem:[%s9909_s27 + $0xa18] sm:$0xff] %v1863_v3  ;;  %v1865_v4 = vld [vmem:[%s9904_s26 + $0x1440] sm:$0xff]  ;;  %v1867_v5 = vld [vmem:[%s9904_s26 + $0x1450] sm:$0xff] }
  0xb2   : > { %v1869_v6 = vld [vmem:[%s9904_s26 + $0x1460] sm:$0xff]  ;;  %1866 = vst [vmem:[%s9909_s27 + $0xa20] sm:$0xff] %v1865_v4  ;;  %1868 = vst [vmem:[%s9909_s27 + $0xa28] sm:$0xff] %v1867_v5  ;;  %v1871_v7 = vld [vmem:[%s9904_s26 + $0x1470] sm:$0xff] }
  0xb3   : > { %1870 = vst [vmem:[%s9909_s27 + $0xa30] sm:$0xff] %v1869_v6  ;;  %v1873_v8 = vld [vmem:[%s9904_s26 + $0x1480] sm:$0xff]  ;;  %v1875_v9 = vld [vmem:[%s9904_s26 + $0x1490] sm:$0xff]  ;;  %1872 = vst [vmem:[%s9909_s27 + $0xa38] sm:$0xff] %v1871_v7 }
  0xb4   : > { %1874 = vst [vmem:[%s9909_s27 + $0xa40] sm:$0xff] %v1873_v8  ;;  %1876 = vst [vmem:[%s9909_s27 + $0xa48] sm:$0xff] %v1875_v9  ;;  %v1877_v10 = vld [vmem:[%s9904_s26 + $0x14a0] sm:$0xff]  ;;  %v1879_v11 = vld [vmem:[%s9904_s26 + $0x14b0] sm:$0xff] }
  0xb5   : > { %v1881_v12 = vld [vmem:[%s9904_s26 + $0x14c0] sm:$0xff]  ;;  %1878 = vst [vmem:[%s9909_s27 + $0xa50] sm:$0xff] %v1877_v10  ;;  %1880 = vst [vmem:[%s9909_s27 + $0xa58] sm:$0xff] %v1879_v11  ;;  %v1883_v13 = vld [vmem:[%s9904_s26 + $0x14d0] sm:$0xff] }
  0xb6   : > { %1882 = vst [vmem:[%s9909_s27 + $0xa60] sm:$0xff] %v1881_v12  ;;  %v1885_v14 = vld [vmem:[%s9904_s26 + $0x14e0] sm:$0xff]  ;;  %v1887_v15 = vld [vmem:[%s9904_s26 + $0x14f0] sm:$0xff]  ;;  %1884 = vst [vmem:[%s9909_s27 + $0xa68] sm:$0xff] %v1883_v13 }
  0xb7   : > { %1886 = vst [vmem:[%s9909_s27 + $0xa70] sm:$0xff] %v1885_v14  ;;  %1888 = vst [vmem:[%s9909_s27 + $0xa78] sm:$0xff] %v1887_v15  ;;  %v1889_v16 = vld [vmem:[%s9904_s26 + $0x1500] sm:$0xff]  ;;  %v1891_v17 = vld [vmem:[%s9904_s26 + $0x1510] sm:$0xff] }
  0xb8   : > { %v1893_v18 = vld [vmem:[%s9904_s26 + $0x1520] sm:$0xff]  ;;  %1890 = vst [vmem:[%s9909_s27 + $0xa80] sm:$0xff] %v1889_v16  ;;  %1892 = vst [vmem:[%s9909_s27 + $0xa88] sm:$0xff] %v1891_v17  ;;  %v1895_v19 = vld [vmem:[%s9904_s26 + $0x1530] sm:$0xff] }
  0xb9   : > { %1894 = vst [vmem:[%s9909_s27 + $0xa90] sm:$0xff] %v1893_v18  ;;  %v1897_v20 = vld [vmem:[%s9904_s26 + $0x1540] sm:$0xff]  ;;  %v1899_v21 = vld [vmem:[%s9904_s26 + $0x1550] sm:$0xff]  ;;  %1896 = vst [vmem:[%s9909_s27 + $0xa98] sm:$0xff] %v1895_v19 }
  0xba   : > { %1898 = vst [vmem:[%s9909_s27 + $0xaa0] sm:$0xff] %v1897_v20  ;;  %1900 = vst [vmem:[%s9909_s27 + $0xaa8] sm:$0xff] %v1899_v21  ;;  %v1901_v22 = vld [vmem:[%s9904_s26 + $0x1560] sm:$0xff]  ;;  %v1903_v23 = vld [vmem:[%s9904_s26 + $0x1570] sm:$0xff] }
  0xbb   : > { %v1905_v24 = vld [vmem:[%s9904_s26 + $0x1580] sm:$0xff]  ;;  %1902 = vst [vmem:[%s9909_s27 + $0xab0] sm:$0xff] %v1901_v22  ;;  %1904 = vst [vmem:[%s9909_s27 + $0xab8] sm:$0xff] %v1903_v23  ;;  %v1907_v25 = vld [vmem:[%s9904_s26 + $0x1590] sm:$0xff] }
  0xbc   : > { %1906 = vst [vmem:[%s9909_s27 + $0xac0] sm:$0xff] %v1905_v24  ;;  %v1909_v26 = vld [vmem:[%s9904_s26 + $0x15a0] sm:$0xff]  ;;  %v1911_v27 = vld [vmem:[%s9904_s26 + $0x15b0] sm:$0xff]  ;;  %1908 = vst [vmem:[%s9909_s27 + $0xac8] sm:$0xff] %v1907_v25 }
  0xbd   : > { %1910 = vst [vmem:[%s9909_s27 + $0xad0] sm:$0xff] %v1909_v26  ;;  %1912 = vst [vmem:[%s9909_s27 + $0xad8] sm:$0xff] %v1911_v27  ;;  %v1913_v28 = vld [vmem:[%s9904_s26 + $0x15c0] sm:$0xff]  ;;  %v1915_v29 = vld [vmem:[%s9904_s26 + $0x15d0] sm:$0xff] }
  0xbe   : > { %v1917_v30 = vld [vmem:[%s9904_s26 + $0x15e0] sm:$0xff]  ;;  %1914 = vst [vmem:[%s9909_s27 + $0xae0] sm:$0xff] %v1913_v28  ;;  %1916 = vst [vmem:[%s9909_s27 + $0xae8] sm:$0xff] %v1915_v29  ;;  %v1919_v31 = vld [vmem:[%s9904_s26 + $0x15f0] sm:$0xff] }
  0xbf   : > { %1918 = vst [vmem:[%s9909_s27 + $0xaf0] sm:$0xff] %v1917_v30  ;;  %v1921_v32 = vld [vmem:[%s9904_s26 + $0x1600] sm:$0xff]  ;;  %v1923_v33 = vld [vmem:[%s9904_s26 + $0x1610] sm:$0xff]  ;;  %1920 = vst [vmem:[%s9909_s27 + $0xaf8] sm:$0xff] %v1919_v31 }
  0xc0   : > { %1922 = vst [vmem:[%s9909_s27 + $0xb00] sm:$0xff] %v1921_v32  ;;  %1924 = vst [vmem:[%s9909_s27 + $0xb08] sm:$0xff] %v1923_v33  ;;  %v1925_v34 = vld [vmem:[%s9904_s26 + $0x1620] sm:$0xff]  ;;  %v1927_v35 = vld [vmem:[%s9904_s26 + $0x1630] sm:$0xff] }
  0xc1   : > { %v1929_v36 = vld [vmem:[%s9904_s26 + $0x1640] sm:$0xff]  ;;  %1926 = vst [vmem:[%s9909_s27 + $0xb10] sm:$0xff] %v1925_v34  ;;  %1928 = vst [vmem:[%s9909_s27 + $0xb18] sm:$0xff] %v1927_v35  ;;  %v1931_v37 = vld [vmem:[%s9904_s26 + $0x1650] sm:$0xff] }
  0xc2   : > { %1930 = vst [vmem:[%s9909_s27 + $0xb20] sm:$0xff] %v1929_v36  ;;  %v1933_v38 = vld [vmem:[%s9904_s26 + $0x1660] sm:$0xff]  ;;  %v1935_v39 = vld [vmem:[%s9904_s26 + $0x1670] sm:$0xff]  ;;  %1932 = vst [vmem:[%s9909_s27 + $0xb28] sm:$0xff] %v1931_v37 }
  0xc3   : > { %1934 = vst [vmem:[%s9909_s27 + $0xb30] sm:$0xff] %v1933_v38  ;;  %1936 = vst [vmem:[%s9909_s27 + $0xb38] sm:$0xff] %v1935_v39  ;;  %v1937_v40 = vld [vmem:[%s9904_s26 + $0x1680] sm:$0xff]  ;;  %v1939_v41 = vld [vmem:[%s9904_s26 + $0x1690] sm:$0xff] }
  0xc4   : > { %v1941_v42 = vld [vmem:[%s9904_s26 + $0x16a0] sm:$0xff]  ;;  %1938 = vst [vmem:[%s9909_s27 + $0xb40] sm:$0xff] %v1937_v40  ;;  %1940 = vst [vmem:[%s9909_s27 + $0xb48] sm:$0xff] %v1939_v41  ;;  %v1943_v43 = vld [vmem:[%s9904_s26 + $0x16b0] sm:$0xff] }
  0xc5   : > { %1942 = vst [vmem:[%s9909_s27 + $0xb50] sm:$0xff] %v1941_v42  ;;  %v1945_v44 = vld [vmem:[%s9904_s26 + $0x16c0] sm:$0xff]  ;;  %v1947_v45 = vld [vmem:[%s9904_s26 + $0x16d0] sm:$0xff]  ;;  %1944 = vst [vmem:[%s9909_s27 + $0xb58] sm:$0xff] %v1943_v43 }
  0xc6   : > { %1946 = vst [vmem:[%s9909_s27 + $0xb60] sm:$0xff] %v1945_v44  ;;  %1948 = vst [vmem:[%s9909_s27 + $0xb68] sm:$0xff] %v1947_v45  ;;  %v1949_v46 = vld [vmem:[%s9904_s26 + $0x16e0] sm:$0xff]  ;;  %v1951_v47 = vld [vmem:[%s9904_s26 + $0x16f0] sm:$0xff] }
  0xc7   : > { %v1953_v48 = vld [vmem:[%s9904_s26 + $0x1700] sm:$0xff]  ;;  %1950 = vst [vmem:[%s9909_s27 + $0xb70] sm:$0xff] %v1949_v46  ;;  %1952 = vst [vmem:[%s9909_s27 + $0xb78] sm:$0xff] %v1951_v47  ;;  %v1955_v49 = vld [vmem:[%s9904_s26 + $0x1710] sm:$0xff] }
  0xc8   : > { %1954 = vst [vmem:[%s9909_s27 + $0xb80] sm:$0xff] %v1953_v48  ;;  %v1957_v50 = vld [vmem:[%s9904_s26 + $0x1720] sm:$0xff]  ;;  %v1959_v51 = vld [vmem:[%s9904_s26 + $0x1730] sm:$0xff]  ;;  %1956 = vst [vmem:[%s9909_s27 + $0xb88] sm:$0xff] %v1955_v49 }
  0xc9   : > { %1958 = vst [vmem:[%s9909_s27 + $0xb90] sm:$0xff] %v1957_v50  ;;  %1960 = vst [vmem:[%s9909_s27 + $0xb98] sm:$0xff] %v1959_v51  ;;  %v1961_v52 = vld [vmem:[%s9904_s26 + $0x1740] sm:$0xff]  ;;  %v1963_v53 = vld [vmem:[%s9904_s26 + $0x1750] sm:$0xff] }
  0xca   : > { %v1965_v54 = vld [vmem:[%s9904_s26 + $0x1760] sm:$0xff]  ;;  %1962 = vst [vmem:[%s9909_s27 + $0xba0] sm:$0xff] %v1961_v52  ;;  %1964 = vst [vmem:[%s9909_s27 + $0xba8] sm:$0xff] %v1963_v53  ;;  %v1967_v55 = vld [vmem:[%s9904_s26 + $0x1770] sm:$0xff] }
  0xcb   : > { %1966 = vst [vmem:[%s9909_s27 + $0xbb0] sm:$0xff] %v1965_v54  ;;  %v1969_v56 = vld [vmem:[%s9904_s26 + $0x1780] sm:$0xff]  ;;  %v1971_v57 = vld [vmem:[%s9904_s26 + $0x1790] sm:$0xff]  ;;  %1968 = vst [vmem:[%s9909_s27 + $0xbb8] sm:$0xff] %v1967_v55 }
  0xcc   : > { %1970 = vst [vmem:[%s9909_s27 + $0xbc0] sm:$0xff] %v1969_v56  ;;  %1972 = vst [vmem:[%s9909_s27 + $0xbc8] sm:$0xff] %v1971_v57  ;;  %v1973_v58 = vld [vmem:[%s9904_s26 + $0x17a0] sm:$0xff]  ;;  %v1975_v59 = vld [vmem:[%s9904_s26 + $0x17b0] sm:$0xff] }
  0xcd   : > { %v1977_v60 = vld [vmem:[%s9904_s26 + $0x17c0] sm:$0xff]  ;;  %1974 = vst [vmem:[%s9909_s27 + $0xbd0] sm:$0xff] %v1973_v58  ;;  %1976 = vst [vmem:[%s9909_s27 + $0xbd8] sm:$0xff] %v1975_v59  ;;  %v1979_v61 = vld [vmem:[%s9904_s26 + $0x17d0] sm:$0xff] }
  0xce   : > { %1978 = vst [vmem:[%s9909_s27 + $0xbe0] sm:$0xff] %v1977_v60  ;;  %v1981_v62 = vld [vmem:[%s9904_s26 + $0x17e0] sm:$0xff]  ;;  %v1983_v63 = vld [vmem:[%s9904_s26 + $0x17f0] sm:$0xff]  ;;  %1980 = vst [vmem:[%s9909_s27 + $0xbe8] sm:$0xff] %v1979_v61 }
  0xcf   : > { %1982 = vst [vmem:[%s9909_s27 + $0xbf0] sm:$0xff] %v1981_v62  ;;  %1984 = vst [vmem:[%s9909_s27 + $0xbf8] sm:$0xff] %v1983_v63  ;;  %v1985_v0 = vld [vmem:[%s9904_s26 + $0x1800] sm:$0xff]  ;;  %v1987_v1 = vld [vmem:[%s9904_s26 + $0x1810] sm:$0xff] }
  0xd0   : > { %v1989_v2 = vld [vmem:[%s9904_s26 + $0x1820] sm:$0xff]  ;;  %1986 = vst [vmem:[%s9909_s27 + $0xc00] sm:$0xff] %v1985_v0  ;;  %1988 = vst [vmem:[%s9909_s27 + $0xc08] sm:$0xff] %v1987_v1  ;;  %v1991_v3 = vld [vmem:[%s9904_s26 + $0x1830] sm:$0xff] }
  0xd1   : > { %1990 = vst [vmem:[%s9909_s27 + $0xc10] sm:$0xff] %v1989_v2  ;;  %v1993_v4 = vld [vmem:[%s9904_s26 + $0x1840] sm:$0xff]  ;;  %v1995_v5 = vld [vmem:[%s9904_s26 + $0x1850] sm:$0xff]  ;;  %1992 = vst [vmem:[%s9909_s27 + $0xc18] sm:$0xff] %v1991_v3 }
  0xd2   : > { %1994 = vst [vmem:[%s9909_s27 + $0xc20] sm:$0xff] %v1993_v4  ;;  %1996 = vst [vmem:[%s9909_s27 + $0xc28] sm:$0xff] %v1995_v5  ;;  %v1997_v6 = vld [vmem:[%s9904_s26 + $0x1860] sm:$0xff]  ;;  %v1999_v7 = vld [vmem:[%s9904_s26 + $0x1870] sm:$0xff] }
  0xd3   : > { %v2001_v8 = vld [vmem:[%s9904_s26 + $0x1880] sm:$0xff]  ;;  %1998 = vst [vmem:[%s9909_s27 + $0xc30] sm:$0xff] %v1997_v6  ;;  %2000 = vst [vmem:[%s9909_s27 + $0xc38] sm:$0xff] %v1999_v7  ;;  %v2003_v9 = vld [vmem:[%s9904_s26 + $0x1890] sm:$0xff] }
  0xd4   : > { %2002 = vst [vmem:[%s9909_s27 + $0xc40] sm:$0xff] %v2001_v8  ;;  %v2005_v10 = vld [vmem:[%s9904_s26 + $0x18a0] sm:$0xff]  ;;  %v2007_v11 = vld [vmem:[%s9904_s26 + $0x18b0] sm:$0xff]  ;;  %2004 = vst [vmem:[%s9909_s27 + $0xc48] sm:$0xff] %v2003_v9 }
  0xd5   : > { %2006 = vst [vmem:[%s9909_s27 + $0xc50] sm:$0xff] %v2005_v10  ;;  %2008 = vst [vmem:[%s9909_s27 + $0xc58] sm:$0xff] %v2007_v11  ;;  %v2009_v12 = vld [vmem:[%s9904_s26 + $0x18c0] sm:$0xff]  ;;  %v2011_v13 = vld [vmem:[%s9904_s26 + $0x18d0] sm:$0xff] }
  0xd6   : > { %v2013_v14 = vld [vmem:[%s9904_s26 + $0x18e0] sm:$0xff]  ;;  %2010 = vst [vmem:[%s9909_s27 + $0xc60] sm:$0xff] %v2009_v12  ;;  %2012 = vst [vmem:[%s9909_s27 + $0xc68] sm:$0xff] %v2011_v13  ;;  %v2015_v15 = vld [vmem:[%s9904_s26 + $0x18f0] sm:$0xff] }
  0xd7   : > { %2014 = vst [vmem:[%s9909_s27 + $0xc70] sm:$0xff] %v2013_v14  ;;  %v2017_v16 = vld [vmem:[%s9904_s26 + $0x1900] sm:$0xff]  ;;  %v2019_v17 = vld [vmem:[%s9904_s26 + $0x1910] sm:$0xff]  ;;  %2016 = vst [vmem:[%s9909_s27 + $0xc78] sm:$0xff] %v2015_v15 }
  0xd8   : > { %2018 = vst [vmem:[%s9909_s27 + $0xc80] sm:$0xff] %v2017_v16  ;;  %2020 = vst [vmem:[%s9909_s27 + $0xc88] sm:$0xff] %v2019_v17  ;;  %v2021_v18 = vld [vmem:[%s9904_s26 + $0x1920] sm:$0xff]  ;;  %v2023_v19 = vld [vmem:[%s9904_s26 + $0x1930] sm:$0xff] }
  0xd9   : > { %v2025_v20 = vld [vmem:[%s9904_s26 + $0x1940] sm:$0xff]  ;;  %2022 = vst [vmem:[%s9909_s27 + $0xc90] sm:$0xff] %v2021_v18  ;;  %2024 = vst [vmem:[%s9909_s27 + $0xc98] sm:$0xff] %v2023_v19  ;;  %v2027_v21 = vld [vmem:[%s9904_s26 + $0x1950] sm:$0xff] }
  0xda   : > { %2026 = vst [vmem:[%s9909_s27 + $0xca0] sm:$0xff] %v2025_v20  ;;  %v2029_v22 = vld [vmem:[%s9904_s26 + $0x1960] sm:$0xff]  ;;  %v2031_v23 = vld [vmem:[%s9904_s26 + $0x1970] sm:$0xff]  ;;  %2028 = vst [vmem:[%s9909_s27 + $0xca8] sm:$0xff] %v2027_v21 }
  0xdb   : > { %2030 = vst [vmem:[%s9909_s27 + $0xcb0] sm:$0xff] %v2029_v22  ;;  %2032 = vst [vmem:[%s9909_s27 + $0xcb8] sm:$0xff] %v2031_v23  ;;  %v2033_v24 = vld [vmem:[%s9904_s26 + $0x1980] sm:$0xff]  ;;  %v2035_v25 = vld [vmem:[%s9904_s26 + $0x1990] sm:$0xff] }
  0xdc   : > { %v2037_v26 = vld [vmem:[%s9904_s26 + $0x19a0] sm:$0xff]  ;;  %2034 = vst [vmem:[%s9909_s27 + $0xcc0] sm:$0xff] %v2033_v24  ;;  %2036 = vst [vmem:[%s9909_s27 + $0xcc8] sm:$0xff] %v2035_v25  ;;  %v2039_v27 = vld [vmem:[%s9904_s26 + $0x19b0] sm:$0xff] }
  0xdd   : > { %2038 = vst [vmem:[%s9909_s27 + $0xcd0] sm:$0xff] %v2037_v26  ;;  %v2041_v28 = vld [vmem:[%s9904_s26 + $0x19c0] sm:$0xff]  ;;  %v2043_v29 = vld [vmem:[%s9904_s26 + $0x19d0] sm:$0xff]  ;;  %2040 = vst [vmem:[%s9909_s27 + $0xcd8] sm:$0xff] %v2039_v27 }
  0xde   : > { %2042 = vst [vmem:[%s9909_s27 + $0xce0] sm:$0xff] %v2041_v28  ;;  %2044 = vst [vmem:[%s9909_s27 + $0xce8] sm:$0xff] %v2043_v29  ;;  %v2045_v30 = vld [vmem:[%s9904_s26 + $0x19e0] sm:$0xff]  ;;  %v2047_v31 = vld [vmem:[%s9904_s26 + $0x19f0] sm:$0xff] }
  0xdf   : > { %v2049_v32 = vld [vmem:[%s9904_s26 + $0x1a00] sm:$0xff]  ;;  %2046 = vst [vmem:[%s9909_s27 + $0xcf0] sm:$0xff] %v2045_v30  ;;  %2048 = vst [vmem:[%s9909_s27 + $0xcf8] sm:$0xff] %v2047_v31  ;;  %v2051_v33 = vld [vmem:[%s9904_s26 + $0x1a10] sm:$0xff] }
  0xe0   : > { %2050 = vst [vmem:[%s9909_s27 + $0xd00] sm:$0xff] %v2049_v32  ;;  %v2053_v34 = vld [vmem:[%s9904_s26 + $0x1a20] sm:$0xff]  ;;  %v2055_v35 = vld [vmem:[%s9904_s26 + $0x1a30] sm:$0xff]  ;;  %2052 = vst [vmem:[%s9909_s27 + $0xd08] sm:$0xff] %v2051_v33 }
  0xe1   : > { %2054 = vst [vmem:[%s9909_s27 + $0xd10] sm:$0xff] %v2053_v34  ;;  %2056 = vst [vmem:[%s9909_s27 + $0xd18] sm:$0xff] %v2055_v35  ;;  %v2057_v36 = vld [vmem:[%s9904_s26 + $0x1a40] sm:$0xff]  ;;  %v2059_v37 = vld [vmem:[%s9904_s26 + $0x1a50] sm:$0xff] }
  0xe2   : > { %v2061_v38 = vld [vmem:[%s9904_s26 + $0x1a60] sm:$0xff]  ;;  %2058 = vst [vmem:[%s9909_s27 + $0xd20] sm:$0xff] %v2057_v36  ;;  %2060 = vst [vmem:[%s9909_s27 + $0xd28] sm:$0xff] %v2059_v37  ;;  %v2063_v39 = vld [vmem:[%s9904_s26 + $0x1a70] sm:$0xff] }
  0xe3   : > { %2062 = vst [vmem:[%s9909_s27 + $0xd30] sm:$0xff] %v2061_v38  ;;  %v2065_v40 = vld [vmem:[%s9904_s26 + $0x1a80] sm:$0xff]  ;;  %v2067_v41 = vld [vmem:[%s9904_s26 + $0x1a90] sm:$0xff]  ;;  %2064 = vst [vmem:[%s9909_s27 + $0xd38] sm:$0xff] %v2063_v39 }
  0xe4   : > { %2066 = vst [vmem:[%s9909_s27 + $0xd40] sm:$0xff] %v2065_v40  ;;  %2068 = vst [vmem:[%s9909_s27 + $0xd48] sm:$0xff] %v2067_v41  ;;  %v2069_v42 = vld [vmem:[%s9904_s26 + $0x1aa0] sm:$0xff]  ;;  %v2071_v43 = vld [vmem:[%s9904_s26 + $0x1ab0] sm:$0xff] }
  0xe5   : > { %v2073_v44 = vld [vmem:[%s9904_s26 + $0x1ac0] sm:$0xff]  ;;  %2070 = vst [vmem:[%s9909_s27 + $0xd50] sm:$0xff] %v2069_v42  ;;  %2072 = vst [vmem:[%s9909_s27 + $0xd58] sm:$0xff] %v2071_v43  ;;  %v2075_v45 = vld [vmem:[%s9904_s26 + $0x1ad0] sm:$0xff] }
  0xe6   : > { %2074 = vst [vmem:[%s9909_s27 + $0xd60] sm:$0xff] %v2073_v44  ;;  %v2077_v46 = vld [vmem:[%s9904_s26 + $0x1ae0] sm:$0xff]  ;;  %v2079_v47 = vld [vmem:[%s9904_s26 + $0x1af0] sm:$0xff]  ;;  %2076 = vst [vmem:[%s9909_s27 + $0xd68] sm:$0xff] %v2075_v45 }
  0xe7   : > { %2078 = vst [vmem:[%s9909_s27 + $0xd70] sm:$0xff] %v2077_v46  ;;  %2080 = vst [vmem:[%s9909_s27 + $0xd78] sm:$0xff] %v2079_v47  ;;  %v2081_v48 = vld [vmem:[%s9904_s26 + $0x1b00] sm:$0xff]  ;;  %v2083_v49 = vld [vmem:[%s9904_s26 + $0x1b10] sm:$0xff] }
  0xe8   : > { %v2085_v50 = vld [vmem:[%s9904_s26 + $0x1b20] sm:$0xff]  ;;  %2082 = vst [vmem:[%s9909_s27 + $0xd80] sm:$0xff] %v2081_v48  ;;  %2084 = vst [vmem:[%s9909_s27 + $0xd88] sm:$0xff] %v2083_v49  ;;  %v2087_v51 = vld [vmem:[%s9904_s26 + $0x1b30] sm:$0xff] }
  0xe9   : > { %2086 = vst [vmem:[%s9909_s27 + $0xd90] sm:$0xff] %v2085_v50  ;;  %v2089_v52 = vld [vmem:[%s9904_s26 + $0x1b40] sm:$0xff]  ;;  %v2091_v53 = vld [vmem:[%s9904_s26 + $0x1b50] sm:$0xff]  ;;  %2088 = vst [vmem:[%s9909_s27 + $0xd98] sm:$0xff] %v2087_v51 }
  0xea   : > { %2090 = vst [vmem:[%s9909_s27 + $0xda0] sm:$0xff] %v2089_v52  ;;  %2092 = vst [vmem:[%s9909_s27 + $0xda8] sm:$0xff] %v2091_v53  ;;  %v2093_v54 = vld [vmem:[%s9904_s26 + $0x1b60] sm:$0xff]  ;;  %v2095_v55 = vld [vmem:[%s9904_s26 + $0x1b70] sm:$0xff] }
  0xeb   : > { %v2097_v56 = vld [vmem:[%s9904_s26 + $0x1b80] sm:$0xff]  ;;  %2094 = vst [vmem:[%s9909_s27 + $0xdb0] sm:$0xff] %v2093_v54  ;;  %2096 = vst [vmem:[%s9909_s27 + $0xdb8] sm:$0xff] %v2095_v55  ;;  %v2099_v57 = vld [vmem:[%s9904_s26 + $0x1b90] sm:$0xff] }
  0xec   : > { %2098 = vst [vmem:[%s9909_s27 + $0xdc0] sm:$0xff] %v2097_v56  ;;  %v2101_v58 = vld [vmem:[%s9904_s26 + $0x1ba0] sm:$0xff]  ;;  %v2103_v59 = vld [vmem:[%s9904_s26 + $0x1bb0] sm:$0xff]  ;;  %2100 = vst [vmem:[%s9909_s27 + $0xdc8] sm:$0xff] %v2099_v57 }
  0xed   : > { %2102 = vst [vmem:[%s9909_s27 + $0xdd0] sm:$0xff] %v2101_v58  ;;  %2104 = vst [vmem:[%s9909_s27 + $0xdd8] sm:$0xff] %v2103_v59  ;;  %v2105_v60 = vld [vmem:[%s9904_s26 + $0x1bc0] sm:$0xff]  ;;  %v2107_v61 = vld [vmem:[%s9904_s26 + $0x1bd0] sm:$0xff] }
  0xee   : > { %v2109_v62 = vld [vmem:[%s9904_s26 + $0x1be0] sm:$0xff]  ;;  %2106 = vst [vmem:[%s9909_s27 + $0xde0] sm:$0xff] %v2105_v60  ;;  %2108 = vst [vmem:[%s9909_s27 + $0xde8] sm:$0xff] %v2107_v61  ;;  %v2111_v63 = vld [vmem:[%s9904_s26 + $0x1bf0] sm:$0xff] }
  0xef   : > { %2110 = vst [vmem:[%s9909_s27 + $0xdf0] sm:$0xff] %v2109_v62  ;;  %v2113_v0 = vld [vmem:[%s9904_s26 + $0x1c00] sm:$0xff]  ;;  %v2115_v1 = vld [vmem:[%s9904_s26 + $0x1c10] sm:$0xff]  ;;  %2112 = vst [vmem:[%s9909_s27 + $0xdf8] sm:$0xff] %v2111_v63 }
  0xf0   : > { %2114 = vst [vmem:[%s9909_s27 + $0xe00] sm:$0xff] %v2113_v0  ;;  %2116 = vst [vmem:[%s9909_s27 + $0xe08] sm:$0xff] %v2115_v1  ;;  %v2117_v2 = vld [vmem:[%s9904_s26 + $0x1c20] sm:$0xff]  ;;  %v2119_v3 = vld [vmem:[%s9904_s26 + $0x1c30] sm:$0xff] }
  0xf1   : > { %v2121_v4 = vld [vmem:[%s9904_s26 + $0x1c40] sm:$0xff]  ;;  %2118 = vst [vmem:[%s9909_s27 + $0xe10] sm:$0xff] %v2117_v2  ;;  %2120 = vst [vmem:[%s9909_s27 + $0xe18] sm:$0xff] %v2119_v3  ;;  %v2123_v5 = vld [vmem:[%s9904_s26 + $0x1c50] sm:$0xff] }
  0xf2   : > { %2122 = vst [vmem:[%s9909_s27 + $0xe20] sm:$0xff] %v2121_v4  ;;  %v2125_v6 = vld [vmem:[%s9904_s26 + $0x1c60] sm:$0xff]  ;;  %v2127_v7 = vld [vmem:[%s9904_s26 + $0x1c70] sm:$0xff]  ;;  %2124 = vst [vmem:[%s9909_s27 + $0xe28] sm:$0xff] %v2123_v5 }
  0xf3   : > { %2126 = vst [vmem:[%s9909_s27 + $0xe30] sm:$0xff] %v2125_v6  ;;  %2128 = vst [vmem:[%s9909_s27 + $0xe38] sm:$0xff] %v2127_v7  ;;  %v2129_v8 = vld [vmem:[%s9904_s26 + $0x1c80] sm:$0xff]  ;;  %v2131_v9 = vld [vmem:[%s9904_s26 + $0x1c90] sm:$0xff] }
  0xf4   : > { %v2133_v10 = vld [vmem:[%s9904_s26 + $0x1ca0] sm:$0xff]  ;;  %2130 = vst [vmem:[%s9909_s27 + $0xe40] sm:$0xff] %v2129_v8  ;;  %2132 = vst [vmem:[%s9909_s27 + $0xe48] sm:$0xff] %v2131_v9  ;;  %v2135_v11 = vld [vmem:[%s9904_s26 + $0x1cb0] sm:$0xff] }
  0xf5   : > { %2134 = vst [vmem:[%s9909_s27 + $0xe50] sm:$0xff] %v2133_v10  ;;  %v2137_v12 = vld [vmem:[%s9904_s26 + $0x1cc0] sm:$0xff]  ;;  %v2139_v13 = vld [vmem:[%s9904_s26 + $0x1cd0] sm:$0xff]  ;;  %2136 = vst [vmem:[%s9909_s27 + $0xe58] sm:$0xff] %v2135_v11 }
  0xf6   : > { %2138 = vst [vmem:[%s9909_s27 + $0xe60] sm:$0xff] %v2137_v12  ;;  %2140 = vst [vmem:[%s9909_s27 + $0xe68] sm:$0xff] %v2139_v13  ;;  %v2141_v14 = vld [vmem:[%s9904_s26 + $0x1ce0] sm:$0xff]  ;;  %v2143_v15 = vld [vmem:[%s9904_s26 + $0x1cf0] sm:$0xff] }
  0xf7   : > { %v2145_v16 = vld [vmem:[%s9904_s26 + $0x1d00] sm:$0xff]  ;;  %2142 = vst [vmem:[%s9909_s27 + $0xe70] sm:$0xff] %v2141_v14  ;;  %2144 = vst [vmem:[%s9909_s27 + $0xe78] sm:$0xff] %v2143_v15  ;;  %v2147_v17 = vld [vmem:[%s9904_s26 + $0x1d10] sm:$0xff] }
  0xf8   : > { %2146 = vst [vmem:[%s9909_s27 + $0xe80] sm:$0xff] %v2145_v16  ;;  %v2149_v18 = vld [vmem:[%s9904_s26 + $0x1d20] sm:$0xff]  ;;  %v2151_v19 = vld [vmem:[%s9904_s26 + $0x1d30] sm:$0xff]  ;;  %2148 = vst [vmem:[%s9909_s27 + $0xe88] sm:$0xff] %v2147_v17 }
  0xf9   : > { %2150 = vst [vmem:[%s9909_s27 + $0xe90] sm:$0xff] %v2149_v18  ;;  %2152 = vst [vmem:[%s9909_s27 + $0xe98] sm:$0xff] %v2151_v19  ;;  %v2153_v20 = vld [vmem:[%s9904_s26 + $0x1d40] sm:$0xff]  ;;  %v2155_v21 = vld [vmem:[%s9904_s26 + $0x1d50] sm:$0xff] }
  0xfa   : > { %v2157_v22 = vld [vmem:[%s9904_s26 + $0x1d60] sm:$0xff]  ;;  %2154 = vst [vmem:[%s9909_s27 + $0xea0] sm:$0xff] %v2153_v20  ;;  %2156 = vst [vmem:[%s9909_s27 + $0xea8] sm:$0xff] %v2155_v21  ;;  %v2159_v23 = vld [vmem:[%s9904_s26 + $0x1d70] sm:$0xff] }
  0xfb   : > { %2158 = vst [vmem:[%s9909_s27 + $0xeb0] sm:$0xff] %v2157_v22  ;;  %v2161_v24 = vld [vmem:[%s9904_s26 + $0x1d80] sm:$0xff]  ;;  %v2163_v25 = vld [vmem:[%s9904_s26 + $0x1d90] sm:$0xff]  ;;  %2160 = vst [vmem:[%s9909_s27 + $0xeb8] sm:$0xff] %v2159_v23 }
  0xfc   : > { %2162 = vst [vmem:[%s9909_s27 + $0xec0] sm:$0xff] %v2161_v24  ;;  %2164 = vst [vmem:[%s9909_s27 + $0xec8] sm:$0xff] %v2163_v25  ;;  %v2165_v26 = vld [vmem:[%s9904_s26 + $0x1da0] sm:$0xff]  ;;  %v2167_v27 = vld [vmem:[%s9904_s26 + $0x1db0] sm:$0xff] }
  0xfd   : > { %v2169_v28 = vld [vmem:[%s9904_s26 + $0x1dc0] sm:$0xff]  ;;  %2166 = vst [vmem:[%s9909_s27 + $0xed0] sm:$0xff] %v2165_v26  ;;  %2168 = vst [vmem:[%s9909_s27 + $0xed8] sm:$0xff] %v2167_v27  ;;  %v2171_v29 = vld [vmem:[%s9904_s26 + $0x1dd0] sm:$0xff] }
  0xfe   : > { %2170 = vst [vmem:[%s9909_s27 + $0xee0] sm:$0xff] %v2169_v28  ;;  %v2173_v30 = vld [vmem:[%s9904_s26 + $0x1de0] sm:$0xff]  ;;  %v2175_v31 = vld [vmem:[%s9904_s26 + $0x1df0] sm:$0xff]  ;;  %2172 = vst [vmem:[%s9909_s27 + $0xee8] sm:$0xff] %v2171_v29 }
  0xff   : > { %2174 = vst [vmem:[%s9909_s27 + $0xef0] sm:$0xff] %v2173_v30  ;;  %2176 = vst [vmem:[%s9909_s27 + $0xef8] sm:$0xff] %v2175_v31  ;;  %v2177_v32 = vld [vmem:[%s9904_s26 + $0x1e00] sm:$0xff]  ;;  %v2179_v33 = vld [vmem:[%s9904_s26 + $0x1e10] sm:$0xff] }
 0x100   : > { %v2181_v34 = vld [vmem:[%s9904_s26 + $0x1e20] sm:$0xff]  ;;  %2178 = vst [vmem:[%s9909_s27 + $0xf00] sm:$0xff] %v2177_v32  ;;  %2180 = vst [vmem:[%s9909_s27 + $0xf08] sm:$0xff] %v2179_v33  ;;  %v2183_v35 = vld [vmem:[%s9904_s26 + $0x1e30] sm:$0xff] }
 0x101   : > { %2182 = vst [vmem:[%s9909_s27 + $0xf10] sm:$0xff] %v2181_v34  ;;  %v2185_v36 = vld [vmem:[%s9904_s26 + $0x1e40] sm:$0xff]  ;;  %v2187_v37 = vld [vmem:[%s9904_s26 + $0x1e50] sm:$0xff]  ;;  %2184 = vst [vmem:[%s9909_s27 + $0xf18] sm:$0xff] %v2183_v35 }
 0x102   : > { %2186 = vst [vmem:[%s9909_s27 + $0xf20] sm:$0xff] %v2185_v36  ;;  %2188 = vst [vmem:[%s9909_s27 + $0xf28] sm:$0xff] %v2187_v37  ;;  %v2189_v38 = vld [vmem:[%s9904_s26 + $0x1e60] sm:$0xff]  ;;  %v2191_v39 = vld [vmem:[%s9904_s26 + $0x1e70] sm:$0xff] }
 0x103   : > { %v2193_v40 = vld [vmem:[%s9904_s26 + $0x1e80] sm:$0xff]  ;;  %2190 = vst [vmem:[%s9909_s27 + $0xf30] sm:$0xff] %v2189_v38  ;;  %2192 = vst [vmem:[%s9909_s27 + $0xf38] sm:$0xff] %v2191_v39  ;;  %v2195_v41 = vld [vmem:[%s9904_s26 + $0x1e90] sm:$0xff] }
 0x104   : > { %2194 = vst [vmem:[%s9909_s27 + $0xf40] sm:$0xff] %v2193_v40  ;;  %v2197_v42 = vld [vmem:[%s9904_s26 + $0x1ea0] sm:$0xff]  ;;  %v2199_v43 = vld [vmem:[%s9904_s26 + $0x1eb0] sm:$0xff]  ;;  %2196 = vst [vmem:[%s9909_s27 + $0xf48] sm:$0xff] %v2195_v41 }
 0x105   : > { %2198 = vst [vmem:[%s9909_s27 + $0xf50] sm:$0xff] %v2197_v42  ;;  %2200 = vst [vmem:[%s9909_s27 + $0xf58] sm:$0xff] %v2199_v43  ;;  %v2201_v44 = vld [vmem:[%s9904_s26 + $0x1ec0] sm:$0xff]  ;;  %v2203_v45 = vld [vmem:[%s9904_s26 + $0x1ed0] sm:$0xff] }
 0x106   : > { %v2205_v46 = vld [vmem:[%s9904_s26 + $0x1ee0] sm:$0xff]  ;;  %2202 = vst [vmem:[%s9909_s27 + $0xf60] sm:$0xff] %v2201_v44  ;;  %2204 = vst [vmem:[%s9909_s27 + $0xf68] sm:$0xff] %v2203_v45  ;;  %v2207_v47 = vld [vmem:[%s9904_s26 + $0x1ef0] sm:$0xff] }
 0x107   : > { %2206 = vst [vmem:[%s9909_s27 + $0xf70] sm:$0xff] %v2205_v46  ;;  %v2209_v48 = vld [vmem:[%s9904_s26 + $0x1f00] sm:$0xff]  ;;  %v2211_v49 = vld [vmem:[%s9904_s26 + $0x1f10] sm:$0xff]  ;;  %2208 = vst [vmem:[%s9909_s27 + $0xf78] sm:$0xff] %v2207_v47 }
 0x108   : > { %2210 = vst [vmem:[%s9909_s27 + $0xf80] sm:$0xff] %v2209_v48  ;;  %2212 = vst [vmem:[%s9909_s27 + $0xf88] sm:$0xff] %v2211_v49  ;;  %v2213_v50 = vld [vmem:[%s9904_s26 + $0x1f20] sm:$0xff]  ;;  %v2215_v51 = vld [vmem:[%s9904_s26 + $0x1f30] sm:$0xff] }
 0x109   : > { %v2217_v52 = vld [vmem:[%s9904_s26 + $0x1f40] sm:$0xff]  ;;  %2214 = vst [vmem:[%s9909_s27 + $0xf90] sm:$0xff] %v2213_v50  ;;  %2216 = vst [vmem:[%s9909_s27 + $0xf98] sm:$0xff] %v2215_v51  ;;  %v2219_v53 = vld [vmem:[%s9904_s26 + $0x1f50] sm:$0xff] }
 0x10a   : > { %2218 = vst [vmem:[%s9909_s27 + $0xfa0] sm:$0xff] %v2217_v52  ;;  %v2221_v54 = vld [vmem:[%s9904_s26 + $0x1f60] sm:$0xff]  ;;  %v2223_v55 = vld [vmem:[%s9904_s26 + $0x1f70] sm:$0xff]  ;;  %2220 = vst [vmem:[%s9909_s27 + $0xfa8] sm:$0xff] %v2219_v53 }
 0x10b   : > { %2222 = vst [vmem:[%s9909_s27 + $0xfb0] sm:$0xff] %v2221_v54  ;;  %2224 = vst [vmem:[%s9909_s27 + $0xfb8] sm:$0xff] %v2223_v55  ;;  %v2225_v56 = vld [vmem:[%s9904_s26 + $0x1f80] sm:$0xff]  ;;  %v2227_v57 = vld [vmem:[%s9904_s26 + $0x1f90] sm:$0xff] }
 0x10c   : > { %v2229_v58 = vld [vmem:[%s9904_s26 + $0x1fa0] sm:$0xff]  ;;  %2226 = vst [vmem:[%s9909_s27 + $0xfc0] sm:$0xff] %v2225_v56  ;;  %2228 = vst [vmem:[%s9909_s27 + $0xfc8] sm:$0xff] %v2227_v57  ;;  %v2231_v59 = vld [vmem:[%s9904_s26 + $0x1fb0] sm:$0xff] }
 0x10d   : > { %2230 = vst [vmem:[%s9909_s27 + $0xfd0] sm:$0xff] %v2229_v58  ;;  %v2233_v60 = vld [vmem:[%s9904_s26 + $0x1fc0] sm:$0xff]  ;;  %v2235_v61 = vld [vmem:[%s9904_s26 + $0x1fd0] sm:$0xff]  ;;  %2232 = vst [vmem:[%s9909_s27 + $0xfd8] sm:$0xff] %v2231_v59 }
 0x10e   : > { %2234 = vst [vmem:[%s9909_s27 + $0xfe0] sm:$0xff] %v2233_v60  ;;  %2236 = vst [vmem:[%s9909_s27 + $0xfe8] sm:$0xff] %v2235_v61  ;;  %v2237_v62 = vld [vmem:[%s9904_s26 + $0x1fe0] sm:$0xff]  ;;  %v2239_v63 = vld [vmem:[%s9904_s26 + $0x1ff0] sm:$0xff] }
 0x10f   : > { %2238 = vst [vmem:[%s9909_s27 + $0xff0] sm:$0xff] %v2237_v62  ;;  %2240 = vst [vmem:[%s9909_s27 + $0xff8] sm:$0xff] %v2239_v63 }
 0x110 PF: > { %p8407_p6 = scmp.ge.s32.totalorder %s9839_s16, 1  ;;  %p4338_p7 = scmp.lt.s32.totalorder %s9839_s16, 3 }
 0x112   : > { %p4339_p8 = pnand %p8407_p6, %p4338_p7 }
 0x113   : > { %s4345_s28 = sand.u32 (!%p4339_p8), 1, %s9823_s12   ;;  %s8409_s26 = sshll.u32 (!%p4339_p8), %s9831_s14, 1 }
 0x114   : > { %4342 = sbr.rel (%p4339_p8) target bundleno = 996 (0x3e4), region = 80  ;;  %s8408_s6 = sshll.u32 (!%p4339_p8), %s4345_s28, 12 }
 0x115   : > { %s10949_s7 = scalar_lea.vmem (!%p4339_p8), [#allocation2], %s8408_s6  ;;  %p4388_p9 = scmp.lt.s32.totalorder (!%p4339_p8), %s8409_s26, 3 }
 0x119   : > { %v10938_v0 = vld [vmem:[%s11643_s0] sm:$0xff]  ;;  %v10943_v1 = vld [vmem:[%s11643_s0 + $0x8] sm:$0xff]  ;;  %v9001_v4 = vld [vmem:[%s10949_s7 + $0x74] ss:$8 sps:$4 sm:$0xff]   ;;  %s11654_s26 = smov (!%p4388_p9, %s8409_s26), 3 }
 0x11a   : > { %v8413_v2 = vcombine.high %v10938_v0, %v10938_v0  ;;  %v8415_v3 = vcombine.high %v10943_v1, %v10943_v1  ;;  %v9003_v5 = vld [vmem:[%s10949_s7 + $0x174] ss:$8 sps:$4 sm:$0xff]   ;;  %7614 = vmatprep.subr.bf16.mxu0 %v9001_v4  ;;  %v9005_v6 = vld [vmem:[%s10949_s7 + $0x70] ss:$8 sps:$4 sm:$0xff]   ;;  %v9007_v8 = vld [vmem:[%s10949_s7 + $0x64] ss:$8 sps:$4 sm:$0xff]   ;;  %s4390_s28 = scalar_lea.vmem %s11645_s2, %s11654_s26 }
 0x11b   : > { %v9006_v7 = vld [vmem:[%s10949_s7 + $0x170] ss:$8 sps:$4 sm:$0xff]   ;;  %7655 = vmatprep.subr.bf16.mxu1 %v9003_v5  ;;  %7615 = vmatpush1.bf16.msra.mxu0 %v9005_v6  ;;  %v9009_v9 = vld [vmem:[%s10949_s7 + $0x164] ss:$8 sps:$4 sm:$0xff]   ;;  %v9011_v10 = vld [vmem:[%s10949_s7 + $0x60] ss:$8 sps:$4 sm:$0xff]  }
 0x11c   : > { %7646 = vmatprep.mubr.bf16.mxu0 %v8413_v2  ;;  %7687 = vmatprep.mubr.bf16.mxu1 %v8415_v3  ;;  %v9012_v11 = vld [vmem:[%s10949_s7 + $0x160] ss:$8 sps:$4 sm:$0xff]   ;;  %v9013_v12 = vld [vmem:[%s10949_s7 + $0x54] ss:$8 sps:$4 sm:$0xff]   ;;  %v9017_v14 = vld [vmem:[%s10949_s7 + $0x50] ss:$8 sps:$4 sm:$0xff]  }
 0x11d   : > { %7656 = vmatpush1.bf16.msra.mxu1 %v9006_v7  ;;  %7616 = vmatprep.subr.bf16.mxu0 %v9007_v8  ;;  %v9015_v13 = vld [vmem:[%s10949_s7 + $0x154] ss:$8 sps:$4 sm:$0xff]   ;;  %v9018_v15 = vld [vmem:[%s10949_s7 + $0x150] ss:$8 sps:$4 sm:$0xff]   ;;  %v9019_v16 = vld [vmem:[%s10949_s7 + $0x44] ss:$8 sps:$4 sm:$0xff]  }
 0x11e   : > { %7657 = vmatprep.subr.bf16.mxu1 %v9009_v9  ;;  %v9021_v17 = vld [vmem:[%s10949_s7 + $0x144] ss:$8 sps:$4 sm:$0xff]   ;;  %v9023_v18 = vld [vmem:[%s10949_s7 + $0x40] ss:$8 sps:$4 sm:$0xff]   ;;  %v9025_v20 = vld [vmem:[%s10949_s7 + $0x34] ss:$8 sps:$4 sm:$0xff]  }
 0x11f   : > { %7617 = vmatpush1.bf16.msra.mxu0 %v9011_v10  ;;  %v9024_v19 = vld [vmem:[%s10949_s7 + $0x140] ss:$8 sps:$4 sm:$0xff]   ;;  %v9027_v21 = vld [vmem:[%s10949_s7 + $0x134] ss:$8 sps:$4 sm:$0xff]   ;;  %v9029_v22 = vld [vmem:[%s10949_s7 + $0x30] ss:$8 sps:$4 sm:$0xff]   ;;  %v8412_v10 = vcombine.low %v10938_v0, %v10938_v0 }
 0x120   : > { %7618 = vmatprep.subr.bf16.mxu0 %v9013_v12  ;;  %v9030_v23 = vld [vmem:[%s10949_s7 + $0x130] ss:$8 sps:$4 sm:$0xff]   ;;  %v9031_v24 = vld [vmem:[%s10949_s7 + $0x24] ss:$8 sps:$4 sm:$0xff]   ;;  %v9035_v26 = vld [vmem:[%s10949_s7 + $0x20] ss:$8 sps:$4 sm:$0xff]  }
 0x121   : > { %7658 = vmatpush1.bf16.msra.mxu1 %v9012_v11  ;;  %v9033_v25 = vld [vmem:[%s10949_s7 + $0x124] ss:$8 sps:$4 sm:$0xff]   ;;  %v9036_v27 = vld [vmem:[%s10949_s7 + $0x120] ss:$8 sps:$4 sm:$0xff]   ;;  %v9037_v28 = vld [vmem:[%s10949_s7 + $0x14] ss:$8 sps:$4 sm:$0xff]   ;;  %v8414_v11 = vcombine.low %v10943_v1, %v10943_v1 }
 0x122   : > { %7659 = vmatprep.subr.bf16.mxu1 %v9015_v13  ;;  %v9039_v29 = vld [vmem:[%s10949_s7 + $0x114] ss:$8 sps:$4 sm:$0xff]   ;;  %v9041_v30 = vld [vmem:[%s10949_s7 + $0x10] ss:$8 sps:$4 sm:$0xff]   ;;  %v9043_v32 = vld [vmem:[%s10949_s7 + $0x4] ss:$8 sps:$4 sm:$0xff]  }
 0x123   : > { %7619 = vmatpush1.bf16.msra.mxu0 %v9017_v14  ;;  %v9042_v31 = vld [vmem:[%s10949_s7 + $0x110] ss:$8 sps:$4 sm:$0xff]   ;;  %v9045_v33 = vld [vmem:[%s10949_s7 + $0x104] ss:$8 sps:$4 sm:$0xff]   ;;  %v9047_v34 = vld [vmem:[%s10949_s7] ss:$8 sps:$4 sm:$0xff]  }
 0x124   : > { %7620 = vmatprep.subr.bf16.mxu0 %v9019_v16  ;;  %v9048_v35 = vld [vmem:[%s10949_s7 + $0x100] ss:$8 sps:$4 sm:$0xff]   ;;  %v9049_v36 = vld [vmem:[%s10949_s7 + $0xf4] ss:$8 sps:$4 sm:$0xff]   ;;  %v9053_v38 = vld [vmem:[%s10949_s7 + $0xf0] ss:$8 sps:$4 sm:$0xff]  }
 0x125   : > { %7660 = vmatpush1.bf16.msra.mxu1 %v9018_v15  ;;  %v9051_v37 = vld [vmem:[%s10949_s7 + $0x1f4] ss:$8 sps:$4 sm:$0xff]   ;;  %v9054_v39 = vld [vmem:[%s10949_s7 + $0x1f0] ss:$8 sps:$4 sm:$0xff]   ;;  %v9055_v40 = vld [vmem:[%s10949_s7 + $0xe4] ss:$8 sps:$4 sm:$0xff]  }
 0x126   : > { %7661 = vmatprep.subr.bf16.mxu1 %v9021_v17  ;;  %v9057_v41 = vld [vmem:[%s10949_s7 + $0x1e4] ss:$8 sps:$4 sm:$0xff]   ;;  %v9059_v42 = vld [vmem:[%s10949_s7 + $0xe0] ss:$8 sps:$4 sm:$0xff]   ;;  %v9061_v44 = vld [vmem:[%s10949_s7 + $0xd4] ss:$8 sps:$4 sm:$0xff]  }
 0x127   : > { %7621 = vmatpush1.bf16.msra.mxu0 %v9023_v18  ;;  %v9060_v43 = vld [vmem:[%s10949_s7 + $0x1e0] ss:$8 sps:$4 sm:$0xff]   ;;  %v9063_v45 = vld [vmem:[%s10949_s7 + $0x1d4] ss:$8 sps:$4 sm:$0xff]   ;;  %v9065_v46 = vld [vmem:[%s10949_s7 + $0xd0] ss:$8 sps:$4 sm:$0xff]  }
 0x128   : > { %7622 = vmatprep.subr.bf16.mxu0 %v9025_v20  ;;  %v9066_v47 = vld [vmem:[%s10949_s7 + $0x1d0] ss:$8 sps:$4 sm:$0xff]   ;;  %v9067_v48 = vld [vmem:[%s10949_s7 + $0xc4] ss:$8 sps:$4 sm:$0xff]   ;;  %v9071_v50 = vld [vmem:[%s10949_s7 + $0xc0] ss:$8 sps:$4 sm:$0xff]  }
 0x129   : > { %7662 = vmatpush1.bf16.msra.mxu1 %v9024_v19  ;;  %v9069_v49 = vld [vmem:[%s10949_s7 + $0x1c4] ss:$8 sps:$4 sm:$0xff]   ;;  %v9072_v51 = vld [vmem:[%s10949_s7 + $0x1c0] ss:$8 sps:$4 sm:$0xff]   ;;  %v9073_v52 = vld [vmem:[%s10949_s7 + $0xb4] ss:$8 sps:$4 sm:$0xff]  }
 0x12a   : > { %7663 = vmatprep.subr.bf16.mxu1 %v9027_v21  ;;  %v9075_v53 = vld [vmem:[%s10949_s7 + $0x1b4] ss:$8 sps:$4 sm:$0xff]   ;;  %v9077_v54 = vld [vmem:[%s10949_s7 + $0xb0] ss:$8 sps:$4 sm:$0xff]   ;;  %v9079_v56 = vld [vmem:[%s10949_s7 + $0xa4] ss:$8 sps:$4 sm:$0xff]  }
 0x12b   : > { %7623 = vmatpush1.bf16.msra.mxu0 %v9029_v22  ;;  %v9078_v55 = vld [vmem:[%s10949_s7 + $0x1b0] ss:$8 sps:$4 sm:$0xff]   ;;  %v9081_v57 = vld [vmem:[%s10949_s7 + $0x1a4] ss:$8 sps:$4 sm:$0xff]   ;;  %v9083_v58 = vld [vmem:[%s10949_s7 + $0xa0] ss:$8 sps:$4 sm:$0xff]  }
 0x12c   : > { %7624 = vmatprep.subr.bf16.mxu0 %v9031_v24  ;;  %v9084_v59 = vld [vmem:[%s10949_s7 + $0x1a0] ss:$8 sps:$4 sm:$0xff]   ;;  %v9085_v60 = vld [vmem:[%s10949_s7 + $0x94] ss:$8 sps:$4 sm:$0xff]   ;;  %v9089_v62 = vld [vmem:[%s10949_s7 + $0x90] ss:$8 sps:$4 sm:$0xff]  }
 0x12d   : > { %7664 = vmatpush1.bf16.msra.mxu1 %v9030_v23  ;;  %v9087_v61 = vld [vmem:[%s10949_s7 + $0x194] ss:$8 sps:$4 sm:$0xff]   ;;  %v9090_v63 = vld [vmem:[%s10949_s7 + $0x190] ss:$8 sps:$4 sm:$0xff]   ;;  %v9091_v2 = vld [vmem:[%s10949_s7 + $0x84] ss:$8 sps:$4 sm:$0xff]  }
 0x12e   : > { %7665 = vmatprep.subr.bf16.mxu1 %v9033_v25  ;;  %v9093_v3 = vld [vmem:[%s10949_s7 + $0x184] ss:$8 sps:$4 sm:$0xff]   ;;  %v9095_v4 = vld [vmem:[%s10949_s7 + $0x80] ss:$8 sps:$4 sm:$0xff]   ;;  %v9103_v6 = vld [vmem:[%s10949_s7 + $0x274] ss:$8 sps:$4 sm:$0xff]  }
 0x12f   : > { %7625 = vmatpush1.bf16.msra.mxu0 %v9035_v26  ;;  %v9096_v5 = vld [vmem:[%s10949_s7 + $0x180] ss:$8 sps:$4 sm:$0xff]   ;;  %v9106_v7 = vld [vmem:[%s10949_s7 + $0x374] ss:$8 sps:$4 sm:$0xff]   ;;  %v9101_v12 = vld [vmem:[%s10949_s7 + $0x270] ss:$8 sps:$4 sm:$0xff]  }
 0x130   : > { %7626 = vmatprep.subr.bf16.mxu0 %v9037_v28  ;;  %v11020_v8 = vld [vmem:[%s11643_s0 + $0x10] sm:$0xff]  ;;  %v11025_v9 = vld [vmem:[%s11643_s0 + $0x18] sm:$0xff]  ;;  %v9109_v14 = vld [vmem:[%s10949_s7 + $0x264] ss:$8 sps:$4 sm:$0xff]  }
 0x131   : > { %7666 = vmatpush1.bf16.msra.mxu1 %v9036_v27  ;;  %v9104_v13 = vld [vmem:[%s10949_s7 + $0x370] ss:$8 sps:$4 sm:$0xff]   ;;  %v9112_v15 = vld [vmem:[%s10949_s7 + $0x364] ss:$8 sps:$4 sm:$0xff]   ;;  %v8417_v16 = vcombine.high %v11020_v8, %v11020_v8  ;;  %v8419_v0 = vcombine.high %v11025_v9, %v11025_v9  ;;  %v9107_v1 = vld [vmem:[%s10949_s7 + $0x260] ss:$8 sps:$4 sm:$0xff]  }
 0x132   : > { %7667 = vmatprep.subr.bf16.mxu1 %v9039_v29  ;;  %v9110_v17 = vld [vmem:[%s10949_s7 + $0x360] ss:$8 sps:$4 sm:$0xff]   ;;  %v9115_v18 = vld [vmem:[%s10949_s7 + $0x254] ss:$8 sps:$4 sm:$0xff]   ;;  %v9113_v20 = vld [vmem:[%s10949_s7 + $0x250] ss:$8 sps:$4 sm:$0xff]  }
 0x133   : > { %7627 = vmatpush1.bf16.msra.mxu0 %v9041_v30  ;;  %v9118_v19 = vld [vmem:[%s10949_s7 + $0x354] ss:$8 sps:$4 sm:$0xff]   ;;  %v9116_v21 = vld [vmem:[%s10949_s7 + $0x350] ss:$8 sps:$4 sm:$0xff]   ;;  %v9121_v22 = vld [vmem:[%s10949_s7 + $0x244] ss:$8 sps:$4 sm:$0xff]  }
 0x134   : > { %7628 = vmatprep.subr.bf16.mxu0 %v9043_v32  ;;  %v9124_v23 = vld [vmem:[%s10949_s7 + $0x344] ss:$8 sps:$4 sm:$0xff]   ;;  %v9119_v24 = vld [vmem:[%s10949_s7 + $0x240] ss:$8 sps:$4 sm:$0xff]   ;;  %v9127_v26 = vld [vmem:[%s10949_s7 + $0x234] ss:$8 sps:$4 sm:$0xff]  }
 0x135   : > { %7668 = vmatpush1.bf16.msra.mxu1 %v9042_v31  ;;  %v9122_v25 = vld [vmem:[%s10949_s7 + $0x340] ss:$8 sps:$4 sm:$0xff]   ;;  %v9130_v27 = vld [vmem:[%s10949_s7 + $0x334] ss:$8 sps:$4 sm:$0xff]   ;;  %v9125_v28 = vld [vmem:[%s10949_s7 + $0x230] ss:$8 sps:$4 sm:$0xff]  }
 0x136   : > { %7669 = vmatprep.subr.bf16.mxu1 %v9045_v33  ;;  %v9128_v29 = vld [vmem:[%s10949_s7 + $0x330] ss:$8 sps:$4 sm:$0xff]   ;;  %v9133_v30 = vld [vmem:[%s10949_s7 + $0x224] ss:$8 sps:$4 sm:$0xff]   ;;  %v9131_v32 = vld [vmem:[%s10949_s7 + $0x220] ss:$8 sps:$4 sm:$0xff]  }
 0x137   : > { %7629 = vmatpush1.bf16.msra.mxu0 %v9047_v34  ;;  %v9136_v31 = vld [vmem:[%s10949_s7 + $0x324] ss:$8 sps:$4 sm:$0xff]   ;;  %v9134_v33 = vld [vmem:[%s10949_s7 + $0x320] ss:$8 sps:$4 sm:$0xff]   ;;  %v9139_v34 = vld [vmem:[%s10949_s7 + $0x214] ss:$8 sps:$4 sm:$0xff]  }
 0x138   : > { %7630 = vmatprep.subr.bf16.mxu0 %v9049_v36  ;;  %v9137_v36 = vld [vmem:[%s10949_s7 + $0x210] ss:$8 sps:$4 sm:$0xff]  }
 0x139   : > { %7670 = vmatpush1.bf16.msra.mxu1 %v9048_v35  ;;  %v9142_v35 = vld [vmem:[%s10949_s7 + $0x314] ss:$8 sps:$4 sm:$0xff]  }
 0x13a   : > { %7671 = vmatprep.subr.bf16.mxu1 %v9051_v37  ;;  %v9140_v37 = vld [vmem:[%s10949_s7 + $0x310] ss:$8 sps:$4 sm:$0xff]  }
 0x13b   : > { %7631 = vmatpush2.bf16.msra.mxu0 %v9053_v38  ;;  %v9145_v38 = vld [vmem:[%s10949_s7 + $0x204] ss:$8 sps:$4 sm:$0xff]  }
 0x13c   : > { %7632 = vmatprep.subr.bf16.mxu0 %v9055_v40  ;;  %v9143_v40 = vld [vmem:[%s10949_s7 + $0x200] ss:$8 sps:$4 sm:$0xff]  }
 0x13d   : > { %7672 = vmatpush2.bf16.msra.mxu1 %v9054_v39  ;;  %v9148_v39 = vld [vmem:[%s10949_s7 + $0x304] ss:$8 sps:$4 sm:$0xff]  }
 0x13e   : > { %7673 = vmatprep.subr.bf16.mxu1 %v9057_v41  ;;  %v9146_v41 = vld [vmem:[%s10949_s7 + $0x300] ss:$8 sps:$4 sm:$0xff]  }
 0x13f   : > { %7633 = vmatpush2.bf16.msra.mxu0 %v9059_v42  ;;  %v9151_v42 = vld [vmem:[%s10949_s7 + $0x2f4] ss:$8 sps:$4 sm:$0xff]  }
 0x140   : > { %7634 = vmatprep.subr.bf16.mxu0 %v9061_v44  ;;  %v9149_v44 = vld [vmem:[%s10949_s7 + $0x2f0] ss:$8 sps:$4 sm:$0xff]  }
 0x141   : > { %7674 = vmatpush2.bf16.msra.mxu1 %v9060_v43  ;;  %v9154_v43 = vld [vmem:[%s10949_s7 + $0x3f4] ss:$8 sps:$4 sm:$0xff]  }
 0x142   : > { %7675 = vmatprep.subr.bf16.mxu1 %v9063_v45  ;;  %v9152_v45 = vld [vmem:[%s10949_s7 + $0x3f0] ss:$8 sps:$4 sm:$0xff]  }
 0x143   : > { %7635 = vmatpush2.bf16.msra.mxu0 %v9065_v46  ;;  %v9157_v46 = vld [vmem:[%s10949_s7 + $0x2e4] ss:$8 sps:$4 sm:$0xff]  }
 0x144   : > { %7636 = vmatprep.subr.bf16.mxu0 %v9067_v48  ;;  %v9155_v48 = vld [vmem:[%s10949_s7 + $0x2e0] ss:$8 sps:$4 sm:$0xff]  }
 0x145   : > { %7676 = vmatpush2.bf16.msra.mxu1 %v9066_v47  ;;  %v9160_v47 = vld [vmem:[%s10949_s7 + $0x3e4] ss:$8 sps:$4 sm:$0xff]  }
 0x146   : > { %7677 = vmatprep.subr.bf16.mxu1 %v9069_v49  ;;  %v9158_v49 = vld [vmem:[%s10949_s7 + $0x3e0] ss:$8 sps:$4 sm:$0xff]  }
 0x147   : > { %7637 = vmatpush2.bf16.msra.mxu0 %v9071_v50  ;;  %v9163_v50 = vld [vmem:[%s10949_s7 + $0x2d4] ss:$8 sps:$4 sm:$0xff]  }
 0x148   : > { %7638 = vmatprep.subr.bf16.mxu0 %v9073_v52  ;;  %v9161_v52 = vld [vmem:[%s10949_s7 + $0x2d0] ss:$8 sps:$4 sm:$0xff]  }
 0x149   : > { %7678 = vmatpush2.bf16.msra.mxu1 %v9072_v51  ;;  %v9166_v51 = vld [vmem:[%s10949_s7 + $0x3d4] ss:$8 sps:$4 sm:$0xff]  }
 0x14a   : > { %7679 = vmatprep.subr.bf16.mxu1 %v9075_v53  ;;  %v9164_v53 = vld [vmem:[%s10949_s7 + $0x3d0] ss:$8 sps:$4 sm:$0xff]  }
 0x14b   : > { %7639 = vmatpush2.bf16.msra.mxu0 %v9077_v54  ;;  %v9169_v54 = vld [vmem:[%s10949_s7 + $0x2c4] ss:$8 sps:$4 sm:$0xff]  }
 0x14c   : > { %7640 = vmatprep.subr.bf16.mxu0 %v9079_v56  ;;  %v9167_v56 = vld [vmem:[%s10949_s7 + $0x2c0] ss:$8 sps:$4 sm:$0xff]  }
 0x14d   : > { %7680 = vmatpush2.bf16.msra.mxu1 %v9078_v55  ;;  %v9172_v55 = vld [vmem:[%s10949_s7 + $0x3c4] ss:$8 sps:$4 sm:$0xff]  }
 0x14e   : > { %7681 = vmatprep.subr.bf16.mxu1 %v9081_v57  ;;  %v9170_v57 = vld [vmem:[%s10949_s7 + $0x3c0] ss:$8 sps:$4 sm:$0xff]  }
 0x14f   : > { %7641 = vmatpush2.bf16.msra.mxu0 %v9083_v58  ;;  %v9175_v58 = vld [vmem:[%s10949_s7 + $0x2b4] ss:$8 sps:$4 sm:$0xff]  }
 0x150   : > { %7642 = vmatprep.subr.bf16.mxu0 %v9085_v60  ;;  %v9173_v60 = vld [vmem:[%s10949_s7 + $0x2b0] ss:$8 sps:$4 sm:$0xff]  }
 0x151   : > { %7682 = vmatpush2.bf16.msra.mxu1 %v9084_v59  ;;  %v9178_v59 = vld [vmem:[%s10949_s7 + $0x3b4] ss:$8 sps:$4 sm:$0xff]  }
 0x152   : > { %7683 = vmatprep.subr.bf16.mxu1 %v9087_v61  ;;  %v9176_v61 = vld [vmem:[%s10949_s7 + $0x3b0] ss:$8 sps:$4 sm:$0xff]  }
 0x153   : > { %7643 = vmatpush2.bf16.msra.mxu0 %v9089_v62  ;;  %v9181_v62 = vld [vmem:[%s10949_s7 + $0x2a4] ss:$8 sps:$4 sm:$0xff]  }
 0x154   : > { %7644 = vmatprep.subr.bf16.mxu0 %v9091_v2  ;;  %v9179_v2 = vld [vmem:[%s10949_s7 + $0x2a0] ss:$8 sps:$4 sm:$0xff]  }
 0x155   : > { %7684 = vmatpush2.bf16.msra.mxu1 %v9090_v63  ;;  %v9184_v63 = vld [vmem:[%s10949_s7 + $0x3a4] ss:$8 sps:$4 sm:$0xff]  }
 0x156   : > { %7685 = vmatprep.subr.bf16.mxu1 %v9093_v3  ;;  %v9182_v3 = vld [vmem:[%s10949_s7 + $0x3a0] ss:$8 sps:$4 sm:$0xff]  }
 0x157   : > { %7645 = vmatpush2.bf16.msra.mxu0 %v9095_v4  ;;  %v9187_v4 = vld [vmem:[%s10949_s7 + $0x294] ss:$8 sps:$4 sm:$0xff]  }
 0x158   : > { %7696 = vmatprep.subr.bf16.mxu0 %v9103_v6  ;;  %v9185_v6 = vld [vmem:[%s10949_s7 + $0x290] ss:$8 sps:$4 sm:$0xff]  }
 0x159   : > { %7686 = vmatpush2.bf16.msra.mxu1 %v9096_v5  ;;  %v9190_v5 = vld [vmem:[%s10949_s7 + $0x394] ss:$8 sps:$4 sm:$0xff]  }
 0x15a   : > { %7737 = vmatprep.subr.bf16.mxu1 %v9106_v7  ;;  %7647 = vmatmul.mubr.bf16.vlgmr.msra.gmra.mxu0 %v8412_v10  ;;  %v9188_v7 = vld [vmem:[%s10949_s7 + $0x390] ss:$8 sps:$4 sm:$0xff]   ;;  %v9193_v10 = vld [vmem:[%s10949_s7 + $0x284] ss:$8 sps:$4 sm:$0xff]  }
 0x15b   : > { %7697 = vmatpush1.bf16.msra.mxu0 %v9101_v12  ;;  %7728 = vmatprep.mubr.bf16.mxu0 %v8417_v16  ;;  %v9191_v12 = vld [vmem:[%s10949_s7 + $0x280] ss:$8 sps:$4 sm:$0xff]   ;;  %v8416_v16 = vcombine.low %v11020_v8, %v11020_v8  ;;  %v9209_v8 = vld [vmem:[%s10949_s7 + $0x464] ss:$8 sps:$4 sm:$0xff]  }
 0x15c   : > { %7688 = vmatmul.mubr.bf16.vlgmr.msra.gmra.mxu1 %v8414_v11  ;;  %7698 = vmatprep.subr.bf16.mxu0 %v9109_v14  ;;  %v9196_v11 = vld [vmem:[%s10949_s7 + $0x384] ss:$8 sps:$4 sm:$0xff]   ;;  %v9203_v14 = vld [vmem:[%s10949_s7 + $0x474] ss:$8 sps:$4 sm:$0xff]  }
 0x15d   : > { %7738 = vmatpush1.bf16.msra.mxu1 %v9104_v13  ;;  %7769 = vmatprep.mubr.bf16.mxu1 %v8419_v0  ;;  %v9194_v13 = vld [vmem:[%s10949_s7 + $0x380] ss:$8 sps:$4 sm:$0xff]   ;;  %v8418_v0 = vcombine.low %v11025_v9, %v11025_v9  ;;  %v9212_v9 = vld [vmem:[%s10949_s7 + $0x564] ss:$8 sps:$4 sm:$0xff]  }
 0x15e   : > { %7739 = vmatprep.subr.bf16.mxu1 %v9112_v15  ;;  %v9206_v15 = vld [vmem:[%s10949_s7 + $0x574] ss:$8 sps:$4 sm:$0xff]  }
 0x15f   : > { %7699 = vmatpush1.bf16.msra.mxu0 %v9107_v1  ;;  %v9201_v1 = vld [vmem:[%s10949_s7 + $0x470] ss:$8 sps:$4 sm:$0xff]  }
 0x160   : > { %7700 = vmatprep.subr.bf16.mxu0 %v9115_v18  ;;  %v11108_v18 = vld [vmem:[%s11643_s0 + $0x20] sm:$0xff] }
 0x161   : > { %7740 = vmatpush1.bf16.msra.mxu1 %v9110_v17  ;;  %v9204_v17 = vld [vmem:[%s10949_s7 + $0x570] ss:$8 sps:$4 sm:$0xff]  }
 0x162   : > { %7741 = vmatprep.subr.bf16.mxu1 %v9118_v19  ;;  %v11113_v19 = vld [vmem:[%s11643_s0 + $0x28] sm:$0xff] }
 0x163   : > { %7701 = vmatpush1.bf16.msra.mxu0 %v9113_v20  ;;  %v8421_v20 = vcombine.high %v11108_v18, %v11108_v18 }
 0x164   : > { %7702 = vmatprep.subr.bf16.mxu0 %v9121_v22  ;;  %v9207_v22 = vld [vmem:[%s10949_s7 + $0x460] ss:$8 sps:$4 sm:$0xff]  }
 0x165   : > { %7742 = vmatpush1.bf16.msra.mxu1 %v9116_v21  ;;  %v8423_v21 = vcombine.high %v11113_v19, %v11113_v19 }
 0x166   : > { %7743 = vmatprep.subr.bf16.mxu1 %v9124_v23  ;;  %v9210_v23 = vld [vmem:[%s10949_s7 + $0x560] ss:$8 sps:$4 sm:$0xff]  }
 0x167   : > { %7703 = vmatpush1.bf16.msra.mxu0 %v9119_v24  ;;  %v9215_v24 = vld [vmem:[%s10949_s7 + $0x454] ss:$8 sps:$4 sm:$0xff]  }
 0x168   : > { %7704 = vmatprep.subr.bf16.mxu0 %v9127_v26  ;;  %v9213_v26 = vld [vmem:[%s10949_s7 + $0x450] ss:$8 sps:$4 sm:$0xff]  }
 0x169   : > { %7744 = vmatpush1.bf16.msra.mxu1 %v9122_v25  ;;  %v9218_v25 = vld [vmem:[%s10949_s7 + $0x554] ss:$8 sps:$4 sm:$0xff]  }
 0x16a   : > { %7745 = vmatprep.subr.bf16.mxu1 %v9130_v27  ;;  %v9216_v27 = vld [vmem:[%s10949_s7 + $0x550] ss:$8 sps:$4 sm:$0xff]  }
 0x16b   : > { %7705 = vmatpush1.bf16.msra.mxu0 %v9125_v28  ;;  %v9221_v28 = vld [vmem:[%s10949_s7 + $0x444] ss:$8 sps:$4 sm:$0xff]  }
 0x16c   : > { %7706 = vmatprep.subr.bf16.mxu0 %v9133_v30  ;;  %v9219_v30 = vld [vmem:[%s10949_s7 + $0x440] ss:$8 sps:$4 sm:$0xff]  }
 0x16d   : > { %7746 = vmatpush1.bf16.msra.mxu1 %v9128_v29  ;;  %v9224_v29 = vld [vmem:[%s10949_s7 + $0x544] ss:$8 sps:$4 sm:$0xff]  }
 0x16e   : > { %7747 = vmatprep.subr.bf16.mxu1 %v9136_v31  ;;  %v9222_v31 = vld [vmem:[%s10949_s7 + $0x540] ss:$8 sps:$4 sm:$0xff]  }
 0x16f   : > { %7707 = vmatpush1.bf16.msra.mxu0 %v9131_v32  ;;  %v9227_v32 = vld [vmem:[%s10949_s7 + $0x434] ss:$8 sps:$4 sm:$0xff]  }
 0x170   : > { %7708 = vmatprep.subr.bf16.mxu0 %v9139_v34  ;;  %v9225_v34 = vld [vmem:[%s10949_s7 + $0x430] ss:$8 sps:$4 sm:$0xff]  }
 0x171   : > { %7748 = vmatpush1.bf16.msra.mxu1 %v9134_v33  ;;  %v9230_v33 = vld [vmem:[%s10949_s7 + $0x534] ss:$8 sps:$4 sm:$0xff]  }
 0x172   : > { %7749 = vmatprep.subr.bf16.mxu1 %v9142_v35  ;;  %v9228_v35 = vld [vmem:[%s10949_s7 + $0x530] ss:$8 sps:$4 sm:$0xff]  }
 0x173   : > { %7709 = vmatpush1.bf16.msra.mxu0 %v9137_v36  ;;  %v9233_v36 = vld [vmem:[%s10949_s7 + $0x424] ss:$8 sps:$4 sm:$0xff]  }
 0x174   : > { %7710 = vmatprep.subr.bf16.mxu0 %v9145_v38  ;;  %v9231_v38 = vld [vmem:[%s10949_s7 + $0x420] ss:$8 sps:$4 sm:$0xff]  }
 0x175   : > { %7750 = vmatpush1.bf16.msra.mxu1 %v9140_v37  ;;  %v9236_v37 = vld [vmem:[%s10949_s7 + $0x524] ss:$8 sps:$4 sm:$0xff]  }
 0x176   : > { %7751 = vmatprep.subr.bf16.mxu1 %v9148_v39  ;;  %v9234_v39 = vld [vmem:[%s10949_s7 + $0x520] ss:$8 sps:$4 sm:$0xff]  }
 0x177   : > { %7711 = vmatpush1.bf16.msra.mxu0 %v9143_v40  ;;  %v9239_v40 = vld [vmem:[%s10949_s7 + $0x414] ss:$8 sps:$4 sm:$0xff]  }
 0x178   : > { %7712 = vmatprep.subr.bf16.mxu0 %v9151_v42  ;;  %v9237_v42 = vld [vmem:[%s10949_s7 + $0x410] ss:$8 sps:$4 sm:$0xff]  }
 0x179   : > { %7752 = vmatpush1.bf16.msra.mxu1 %v9146_v41  ;;  %v9242_v41 = vld [vmem:[%s10949_s7 + $0x514] ss:$8 sps:$4 sm:$0xff]  }
 0x17a   : > { %7753 = vmatprep.subr.bf16.mxu1 %v9154_v43  ;;  %v9240_v43 = vld [vmem:[%s10949_s7 + $0x510] ss:$8 sps:$4 sm:$0xff]  }
 0x17b   : > { %7713 = vmatpush2.bf16.msra.mxu0 %v9149_v44  ;;  %v9245_v44 = vld [vmem:[%s10949_s7 + $0x404] ss:$8 sps:$4 sm:$0xff]  }
 0x17c   : > { %7714 = vmatprep.subr.bf16.mxu0 %v9157_v46  ;;  %v9243_v46 = vld [vmem:[%s10949_s7 + $0x400] ss:$8 sps:$4 sm:$0xff]  }
 0x17d   : > { %7754 = vmatpush2.bf16.msra.mxu1 %v9152_v45  ;;  %v9248_v45 = vld [vmem:[%s10949_s7 + $0x504] ss:$8 sps:$4 sm:$0xff]  }
 0x17e   : > { %7755 = vmatprep.subr.bf16.mxu1 %v9160_v47  ;;  %v9246_v47 = vld [vmem:[%s10949_s7 + $0x500] ss:$8 sps:$4 sm:$0xff]  }
 0x17f   : > { %7715 = vmatpush2.bf16.msra.mxu0 %v9155_v48  ;;  %v9251_v48 = vld [vmem:[%s10949_s7 + $0x4f4] ss:$8 sps:$4 sm:$0xff]  }
 0x180   : > { %7716 = vmatprep.subr.bf16.mxu0 %v9163_v50  ;;  %v9249_v50 = vld [vmem:[%s10949_s7 + $0x4f0] ss:$8 sps:$4 sm:$0xff]  }
 0x181   : > { %7756 = vmatpush2.bf16.msra.mxu1 %v9158_v49  ;;  %v9254_v49 = vld [vmem:[%s10949_s7 + $0x5f4] ss:$8 sps:$4 sm:$0xff]  }
 0x182   : > { %7757 = vmatprep.subr.bf16.mxu1 %v9166_v51  ;;  %v9252_v51 = vld [vmem:[%s10949_s7 + $0x5f0] ss:$8 sps:$4 sm:$0xff]  }
 0x183   : > { %7717 = vmatpush2.bf16.msra.mxu0 %v9161_v52  ;;  %v9257_v52 = vld [vmem:[%s10949_s7 + $0x4e4] ss:$8 sps:$4 sm:$0xff]  }
 0x184   : > { %7718 = vmatprep.subr.bf16.mxu0 %v9169_v54  ;;  %v9255_v54 = vld [vmem:[%s10949_s7 + $0x4e0] ss:$8 sps:$4 sm:$0xff]  }
 0x185   : > { %7758 = vmatpush2.bf16.msra.mxu1 %v9164_v53  ;;  %v9260_v53 = vld [vmem:[%s10949_s7 + $0x5e4] ss:$8 sps:$4 sm:$0xff]  }
 0x186   : > { %7759 = vmatprep.subr.bf16.mxu1 %v9172_v55  ;;  %v9258_v55 = vld [vmem:[%s10949_s7 + $0x5e0] ss:$8 sps:$4 sm:$0xff]  }
 0x187   : > { %7719 = vmatpush2.bf16.msra.mxu0 %v9167_v56  ;;  %v9263_v56 = vld [vmem:[%s10949_s7 + $0x4d4] ss:$8 sps:$4 sm:$0xff]  }
 0x188   : > { %7720 = vmatprep.subr.bf16.mxu0 %v9175_v58  ;;  %v9261_v58 = vld [vmem:[%s10949_s7 + $0x4d0] ss:$8 sps:$4 sm:$0xff]  }
 0x189   : > { %7760 = vmatpush2.bf16.msra.mxu1 %v9170_v57  ;;  %v9266_v57 = vld [vmem:[%s10949_s7 + $0x5d4] ss:$8 sps:$4 sm:$0xff]  }
 0x18a   : > { %7761 = vmatprep.subr.bf16.mxu1 %v9178_v59  ;;  %v9264_v59 = vld [vmem:[%s10949_s7 + $0x5d0] ss:$8 sps:$4 sm:$0xff]  }
 0x18b   : > { %7721 = vmatpush2.bf16.msra.mxu0 %v9173_v60  ;;  %v9269_v60 = vld [vmem:[%s10949_s7 + $0x4c4] ss:$8 sps:$4 sm:$0xff]  }
 0x18c   : > { %7722 = vmatprep.subr.bf16.mxu0 %v9181_v62  ;;  %v9267_v62 = vld [vmem:[%s10949_s7 + $0x4c0] ss:$8 sps:$4 sm:$0xff]  }
 0x18d   : > { %7762 = vmatpush2.bf16.msra.mxu1 %v9176_v61  ;;  %v9272_v61 = vld [vmem:[%s10949_s7 + $0x5c4] ss:$8 sps:$4 sm:$0xff]  }
 0x18e   : > { %7763 = vmatprep.subr.bf16.mxu1 %v9184_v63  ;;  %v9270_v63 = vld [vmem:[%s10949_s7 + $0x5c0] ss:$8 sps:$4 sm:$0xff]  }
 0x18f   : > { %7723 = vmatpush2.bf16.msra.mxu0 %v9179_v2  ;;  %v9275_v2 = vld [vmem:[%s10949_s7 + $0x4b4] ss:$8 sps:$4 sm:$0xff]  }
 0x190   : > { %7724 = vmatprep.subr.bf16.mxu0 %v9187_v4  ;;  %v9273_v4 = vld [vmem:[%s10949_s7 + $0x4b0] ss:$8 sps:$4 sm:$0xff]  }
 0x191   : > { %7764 = vmatpush2.bf16.msra.mxu1 %v9182_v3  ;;  %v9278_v3 = vld [vmem:[%s10949_s7 + $0x5b4] ss:$8 sps:$4 sm:$0xff]  }
 0x192   : > { %7765 = vmatprep.subr.bf16.mxu1 %v9190_v5  ;;  %v9276_v5 = vld [vmem:[%s10949_s7 + $0x5b0] ss:$8 sps:$4 sm:$0xff]  }
 0x193   : > { %7725 = vmatpush2.bf16.msra.mxu0 %v9185_v6  ;;  %v9281_v6 = vld [vmem:[%s10949_s7 + $0x4a4] ss:$8 sps:$4 sm:$0xff]  }
 0x194   : > { %7726 = vmatprep.subr.bf16.mxu0 %v9193_v10  ;;  %v9279_v10 = vld [vmem:[%s10949_s7 + $0x4a0] ss:$8 sps:$4 sm:$0xff]  }
 0x195   : > { %7766 = vmatpush2.bf16.msra.mxu1 %v9188_v7  ;;  %v9284_v7 = vld [vmem:[%s10949_s7 + $0x5a4] ss:$8 sps:$4 sm:$0xff]  }
 0x196   : > { %7767 = vmatprep.subr.bf16.mxu1 %v9196_v11  ;;  %v9282_v11 = vld [vmem:[%s10949_s7 + $0x5a0] ss:$8 sps:$4 sm:$0xff]  }
 0x197   : > { %7727 = vmatpush2.bf16.msra.mxu0 %v9191_v12  ;;  %v9287_v12 = vld [vmem:[%s10949_s7 + $0x494] ss:$8 sps:$4 sm:$0xff]  }
 0x198   : > { %7778 = vmatprep.subr.bf16.mxu0 %v9203_v14  ;;  %v9285_v14 = vld [vmem:[%s10949_s7 + $0x490] ss:$8 sps:$4 sm:$0xff]  }
 0x199   : > { %7768 = vmatpush2.bf16.msra.mxu1 %v9194_v13  ;;  %v9290_v13 = vld [vmem:[%s10949_s7 + $0x594] ss:$8 sps:$4 sm:$0xff]  }
 0x19a   : > { %7819 = vmatprep.subr.bf16.mxu1 %v9206_v15  ;;  %7729 = vmatmul.mubr.bf16.vlgmr.msra.gmra.mxu0 %v8416_v16  ;;  %v9288_v15 = vld [vmem:[%s10949_s7 + $0x590] ss:$8 sps:$4 sm:$0xff]   ;;  %v9293_v16 = vld [vmem:[%s10949_s7 + $0x484] ss:$8 sps:$4 sm:$0xff]  }
 0x19b   : > { %7779 = vmatpush1.bf16.msra.mxu0 %v9201_v1  ;;  %7810 = vmatprep.mubr.bf16.mxu0 %v8421_v20  ;;  %v9291_v1 = vld [vmem:[%s10949_s7 + $0x480] ss:$8 sps:$4 sm:$0xff]   ;;  %v9301_v20 = vld [vmem:[%s10949_s7 + $0x670] ss:$8 sps:$4 sm:$0xff]  }
 0x19c   : > { %7770 = vmatmul.mubr.bf16.vlgmr.msra.gmra.mxu1 %v8418_v0  ;;  %7780 = vmatprep.subr.bf16.mxu0 %v9209_v8  ;;  %v9296_v0 = vld [vmem:[%s10949_s7 + $0x584] ss:$8 sps:$4 sm:$0xff]   ;;  %v9303_v8 = vld [vmem:[%s10949_s7 + $0x674] ss:$8 sps:$4 sm:$0xff]  }
 0x19d   : > { %7820 = vmatpush1.bf16.msra.mxu1 %v9204_v17  ;;  %7851 = vmatprep.mubr.bf16.mxu1 %v8423_v21  ;;  %v9294_v17 = vld [vmem:[%s10949_s7 + $0x580] ss:$8 sps:$4 sm:$0xff]   ;;  %v11185_v21 = vld [vmem:[%s11643_s0 + $0x30] sm:$0xff] }
 0x19e   : > { %7821 = vmatprep.subr.bf16.mxu1 %v9212_v9  ;;  %v9306_v9 = vld [vmem:[%s10949_s7 + $0x774] ss:$8 sps:$4 sm:$0xff]  }
 0x19f   : > { %7781 = vmatpush1.bf16.msra.mxu0 %v9207_v22  ;;  %v8420_v22 = vcombine.low %v11108_v18, %v11108_v18  ;;  %v8425_v18 = vcombine.high %v11185_v21, %v11185_v21 }
 0x1a0   : > { %7782 = vmatprep.subr.bf16.mxu0 %v9215_v24  ;;  %v11194_v24 = vld [vmem:[%s11643_s0 + $0x38] sm:$0xff] }
 0x1a1   : > { %7822 = vmatpush1.bf16.msra.mxu1 %v9210_v23  ;;  %v8422_v23 = vcombine.low %v11113_v19, %v11113_v19  ;;  %v8427_v19 = vcombine.high %v11194_v24, %v11194_v24 }
 0x1a2   : > { %7823 = vmatprep.subr.bf16.mxu1 %v9218_v25  ;;  %v9304_v25 = vld [vmem:[%s10949_s7 + $0x770] ss:$8 sps:$4 sm:$0xff]  }
 0x1a3   : > { %7783 = vmatpush1.bf16.msra.mxu0 %v9213_v26  ;;  %v9309_v26 = vld [vmem:[%s10949_s7 + $0x664] ss:$8 sps:$4 sm:$0xff]  }
 0x1a4   : > { %7784 = vmatprep.subr.bf16.mxu0 %v9221_v28  ;;  %v9307_v28 = vld [vmem:[%s10949_s7 + $0x660] ss:$8 sps:$4 sm:$0xff]  }
 0x1a5   : > { %7824 = vmatpush1.bf16.msra.mxu1 %v9216_v27  ;;  %v9312_v27 = vld [vmem:[%s10949_s7 + $0x764] ss:$8 sps:$4 sm:$0xff]  }
 0x1a6   : > { %7825 = vmatprep.subr.bf16.mxu1 %v9224_v29  ;;  %v9310_v29 = vld [vmem:[%s10949_s7 + $0x760] ss:$8 sps:$4 sm:$0xff]  }
 0x1a7   : > { %7785 = vmatpush1.bf16.msra.mxu0 %v9219_v30  ;;  %v9315_v30 = vld [vmem:[%s10949_s7 + $0x654] ss:$8 sps:$4 sm:$0xff]  }
 0x1a8   : > { %7786 = vmatprep.subr.bf16.mxu0 %v9227_v32  ;;  %v9313_v32 = vld [vmem:[%s10949_s7 + $0x650] ss:$8 sps:$4 sm:$0xff]  }
 0x1a9   : > { %7826 = vmatpush1.bf16.msra.mxu1 %v9222_v31  ;;  %v9318_v31 = vld [vmem:[%s10949_s7 + $0x754] ss:$8 sps:$4 sm:$0xff]  }
 0x1aa   : > { %7827 = vmatprep.subr.bf16.mxu1 %v9230_v33  ;;  %v9316_v33 = vld [vmem:[%s10949_s7 + $0x750] ss:$8 sps:$4 sm:$0xff]  }
 0x1ab   : > { %7787 = vmatpush1.bf16.msra.mxu0 %v9225_v34  ;;  %v9321_v34 = vld [vmem:[%s10949_s7 + $0x644] ss:$8 sps:$4 sm:$0xff]  }
 0x1ac   : > { %7788 = vmatprep.subr.bf16.mxu0 %v9233_v36  ;;  %v9319_v36 = vld [vmem:[%s10949_s7 + $0x640] ss:$8 sps:$4 sm:$0xff]  }
 0x1ad   : > { %7828 = vmatpush1.bf16.msra.mxu1 %v9228_v35  ;;  %v9324_v35 = vld [vmem:[%s10949_s7 + $0x744] ss:$8 sps:$4 sm:$0xff]  }
 0x1ae   : > { %7829 = vmatprep.subr.bf16.mxu1 %v9236_v37  ;;  %v9322_v37 = vld [vmem:[%s10949_s7 + $0x740] ss:$8 sps:$4 sm:$0xff]  }
 0x1af   : > { %7789 = vmatpush1.bf16.msra.mxu0 %v9231_v38  ;;  %v9327_v38 = vld [vmem:[%s10949_s7 + $0x634] ss:$8 sps:$4 sm:$0xff]  }
 0x1b0   : > { %7790 = vmatprep.subr.bf16.mxu0 %v9239_v40  ;;  %v9325_v40 = vld [vmem:[%s10949_s7 + $0x630] ss:$8 sps:$4 sm:$0xff]  }
 0x1b1   : > { %7830 = vmatpush1.bf16.msra.mxu1 %v9234_v39  ;;  %v9330_v39 = vld [vmem:[%s10949_s7 + $0x734] ss:$8 sps:$4 sm:$0xff]  }
 0x1b2   : > { %7831 = vmatprep.subr.bf16.mxu1 %v9242_v41  ;;  %v9328_v41 = vld [vmem:[%s10949_s7 + $0x730] ss:$8 sps:$4 sm:$0xff]  }
 0x1b3   : > { %7791 = vmatpush1.bf16.msra.mxu0 %v9237_v42  ;;  %v9333_v42 = vld [vmem:[%s10949_s7 + $0x624] ss:$8 sps:$4 sm:$0xff]  }
 0x1b4   : > { %7792 = vmatprep.subr.bf16.mxu0 %v9245_v44  ;;  %v9331_v44 = vld [vmem:[%s10949_s7 + $0x620] ss:$8 sps:$4 sm:$0xff]  }
 0x1b5   : > { %7832 = vmatpush1.bf16.msra.mxu1 %v9240_v43  ;;  %v9336_v43 = vld [vmem:[%s10949_s7 + $0x724] ss:$8 sps:$4 sm:$0xff]  }
 0x1b6   : > { %7833 = vmatprep.subr.bf16.mxu1 %v9248_v45  ;;  %v9334_v45 = vld [vmem:[%s10949_s7 + $0x720] ss:$8 sps:$4 sm:$0xff]  }
 0x1b7   : > { %7793 = vmatpush1.bf16.msra.mxu0 %v9243_v46  ;;  %v9339_v46 = vld [vmem:[%s10949_s7 + $0x614] ss:$8 sps:$4 sm:$0xff]  }
 0x1b8   : > { %7794 = vmatprep.subr.bf16.mxu0 %v9251_v48  ;;  %v9337_v48 = vld [vmem:[%s10949_s7 + $0x610] ss:$8 sps:$4 sm:$0xff]  }
 0x1b9   : > { %7834 = vmatpush1.bf16.msra.mxu1 %v9246_v47  ;;  %v9342_v47 = vld [vmem:[%s10949_s7 + $0x714] ss:$8 sps:$4 sm:$0xff]  }
 0x1ba   : > { %7835 = vmatprep.subr.bf16.mxu1 %v9254_v49  ;;  %v9340_v49 = vld [vmem:[%s10949_s7 + $0x710] ss:$8 sps:$4 sm:$0xff]  }
 0x1bb   : > { %7795 = vmatpush2.bf16.msra.mxu0 %v9249_v50  ;;  %v9345_v50 = vld [vmem:[%s10949_s7 + $0x604] ss:$8 sps:$4 sm:$0xff]  }
 0x1bc   : > { %7796 = vmatprep.subr.bf16.mxu0 %v9257_v52  ;;  %v9343_v52 = vld [vmem:[%s10949_s7 + $0x600] ss:$8 sps:$4 sm:$0xff]  }
 0x1bd   : > { %7836 = vmatpush2.bf16.msra.mxu1 %v9252_v51  ;;  %v9348_v51 = vld [vmem:[%s10949_s7 + $0x704] ss:$8 sps:$4 sm:$0xff]  }
 0x1be   : > { %7837 = vmatprep.subr.bf16.mxu1 %v9260_v53  ;;  %v9346_v53 = vld [vmem:[%s10949_s7 + $0x700] ss:$8 sps:$4 sm:$0xff]  }
 0x1bf   : > { %7797 = vmatpush2.bf16.msra.mxu0 %v9255_v54  ;;  %v9351_v54 = vld [vmem:[%s10949_s7 + $0x6f4] ss:$8 sps:$4 sm:$0xff]  }
 0x1c0   : > { %7798 = vmatprep.subr.bf16.mxu0 %v9263_v56  ;;  %v9349_v56 = vld [vmem:[%s10949_s7 + $0x6f0] ss:$8 sps:$4 sm:$0xff]  }
 0x1c1   : > { %7838 = vmatpush2.bf16.msra.mxu1 %v9258_v55  ;;  %v9354_v55 = vld [vmem:[%s10949_s7 + $0x7f4] ss:$8 sps:$4 sm:$0xff]  }
 0x1c2   : > { %7839 = vmatprep.subr.bf16.mxu1 %v9266_v57  ;;  %v9352_v57 = vld [vmem:[%s10949_s7 + $0x7f0] ss:$8 sps:$4 sm:$0xff]  }
 0x1c3   : > { %7799 = vmatpush2.bf16.msra.mxu0 %v9261_v58  ;;  %v9357_v58 = vld [vmem:[%s10949_s7 + $0x6e4] ss:$8 sps:$4 sm:$0xff]  }
 0x1c4   : > { %7800 = vmatprep.subr.bf16.mxu0 %v9269_v60  ;;  %v9355_v60 = vld [vmem:[%s10949_s7 + $0x6e0] ss:$8 sps:$4 sm:$0xff]  }
 0x1c5   : > { %7840 = vmatpush2.bf16.msra.mxu1 %v9264_v59  ;;  %v9360_v59 = vld [vmem:[%s10949_s7 + $0x7e4] ss:$8 sps:$4 sm:$0xff]  }
 0x1c6   : > { %7841 = vmatprep.subr.bf16.mxu1 %v9272_v61  ;;  %v9358_v61 = vld [vmem:[%s10949_s7 + $0x7e0] ss:$8 sps:$4 sm:$0xff]  }
 0x1c7   : > { %7801 = vmatpush2.bf16.msra.mxu0 %v9267_v62  ;;  %v9363_v62 = vld [vmem:[%s10949_s7 + $0x6d4] ss:$8 sps:$4 sm:$0xff]  }
 0x1c8   : > { %7802 = vmatprep.subr.bf16.mxu0 %v9275_v2  ;;  %v9361_v2 = vld [vmem:[%s10949_s7 + $0x6d0] ss:$8 sps:$4 sm:$0xff]  }
 0x1c9   : > { %7842 = vmatpush2.bf16.msra.mxu1 %v9270_v63  ;;  %v9366_v63 = vld [vmem:[%s10949_s7 + $0x7d4] ss:$8 sps:$4 sm:$0xff]  }
 0x1ca   : > { %7843 = vmatprep.subr.bf16.mxu1 %v9278_v3  ;;  %v9364_v3 = vld [vmem:[%s10949_s7 + $0x7d0] ss:$8 sps:$4 sm:$0xff]  }
 0x1cb   : > { %7803 = vmatpush2.bf16.msra.mxu0 %v9273_v4  ;;  %v9369_v4 = vld [vmem:[%s10949_s7 + $0x6c4] ss:$8 sps:$4 sm:$0xff]  }
 0x1cc   : > { %7804 = vmatprep.subr.bf16.mxu0 %v9281_v6  ;;  %v9367_v6 = vld [vmem:[%s10949_s7 + $0x6c0] ss:$8 sps:$4 sm:$0xff]  }
 0x1cd   : > { %7844 = vmatpush2.bf16.msra.mxu1 %v9276_v5  ;;  %v9372_v5 = vld [vmem:[%s10949_s7 + $0x7c4] ss:$8 sps:$4 sm:$0xff]  }
 0x1ce   : > { %7845 = vmatprep.subr.bf16.mxu1 %v9284_v7  ;;  %v9370_v7 = vld [vmem:[%s10949_s7 + $0x7c0] ss:$8 sps:$4 sm:$0xff]  }
 0x1cf   : > { %7805 = vmatpush2.bf16.msra.mxu0 %v9279_v10  ;;  %v9375_v10 = vld [vmem:[%s10949_s7 + $0x6b4] ss:$8 sps:$4 sm:$0xff]  }
 0x1d0   : > { %7806 = vmatprep.subr.bf16.mxu0 %v9287_v12  ;;  %v9373_v12 = vld [vmem:[%s10949_s7 + $0x6b0] ss:$8 sps:$4 sm:$0xff]  }
 0x1d1   : > { %7846 = vmatpush2.bf16.msra.mxu1 %v9282_v11  ;;  %v9378_v11 = vld [vmem:[%s10949_s7 + $0x7b4] ss:$8 sps:$4 sm:$0xff]  }
 0x1d2   : > { %7847 = vmatprep.subr.bf16.mxu1 %v9290_v13  ;;  %v9376_v13 = vld [vmem:[%s10949_s7 + $0x7b0] ss:$8 sps:$4 sm:$0xff]  }
 0x1d3   : > { %7807 = vmatpush2.bf16.msra.mxu0 %v9285_v14  ;;  %v9381_v14 = vld [vmem:[%s10949_s7 + $0x6a4] ss:$8 sps:$4 sm:$0xff]  }
 0x1d4   : > { %7808 = vmatprep.subr.bf16.mxu0 %v9293_v16  ;;  %v9379_v16 = vld [vmem:[%s10949_s7 + $0x6a0] ss:$8 sps:$4 sm:$0xff]  }
 0x1d5   : > { %7848 = vmatpush2.bf16.msra.mxu1 %v9288_v15  ;;  %v9384_v15 = vld [vmem:[%s10949_s7 + $0x7a4] ss:$8 sps:$4 sm:$0xff]  }
 0x1d6   : > { %7849 = vmatprep.subr.bf16.mxu1 %v9296_v0  ;;  %v9382_v0 = vld [vmem:[%s10949_s7 + $0x7a0] ss:$8 sps:$4 sm:$0xff]  }
 0x1d7   : > { %7809 = vmatpush2.bf16.msra.mxu0 %v9291_v1  ;;  %v9387_v1 = vld [vmem:[%s10949_s7 + $0x694] ss:$8 sps:$4 sm:$0xff]  }
 0x1d8   : > { %7860 = vmatprep.subr.bf16.mxu0 %v9303_v8  ;;  %v9390_v8 = vld [vmem:[%s10949_s7 + $0x794] ss:$8 sps:$4 sm:$0xff]  }
 0x1d9   : > { %7850 = vmatpush2.bf16.msra.mxu1 %v9294_v17  ;;  %v4932_v17 = vlaneseq }
 0x1da   : > { %7901 = vmatprep.subr.bf16.mxu1 %v9306_v9  ;;  %7811 = vmatmul.mubr.bf16.vlgmr.msra.gmra.mxu0 %v8420_v22  ;;  %v9385_v9 = vld [vmem:[%s10949_s7 + $0x690] ss:$8 sps:$4 sm:$0xff]   ;;  %v9393_v22 = vld [vmem:[%s10949_s7 + $0x684] ss:$8 sps:$4 sm:$0xff]  }
 0x1db   : > { %7861 = vmatpush1.bf16.msra.mxu0 %v9301_v20  ;;  %7892 = vmatprep.mubr.bf16.mxu0 %v8425_v18  ;;  %v9388_v20 = vld [vmem:[%s10949_s7 + $0x790] ss:$8 sps:$4 sm:$0xff]   ;;  %v4930_v18 = vld [vmem:[%s4390_s28] sm:$0x3] }
 0x1dc   : > { %7852 = vmatmul.mubr.bf16.vlgmr.msra.gmra.mxu1 %v8422_v23  ;;  %7862 = vmatprep.subr.bf16.mxu0 %v9309_v26  ;;  %v4933_v23 = vshrl.u32 %v4932_v17, 7  ;;  %v9391_v26 = vld [vmem:[%s10949_s7 + $0x680] ss:$8 sps:$4 sm:$0xff]   ;;  %v9451_v17 = vld [vmem:[%s10949_s7 + $0x8f4] ss:$8 sps:$4 sm:$0xff]  }
 0x1dd   : > { %7902 = vmatpush1.bf16.msra.mxu1 %v9304_v25  ;;  %7933 = vmatprep.mubr.bf16.mxu1 %v8427_v19  ;;  %v9396_v25 = vld [vmem:[%s10949_s7 + $0x784] ss:$8 sps:$4 sm:$0xff]  }
 0x1de   : > { %7903 = vmatprep.subr.bf16.mxu1 %v9312_v27  ;;  %v9394_v27 = vld [vmem:[%s10949_s7 + $0x780] ss:$8 sps:$4 sm:$0xff]   ;;  %v4934_v19 = vsub.s32 0, %v4933_v23 }
 0x1df   : > { %7863 = vmatpush1.bf16.msra.mxu0 %v9307_v28  ;;  %v9403_v28 = vld [vmem:[%s10949_s7 + $0x874] ss:$8 sps:$4 sm:$0xff]  }
 0x1e0   : > { %7864 = vmatprep.subr.bf16.mxu0 %v9315_v30  ;;  %v9401_v30 = vld [vmem:[%s10949_s7 + $0x870] ss:$8 sps:$4 sm:$0xff]  }
 0x1e1   : > { %7904 = vmatpush1.bf16.msra.mxu1 %v9310_v29  ;;  %v9406_v29 = vld [vmem:[%s10949_s7 + $0x974] ss:$8 sps:$4 sm:$0xff]  }
 0x1e2   : > { %7905 = vmatprep.subr.bf16.mxu1 %v9318_v31  ;;  %v4938_v31 = vsub.s32 1, %v4933_v23  ;;  %v9460_v23 = vld [vmem:[%s10949_s7 + $0x9e4] ss:$8 sps:$4 sm:$0xff]  }
 0x1e3   : > { %7865 = vmatpush1.bf16.msra.mxu0 %v9313_v32  ;;  %v8424_v32 = vcombine.low %v11185_v21, %v11185_v21  ;;  %v9409_v21 = vld [vmem:[%s10949_s7 + $0x864] ss:$8 sps:$4 sm:$0xff]  }
 0x1e4   : > { %7866 = vmatprep.subr.bf16.mxu0 %v9321_v34  ;;  %v11278_v34 = vld [vmem:[%s11643_s0 + $0x40] sm:$0xff] }
 0x1e5   : > { %7906 = vmatpush1.bf16.msra.mxu1 %v9316_v33  ;;  %v8426_v33 = vcombine.low %v11194_v24, %v11194_v24  ;;  %v9412_v24 = vld [vmem:[%s10949_s7 + $0x964] ss:$8 sps:$4 sm:$0xff]  }
 0x1e6   : > { %7907 = vmatprep.subr.bf16.mxu1 %v9324_v35  ;;  %v11283_v35 = vld [vmem:[%s11643_s0 + $0x48] sm:$0xff] }
 0x1e7   : > { %7867 = vmatpush1.bf16.msra.mxu0 %v9319_v36  ;;  %v4935_v36 = vrot.slane %v4930_v18, %v4934_v19  ;;  %v9461_v19 = vld [vmem:[%s10949_s7 + $0x8d0] ss:$8 sps:$4 sm:$0xff]  }
 0x1e8   : > { %7868 = vmatprep.subr.bf16.mxu0 %v9327_v38  ;;  %v4939_v38 = vrot.slane %v4930_v18, %v4938_v31  ;;  %v9466_v18 = vld [vmem:[%s10949_s7 + $0x9d4] ss:$8 sps:$4 sm:$0xff]   ;;  %v9467_v31 = vld [vmem:[%s10949_s7 + $0x8c0] ss:$8 sps:$4 sm:$0xff]  }
 0x1e9   : > { %7908 = vmatpush1.bf16.msra.mxu1 %v9322_v37  ;;  %v9404_v37 = vld [vmem:[%s10949_s7 + $0x970] ss:$8 sps:$4 sm:$0xff]  }
 0x1ea   : > { %7909 = vmatprep.subr.bf16.mxu1 %v9330_v39  ;;  %v8429_v39 = vcombine.high %v11278_v34, %v11278_v34 }
 0x1eb   : > { %7869 = vmatpush1.bf16.msra.mxu0 %v9325_v40  ;;  %v8431_v40 = vcombine.high %v11283_v35, %v11283_v35 }
 0x1ec   : > { %7870 = vmatprep.subr.bf16.mxu0 %v9333_v42 }
 0x1ed   : > { %7910 = vmatpush1.bf16.msra.mxu1 %v9328_v41 }
 0x1ee   : > { %7911 = vmatprep.subr.bf16.mxu1 %v9336_v43  ;;  %v9407_v43 = vld [vmem:[%s10949_s7 + $0x860] ss:$8 sps:$4 sm:$0xff]  }
 0x1ef   : > { %7871 = vmatpush1.bf16.msra.mxu0 %v9331_v44 }
 0x1f0   : > { %7872 = vmatprep.subr.bf16.mxu0 %v9339_v46 }
 0x1f1   : > { %7912 = vmatpush1.bf16.msra.mxu1 %v9334_v45  ;;  %v9410_v45 = vld [vmem:[%s10949_s7 + $0x960] ss:$8 sps:$4 sm:$0xff]  }
 0x1f2   : > { %7913 = vmatprep.subr.bf16.mxu1 %v9342_v47 }
 0x1f3   : > { %7873 = vmatpush1.bf16.msra.mxu0 %v9337_v48  ;;  %v9415_v48 = vld [vmem:[%s10949_s7 + $0x854] ss:$8 sps:$4 sm:$0xff]  }
 0x1f4   : > { %7874 = vmatprep.subr.bf16.mxu0 %v9345_v50 }
 0x1f5   : > { %7914 = vmatpush1.bf16.msra.mxu1 %v9340_v49  ;;  %v9418_v49 = vld [vmem:[%s10949_s7 + $0x954] ss:$8 sps:$4 sm:$0xff]  }
 0x1f6   : > { %7915 = vmatprep.subr.bf16.mxu1 %v9348_v51 }
 0x1f7   : > { %7875 = vmatpush1.bf16.msra.mxu0 %v9343_v52 }
 0x1f8   : > { %7876 = vmatprep.subr.bf16.mxu0 %v9351_v54  ;;  %v9413_v54 = vld [vmem:[%s10949_s7 + $0x850] ss:$8 sps:$4 sm:$0xff]  }
 0x1f9   : > { %7916 = vmatpush1.bf16.msra.mxu1 %v9346_v53 }
 0x1fa   : > { %7917 = vmatprep.subr.bf16.mxu1 %v9354_v55 }
 0x1fb   : > { %7877 = vmatpush2.bf16.msra.mxu0 %v9349_v56  ;;  %v9416_v56 = vld [vmem:[%s10949_s7 + $0x950] ss:$8 sps:$4 sm:$0xff]  }
 0x1fc   : > { %7878 = vmatprep.subr.bf16.mxu0 %v9357_v58 }
 0x1fd   : > { %7918 = vmatpush2.bf16.msra.mxu1 %v9352_v57 }
 0x1fe   : > { %7919 = vmatprep.subr.bf16.mxu1 %v9360_v59  ;;  %v9421_v59 = vld [vmem:[%s10949_s7 + $0x844] ss:$8 sps:$4 sm:$0xff]  }
 0x1ff   : > { %7879 = vmatpush2.bf16.msra.mxu0 %v9355_v60  ;;  %v9424_v60 = vld [vmem:[%s10949_s7 + $0x944] ss:$8 sps:$4 sm:$0xff]  }
 0x200   : > { %7880 = vmatprep.subr.bf16.mxu0 %v9363_v62  ;;  %v9422_v62 = vld [vmem:[%s10949_s7 + $0x940] ss:$8 sps:$4 sm:$0xff]  }
 0x201   : > { %7920 = vmatpush2.bf16.msra.mxu1 %v9358_v61  ;;  %v9419_v61 = vld [vmem:[%s10949_s7 + $0x840] ss:$8 sps:$4 sm:$0xff]  }
 0x202   : > { %7921 = vmatprep.subr.bf16.mxu1 %v9366_v63  ;;  %v9427_v63 = vld [vmem:[%s10949_s7 + $0x834] ss:$8 sps:$4 sm:$0xff]  }
 0x203   : > { %7881 = vmatpush2.bf16.msra.mxu0 %v9361_v2  ;;  %v9430_v2 = vld [vmem:[%s10949_s7 + $0x934] ss:$8 sps:$4 sm:$0xff]  }
 0x204   : > { %7882 = vmatprep.subr.bf16.mxu0 %v9369_v4  ;;  %v9428_v4 = vld [vmem:[%s10949_s7 + $0x930] ss:$8 sps:$4 sm:$0xff]  }
 0x205   : > { %7922 = vmatpush2.bf16.msra.mxu1 %v9364_v3  ;;  %v9425_v3 = vld [vmem:[%s10949_s7 + $0x830] ss:$8 sps:$4 sm:$0xff]  }
 0x206   : > { %7923 = vmatprep.subr.bf16.mxu1 %v9372_v5  ;;  %v9433_v5 = vld [vmem:[%s10949_s7 + $0x824] ss:$8 sps:$4 sm:$0xff]  }
 0x207   : > { %7883 = vmatpush2.bf16.msra.mxu0 %v9367_v6  ;;  %v9436_v6 = vld [vmem:[%s10949_s7 + $0x924] ss:$8 sps:$4 sm:$0xff]  }
 0x208   : > { %7884 = vmatprep.subr.bf16.mxu0 %v9375_v10  ;;  %v9434_v10 = vld [vmem:[%s10949_s7 + $0x920] ss:$8 sps:$4 sm:$0xff]  }
 0x209   : > { %7924 = vmatpush2.bf16.msra.mxu1 %v9370_v7  ;;  %v9431_v7 = vld [vmem:[%s10949_s7 + $0x820] ss:$8 sps:$4 sm:$0xff]  }
 0x20a   : > { %7925 = vmatprep.subr.bf16.mxu1 %v9378_v11  ;;  %v9439_v11 = vld [vmem:[%s10949_s7 + $0x814] ss:$8 sps:$4 sm:$0xff]  }
 0x20b   : > { %7885 = vmatpush2.bf16.msra.mxu0 %v9373_v12  ;;  %v9442_v12 = vld [vmem:[%s10949_s7 + $0x914] ss:$8 sps:$4 sm:$0xff]  }
 0x20c   : > { %7886 = vmatprep.subr.bf16.mxu0 %v9381_v14  ;;  %v9440_v14 = vld [vmem:[%s10949_s7 + $0x910] ss:$8 sps:$4 sm:$0xff]  }
 0x20d   : > { %7926 = vmatpush2.bf16.msra.mxu1 %v9376_v13  ;;  %v9437_v13 = vld [vmem:[%s10949_s7 + $0x810] ss:$8 sps:$4 sm:$0xff]  }
 0x20e   : > { %7927 = vmatprep.subr.bf16.mxu1 %v9384_v15  ;;  %v9445_v15 = vld [vmem:[%s10949_s7 + $0x804] ss:$8 sps:$4 sm:$0xff]  }
 0x20f   : > { %7887 = vmatpush2.bf16.msra.mxu0 %v9379_v16  ;;  %v9448_v16 = vld [vmem:[%s10949_s7 + $0x904] ss:$8 sps:$4 sm:$0xff]  }
 0x210   : > { %7888 = vmatprep.subr.bf16.mxu0 %v9387_v1  ;;  %v9446_v1 = vld [vmem:[%s10949_s7 + $0x900] ss:$8 sps:$4 sm:$0xff]  }
 0x211   : > { %7928 = vmatpush2.bf16.msra.mxu1 %v9382_v0  ;;  %v9443_v0 = vld [vmem:[%s10949_s7 + $0x800] ss:$8 sps:$4 sm:$0xff]  }
 0x212   : > { %7929 = vmatprep.subr.bf16.mxu1 %v9390_v8  ;;  %v9454_v8 = vld [vmem:[%s10949_s7 + $0x9f4] ss:$8 sps:$4 sm:$0xff]  }
 0x213   : > { %7889 = vmatpush2.bf16.msra.mxu0 %v9385_v9  ;;  %v9449_v9 = vld [vmem:[%s10949_s7 + $0x8f0] ss:$8 sps:$4 sm:$0xff]  }
 0x214   : > { %7890 = vmatprep.subr.bf16.mxu0 %v9393_v22  ;;  %v9457_v22 = vld [vmem:[%s10949_s7 + $0x8e4] ss:$8 sps:$4 sm:$0xff]  }
 0x215   : > { %7930 = vmatpush2.bf16.msra.mxu1 %v9388_v20  ;;  %v9452_v20 = vld [vmem:[%s10949_s7 + $0x9f0] ss:$8 sps:$4 sm:$0xff]  }
 0x216   : > { %7931 = vmatprep.subr.bf16.mxu1 %v9396_v25  ;;  %v9455_v25 = vld [vmem:[%s10949_s7 + $0x8e0] ss:$8 sps:$4 sm:$0xff]  }
 0x217   : > { %7891 = vmatpush2.bf16.msra.mxu0 %v9391_v26  ;;  %v9458_v26 = vld [vmem:[%s10949_s7 + $0x9e0] ss:$8 sps:$4 sm:$0xff]  }
 0x218   : > { %7942 = vmatprep.subr.bf16.mxu0 %v9403_v28  ;;  %v9464_v28 = vld [vmem:[%s10949_s7 + $0x9d0] ss:$8 sps:$4 sm:$0xff]  }
 0x219   : > { %7932 = vmatpush2.bf16.msra.mxu1 %v9394_v27  ;;  %v9463_v27 = vld [vmem:[%s10949_s7 + $0x8d4] ss:$8 sps:$4 sm:$0xff]  }
 0x21a   : > { %7983 = vmatprep.subr.bf16.mxu1 %v9406_v29  ;;  %v7648_v41 = vpop.f32.mrf.mxu0  ;;  %7893 = vmatmul.mubr.bf16.vlgmr.msra.gmra.mxu0 %v8424_v32  ;;  %v9469_v29 = vld [vmem:[%s10949_s7 + $0x8c4] ss:$8 sps:$4 sm:$0xff]   ;;  %v9470_v32 = vld [vmem:[%s10949_s7 + $0x9c0] ss:$8 sps:$4 sm:$0xff]  }
 0x21b   : > { %v7649_v44 = vadd.f32 %v7648_v41, %v4935_v36  ;;  %7943 = vmatpush1.bf16.msra.mxu0 %v9401_v30  ;;  %7974 = vmatprep.mubr.bf16.mxu0 %v8429_v39  ;;  %v9472_v30 = vld [vmem:[%s10949_s7 + $0x9c4] ss:$8 sps:$4 sm:$0xff]   ;;  %v9478_v36 = vld [vmem:[%s10949_s7 + $0x9b4] ss:$8 sps:$4 sm:$0xff]   ;;  %v9479_v39 = vld [vmem:[%s10949_s7 + $0x8a0] ss:$8 sps:$4 sm:$0xff]  }
 0x21c   : > { %v7689_v42 = vpop.f32.mrf.mxu1  ;;  %7934 = vmatmul.mubr.bf16.vlgmr.msra.gmra.mxu1 %v8426_v33  ;;  %v7650_v46 = vpop.f32.mrf.mxu0  ;;  %7944 = vmatprep.subr.bf16.mxu0 %v9409_v21  ;;  %v9475_v33 = vld [vmem:[%s10949_s7 + $0x8b4] ss:$8 sps:$4 sm:$0xff]   ;;  %v9476_v21 = vld [vmem:[%s10949_s7 + $0x9b0] ss:$8 sps:$4 sm:$0xff]  }
 0x21d   : > { %7984 = vmatpush1.bf16.msra.mxu1 %v9404_v37  ;;  %v11296_v50 = vadd.f32 %v7689_v42, %v7649_v44  ;;  %v7651_v51 = vadd.f32 %v7650_v46, %v4939_v38  ;;  %8015 = vmatprep.mubr.bf16.mxu1 %v8431_v40  ;;  %v9473_v37 = vld [vmem:[%s10949_s7 + $0x8b0] ss:$8 sps:$4 sm:$0xff]   ;;  %v9484_v38 = vld [vmem:[%s10949_s7 + $0x9a4] ss:$8 sps:$4 sm:$0xff]   ;;  %v9482_v40 = vld [vmem:[%s10949_s7 + $0x9a0] ss:$8 sps:$4 sm:$0xff]  }
 0x21e   : > { %v7691_v47 = vpop.f32.mrf.mxu1  ;;  %7985 = vmatprep.subr.bf16.mxu1 %v9412_v24  ;;  %v7652_v52 = vpop.f32.mrf.mxu0  ;;  %v9481_v24 = vld [vmem:[%s10949_s7 + $0x8a4] ss:$8 sps:$4 sm:$0xff]   ;;  %v9487_v41 = vld [vmem:[%s10949_s7 + $0x894] ss:$8 sps:$4 sm:$0xff]   ;;  %v9488_v44 = vld [vmem:[%s10949_s7 + $0x990] ss:$8 sps:$4 sm:$0xff]  }
 0x21f   : > { %v11299_v55 = vadd.f32 %v7691_v47, %v7651_v51  ;;  %7945 = vmatpush1.bf16.msra.mxu0 %v9407_v43  ;;  %v9490_v42 = vld [vmem:[%s10949_s7 + $0x994] ss:$8 sps:$4 sm:$0xff]   ;;  %v9485_v43 = vld [vmem:[%s10949_s7 + $0x890] ss:$8 sps:$4 sm:$0xff]   ;;  %v9496_v46 = vld [vmem:[%s10949_s7 + $0x984] ss:$8 sps:$4 sm:$0xff]  }
 0x220   : > { %v7693_v53 = vpop.f32.mrf.mxu1  ;;  %v7653_v57 = vpop.f32.mrf.mxu0  ;;  %7946 = vmatprep.subr.bf16.mxu0 %v9415_v48  ;;  %v9491_v47 = vld [vmem:[%s10949_s7 + $0x880] ss:$8 sps:$4 sm:$0xff]   ;;  %v9506_v51 = vld [vmem:[%s10949_s7 + $0xb74] ss:$8 sps:$4 sm:$0xff]   ;;  %v9501_v52 = vld [vmem:[%s10949_s7 + $0xa70] ss:$8 sps:$4 sm:$0xff]  }
 0x221   : > { %7986 = vmatpush1.bf16.msra.mxu1 %v9410_v45  ;;  %v9493_v45 = vld [vmem:[%s10949_s7 + $0x884] ss:$8 sps:$4 sm:$0xff]   ;;  %v9494_v48 = vld [vmem:[%s10949_s7 + $0x980] ss:$8 sps:$4 sm:$0xff]   ;;  %v9504_v53 = vld [vmem:[%s10949_s7 + $0xb70] ss:$8 sps:$4 sm:$0xff]  }
 0x222   : > { %v7694_v58 = vpop.f32.mrf.mxu1  ;;  %7987 = vmatprep.subr.bf16.mxu1 %v9418_v49  ;;  %v9503_v49 = vld [vmem:[%s10949_s7 + $0xa74] ss:$8 sps:$4 sm:$0xff]  }
 0x223   : > { %7947 = vmatpush1.bf16.msra.mxu0 %v9413_v54  ;;  %v8428_v54 = vcombine.low %v11278_v34, %v11278_v34  ;;  %v11365_v57 = vld [vmem:[%s11643_s0 + $0x50] sm:$0xff]  ;;  %v11370_v58 = vld [vmem:[%s11643_s0 + $0x58] sm:$0xff]  ;;  %v9507_v34 = vld [vmem:[%s10949_s7 + $0xa60] ss:$8 sps:$4 sm:$0xff]  }
 0x224   : > { %7948 = vmatprep.subr.bf16.mxu0 %v9421_v59  ;;  %v9509_v59 = vld [vmem:[%s10949_s7 + $0xa64] ss:$8 sps:$4 sm:$0xff]  }
 0x225   : > { %7988 = vmatpush1.bf16.msra.mxu1 %v9416_v56  ;;  %v8430_v56 = vcombine.low %v11283_v35, %v11283_v35  ;;  %v9510_v35 = vld [vmem:[%s10949_s7 + $0xb60] ss:$8 sps:$4 sm:$0xff]  }
 0x226   : > { %7989 = vmatprep.subr.bf16.mxu1 %v9424_v60  ;;  %v9512_v60 = vld [vmem:[%s10949_s7 + $0xb64] ss:$8 sps:$4 sm:$0xff]  }
 0x227   : > { %7949 = vmatpush1.bf16.msra.mxu0 %v9419_v61  ;;  %v8433_v61 = vcombine.high %v11365_v57, %v11365_v57 }
 0x228   : > { %7950 = vmatprep.subr.bf16.mxu0 %v9427_v63 }
 0x229   : > { %7990 = vmatpush1.bf16.msra.mxu1 %v9422_v62  ;;  %v8435_v62 = vcombine.high %v11370_v58, %v11370_v58 }
 0x22a   : > { %7991 = vmatprep.subr.bf16.mxu1 %v9430_v2 }
 0x22b   : > { %7951 = vmatpush1.bf16.msra.mxu0 %v9425_v3 }
 0x22c   : > { %7952 = vmatprep.subr.bf16.mxu0 %v9433_v5 }
 0x22d   : > { %7992 = vmatpush1.bf16.msra.mxu1 %v9428_v4 }
 0x22e   : > { %7993 = vmatprep.subr.bf16.mxu1 %v9436_v6  ;;  %v9515_v6 = vld [vmem:[%s10949_s7 + $0xa54] ss:$8 sps:$4 sm:$0xff]  }
 0x22f   : > { %7953 = vmatpush1.bf16.msra.mxu0 %v9431_v7  ;;  %v9518_v7 = vld [vmem:[%s10949_s7 + $0xb54] ss:$8 sps:$4 sm:$0xff]  }
 0x230   : > { %7954 = vmatprep.subr.bf16.mxu0 %v9439_v11 }
 0x231   : > { %7994 = vmatpush1.bf16.msra.mxu1 %v9434_v10 }
 0x232   : > { %7995 = vmatprep.subr.bf16.mxu1 %v9442_v12 }
 0x233   : > { %7955 = vmatpush1.bf16.msra.mxu0 %v9437_v13 }
 0x234   : > { %7956 = vmatprep.subr.bf16.mxu0 %v9445_v15  ;;  %v9516_v15 = vld [vmem:[%s10949_s7 + $0xb50] ss:$8 sps:$4 sm:$0xff]  }
 0x235   : > { %7996 = vmatpush1.bf16.msra.mxu1 %v9440_v14  ;;  %v9513_v14 = vld [vmem:[%s10949_s7 + $0xa50] ss:$8 sps:$4 sm:$0xff]  }
 0x236   : > { %7997 = vmatprep.subr.bf16.mxu1 %v9448_v16 }
 0x237   : > { %7957 = vmatpush1.bf16.msra.mxu0 %v9443_v0 }
 0x238   : > { %7958 = vmatprep.subr.bf16.mxu0 %v9451_v17  ;;  %v9519_v17 = vld [vmem:[%s10949_s7 + $0xa40] ss:$8 sps:$4 sm:$0xff]  }
 0x239   : > { %7998 = vmatpush1.bf16.msra.mxu1 %v9446_v1  ;;  %v9524_v1 = vld [vmem:[%s10949_s7 + $0xb44] ss:$8 sps:$4 sm:$0xff]  }
 0x23a   : > { %7999 = vmatprep.subr.bf16.mxu1 %v9454_v8  ;;  %v9522_v8 = vld [vmem:[%s10949_s7 + $0xb40] ss:$8 sps:$4 sm:$0xff]  }
 0x23b   : > { %7959 = vmatpush2.bf16.msra.mxu0 %v9449_v9  ;;  %v9527_v9 = vld [vmem:[%s10949_s7 + $0xa34] ss:$8 sps:$4 sm:$0xff]  }
 0x23c   : > { %7960 = vmatprep.subr.bf16.mxu0 %v9457_v22  ;;  %v9525_v22 = vld [vmem:[%s10949_s7 + $0xa30] ss:$8 sps:$4 sm:$0xff]  }
 0x23d   : > { %8000 = vmatpush2.bf16.msra.mxu1 %v9452_v20  ;;  %v9530_v20 = vld [vmem:[%s10949_s7 + $0xb34] ss:$8 sps:$4 sm:$0xff]  }
 0x23e   : > { %8001 = vmatprep.subr.bf16.mxu1 %v9460_v23  ;;  %v9528_v23 = vld [vmem:[%s10949_s7 + $0xb30] ss:$8 sps:$4 sm:$0xff]  }
 0x23f   : > { %7961 = vmatpush2.bf16.msra.mxu0 %v9455_v25  ;;  %v9533_v25 = vld [vmem:[%s10949_s7 + $0xa24] ss:$8 sps:$4 sm:$0xff]  }
 0x240   : > { %7962 = vmatprep.subr.bf16.mxu0 %v9463_v27  ;;  %v9531_v27 = vld [vmem:[%s10949_s7 + $0xa20] ss:$8 sps:$4 sm:$0xff]  }
 0x241   : > { %8002 = vmatpush2.bf16.msra.mxu1 %v9458_v26  ;;  %v9536_v26 = vld [vmem:[%s10949_s7 + $0xb24] ss:$8 sps:$4 sm:$0xff]  }
 0x242   : > { %8003 = vmatprep.subr.bf16.mxu1 %v9466_v18  ;;  %v9534_v18 = vld [vmem:[%s10949_s7 + $0xb20] ss:$8 sps:$4 sm:$0xff]  }
 0x243   : > { %7963 = vmatpush2.bf16.msra.mxu0 %v9461_v19  ;;  %v9539_v19 = vld [vmem:[%s10949_s7 + $0xa14] ss:$8 sps:$4 sm:$0xff]  }
 0x244   : > { %7964 = vmatprep.subr.bf16.mxu0 %v9469_v29  ;;  %v9537_v29 = vld [vmem:[%s10949_s7 + $0xa10] ss:$8 sps:$4 sm:$0xff]  }
 0x245   : > { %8004 = vmatpush2.bf16.msra.mxu1 %v9464_v28  ;;  %v9542_v28 = vld [vmem:[%s10949_s7 + $0xb14] ss:$8 sps:$4 sm:$0xff]  }
 0x246   : > { %8005 = vmatprep.subr.bf16.mxu1 %v9472_v30  ;;  %v9540_v30 = vld [vmem:[%s10949_s7 + $0xb10] ss:$8 sps:$4 sm:$0xff]  }
 0x247   : > { %7965 = vmatpush2.bf16.msra.mxu0 %v9467_v31  ;;  %v9545_v31 = vld [vmem:[%s10949_s7 + $0xa04] ss:$8 sps:$4 sm:$0xff]  }
 0x248   : > { %7966 = vmatprep.subr.bf16.mxu0 %v9475_v33  ;;  %v9543_v33 = vld [vmem:[%s10949_s7 + $0xa00] ss:$8 sps:$4 sm:$0xff]  }
 0x249   : > { %8006 = vmatpush2.bf16.msra.mxu1 %v9470_v32  ;;  %v9548_v32 = vld [vmem:[%s10949_s7 + $0xb04] ss:$8 sps:$4 sm:$0xff]  }
 0x24a   : > { %8007 = vmatprep.subr.bf16.mxu1 %v9478_v36  ;;  %v9546_v36 = vld [vmem:[%s10949_s7 + $0xb00] ss:$8 sps:$4 sm:$0xff]  }
 0x24b   : > { %7967 = vmatpush2.bf16.msra.mxu0 %v9473_v37  ;;  %v9551_v37 = vld [vmem:[%s10949_s7 + $0xaf4] ss:$8 sps:$4 sm:$0xff]  }
 0x24c   : > { %7968 = vmatprep.subr.bf16.mxu0 %v9481_v24  ;;  %v9549_v24 = vld [vmem:[%s10949_s7 + $0xaf0] ss:$8 sps:$4 sm:$0xff]  }
 0x24d   : > { %8008 = vmatpush2.bf16.msra.mxu1 %v9476_v21  ;;  %v9554_v21 = vld [vmem:[%s10949_s7 + $0xbf4] ss:$8 sps:$4 sm:$0xff]  }
 0x24e   : > { %8009 = vmatprep.subr.bf16.mxu1 %v9484_v38  ;;  %v9552_v38 = vld [vmem:[%s10949_s7 + $0xbf0] ss:$8 sps:$4 sm:$0xff]  }
 0x24f   : > { %7969 = vmatpush2.bf16.msra.mxu0 %v9479_v39  ;;  %v9557_v39 = vld [vmem:[%s10949_s7 + $0xae4] ss:$8 sps:$4 sm:$0xff]  }
 0x250   : > { %7970 = vmatprep.subr.bf16.mxu0 %v9487_v41  ;;  %v9555_v41 = vld [vmem:[%s10949_s7 + $0xae0] ss:$8 sps:$4 sm:$0xff]  }
 0x251   : > { %8010 = vmatpush2.bf16.msra.mxu1 %v9482_v40  ;;  %v9560_v40 = vld [vmem:[%s10949_s7 + $0xbe4] ss:$8 sps:$4 sm:$0xff]  }
 0x252   : > { %8011 = vmatprep.subr.bf16.mxu1 %v9490_v42  ;;  %v9558_v42 = vld [vmem:[%s10949_s7 + $0xbe0] ss:$8 sps:$4 sm:$0xff]  }
 0x253   : > { %7971 = vmatpush2.bf16.msra.mxu0 %v9485_v43  ;;  %v9563_v43 = vld [vmem:[%s10949_s7 + $0xad4] ss:$8 sps:$4 sm:$0xff]  }
 0x254   : > { %7972 = vmatprep.subr.bf16.mxu0 %v9493_v45  ;;  %v9561_v45 = vld [vmem:[%s10949_s7 + $0xad0] ss:$8 sps:$4 sm:$0xff]  }
 0x255   : > { %8012 = vmatpush2.bf16.msra.mxu1 %v9488_v44  ;;  %v9566_v44 = vld [vmem:[%s10949_s7 + $0xbd4] ss:$8 sps:$4 sm:$0xff]  }
 0x256   : > { %8013 = vmatprep.subr.bf16.mxu1 %v9496_v46  ;;  %v9564_v46 = vld [vmem:[%s10949_s7 + $0xbd0] ss:$8 sps:$4 sm:$0xff]  }
 0x257   : > { %7973 = vmatpush2.bf16.msra.mxu0 %v9491_v47  ;;  %v9569_v47 = vld [vmem:[%s10949_s7 + $0xac4] ss:$8 sps:$4 sm:$0xff]  }
 0x258   : > { %8024 = vmatprep.subr.bf16.mxu0 %v9503_v49  ;;  %v9567_v49 = vld [vmem:[%s10949_s7 + $0xac0] ss:$8 sps:$4 sm:$0xff]  }
 0x259   : > { %8014 = vmatpush2.bf16.msra.mxu1 %v9494_v48  ;;  %v9572_v48 = vld [vmem:[%s10949_s7 + $0xbc4] ss:$8 sps:$4 sm:$0xff]  }
 0x25a   : > { %8065 = vmatprep.subr.bf16.mxu1 %v9506_v51  ;;  %v7730_v63 = vpop.f32.mrf.mxu0  ;;  %7975 = vmatmul.mubr.bf16.vlgmr.msra.gmra.mxu0 %v8428_v54  ;;  %v9570_v51 = vld [vmem:[%s10949_s7 + $0xbc0] ss:$8 sps:$4 sm:$0xff]   ;;  %v9573_v54 = vld [vmem:[%s10949_s7 + $0xab0] ss:$8 sps:$4 sm:$0xff]  }
 0x25b   : > { %v7731_v3 = vadd.f32 %v7730_v63, %v11296_v50  ;;  %8025 = vmatpush1.bf16.msra.mxu0 %v9501_v52  ;;  %8056 = vmatprep.mubr.bf16.mxu0 %v8433_v61  ;;  %v9575_v52 = vld [vmem:[%s10949_s7 + $0xab4] ss:$8 sps:$4 sm:$0xff]   ;;  %v9585_v63 = vld [vmem:[%s10949_s7 + $0xa90] ss:$8 sps:$4 sm:$0xff]  }
 0x25c   : > { %v7771_v2 = vpop.f32.mrf.mxu1  ;;  %8016 = vmatmul.mubr.bf16.vlgmr.msra.gmra.mxu1 %v8430_v56  ;;  %v7732_v4 = vpop.f32.mrf.mxu0  ;;  %8026 = vmatprep.subr.bf16.mxu0 %v9509_v59  ;;  %v9576_v56 = vld [vmem:[%s10949_s7 + $0xbb0] ss:$8 sps:$4 sm:$0xff]   ;;  %v9581_v59 = vld [vmem:[%s10949_s7 + $0xaa4] ss:$8 sps:$4 sm:$0xff]   ;;  %v9587_v61 = vld [vmem:[%s10949_s7 + $0xa94] ss:$8 sps:$4 sm:$0xff]  }
 0x25d   : > { %8066 = vmatpush1.bf16.msra.mxu1 %v9504_v53  ;;  %v11383_v10 = vadd.f32 %v7771_v2, %v7731_v3  ;;  %v7733_v11 = vadd.f32 %v7732_v4, %v11299_v55  ;;  %8097 = vmatprep.mubr.bf16.mxu1 %v8435_v62  ;;  %v9521_v55 = vld [vmem:[%s10949_s7 + $0xa44] ss:$8 sps:$4 sm:$0xff]   ;;  %v9578_v53 = vld [vmem:[%s10949_s7 + $0xbb4] ss:$8 sps:$4 sm:$0xff]   ;;  %v9588_v2 = vld [vmem:[%s10949_s7 + $0xb90] ss:$8 sps:$4 sm:$0xff]  }
 0x25e   : > { %v7773_v5 = vpop.f32.mrf.mxu1  ;;  %8067 = vmatprep.subr.bf16.mxu1 %v9512_v60  ;;  %v7734_v50 = vpop.f32.mrf.mxu0  ;;  %v9584_v60 = vld [vmem:[%s10949_s7 + $0xba4] ss:$8 sps:$4 sm:$0xff]   ;;  %v9590_v62 = vld [vmem:[%s10949_s7 + $0xb94] ss:$8 sps:$4 sm:$0xff]  }
 0x25f   : > { %v11386_v13 = vadd.f32 %v7773_v5, %v7733_v11  ;;  %8027 = vmatpush1.bf16.msra.mxu0 %v9507_v34  ;;  %v9579_v34 = vld [vmem:[%s10949_s7 + $0xaa0] ss:$8 sps:$4 sm:$0xff]   ;;  %v9593_v3 = vld [vmem:[%s10949_s7 + $0xa84] ss:$8 sps:$4 sm:$0xff]   ;;  %v9606_v11 = vld [vmem:[%s10949_s7 + $0xd74] ss:$8 sps:$4 sm:$0xff]   ;;  %v8432_v50 = vcombine.low %v11365_v57, %v11365_v57 }
 0x260   : > { %v7775_v12 = vpop.f32.mrf.mxu1  ;;  %v7735_v16 = vpop.f32.mrf.mxu0  ;;  %8028 = vmatprep.subr.bf16.mxu0 %v9515_v6  ;;  %v9596_v4 = vld [vmem:[%s10949_s7 + $0xb84] ss:$8 sps:$4 sm:$0xff]   ;;  %v9591_v5 = vld [vmem:[%s10949_s7 + $0xa80] ss:$8 sps:$4 sm:$0xff]  }
 0x261   : > { %8068 = vmatpush1.bf16.msra.mxu1 %v9510_v35  ;;  %v9582_v35 = vld [vmem:[%s10949_s7 + $0xba0] ss:$8 sps:$4 sm:$0xff]   ;;  %v8434_v12 = vcombine.low %v11370_v58, %v11370_v58  ;;  %v9601_v16 = vld [vmem:[%s10949_s7 + $0xc70] ss:$8 sps:$4 sm:$0xff]   ;;  %v9609_v57 = vld [vmem:[%s10949_s7 + $0xc64] ss:$8 sps:$4 sm:$0xff]  }
 0x262   : > { %v7776_v0 = vpop.f32.mrf.mxu1  ;;  %8069 = vmatprep.subr.bf16.mxu1 %v9518_v7  ;;  %v9594_v6 = vld [vmem:[%s10949_s7 + $0xb80] ss:$8 sps:$4 sm:$0xff]   ;;  %v9603_v7 = vld [vmem:[%s10949_s7 + $0xc74] ss:$8 sps:$4 sm:$0xff]   ;;  %v9612_v58 = vld [vmem:[%s10949_s7 + $0xd64] ss:$8 sps:$4 sm:$0xff]  }
 0x263   : > { %8029 = vmatpush1.bf16.msra.mxu0 %v9513_v14  ;;  %v11451_v14 = vld [vmem:[%s11643_s0 + $0x60] sm:$0xff]  ;;  %v9604_v0 = vld [vmem:[%s10949_s7 + $0xd70] ss:$8 sps:$4 sm:$0xff]  }
 0x264   : > { %8030 = vmatprep.subr.bf16.mxu0 %v9521_v55  ;;  %v8437_v55 = vcombine.high %v11451_v14, %v11451_v14 }
 0x265   : > { %8070 = vmatpush1.bf16.msra.mxu1 %v9516_v15  ;;  %v11456_v15 = vld [vmem:[%s11643_s0 + $0x68] sm:$0xff] }
 0x266   : > { %8071 = vmatprep.subr.bf16.mxu1 %v9524_v1  ;;  %v8439_v1 = vcombine.high %v11456_v15, %v11456_v15 }
 0x267   : > { %8031 = vmatpush1.bf16.msra.mxu0 %v9519_v17 }
 0x268   : > { %8032 = vmatprep.subr.bf16.mxu0 %v9527_v9 }
 0x269   : > { %8072 = vmatpush1.bf16.msra.mxu1 %v9522_v8 }
 0x26a   : > { %8073 = vmatprep.subr.bf16.mxu1 %v9530_v20  ;;  %v9607_v20 = vld [vmem:[%s10949_s7 + $0xc60] ss:$8 sps:$4 sm:$0xff]  }
 0x26b   : > { %8033 = vmatpush1.bf16.msra.mxu0 %v9525_v22  ;;  %v9610_v22 = vld [vmem:[%s10949_s7 + $0xd60] ss:$8 sps:$4 sm:$0xff]  }
 0x26c   : > { %8034 = vmatprep.subr.bf16.mxu0 %v9533_v25 }
 0x26d   : > { %8074 = vmatpush1.bf16.msra.mxu1 %v9528_v23 }
 0x26e   : > { %8075 = vmatprep.subr.bf16.mxu1 %v9536_v26  ;;  %v9615_v26 = vld [vmem:[%s10949_s7 + $0xc54] ss:$8 sps:$4 sm:$0xff]  }
 0x26f   : > { %8035 = vmatpush1.bf16.msra.mxu0 %v9531_v27  ;;  %v9618_v27 = vld [vmem:[%s10949_s7 + $0xd54] ss:$8 sps:$4 sm:$0xff]  }
 0x270   : > { %8036 = vmatprep.subr.bf16.mxu0 %v9539_v19 }
 0x271   : > { %8076 = vmatpush1.bf16.msra.mxu1 %v9534_v18 }
 0x272   : > { %8077 = vmatprep.subr.bf16.mxu1 %v9542_v28 }
 0x273   : > { %8037 = vmatpush1.bf16.msra.mxu0 %v9537_v29 }
 0x274   : > { %8038 = vmatprep.subr.bf16.mxu0 %v9545_v31  ;;  %v9616_v31 = vld [vmem:[%s10949_s7 + $0xd50] ss:$8 sps:$4 sm:$0xff]  }
 0x275   : > { %8078 = vmatpush1.bf16.msra.mxu1 %v9540_v30  ;;  %v9613_v30 = vld [vmem:[%s10949_s7 + $0xc50] ss:$8 sps:$4 sm:$0xff]  }
 0x276   : > { %8079 = vmatprep.subr.bf16.mxu1 %v9548_v32 }
 0x277   : > { %8039 = vmatpush1.bf16.msra.mxu0 %v9543_v33 }
 0x278   : > { %8040 = vmatprep.subr.bf16.mxu0 %v9551_v37  ;;  %v9619_v37 = vld [vmem:[%s10949_s7 + $0xc40] ss:$8 sps:$4 sm:$0xff]  }
 0x279   : > { %8080 = vmatpush1.bf16.msra.mxu1 %v9546_v36  ;;  %v9624_v36 = vld [vmem:[%s10949_s7 + $0xd44] ss:$8 sps:$4 sm:$0xff]  }
 0x27a   : > { %8081 = vmatprep.subr.bf16.mxu1 %v9554_v21  ;;  %v9622_v21 = vld [vmem:[%s10949_s7 + $0xd40] ss:$8 sps:$4 sm:$0xff]  }
 0x27b   : > { %8041 = vmatpush2.bf16.msra.mxu0 %v9549_v24  ;;  %v9627_v24 = vld [vmem:[%s10949_s7 + $0xc34] ss:$8 sps:$4 sm:$0xff]  }
 0x27c   : > { %8042 = vmatprep.subr.bf16.mxu0 %v9557_v39  ;;  %v9625_v39 = vld [vmem:[%s10949_s7 + $0xc30] ss:$8 sps:$4 sm:$0xff]  }
 0x27d   : > { %8082 = vmatpush2.bf16.msra.mxu1 %v9552_v38  ;;  %v9630_v38 = vld [vmem:[%s10949_s7 + $0xd34] ss:$8 sps:$4 sm:$0xff]  }
 0x27e   : > { %8083 = vmatprep.subr.bf16.mxu1 %v9560_v40  ;;  %v9628_v40 = vld [vmem:[%s10949_s7 + $0xd30] ss:$8 sps:$4 sm:$0xff]  }
 0x27f   : > { %8043 = vmatpush2.bf16.msra.mxu0 %v9555_v41  ;;  %v9633_v41 = vld [vmem:[%s10949_s7 + $0xc24] ss:$8 sps:$4 sm:$0xff]  }
 0x280   : > { %8044 = vmatprep.subr.bf16.mxu0 %v9563_v43  ;;  %v9631_v43 = vld [vmem:[%s10949_s7 + $0xc20] ss:$8 sps:$4 sm:$0xff]  }
 0x281   : > { %8084 = vmatpush2.bf16.msra.mxu1 %v9558_v42  ;;  %v9636_v42 = vld [vmem:[%s10949_s7 + $0xd24] ss:$8 sps:$4 sm:$0xff]  }
 0x282   : > { %8085 = vmatprep.subr.bf16.mxu1 %v9566_v44  ;;  %v9634_v44 = vld [vmem:[%s10949_s7 + $0xd20] ss:$8 sps:$4 sm:$0xff]  }
 0x283   : > { %8045 = vmatpush2.bf16.msra.mxu0 %v9561_v45  ;;  %v9639_v45 = vld [vmem:[%s10949_s7 + $0xc14] ss:$8 sps:$4 sm:$0xff]  }
 0x284   : > { %8046 = vmatprep.subr.bf16.mxu0 %v9569_v47  ;;  %v9637_v47 = vld [vmem:[%s10949_s7 + $0xc10] ss:$8 sps:$4 sm:$0xff]  }
 0x285   : > { %8086 = vmatpush2.bf16.msra.mxu1 %v9564_v46  ;;  %v9642_v46 = vld [vmem:[%s10949_s7 + $0xd14] ss:$8 sps:$4 sm:$0xff]  }
 0x286   : > { %8087 = vmatprep.subr.bf16.mxu1 %v9572_v48  ;;  %v9640_v48 = vld [vmem:[%s10949_s7 + $0xd10] ss:$8 sps:$4 sm:$0xff]  }
 0x287   : > { %8047 = vmatpush2.bf16.msra.mxu0 %v9567_v49  ;;  %v9645_v49 = vld [vmem:[%s10949_s7 + $0xc04] ss:$8 sps:$4 sm:$0xff]  }
 0x288   : > { %8048 = vmatprep.subr.bf16.mxu0 %v9575_v52  ;;  %v9643_v52 = vld [vmem:[%s10949_s7 + $0xc00] ss:$8 sps:$4 sm:$0xff]  }
 0x289   : > { %8088 = vmatpush2.bf16.msra.mxu1 %v9570_v51  ;;  %v9648_v51 = vld [vmem:[%s10949_s7 + $0xd04] ss:$8 sps:$4 sm:$0xff]  }
 0x28a   : > { %8089 = vmatprep.subr.bf16.mxu1 %v9578_v53  ;;  %v9646_v53 = vld [vmem:[%s10949_s7 + $0xd00] ss:$8 sps:$4 sm:$0xff]  }
 0x28b   : > { %8049 = vmatpush2.bf16.msra.mxu0 %v9573_v54  ;;  %v9651_v54 = vld [vmem:[%s10949_s7 + $0xcf4] ss:$8 sps:$4 sm:$0xff]  }
 0x28c   : > { %8050 = vmatprep.subr.bf16.mxu0 %v9581_v59  ;;  %v9649_v59 = vld [vmem:[%s10949_s7 + $0xcf0] ss:$8 sps:$4 sm:$0xff]  }
 0x28d   : > { %8090 = vmatpush2.bf16.msra.mxu1 %v9576_v56  ;;  %v9654_v56 = vld [vmem:[%s10949_s7 + $0xdf4] ss:$8 sps:$4 sm:$0xff]  }
 0x28e   : > { %8091 = vmatprep.subr.bf16.mxu1 %v9584_v60  ;;  %v9652_v60 = vld [vmem:[%s10949_s7 + $0xdf0] ss:$8 sps:$4 sm:$0xff]  }
 0x28f   : > { %8051 = vmatpush2.bf16.msra.mxu0 %v9579_v34  ;;  %v9657_v34 = vld [vmem:[%s10949_s7 + $0xce4] ss:$8 sps:$4 sm:$0xff]  }
 0x290   : > { %8052 = vmatprep.subr.bf16.mxu0 %v9587_v61  ;;  %v9655_v61 = vld [vmem:[%s10949_s7 + $0xce0] ss:$8 sps:$4 sm:$0xff]  }
 0x291   : > { %8092 = vmatpush2.bf16.msra.mxu1 %v9582_v35  ;;  %v9660_v35 = vld [vmem:[%s10949_s7 + $0xde4] ss:$8 sps:$4 sm:$0xff]  }
 0x292   : > { %8093 = vmatprep.subr.bf16.mxu1 %v9590_v62  ;;  %v9658_v62 = vld [vmem:[%s10949_s7 + $0xde0] ss:$8 sps:$4 sm:$0xff]  }
 0x293   : > { %8053 = vmatpush2.bf16.msra.mxu0 %v9585_v63  ;;  %v9663_v63 = vld [vmem:[%s10949_s7 + $0xcd4] ss:$8 sps:$4 sm:$0xff]  }
 0x294   : > { %8054 = vmatprep.subr.bf16.mxu0 %v9593_v3  ;;  %v9661_v3 = vld [vmem:[%s10949_s7 + $0xcd0] ss:$8 sps:$4 sm:$0xff]  }
 0x295   : > { %8094 = vmatpush2.bf16.msra.mxu1 %v9588_v2  ;;  %v9666_v2 = vld [vmem:[%s10949_s7 + $0xdd4] ss:$8 sps:$4 sm:$0xff]  }
 0x296   : > { %8095 = vmatprep.subr.bf16.mxu1 %v9596_v4  ;;  %v9664_v4 = vld [vmem:[%s10949_s7 + $0xdd0] ss:$8 sps:$4 sm:$0xff]  }
 0x297   : > { %8055 = vmatpush2.bf16.msra.mxu0 %v9591_v5  ;;  %v9669_v5 = vld [vmem:[%s10949_s7 + $0xcc4] ss:$8 sps:$4 sm:$0xff]  }
 0x298   : > { %8106 = vmatprep.subr.bf16.mxu0 %v9603_v7  ;;  %v9667_v7 = vld [vmem:[%s10949_s7 + $0xcc0] ss:$8 sps:$4 sm:$0xff]  }
 0x299   : > { %8096 = vmatpush2.bf16.msra.mxu1 %v9594_v6  ;;  %v9672_v6 = vld [vmem:[%s10949_s7 + $0xdc4] ss:$8 sps:$4 sm:$0xff]  }
 0x29a   : > { %8147 = vmatprep.subr.bf16.mxu1 %v9606_v11  ;;  %v7812_v17 = vpop.f32.mrf.mxu0  ;;  %8057 = vmatmul.mubr.bf16.vlgmr.msra.gmra.mxu0 %v8432_v50  ;;  %v9670_v11 = vld [vmem:[%s10949_s7 + $0xdc0] ss:$8 sps:$4 sm:$0xff]   ;;  %v9675_v50 = vld [vmem:[%s10949_s7 + $0xcb4] ss:$8 sps:$4 sm:$0xff]  }
 0x29b   : > { %v7813_v9 = vadd.f32 %v7812_v17, %v11383_v10  ;;  %8107 = vmatpush1.bf16.msra.mxu0 %v9601_v16  ;;  %8138 = vmatprep.mubr.bf16.mxu0 %v8437_v55  ;;  %v9673_v16 = vld [vmem:[%s10949_s7 + $0xcb0] ss:$8 sps:$4 sm:$0xff]   ;;  %v9679_v55 = vld [vmem:[%s10949_s7 + $0xca0] ss:$8 sps:$4 sm:$0xff]   ;;  %v9687_v17 = vld [vmem:[%s10949_s7 + $0xc94] ss:$8 sps:$4 sm:$0xff]  }
 0x29c   : > { %v7853_v8 = vpop.f32.mrf.mxu1  ;;  %8098 = vmatmul.mubr.bf16.vlgmr.msra.gmra.mxu1 %v8434_v12  ;;  %v7814_v23 = vpop.f32.mrf.mxu0  ;;  %8108 = vmatprep.subr.bf16.mxu0 %v9609_v57  ;;  %v9678_v12 = vld [vmem:[%s10949_s7 + $0xdb4] ss:$8 sps:$4 sm:$0xff]   ;;  %v9681_v57 = vld [vmem:[%s10949_s7 + $0xca4] ss:$8 sps:$4 sm:$0xff]  }
 0x29d   : > { %8148 = vmatpush1.bf16.msra.mxu1 %v9604_v0  ;;  %v11471_v18 = vadd.f32 %v7853_v8, %v7813_v9  ;;  %v7815_v19 = vadd.f32 %v7814_v23, %v11386_v13  ;;  %8179 = vmatprep.mubr.bf16.mxu1 %v8439_v1  ;;  %v9621_v13 = vld [vmem:[%s10949_s7 + $0xc44] ss:$8 sps:$4 sm:$0xff]   ;;  %v9676_v0 = vld [vmem:[%s10949_s7 + $0xdb0] ss:$8 sps:$4 sm:$0xff]   ;;  %v9682_v1 = vld [vmem:[%s10949_s7 + $0xda0] ss:$8 sps:$4 sm:$0xff]  }
 0x29e   : > { %v7855_v25 = vpop.f32.mrf.mxu1  ;;  %8149 = vmatprep.subr.bf16.mxu1 %v9612_v58  ;;  %v7816_v10 = vpop.f32.mrf.mxu0  ;;  %v9684_v58 = vld [vmem:[%s10949_s7 + $0xda4] ss:$8 sps:$4 sm:$0xff]   ;;  %v9690_v8 = vld [vmem:[%s10949_s7 + $0xd94] ss:$8 sps:$4 sm:$0xff]   ;;  %v9685_v9 = vld [vmem:[%s10949_s7 + $0xc90] ss:$8 sps:$4 sm:$0xff]  }
 0x29f   : > { %v11474_v29 = vadd.f32 %v7855_v25, %v7815_v19  ;;  %8109 = vmatpush1.bf16.msra.mxu0 %v9607_v20  ;;  %v9688_v20 = vld [vmem:[%s10949_s7 + $0xd90] ss:$8 sps:$4 sm:$0xff]   ;;  %v9696_v23 = vld [vmem:[%s10949_s7 + $0xd84] ss:$8 sps:$4 sm:$0xff]   ;;  %v9691_v25 = vld [vmem:[%s10949_s7 + $0xc80] ss:$8 sps:$4 sm:$0xff]   ;;  %v8436_v10 = vcombine.low %v11451_v14, %v11451_v14 }
 0x2a0   : > { %v7857_v28 = vpop.f32.mrf.mxu1  ;;  %v7817_v32 = vpop.f32.mrf.mxu0  ;;  %8110 = vmatprep.subr.bf16.mxu0 %v9615_v26  ;;  %v9694_v26 = vld [vmem:[%s10949_s7 + $0xd80] ss:$8 sps:$4 sm:$0xff]   ;;  %v9706_v19 = vld [vmem:[%s10949_s7 + $0xf74] ss:$8 sps:$4 sm:$0xff]   ;;  %v9709_v14 = vld [vmem:[%s10949_s7 + $0xe64] ss:$8 sps:$4 sm:$0xff]  }
 0x2a1   : > { %8150 = vmatpush1.bf16.msra.mxu1 %v9610_v22  ;;  %v9693_v22 = vld [vmem:[%s10949_s7 + $0xc84] ss:$8 sps:$4 sm:$0xff]   ;;  %v8438_v28 = vcombine.low %v11456_v15, %v11456_v15  ;;  %v9701_v32 = vld [vmem:[%s10949_s7 + $0xe70] ss:$8 sps:$4 sm:$0xff]  }
 0x2a2   : > { %v7858_v33 = vpop.f32.mrf.mxu1  ;;  %8151 = vmatprep.subr.bf16.mxu1 %v9618_v27  ;;  %v9703_v27 = vld [vmem:[%s10949_s7 + $0xe74] ss:$8 sps:$4 sm:$0xff]   ;;  %v9712_v15 = vld [vmem:[%s10949_s7 + $0xf64] ss:$8 sps:$4 sm:$0xff]  }
 0x2a3   : > { %8111 = vmatpush1.bf16.msra.mxu0 %v9613_v30  ;;  %v11539_v30 = vld [vmem:[%s11643_s0 + $0x70] sm:$0xff] }
 0x2a4   : > { %8112 = vmatprep.subr.bf16.mxu0 %v9621_v13  ;;  %v9704_v33 = vld [vmem:[%s10949_s7 + $0xf70] ss:$8 sps:$4 sm:$0xff]   ;;  %v8441_v13 = vcombine.high %v11539_v30, %v11539_v30 }
 0x2a5   : > { %8152 = vmatpush1.bf16.msra.mxu1 %v9616_v31  ;;  %v11544_v31 = vld [vmem:[%s11643_s0 + $0x78] sm:$0xff] }
 0x2a6   : > { %8153 = vmatprep.subr.bf16.mxu1 %v9624_v36  ;;  %v8443_v36 = vcombine.high %v11544_v31, %v11544_v31 }
 0x2a7   : > { %8113 = vmatpush1.bf16.msra.mxu0 %v9619_v37 }
 0x2a8   : > { %8114 = vmatprep.subr.bf16.mxu0 %v9627_v24 }
 0x2a9   : > { %8154 = vmatpush1.bf16.msra.mxu1 %v9622_v21 }
 0x2aa   : > { %8155 = vmatprep.subr.bf16.mxu1 %v9630_v38  ;;  %v9707_v38 = vld [vmem:[%s10949_s7 + $0xe60] ss:$8 sps:$4 sm:$0xff]  }
 0x2ab   : > { %8115 = vmatpush1.bf16.msra.mxu0 %v9625_v39  ;;  %v9710_v39 = vld [vmem:[%s10949_s7 + $0xf60] ss:$8 sps:$4 sm:$0xff]  }
 0x2ac   : > { %8116 = vmatprep.subr.bf16.mxu0 %v9633_v41 }
 0x2ad   : > { %8156 = vmatpush1.bf16.msra.mxu1 %v9628_v40 }
 0x2ae   : > { %8157 = vmatprep.subr.bf16.mxu1 %v9636_v42  ;;  %v9715_v42 = vld [vmem:[%s10949_s7 + $0xe54] ss:$8 sps:$4 sm:$0xff]  }
 0x2af   : > { %8117 = vmatpush1.bf16.msra.mxu0 %v9631_v43  ;;  %v9718_v43 = vld [vmem:[%s10949_s7 + $0xf54] ss:$8 sps:$4 sm:$0xff]  }
 0x2b0   : > { %8118 = vmatprep.subr.bf16.mxu0 %v9639_v45 }
 0x2b1   : > { %8158 = vmatpush1.bf16.msra.mxu1 %v9634_v44 }
 0x2b2   : > { %8159 = vmatprep.subr.bf16.mxu1 %v9642_v46 }
 0x2b3   : > { %8119 = vmatpush1.bf16.msra.mxu0 %v9637_v47 }
 0x2b4   : > { %8120 = vmatprep.subr.bf16.mxu0 %v9645_v49  ;;  %v9716_v49 = vld [vmem:[%s10949_s7 + $0xf50] ss:$8 sps:$4 sm:$0xff]  }
 0x2b5   : > { %8160 = vmatpush1.bf16.msra.mxu1 %v9640_v48  ;;  %v9713_v48 = vld [vmem:[%s10949_s7 + $0xe50] ss:$8 sps:$4 sm:$0xff]  }
 0x2b6   : > { %8161 = vmatprep.subr.bf16.mxu1 %v9648_v51 }
 0x2b7   : > { %8121 = vmatpush1.bf16.msra.mxu0 %v9643_v52 }
 0x2b8   : > { %8122 = vmatprep.subr.bf16.mxu0 %v9651_v54  ;;  %v9719_v54 = vld [vmem:[%s10949_s7 + $0xe40] ss:$8 sps:$4 sm:$0xff]  }
 0x2b9   : > { %8162 = vmatpush1.bf16.msra.mxu1 %v9646_v53  ;;  %v9724_v53 = vld [vmem:[%s10949_s7 + $0xf44] ss:$8 sps:$4 sm:$0xff]  }
 0x2ba   : > { %8163 = vmatprep.subr.bf16.mxu1 %v9654_v56  ;;  %v9722_v56 = vld [vmem:[%s10949_s7 + $0xf40] ss:$8 sps:$4 sm:$0xff]  }
 0x2bb   : > { %8123 = vmatpush2.bf16.msra.mxu0 %v9649_v59  ;;  %v9727_v59 = vld [vmem:[%s10949_s7 + $0xe34] ss:$8 sps:$4 sm:$0xff]  }
 0x2bc   : > { %8124 = vmatprep.subr.bf16.mxu0 %v9657_v34  ;;  %v9725_v34 = vld [vmem:[%s10949_s7 + $0xe30] ss:$8 sps:$4 sm:$0xff]  }
 0x2bd   : > { %8164 = vmatpush2.bf16.msra.mxu1 %v9652_v60  ;;  %v9730_v60 = vld [vmem:[%s10949_s7 + $0xf34] ss:$8 sps:$4 sm:$0xff]  }
 0x2be   : > { %8165 = vmatprep.subr.bf16.mxu1 %v9660_v35  ;;  %v9728_v35 = vld [vmem:[%s10949_s7 + $0xf30] ss:$8 sps:$4 sm:$0xff]  }
 0x2bf   : > { %8125 = vmatpush2.bf16.msra.mxu0 %v9655_v61  ;;  %v9733_v61 = vld [vmem:[%s10949_s7 + $0xe24] ss:$8 sps:$4 sm:$0xff]  }
 0x2c0   : > { %8126 = vmatprep.subr.bf16.mxu0 %v9663_v63  ;;  %v9731_v63 = vld [vmem:[%s10949_s7 + $0xe20] ss:$8 sps:$4 sm:$0xff]  }
 0x2c1   : > { %8166 = vmatpush2.bf16.msra.mxu1 %v9658_v62  ;;  %v9736_v62 = vld [vmem:[%s10949_s7 + $0xf24] ss:$8 sps:$4 sm:$0xff]  }
 0x2c2   : > { %8167 = vmatprep.subr.bf16.mxu1 %v9666_v2  ;;  %v9734_v2 = vld [vmem:[%s10949_s7 + $0xf20] ss:$8 sps:$4 sm:$0xff]  }
 0x2c3   : > { %8127 = vmatpush2.bf16.msra.mxu0 %v9661_v3  ;;  %v9739_v3 = vld [vmem:[%s10949_s7 + $0xe14] ss:$8 sps:$4 sm:$0xff]  }
 0x2c4   : > { %8128 = vmatprep.subr.bf16.mxu0 %v9669_v5  ;;  %v9737_v5 = vld [vmem:[%s10949_s7 + $0xe10] ss:$8 sps:$4 sm:$0xff]  }
 0x2c5   : > { %8168 = vmatpush2.bf16.msra.mxu1 %v9664_v4  ;;  %v9742_v4 = vld [vmem:[%s10949_s7 + $0xf14] ss:$8 sps:$4 sm:$0xff]  }
 0x2c6   : > { %8169 = vmatprep.subr.bf16.mxu1 %v9672_v6  ;;  %v9740_v6 = vld [vmem:[%s10949_s7 + $0xf10] ss:$8 sps:$4 sm:$0xff]  }
 0x2c7   : > { %8129 = vmatpush2.bf16.msra.mxu0 %v9667_v7  ;;  %v9745_v7 = vld [vmem:[%s10949_s7 + $0xe04] ss:$8 sps:$4 sm:$0xff]  }
 0x2c8   : > { %8130 = vmatprep.subr.bf16.mxu0 %v9675_v50  ;;  %v9743_v50 = vld [vmem:[%s10949_s7 + $0xe00] ss:$8 sps:$4 sm:$0xff]  }
 0x2c9   : > { %8170 = vmatpush2.bf16.msra.mxu1 %v9670_v11  ;;  %v9748_v11 = vld [vmem:[%s10949_s7 + $0xf04] ss:$8 sps:$4 sm:$0xff]  }
 0x2ca   : > { %8171 = vmatprep.subr.bf16.mxu1 %v9678_v12  ;;  %v9746_v12 = vld [vmem:[%s10949_s7 + $0xf00] ss:$8 sps:$4 sm:$0xff]  }
 0x2cb   : > { %8131 = vmatpush2.bf16.msra.mxu0 %v9673_v16  ;;  %v9751_v16 = vld [vmem:[%s10949_s7 + $0xef4] ss:$8 sps:$4 sm:$0xff]  }
 0x2cc   : > { %8132 = vmatprep.subr.bf16.mxu0 %v9681_v57  ;;  %v9749_v57 = vld [vmem:[%s10949_s7 + $0xef0] ss:$8 sps:$4 sm:$0xff]  }
 0x2cd   : > { %8172 = vmatpush2.bf16.msra.mxu1 %v9676_v0  ;;  %v9754_v0 = vld [vmem:[%s10949_s7 + $0xff4] ss:$8 sps:$4 sm:$0xff]  }
 0x2ce   : > { %8173 = vmatprep.subr.bf16.mxu1 %v9684_v58  ;;  %v9752_v58 = vld [vmem:[%s10949_s7 + $0xff0] ss:$8 sps:$4 sm:$0xff]  }
 0x2cf   : > { %8133 = vmatpush2.bf16.msra.mxu0 %v9679_v55  ;;  %v9757_v55 = vld [vmem:[%s10949_s7 + $0xee4] ss:$8 sps:$4 sm:$0xff]  }
 0x2d0   : > { %8134 = vmatprep.subr.bf16.mxu0 %v9687_v17  ;;  %v9755_v17 = vld [vmem:[%s10949_s7 + $0xee0] ss:$8 sps:$4 sm:$0xff]  }
 0x2d1   : > { %8174 = vmatpush2.bf16.msra.mxu1 %v9682_v1  ;;  %v9760_v1 = vld [vmem:[%s10949_s7 + $0xfe4] ss:$8 sps:$4 sm:$0xff]  }
 0x2d2   : > { %8175 = vmatprep.subr.bf16.mxu1 %v9690_v8  ;;  %v9758_v8 = vld [vmem:[%s10949_s7 + $0xfe0] ss:$8 sps:$4 sm:$0xff]  }
 0x2d3   : > { %8135 = vmatpush2.bf16.msra.mxu0 %v9685_v9  ;;  %v9763_v9 = vld [vmem:[%s10949_s7 + $0xed4] ss:$8 sps:$4 sm:$0xff]  }
 0x2d4   : > { %8136 = vmatprep.subr.bf16.mxu0 %v9693_v22  ;;  %v9761_v22 = vld [vmem:[%s10949_s7 + $0xed0] ss:$8 sps:$4 sm:$0xff]  }
 0x2d5   : > { %8176 = vmatpush2.bf16.msra.mxu1 %v9688_v20  ;;  %v9766_v20 = vld [vmem:[%s10949_s7 + $0xfd4] ss:$8 sps:$4 sm:$0xff]  }
 0x2d6   : > { %8177 = vmatprep.subr.bf16.mxu1 %v9696_v23  ;;  %v9764_v23 = vld [vmem:[%s10949_s7 + $0xfd0] ss:$8 sps:$4 sm:$0xff]  }
 0x2d7   : > { %8137 = vmatpush2.bf16.msra.mxu0 %v9691_v25  ;;  %v9769_v25 = vld [vmem:[%s10949_s7 + $0xec4] ss:$8 sps:$4 sm:$0xff]  }
 0x2d8   : > { %8188 = vmatprep.subr.bf16.mxu0 %v9703_v27  ;;  %v9767_v27 = vld [vmem:[%s10949_s7 + $0xec0] ss:$8 sps:$4 sm:$0xff]  }
 0x2d9   : > { %8178 = vmatpush2.bf16.msra.mxu1 %v9694_v26  ;;  %v9772_v26 = vld [vmem:[%s10949_s7 + $0xfc4] ss:$8 sps:$4 sm:$0xff]  }
 0x2da   : > { %8229 = vmatprep.subr.bf16.mxu1 %v9706_v19  ;;  %v7894_v37 = vpop.f32.mrf.mxu0  ;;  %8139 = vmatmul.mubr.bf16.vlgmr.msra.gmra.mxu0 %v8436_v10  ;;  %v9770_v19 = vld [vmem:[%s10949_s7 + $0xfc0] ss:$8 sps:$4 sm:$0xff]   ;;  %v9775_v10 = vld [vmem:[%s10949_s7 + $0xeb4] ss:$8 sps:$4 sm:$0xff]  }
 0x2db   : > { %v7895_v24 = vadd.f32 %v7894_v37, %v11471_v18  ;;  %8189 = vmatpush1.bf16.msra.mxu0 %v9701_v32  ;;  %8220 = vmatprep.mubr.bf16.mxu0 %v8441_v13  ;;  %v9773_v32 = vld [vmem:[%s10949_s7 + $0xeb0] ss:$8 sps:$4 sm:$0xff]   ;;  %v9779_v13 = vld [vmem:[%s10949_s7 + $0xea0] ss:$8 sps:$4 sm:$0xff]   ;;  %v9787_v37 = vld [vmem:[%s10949_s7 + $0xe94] ss:$8 sps:$4 sm:$0xff]  }
 0x2dc   : > { %v7935_v21 = vpop.f32.mrf.mxu1  ;;  %8180 = vmatmul.mubr.bf16.vlgmr.msra.gmra.mxu1 %v8438_v28  ;;  %v7896_v40 = vpop.f32.mrf.mxu0  ;;  %8190 = vmatprep.subr.bf16.mxu0 %v9709_v14  ;;  %v9778_v28 = vld [vmem:[%s10949_s7 + $0xfb4] ss:$8 sps:$4 sm:$0xff]   ;;  %v9781_v14 = vld [vmem:[%s10949_s7 + $0xea4] ss:$8 sps:$4 sm:$0xff]  }
 0x2dd   : > { %8230 = vmatpush1.bf16.msra.mxu1 %v9704_v33  ;;  %v11559_v44 = vadd.f32 %v7935_v21, %v7895_v24  ;;  %v7897_v45 = vadd.f32 %v7896_v40, %v11474_v29  ;;  %8261 = vmatprep.mubr.bf16.mxu1 %v8443_v36  ;;  %v9721_v29 = vld [vmem:[%s10949_s7 + $0xe44] ss:$8 sps:$4 sm:$0xff]   ;;  %v9776_v33 = vld [vmem:[%s10949_s7 + $0xfb0] ss:$8 sps:$4 sm:$0xff]   ;;  %v9782_v36 = vld [vmem:[%s10949_s7 + $0xfa0] ss:$8 sps:$4 sm:$0xff]  }
 0x2de   : > { %v7937_v41 = vpop.f32.mrf.mxu1  ;;  %8231 = vmatprep.subr.bf16.mxu1 %v9712_v15  ;;  %v7898_v18 = vpop.f32.mrf.mxu0  ;;  %v9784_v15 = vld [vmem:[%s10949_s7 + $0xfa4] ss:$8 sps:$4 sm:$0xff]   ;;  %v9790_v21 = vld [vmem:[%s10949_s7 + $0xf94] ss:$8 sps:$4 sm:$0xff]   ;;  %v9785_v24 = vld [vmem:[%s10949_s7 + $0xe90] ss:$8 sps:$4 sm:$0xff]  }
 0x2df   : > { %v11562_v47 = vadd.f32 %v7937_v41, %v7897_v45  ;;  %8191 = vmatpush1.bf16.msra.mxu0 %v9707_v38  ;;  %v9788_v38 = vld [vmem:[%s10949_s7 + $0xf90] ss:$8 sps:$4 sm:$0xff]   ;;  %v9796_v40 = vld [vmem:[%s10949_s7 + $0xf84] ss:$8 sps:$4 sm:$0xff]   ;;  %v9791_v41 = vld [vmem:[%s10949_s7 + $0xe80] ss:$8 sps:$4 sm:$0xff]   ;;  %v8442_v45 = vcombine.low %v11544_v31, %v11544_v31 }
 0x2e0   : > { %v7939_v46 = vpop.f32.mrf.mxu1  ;;  %v7899_v51 = vpop.f32.mrf.mxu0  ;;  %8192 = vmatprep.subr.bf16.mxu0 %v9715_v42  ;;  %v9794_v42 = vld [vmem:[%s10949_s7 + $0xf80] ss:$8 sps:$4 sm:$0xff]  }
 0x2e1   : > { %8232 = vmatpush1.bf16.msra.mxu1 %v9710_v39  ;;  %v9793_v39 = vld [vmem:[%s10949_s7 + $0xe84] ss:$8 sps:$4 sm:$0xff]   ;;  %s8411_s7 = sshll.u32 %s11654_s26, 2 }
 0x2e2   : > { %v7940_v52 = vpop.f32.mrf.mxu1  ;;  %8233 = vmatprep.subr.bf16.mxu1 %v9718_v43  ;;  %v8440_v43 = vcombine.low %v11539_v30, %v11539_v30  ;;  %s4400_s27 = scalar_lea.vmem %s11646_s3, %s8411_s7 }
 0x2e3   : > { %8193 = vmatpush1.bf16.msra.mxu0 %v9713_v48 }
 0x2e4   : > { %8194 = vmatprep.subr.bf16.mxu0 %v9721_v29 }
 0x2e5   : > { %8234 = vmatpush1.bf16.msra.mxu1 %v9716_v49 }
 0x2e6   : > { %8235 = vmatprep.subr.bf16.mxu1 %v9724_v53 }
 0x2e7   : > { %8195 = vmatpush1.bf16.msra.mxu0 %v9719_v54 }
 0x2e8   : > { %8196 = vmatprep.subr.bf16.mxu0 %v9727_v59 }
 0x2e9   : > { %8236 = vmatpush1.bf16.msra.mxu1 %v9722_v56 }
 0x2ea   : > { %8237 = vmatprep.subr.bf16.mxu1 %v9730_v60 }
 0x2eb   : > { %8197 = vmatpush1.bf16.msra.mxu0 %v9725_v34 }
 0x2ec   : > { %8198 = vmatprep.subr.bf16.mxu0 %v9733_v61 }
 0x2ed   : > { %8238 = vmatpush1.bf16.msra.mxu1 %v9728_v35 }
 0x2ee   : > { %8239 = vmatprep.subr.bf16.mxu1 %v9736_v62 }
 0x2ef   : > { %8199 = vmatpush1.bf16.msra.mxu0 %v9731_v63 }
 0x2f0   : > { %8200 = vmatprep.subr.bf16.mxu0 %v9739_v3 }
 0x2f1   : > { %8240 = vmatpush1.bf16.msra.mxu1 %v9734_v2 }
 0x2f2   : > { %8241 = vmatprep.subr.bf16.mxu1 %v9742_v4 }
 0x2f3   : > { %8201 = vmatpush1.bf16.msra.mxu0 %v9737_v5 }
 0x2f4   : > { %8202 = vmatprep.subr.bf16.mxu0 %v9745_v7 }
 0x2f5   : > { %8242 = vmatpush1.bf16.msra.mxu1 %v9740_v6 }
 0x2f6   : > { %8243 = vmatprep.subr.bf16.mxu1 %v9748_v11 }
 0x2f7   : > { %8203 = vmatpush1.bf16.msra.mxu0 %v9743_v50 }
 0x2f8   : > { %8204 = vmatprep.subr.bf16.mxu0 %v9751_v16 }
 0x2f9   : > { %8244 = vmatpush1.bf16.msra.mxu1 %v9746_v12 }
 0x2fa   : > { %8245 = vmatprep.subr.bf16.mxu1 %v9754_v0 }
 0x2fb   : > { %8205 = vmatpush2.bf16.msra.mxu0 %v9749_v57 }
 0x2fc   : > { %8206 = vmatprep.subr.bf16.mxu0 %v9757_v55 }
 0x2fd   : > { %8246 = vmatpush2.bf16.msra.mxu1 %v9752_v58 }
 0x2fe   : > { %8247 = vmatprep.subr.bf16.mxu1 %v9760_v1 }
 0x2ff   : > { %8207 = vmatpush2.bf16.msra.mxu0 %v9755_v17 }
 0x300   : > { %8208 = vmatprep.subr.bf16.mxu0 %v9763_v9 }
 0x301   : > { %8248 = vmatpush2.bf16.msra.mxu1 %v9758_v8 }
 0x302   : > { %8249 = vmatprep.subr.bf16.mxu1 %v9766_v20 }
 0x303   : > { %8209 = vmatpush2.bf16.msra.mxu0 %v9761_v22 }
 0x304   : > { %8210 = vmatprep.subr.bf16.mxu0 %v9769_v25 }
 0x305   : > { %8250 = vmatpush2.bf16.msra.mxu1 %v9764_v23 }
 0x306   : > { %8251 = vmatprep.subr.bf16.mxu1 %v9772_v26 }
 0x307   : > { %8211 = vmatpush2.bf16.msra.mxu0 %v9767_v27 }
 0x308   : > { %8212 = vmatprep.subr.bf16.mxu0 %v9775_v10 }
 0x309   : > { %8252 = vmatpush2.bf16.msra.mxu1 %v9770_v19 }
 0x30a   : > { %8253 = vmatprep.subr.bf16.mxu1 %v9778_v28 }
 0x30b   : > { %8213 = vmatpush2.bf16.msra.mxu0 %v9773_v32 }
 0x30c   : > { %8214 = vmatprep.subr.bf16.mxu0 %v9781_v14 }
 0x30d   : > { %8254 = vmatpush2.bf16.msra.mxu1 %v9776_v33 }
 0x30e   : > { %8255 = vmatprep.subr.bf16.mxu1 %v9784_v15 }
 0x30f   : > { %8215 = vmatpush2.bf16.msra.mxu0 %v9779_v13 }
 0x310   : > { %8216 = vmatprep.subr.bf16.mxu0 %v9787_v37 }
 0x311   : > { %8256 = vmatpush2.bf16.msra.mxu1 %v9782_v36 }
 0x312   : > { %8257 = vmatprep.subr.bf16.mxu1 %v9790_v21 }
 0x313   : > { %8217 = vmatpush2.bf16.msra.mxu0 %v9785_v24 }
 0x314   : > { %8218 = vmatprep.subr.bf16.mxu0 %v9793_v39 }
 0x315   : > { %8258 = vmatpush2.bf16.msra.mxu1 %v9788_v38 }
 0x316   : > { %8259 = vmatprep.subr.bf16.mxu1 %v9796_v40 }
 0x317   : > { %8219 = vmatpush2.bf16.msra.mxu0 %v9791_v41 }
 0x319   : > { %8260 = vmatpush2.bf16.msra.mxu1 %v9794_v42 }
 0x31a   : > { %v7976_v18 = vpop.f32.mrf.mxu0  ;;  %8221 = vmatmul.mubr.bf16.vlgmr.msra.gmra.mxu0 %v8440_v43 }
 0x31b   : > { %v7977_v48 = vadd.f32 %v7976_v18, %v11559_v44 }
 0x31c   : > { %v8017_v46 = vpop.f32.mrf.mxu1  ;;  %8262 = vmatmul.mubr.bf16.vlgmr.msra.gmra.mxu1 %v8442_v45  ;;  %v7978_v49 = vpop.f32.mrf.mxu0 }
 0x31d   : > { %v8018_v52 = vadd.f32 %v8017_v46, %v7977_v48  ;;  %v7979_v29 = vadd.f32 %v7978_v49, %v11562_v47 }
 0x31e   : > { %v8019_v51 = vpop.f32.mrf.mxu1  ;;  %v7980_v53 = vpop.f32.mrf.mxu0 }
 0x31f   : > { %v8020_v56 = vadd.f32 %v8019_v51, %v7979_v29 }
 0x320   : > { %v8021_v54 = vpop.f32.mrf.mxu1  ;;  %v7981_v30 = vpop.f32.mrf.mxu0 }
 0x322   : > { %v8022_v59 = vpop.f32.mrf.mxu1 }
 0x35a   : > { %v8058_v60 = vpop.f32.mrf.mxu0 }
 0x35b   : > { %v8059_v34 = vadd.f32 %v8058_v60, %v8018_v52 }
 0x35c   : > { %v8099_v31 = vpop.f32.mrf.mxu1  ;;  %v8060_v35 = vpop.f32.mrf.mxu0 }
 0x35d   : > { %v8100_v62 = vadd.f32 %v8099_v31, %v8059_v34  ;;  %v8061_v63 = vadd.f32 %v8060_v35, %v8020_v56 }
 0x35e   : > { %v8101_v61 = vpop.f32.mrf.mxu1  ;;  %v8062_v2 = vpop.f32.mrf.mxu0 }
 0x35f   : > { %v8102_v44 = vadd.f32 %v8101_v61, %v8061_v63 }
 0x360   : > { %v8103_v3 = vpop.f32.mrf.mxu1  ;;  %v8063_v4 = vpop.f32.mrf.mxu0 }
 0x362   : > { %v8104_v5 = vpop.f32.mrf.mxu1 }
 0x39a   : > { %v8140_v6 = vpop.f32.mrf.mxu0 }
 0x39b   : > { %v8141_v47 = vadd.f32 %v8140_v6, %v8100_v62 }
 0x39c   : > { %v8181_v7 = vpop.f32.mrf.mxu1  ;;  %v8142_v11 = vpop.f32.mrf.mxu0 }
 0x39d   : > { %v8182_v12 = vadd.f32 %v8181_v7, %v8141_v47  ;;  %v8143_v55 = vadd.f32 %v8142_v11, %v8102_v44 }
 0x39e   : > { %v8183_v50 = vpop.f32.mrf.mxu1  ;;  %v8144_v16 = vpop.f32.mrf.mxu0 }
 0x39f   : > { %v8184_v8 = vadd.f32 %v8183_v50, %v8143_v55 }
 0x3a0   : > { %v8185_v0 = vpop.f32.mrf.mxu1  ;;  %v8145_v57 = vpop.f32.mrf.mxu0 }
 0x3a2   : > { %v8186_v58 = vpop.f32.mrf.mxu1 }
 0x3da   : > { %v8222_v1 = vpop.f32.mrf.mxu0 }
 0x3db   : > { %v8223_v9 = vadd.f32 %v8222_v1, %v8182_v12 }
 0x3dc   : > { %v8263_v17 = vpop.f32.mrf.mxu1  ;;  %v8224_v20 = vpop.f32.mrf.mxu0 }
 0x3dd   : > { %v8225_v23 = vadd.f32 %v8224_v20, %v8184_v8  ;;  %v8264_v27 = vadd.f32 %v8263_v17, %v8223_v9 }
 0x3de   : > { %v8265_v22 = vpop.f32.mrf.mxu1  ;;  %v8226_v25 = vpop.f32.mrf.mxu0 }
 0x3df   : > { %v8266_v19 = vadd.f32 %v8265_v22, %v8225_v23 }
 0x3e0   : > { %v8267_v26 = vpop.f32.mrf.mxu1  ;;  %v8227_v10 = vpop.f32.mrf.mxu0 }
 0x3e1   : > { %v8960_v32 = vpack.c.bf16 %v8266_v19, %v8264_v27 }
 0x3e2   : > { %v8268_v28 = vpop.f32.mrf.mxu1 }
 0x3e3   : > { %8278 = vst [vmem:[%s4400_s27] sm:$0xff] %v8960_v32 }
 0x3e4 PF: > { %s13_s16 = sadd.s32 1, %s9839_s16   ;;  %s11647_s12 = smov %s9827_s13 }
 0x3e5   : > { %p10_p10 = scmp.ge.s32.totalorder %s13_s16, 4   ;;  %s11648_s13 = smov %s9896_s20 }
 0x3e6   : > { %s11649_s14 = smov %s9835_s15  ;;  %s11650_s15 = smov %s11652_s17 }
 0x3e7   :  { %12 = sbr.rel (!%p10_p10) target bundleno = 3 (0x3), region = 131 }

// kernel: discriminator_global.15
= control target key start
LH: loop header
LB: loop body
LE: loop exit
PB: predicated region body
PF: predicated region fallthrough
CT: control target
= control target key end

     0   :  { %s9201_s1 = inlined_call_operand.vmem [shape: bf16[8192,128], index: 1, kind: input, shape index: {}]   ;;  %s9202_s0 = inlined_call_operand.vmem [shape: bf16[8,8192], index: 0, kind: input, shape index: {}]   ;;  %s9203_s2 = inlined_call_operand.vmem [shape: f32[1,128], index: 2, kind: input, shape index: {}]   ;;  %s9204_s3 = inlined_call_operand.vmem [shape: f32[8,128], index: 3, kind: output, shape index: {}]  }
   0x1   :  { %v6940_v0 = vld [vmem:[%s9201_s1 + $0x78] sm:$0xff]   ;;  %v6944_v4 = vld [vmem:[%s9201_s1 + $0x70] sm:$0xff]   ;;  %v6948_v8 = vld [vmem:[%s9201_s1 + $0x68] sm:$0xff]  }
   0x2   :  { %v6941_v1 = vld [vmem:[%s9201_s1 + $0xf8] sm:$0xff]   ;;  %6236 = vmatprep.subr.bf16.mxu0 %v6940_v0  ;;  %v6945_v5 = vld [vmem:[%s9201_s1 + $0xf0] sm:$0xff]   ;;  %v6949_v9 = vld [vmem:[%s9201_s1 + $0xe8] sm:$0xff]  }
   0x3   :  { %v6942_v2 = vld [vmem:[%s9201_s1 + $0x38] sm:$0xff]   ;;  %6258 = vmatprep.subr.bf16.mxu1 %v6941_v1  ;;  %v6946_v6 = vld [vmem:[%s9201_s1 + $0x30] sm:$0xff]   ;;  %v6950_v10 = vld [vmem:[%s9201_s1 + $0x28] sm:$0xff]  }
   0x4   :  { %v6943_v3 = vld [vmem:[%s9201_s1 + $0xb8] sm:$0xff]   ;;  %6237 = vmatpush3.bf16.msra.mxu0 %v6942_v2  ;;  %v6947_v7 = vld [vmem:[%s9201_s1 + $0xb0] sm:$0xff]   ;;  %v6951_v11 = vld [vmem:[%s9201_s1 + $0xa8] sm:$0xff]  }
   0x5   :  { %6259 = vmatpush3.bf16.msra.mxu1 %v6943_v3  ;;  %6238 = vmatprep.subr.bf16.mxu0 %v6944_v4  ;;  %v6952_v12 = vld [vmem:[%s9201_s1 + $0x60] sm:$0xff]   ;;  %v6956_v16 = vld [vmem:[%s9201_s1 + $0x58] sm:$0xff]   ;;  %v6960_v20 = vld [vmem:[%s9201_s1 + $0x50] sm:$0xff]  }
   0x6   :  { %6260 = vmatprep.subr.bf16.mxu1 %v6945_v5  ;;  %v6953_v13 = vld [vmem:[%s9201_s1 + $0xe0] sm:$0xff]   ;;  %v6957_v17 = vld [vmem:[%s9201_s1 + $0xd8] sm:$0xff]   ;;  %v6961_v21 = vld [vmem:[%s9201_s1 + $0xd0] sm:$0xff]  }
   0x7   :  { %v6954_v14 = vld [vmem:[%s9201_s1 + $0x20] sm:$0xff]   ;;  %v6958_v18 = vld [vmem:[%s9201_s1 + $0x18] sm:$0xff]   ;;  %v6962_v22 = vld [vmem:[%s9201_s1 + $0x10] sm:$0xff]  }
   0x8   :  { %6239 = vmatpush3.bf16.msra.mxu0 %v6946_v6  ;;  %v6955_v15 = vld [vmem:[%s9201_s1 + $0xa0] sm:$0xff]   ;;  %v6959_v19 = vld [vmem:[%s9201_s1 + $0x98] sm:$0xff]   ;;  %v6963_v23 = vld [vmem:[%s9201_s1 + $0x90] sm:$0xff]  }
   0x9   :  { %6261 = vmatpush3.bf16.msra.mxu1 %v6947_v7  ;;  %6240 = vmatprep.subr.bf16.mxu0 %v6948_v8  ;;  %v6964_v24 = vld [vmem:[%s9201_s1 + $0x48] sm:$0xff]   ;;  %v6968_v28 = vld [vmem:[%s9201_s1 + $0x40] sm:$0xff]   ;;  %v6976_v38 = vld [vmem:[%s9201_s1 + $0x178] sm:$0xff]  }
   0xa   :  { %6262 = vmatprep.subr.bf16.mxu1 %v6949_v9  ;;  %v6965_v25 = vld [vmem:[%s9201_s1 + $0xc8] sm:$0xff]   ;;  %v6969_v29 = vld [vmem:[%s9201_s1 + $0xc0] sm:$0xff]   ;;  %v6977_v39 = vld [vmem:[%s9201_s1 + $0x1f8] sm:$0xff]  }
   0xb   :  { %v6966_v26 = vld [vmem:[%s9201_s1 + $0x8] sm:$0xff]   ;;  %v6970_v30 = vld [vmem:[%s9201_s1] sm:$0xff]   ;;  %v6978_v40 = vld [vmem:[%s9201_s1 + $0x138] sm:$0xff]  }
   0xc   :  { %6241 = vmatpush3.bf16.msra.mxu0 %v6950_v10  ;;  %v6967_v27 = vld [vmem:[%s9201_s1 + $0x88] sm:$0xff]   ;;  %v6971_v31 = vld [vmem:[%s9201_s1 + $0x80] sm:$0xff]   ;;  %v6979_v41 = vld [vmem:[%s9201_s1 + $0x1b8] sm:$0xff]  }
   0xd   :  { %6263 = vmatpush3.bf16.msra.mxu1 %v6951_v11  ;;  %6242 = vmatprep.subr.bf16.mxu0 %v6952_v12  ;;  %v15_v32 = vld [vmem:[%s9202_s0] sm:$0xff]  ;;  %v16_v33 = vld [vmem:[%s9202_s0 + $0x8] sm:$0xff]  ;;  %v6980_v42 = vld [vmem:[%s9201_s1 + $0x170] sm:$0xff]  }
   0xe   :  { %6264 = vmatprep.subr.bf16.mxu1 %v6953_v13  ;;  %v5660_v34 = vcombine.low %v15_v32, %v15_v32  ;;  %v5661_v35 = vcombine.high %v15_v32, %v15_v32  ;;  %v5662_v36 = vcombine.low %v16_v33, %v16_v33  ;;  %v5663_v37 = vcombine.high %v16_v33, %v16_v33  ;;  %v6981_v43 = vld [vmem:[%s9201_s1 + $0x1f0] sm:$0xff]   ;;  %v6984_v46 = vld [vmem:[%s9201_s1 + $0x168] sm:$0xff]   ;;  %v6988_v50 = vld [vmem:[%s9201_s1 + $0x160] sm:$0xff]  }
   0xf   :  { %v6982_v44 = vld [vmem:[%s9201_s1 + $0x130] sm:$0xff]   ;;  %v6985_v47 = vld [vmem:[%s9201_s1 + $0x1e8] sm:$0xff]   ;;  %v6989_v51 = vld [vmem:[%s9201_s1 + $0x1e0] sm:$0xff]  }
  0x10   :  { %6243 = vmatpush3.bf16.msra.mxu0 %v6954_v14  ;;  %4406 = vmatprep.mubr.bf16.mxu0 %v5661_v35  ;;  %v6983_v45 = vld [vmem:[%s9201_s1 + $0x1b0] sm:$0xff]   ;;  %v6986_v48 = vld [vmem:[%s9201_s1 + $0x128] sm:$0xff]   ;;  %v6990_v52 = vld [vmem:[%s9201_s1 + $0x120] sm:$0xff]  }
  0x11   :  { %6265 = vmatpush3.bf16.msra.mxu1 %v6955_v15  ;;  %6244 = vmatprep.subr.bf16.mxu0 %v6956_v16  ;;  %v6987_v49 = vld [vmem:[%s9201_s1 + $0x1a8] sm:$0xff]   ;;  %v6991_v53 = vld [vmem:[%s9201_s1 + $0x1a0] sm:$0xff]   ;;  %v6992_v54 = vld [vmem:[%s9201_s1 + $0x158] sm:$0xff]  }
  0x12   :  { %6266 = vmatprep.subr.bf16.mxu1 %v6957_v17  ;;  %4446 = vmatprep.mubr.bf16.mxu1 %v5663_v37  ;;  %v6993_v55 = vld [vmem:[%s9201_s1 + $0x1d8] sm:$0xff]   ;;  %v6996_v58 = vld [vmem:[%s9201_s1 + $0x150] sm:$0xff]   ;;  %v7000_v62 = vld [vmem:[%s9201_s1 + $0x148] sm:$0xff]  }
  0x13   :  { %v6994_v56 = vld [vmem:[%s9201_s1 + $0x118] sm:$0xff]   ;;  %v6997_v59 = vld [vmem:[%s9201_s1 + $0x1d0] sm:$0xff]   ;;  %v7001_v63 = vld [vmem:[%s9201_s1 + $0x1c8] sm:$0xff]  }
  0x14   :  { %6245 = vmatpush3.bf16.msra.mxu0 %v6958_v18  ;;  %v6995_v57 = vld [vmem:[%s9201_s1 + $0x198] sm:$0xff]   ;;  %v6998_v60 = vld [vmem:[%s9201_s1 + $0x110] sm:$0xff]   ;;  %v7002_v0 = vld [vmem:[%s9201_s1 + $0x108] sm:$0xff]  }
  0x15   :  { %6267 = vmatpush3.bf16.msra.mxu1 %v6959_v19  ;;  %6246 = vmatprep.subr.bf16.mxu0 %v6960_v20  ;;  %v6999_v61 = vld [vmem:[%s9201_s1 + $0x190] sm:$0xff]   ;;  %v7003_v1 = vld [vmem:[%s9201_s1 + $0x188] sm:$0xff]   ;;  %v7004_v2 = vld [vmem:[%s9201_s1 + $0x140] sm:$0xff]  }
  0x16   :  { %6268 = vmatprep.subr.bf16.mxu1 %v6961_v21  ;;  %v7005_v3 = vld [vmem:[%s9201_s1 + $0x1c0] sm:$0xff]   ;;  %v17_v6 = vld [vmem:[%s9202_s0 + $0x10] sm:$0xff]  ;;  %v18_v9 = vld [vmem:[%s9202_s0 + $0x18] sm:$0xff] }
  0x17   :  { %v7006_v4 = vld [vmem:[%s9201_s1 + $0x100] sm:$0xff]   ;;  %v5664_v7 = vcombine.low %v17_v6, %v17_v6  ;;  %v5665_v8 = vcombine.high %v17_v6, %v17_v6  ;;  %v5666_v10 = vcombine.low %v18_v9, %v18_v9  ;;  %v5667_v11 = vcombine.high %v18_v9, %v18_v9  ;;  %v7012_v12 = vld [vmem:[%s9201_s1 + $0x278] sm:$0xff]   ;;  %v7016_v16 = vld [vmem:[%s9201_s1 + $0x270] sm:$0xff]  }
  0x18   :  { %6247 = vmatpush3.bf16.msra.mxu0 %v6962_v22  ;;  %v7007_v5 = vld [vmem:[%s9201_s1 + $0x180] sm:$0xff]   ;;  %v7013_v13 = vld [vmem:[%s9201_s1 + $0x2f8] sm:$0xff]   ;;  %v7017_v17 = vld [vmem:[%s9201_s1 + $0x2f0] sm:$0xff]  }
  0x19   :  { %6269 = vmatpush3.bf16.msra.mxu1 %v6963_v23  ;;  %6248 = vmatprep.subr.bf16.mxu0 %v6964_v24  ;;  %v7014_v14 = vld [vmem:[%s9201_s1 + $0x238] sm:$0xff]   ;;  %v7018_v18 = vld [vmem:[%s9201_s1 + $0x230] sm:$0xff]   ;;  %v7020_v20 = vld [vmem:[%s9201_s1 + $0x268] sm:$0xff]  }
  0x1a   :  { %6270 = vmatprep.subr.bf16.mxu1 %v6965_v25  ;;  %v7015_v15 = vld [vmem:[%s9201_s1 + $0x2b8] sm:$0xff]   ;;  %v7019_v19 = vld [vmem:[%s9201_s1 + $0x2b0] sm:$0xff]   ;;  %v7021_v21 = vld [vmem:[%s9201_s1 + $0x2e8] sm:$0xff]  }
  0x1b   :  { %v7022_v22 = vld [vmem:[%s9201_s1 + $0x228] sm:$0xff]   ;;  %v7024_v24 = vld [vmem:[%s9201_s1 + $0x260] sm:$0xff]   ;;  %v7032_v32 = vld [vmem:[%s9201_s1 + $0x250] sm:$0xff]  }
  0x1c   :  { %6249 = vmatpush3.bf16.msra.mxu0 %v6966_v26  ;;  %v7023_v23 = vld [vmem:[%s9201_s1 + $0x2a8] sm:$0xff]   ;;  %v7025_v25 = vld [vmem:[%s9201_s1 + $0x2e0] sm:$0xff]   ;;  %v7033_v33 = vld [vmem:[%s9201_s1 + $0x2d0] sm:$0xff]  }
  0x1d   :  { %6271 = vmatpush3.bf16.msra.mxu1 %v6967_v27  ;;  %6250 = vmatprep.subr.bf16.mxu0 %v6968_v28  ;;  %v7026_v26 = vld [vmem:[%s9201_s1 + $0x220] sm:$0xff]   ;;  %v7028_v28 = vld [vmem:[%s9201_s1 + $0x258] sm:$0xff]   ;;  %v7035_v35 = vld [vmem:[%s9201_s1 + $0x290] sm:$0xff]  }
  0x1e   :  { %6272 = vmatprep.subr.bf16.mxu1 %v6969_v29  ;;  %v7027_v27 = vld [vmem:[%s9201_s1 + $0x2a0] sm:$0xff]   ;;  %v7029_v29 = vld [vmem:[%s9201_s1 + $0x2d8] sm:$0xff]   ;;  %v7037_v37 = vld [vmem:[%s9201_s1 + $0x2c8] sm:$0xff]  }
  0x1f   :  { %v7068_v6 = vld [vmem:[%s9201_s1 + $0x350] sm:$0xff]  }
  0x20   :  { %6251 = vmatpush3.bf16.msra.mxu0 %v6970_v30  ;;  %v7030_v30 = vld [vmem:[%s9201_s1 + $0x218] sm:$0xff]   ;;  %v7071_v9 = vld [vmem:[%s9201_s1 + $0x390] sm:$0xff]  }
  0x21   :  { %6273 = vmatpush3.bf16.msra.mxu1 %v6971_v31  ;;  %6280 = vmatprep.subr.bf16.mxu0 %v6976_v38  ;;  %v7031_v31 = vld [vmem:[%s9201_s1 + $0x298] sm:$0xff]   ;;  %v7038_v38 = vld [vmem:[%s9201_s1 + $0x208] sm:$0xff]  }
  0x22   :  { %6302 = vmatprep.subr.bf16.mxu1 %v6977_v39  ;;  %v7039_v39 = vld [vmem:[%s9201_s1 + $0x288] sm:$0xff]  }
  0x23   :  { %4407 = vmatmul.mubr.bf16.vlgmr.msra.gmra.mxu0 %v5660_v34  ;;  %v7034_v34 = vld [vmem:[%s9201_s1 + $0x210] sm:$0xff]  }
  0x24   :  { %4447 = vmatmul.mubr.bf16.vlgmr.msra.gmra.mxu1 %v5662_v36  ;;  %6281 = vmatpush3.bf16.msra.mxu0 %v6978_v40  ;;  %v7036_v36 = vld [vmem:[%s9201_s1 + $0x248] sm:$0xff]   ;;  %v7040_v40 = vld [vmem:[%s9201_s1 + $0x240] sm:$0xff]  }
  0x25   :  { %6303 = vmatpush3.bf16.msra.mxu1 %v6979_v41  ;;  %6282 = vmatprep.subr.bf16.mxu0 %v6980_v42  ;;  %v7041_v41 = vld [vmem:[%s9201_s1 + $0x2c0] sm:$0xff]  }
  0x26   :  { %6304 = vmatprep.subr.bf16.mxu1 %v6981_v43  ;;  %4486 = vmatprep.mubr.bf16.mxu0 %v5665_v8  ;;  %v7042_v42 = vld [vmem:[%s9201_s1 + $0x200] sm:$0xff]   ;;  %v7070_v8 = vld [vmem:[%s9201_s1 + $0x310] sm:$0xff]  }
  0x27   :  { %4526 = vmatprep.mubr.bf16.mxu1 %v5667_v11  ;;  %v7043_v43 = vld [vmem:[%s9201_s1 + $0x280] sm:$0xff]   ;;  %v7073_v11 = vld [vmem:[%s9201_s1 + $0x3c8] sm:$0xff]  }
  0x28   :  { %6283 = vmatpush3.bf16.msra.mxu0 %v6982_v44  ;;  %v19_v44 = vld [vmem:[%s9202_s0 + $0x20] sm:$0xff] }
  0x29   :  { %6305 = vmatpush3.bf16.msra.mxu1 %v6983_v45  ;;  %6284 = vmatprep.subr.bf16.mxu0 %v6984_v46  ;;  %v20_v45 = vld [vmem:[%s9202_s0 + $0x28] sm:$0xff]  ;;  %v5668_v46 = vcombine.low %v19_v44, %v19_v44 }
  0x2a   :  { %6306 = vmatprep.subr.bf16.mxu1 %v6985_v47  ;;  %v5669_v47 = vcombine.high %v19_v44, %v19_v44  ;;  %v7104_v44 = vld [vmem:[%s9201_s1 + $0x450] sm:$0xff]  }
  0x2c   :  { %6285 = vmatpush3.bf16.msra.mxu0 %v6986_v48  ;;  %v5670_v48 = vcombine.low %v20_v45, %v20_v45 }
  0x2d   :  { %6307 = vmatpush3.bf16.msra.mxu1 %v6987_v49  ;;  %6286 = vmatprep.subr.bf16.mxu0 %v6988_v50  ;;  %v5671_v49 = vcombine.high %v20_v45, %v20_v45  ;;  %v7048_v50 = vld [vmem:[%s9201_s1 + $0x378] sm:$0xff]   ;;  %v7105_v45 = vld [vmem:[%s9201_s1 + $0x4d0] sm:$0xff]  }
  0x2e   :  { %6308 = vmatprep.subr.bf16.mxu1 %v6989_v51  ;;  %v7049_v51 = vld [vmem:[%s9201_s1 + $0x3f8] sm:$0xff]  }
  0x30   :  { %6287 = vmatpush3.bf16.msra.mxu0 %v6990_v52  ;;  %v7050_v52 = vld [vmem:[%s9201_s1 + $0x338] sm:$0xff]  }
  0x31   :  { %6309 = vmatpush3.bf16.msra.mxu1 %v6991_v53  ;;  %6288 = vmatprep.subr.bf16.mxu0 %v6992_v54  ;;  %v7051_v53 = vld [vmem:[%s9201_s1 + $0x3b8] sm:$0xff]   ;;  %v7052_v54 = vld [vmem:[%s9201_s1 + $0x370] sm:$0xff]  }
  0x32   :  { %6310 = vmatprep.subr.bf16.mxu1 %v6993_v55  ;;  %v7053_v55 = vld [vmem:[%s9201_s1 + $0x3f0] sm:$0xff]  }
  0x34   :  { %6289 = vmatpush3.bf16.msra.mxu0 %v6994_v56  ;;  %v7054_v56 = vld [vmem:[%s9201_s1 + $0x330] sm:$0xff]  }
  0x35   :  { %6311 = vmatpush3.bf16.msra.mxu1 %v6995_v57  ;;  %6290 = vmatprep.subr.bf16.mxu0 %v6996_v58  ;;  %v7055_v57 = vld [vmem:[%s9201_s1 + $0x3b0] sm:$0xff]   ;;  %v7056_v58 = vld [vmem:[%s9201_s1 + $0x368] sm:$0xff]  }
  0x36   :  { %6312 = vmatprep.subr.bf16.mxu1 %v6997_v59  ;;  %v7057_v59 = vld [vmem:[%s9201_s1 + $0x3e8] sm:$0xff]  }
  0x38   :  { %6291 = vmatpush3.bf16.msra.mxu0 %v6998_v60  ;;  %v7058_v60 = vld [vmem:[%s9201_s1 + $0x328] sm:$0xff]  }
  0x39   :  { %6313 = vmatpush3.bf16.msra.mxu1 %v6999_v61  ;;  %6292 = vmatprep.subr.bf16.mxu0 %v7000_v62  ;;  %v7059_v61 = vld [vmem:[%s9201_s1 + $0x3a8] sm:$0xff]   ;;  %v7060_v62 = vld [vmem:[%s9201_s1 + $0x360] sm:$0xff]  }
  0x3a   :  { %6314 = vmatprep.subr.bf16.mxu1 %v7001_v63  ;;  %v7061_v63 = vld [vmem:[%s9201_s1 + $0x3e0] sm:$0xff]  }
  0x3c   :  { %6293 = vmatpush3.bf16.msra.mxu0 %v7002_v0  ;;  %v7062_v0 = vld [vmem:[%s9201_s1 + $0x320] sm:$0xff]  }
  0x3d   :  { %6315 = vmatpush3.bf16.msra.mxu1 %v7003_v1  ;;  %6294 = vmatprep.subr.bf16.mxu0 %v7004_v2  ;;  %v7063_v1 = vld [vmem:[%s9201_s1 + $0x3a0] sm:$0xff]   ;;  %v7064_v2 = vld [vmem:[%s9201_s1 + $0x358] sm:$0xff]  }
  0x3e   :  { %6316 = vmatprep.subr.bf16.mxu1 %v7005_v3  ;;  %v7065_v3 = vld [vmem:[%s9201_s1 + $0x3d8] sm:$0xff]  }
  0x40   :  { %6295 = vmatpush3.bf16.msra.mxu0 %v7006_v4  ;;  %v7066_v4 = vld [vmem:[%s9201_s1 + $0x318] sm:$0xff]  }
  0x41   :  { %6317 = vmatpush3.bf16.msra.mxu1 %v7007_v5  ;;  %6324 = vmatprep.subr.bf16.mxu0 %v7012_v12  ;;  %v7067_v5 = vld [vmem:[%s9201_s1 + $0x398] sm:$0xff]   ;;  %v7074_v12 = vld [vmem:[%s9201_s1 + $0x308] sm:$0xff]  }
  0x42   :  { %6346 = vmatprep.subr.bf16.mxu1 %v7013_v13  ;;  %v7075_v13 = vld [vmem:[%s9201_s1 + $0x388] sm:$0xff]  }
  0x43   :  { %4487 = vmatmul.mubr.bf16.vlgmr.msra.gmra.mxu0 %v5664_v7  ;;  %v7069_v7 = vld [vmem:[%s9201_s1 + $0x3d0] sm:$0xff]  }
  0x44   :  { %4527 = vmatmul.mubr.bf16.vlgmr.msra.gmra.mxu1 %v5666_v10  ;;  %6325 = vmatpush3.bf16.msra.mxu0 %v7014_v14  ;;  %v7072_v10 = vld [vmem:[%s9201_s1 + $0x348] sm:$0xff]   ;;  %v7076_v14 = vld [vmem:[%s9201_s1 + $0x340] sm:$0xff]  }
  0x45   :  { %6347 = vmatpush3.bf16.msra.mxu1 %v7015_v15  ;;  %6326 = vmatprep.subr.bf16.mxu0 %v7016_v16  ;;  %v7077_v15 = vld [vmem:[%s9201_s1 + $0x3c0] sm:$0xff]  }
  0x46   :  { %6348 = vmatprep.subr.bf16.mxu1 %v7017_v17  ;;  %4566 = vmatprep.mubr.bf16.mxu0 %v5669_v47  ;;  %v7078_v16 = vld [vmem:[%s9201_s1 + $0x300] sm:$0xff]   ;;  %v7107_v47 = vld [vmem:[%s9201_s1 + $0x490] sm:$0xff]  }
  0x47   :  { %4606 = vmatprep.mubr.bf16.mxu1 %v5671_v49  ;;  %v7079_v17 = vld [vmem:[%s9201_s1 + $0x380] sm:$0xff]   ;;  %v7109_v49 = vld [vmem:[%s9201_s1 + $0x4c8] sm:$0xff]  }
  0x48   :  { %6327 = vmatpush3.bf16.msra.mxu0 %v7018_v18  ;;  %v21_v18 = vld [vmem:[%s9202_s0 + $0x30] sm:$0xff] }
  0x49   :  { %6349 = vmatpush3.bf16.msra.mxu1 %v7019_v19  ;;  %6328 = vmatprep.subr.bf16.mxu0 %v7020_v20  ;;  %v22_v19 = vld [vmem:[%s9202_s0 + $0x38] sm:$0xff]  ;;  %v5672_v20 = vcombine.low %v21_v18, %v21_v18 }
  0x4a   :  { %6350 = vmatprep.subr.bf16.mxu1 %v7021_v21  ;;  %v5673_v21 = vcombine.high %v21_v18, %v21_v18  ;;  %v7140_v18 = vld [vmem:[%s9201_s1 + $0x550] sm:$0xff]  }
  0x4c   :  { %6329 = vmatpush3.bf16.msra.mxu0 %v7022_v22  ;;  %v5674_v22 = vcombine.low %v22_v19, %v22_v19 }
  0x4d   :  { %6351 = vmatpush3.bf16.msra.mxu1 %v7023_v23  ;;  %6330 = vmatprep.subr.bf16.mxu0 %v7024_v24  ;;  %v7084_v23 = vld [vmem:[%s9201_s1 + $0x478] sm:$0xff]   ;;  %v5675_v24 = vcombine.high %v22_v19, %v22_v19  ;;  %v7141_v19 = vld [vmem:[%s9201_s1 + $0x5d0] sm:$0xff]  }
  0x4e   :  { %6352 = vmatprep.subr.bf16.mxu1 %v7025_v25  ;;  %v7085_v25 = vld [vmem:[%s9201_s1 + $0x4f8] sm:$0xff]  }
  0x50   :  { %6331 = vmatpush3.bf16.msra.mxu0 %v7026_v26  ;;  %v7086_v26 = vld [vmem:[%s9201_s1 + $0x438] sm:$0xff]  }
  0x51   :  { %6353 = vmatpush3.bf16.msra.mxu1 %v7027_v27  ;;  %6332 = vmatprep.subr.bf16.mxu0 %v7028_v28  ;;  %v7087_v27 = vld [vmem:[%s9201_s1 + $0x4b8] sm:$0xff]   ;;  %v7088_v28 = vld [vmem:[%s9201_s1 + $0x470] sm:$0xff]  }
  0x52   :  { %6354 = vmatprep.subr.bf16.mxu1 %v7029_v29  ;;  %v7089_v29 = vld [vmem:[%s9201_s1 + $0x4f0] sm:$0xff]  }
  0x54   :  { %6333 = vmatpush3.bf16.msra.mxu0 %v7030_v30  ;;  %v7090_v30 = vld [vmem:[%s9201_s1 + $0x430] sm:$0xff]  }
  0x55   :  { %6355 = vmatpush3.bf16.msra.mxu1 %v7031_v31  ;;  %6334 = vmatprep.subr.bf16.mxu0 %v7032_v32  ;;  %v7091_v31 = vld [vmem:[%s9201_s1 + $0x4b0] sm:$0xff]   ;;  %v7092_v32 = vld [vmem:[%s9201_s1 + $0x468] sm:$0xff]  }
  0x56   :  { %6356 = vmatprep.subr.bf16.mxu1 %v7033_v33  ;;  %v7093_v33 = vld [vmem:[%s9201_s1 + $0x4e8] sm:$0xff]  }
  0x58   :  { %6335 = vmatpush3.bf16.msra.mxu0 %v7034_v34  ;;  %v7094_v34 = vld [vmem:[%s9201_s1 + $0x428] sm:$0xff]  }
  0x59   :  { %6357 = vmatpush3.bf16.msra.mxu1 %v7035_v35  ;;  %6336 = vmatprep.subr.bf16.mxu0 %v7036_v36  ;;  %v7095_v35 = vld [vmem:[%s9201_s1 + $0x4a8] sm:$0xff]   ;;  %v7096_v36 = vld [vmem:[%s9201_s1 + $0x460] sm:$0xff]  }
  0x5a   :  { %6358 = vmatprep.subr.bf16.mxu1 %v7037_v37  ;;  %v7097_v37 = vld [vmem:[%s9201_s1 + $0x4e0] sm:$0xff]  }
  0x5c   :  { %6337 = vmatpush3.bf16.msra.mxu0 %v7038_v38  ;;  %v7098_v38 = vld [vmem:[%s9201_s1 + $0x420] sm:$0xff]  }
  0x5d   :  { %6359 = vmatpush3.bf16.msra.mxu1 %v7039_v39  ;;  %6338 = vmatprep.subr.bf16.mxu0 %v7040_v40  ;;  %v7099_v39 = vld [vmem:[%s9201_s1 + $0x4a0] sm:$0xff]   ;;  %v7100_v40 = vld [vmem:[%s9201_s1 + $0x458] sm:$0xff]  }
  0x5e   :  { %6360 = vmatprep.subr.bf16.mxu1 %v7041_v41  ;;  %v7101_v41 = vld [vmem:[%s9201_s1 + $0x4d8] sm:$0xff]  }
  0x60   :  { %6339 = vmatpush3.bf16.msra.mxu0 %v7042_v42  ;;  %v7102_v42 = vld [vmem:[%s9201_s1 + $0x418] sm:$0xff]  }
  0x61   :  { %6361 = vmatpush3.bf16.msra.mxu1 %v7043_v43  ;;  %6368 = vmatprep.subr.bf16.mxu0 %v7048_v50  ;;  %v7103_v43 = vld [vmem:[%s9201_s1 + $0x498] sm:$0xff]   ;;  %v7110_v50 = vld [vmem:[%s9201_s1 + $0x408] sm:$0xff]  }
  0x62   :  { %6390 = vmatprep.subr.bf16.mxu1 %v7049_v51  ;;  %v7111_v51 = vld [vmem:[%s9201_s1 + $0x488] sm:$0xff]  }
  0x63   :  { %4567 = vmatmul.mubr.bf16.vlgmr.msra.gmra.mxu0 %v5668_v46  ;;  %v7106_v46 = vld [vmem:[%s9201_s1 + $0x410] sm:$0xff]  }
  0x64   :  { %4607 = vmatmul.mubr.bf16.vlgmr.msra.gmra.mxu1 %v5670_v48  ;;  %6369 = vmatpush3.bf16.msra.mxu0 %v7050_v52  ;;  %v7108_v48 = vld [vmem:[%s9201_s1 + $0x448] sm:$0xff]   ;;  %v7112_v52 = vld [vmem:[%s9201_s1 + $0x440] sm:$0xff]  }
  0x65   :  { %6391 = vmatpush3.bf16.msra.mxu1 %v7051_v53  ;;  %6370 = vmatprep.subr.bf16.mxu0 %v7052_v54  ;;  %v7113_v53 = vld [vmem:[%s9201_s1 + $0x4c0] sm:$0xff]  }
  0x66   :  { %6392 = vmatprep.subr.bf16.mxu1 %v7053_v55  ;;  %4646 = vmatprep.mubr.bf16.mxu0 %v5673_v21  ;;  %v7114_v54 = vld [vmem:[%s9201_s1 + $0x400] sm:$0xff]   ;;  %v7143_v21 = vld [vmem:[%s9201_s1 + $0x590] sm:$0xff]  }
  0x67   :  { %4686 = vmatprep.mubr.bf16.mxu1 %v5675_v24  ;;  %v7115_v55 = vld [vmem:[%s9201_s1 + $0x480] sm:$0xff]   ;;  %v7146_v24 = vld [vmem:[%s9201_s1 + $0x508] sm:$0xff]  }
  0x68   :  { %6371 = vmatpush3.bf16.msra.mxu0 %v7054_v56  ;;  %v23_v56 = vld [vmem:[%s9202_s0 + $0x40] sm:$0xff] }
  0x69   :  { %6393 = vmatpush3.bf16.msra.mxu1 %v7055_v57  ;;  %6372 = vmatprep.subr.bf16.mxu0 %v7056_v58  ;;  %v5676_v57 = vcombine.low %v23_v56, %v23_v56  ;;  %v5677_v58 = vcombine.high %v23_v56, %v23_v56  ;;  %v7176_v56 = vld [vmem:[%s9201_s1 + $0x650] sm:$0xff]  }
  0x6a   :  { %6394 = vmatprep.subr.bf16.mxu1 %v7057_v59  ;;  %v24_v59 = vld [vmem:[%s9202_s0 + $0x48] sm:$0xff] }
  0x6c   :  { %6373 = vmatpush3.bf16.msra.mxu0 %v7058_v60  ;;  %v5678_v60 = vcombine.low %v24_v59, %v24_v59 }
  0x6d   :  { %6395 = vmatpush3.bf16.msra.mxu1 %v7059_v61  ;;  %6374 = vmatprep.subr.bf16.mxu0 %v7060_v62  ;;  %v5679_v61 = vcombine.high %v24_v59, %v24_v59  ;;  %v7120_v62 = vld [vmem:[%s9201_s1 + $0x578] sm:$0xff]   ;;  %v7179_v59 = vld [vmem:[%s9201_s1 + $0x690] sm:$0xff]  }
  0x6e   :  { %6396 = vmatprep.subr.bf16.mxu1 %v7061_v63  ;;  %v7121_v63 = vld [vmem:[%s9201_s1 + $0x5f8] sm:$0xff]  }
  0x70   :  { %6375 = vmatpush3.bf16.msra.mxu0 %v7062_v0  ;;  %v7122_v0 = vld [vmem:[%s9201_s1 + $0x538] sm:$0xff]  }
  0x71   :  { %6397 = vmatpush3.bf16.msra.mxu1 %v7063_v1  ;;  %6376 = vmatprep.subr.bf16.mxu0 %v7064_v2  ;;  %v7123_v1 = vld [vmem:[%s9201_s1 + $0x5b8] sm:$0xff]   ;;  %v7124_v2 = vld [vmem:[%s9201_s1 + $0x570] sm:$0xff]  }
  0x72   :  { %6398 = vmatprep.subr.bf16.mxu1 %v7065_v3  ;;  %v7125_v3 = vld [vmem:[%s9201_s1 + $0x5f0] sm:$0xff]  }
  0x74   :  { %6377 = vmatpush3.bf16.msra.mxu0 %v7066_v4  ;;  %v7126_v4 = vld [vmem:[%s9201_s1 + $0x530] sm:$0xff]  }
  0x75   :  { %6399 = vmatpush3.bf16.msra.mxu1 %v7067_v5  ;;  %6378 = vmatprep.subr.bf16.mxu0 %v7068_v6  ;;  %v7127_v5 = vld [vmem:[%s9201_s1 + $0x5b0] sm:$0xff]   ;;  %v7128_v6 = vld [vmem:[%s9201_s1 + $0x568] sm:$0xff]  }
  0x76   :  { %6400 = vmatprep.subr.bf16.mxu1 %v7069_v7  ;;  %v7129_v7 = vld [vmem:[%s9201_s1 + $0x5e8] sm:$0xff]  }
  0x78   :  { %6379 = vmatpush3.bf16.msra.mxu0 %v7070_v8  ;;  %v7130_v8 = vld [vmem:[%s9201_s1 + $0x528] sm:$0xff]  }
  0x79   :  { %6401 = vmatpush3.bf16.msra.mxu1 %v7071_v9  ;;  %6380 = vmatprep.subr.bf16.mxu0 %v7072_v10  ;;  %v7131_v9 = vld [vmem:[%s9201_s1 + $0x5a8] sm:$0xff]   ;;  %v7132_v10 = vld [vmem:[%s9201_s1 + $0x560] sm:$0xff]  }
  0x7a   :  { %6402 = vmatprep.subr.bf16.mxu1 %v7073_v11  ;;  %v7133_v11 = vld [vmem:[%s9201_s1 + $0x5e0] sm:$0xff]  }
  0x7c   :  { %6381 = vmatpush3.bf16.msra.mxu0 %v7074_v12  ;;  %v7134_v12 = vld [vmem:[%s9201_s1 + $0x520] sm:$0xff]  }
  0x7d   :  { %6403 = vmatpush3.bf16.msra.mxu1 %v7075_v13  ;;  %6382 = vmatprep.subr.bf16.mxu0 %v7076_v14  ;;  %v7135_v13 = vld [vmem:[%s9201_s1 + $0x5a0] sm:$0xff]   ;;  %v7136_v14 = vld [vmem:[%s9201_s1 + $0x558] sm:$0xff]  }
  0x7e   :  { %6404 = vmatprep.subr.bf16.mxu1 %v7077_v15  ;;  %v7137_v15 = vld [vmem:[%s9201_s1 + $0x5d8] sm:$0xff]  }
  0x80   :  { %6383 = vmatpush3.bf16.msra.mxu0 %v7078_v16  ;;  %v7138_v16 = vld [vmem:[%s9201_s1 + $0x518] sm:$0xff]  }
  0x81   :  { %6405 = vmatpush3.bf16.msra.mxu1 %v7079_v17  ;;  %6412 = vmatprep.subr.bf16.mxu0 %v7084_v23  ;;  %v7139_v17 = vld [vmem:[%s9201_s1 + $0x598] sm:$0xff]   ;;  %v7145_v23 = vld [vmem:[%s9201_s1 + $0x5c8] sm:$0xff]  }
  0x82   :  { %6434 = vmatprep.subr.bf16.mxu1 %v7085_v25  ;;  %v7147_v25 = vld [vmem:[%s9201_s1 + $0x588] sm:$0xff]  }
  0x83   :  { %4647 = vmatmul.mubr.bf16.vlgmr.msra.gmra.mxu0 %v5672_v20  ;;  %v7142_v20 = vld [vmem:[%s9201_s1 + $0x510] sm:$0xff]  }
  0x84   :  { %4687 = vmatmul.mubr.bf16.vlgmr.msra.gmra.mxu1 %v5674_v22  ;;  %6413 = vmatpush3.bf16.msra.mxu0 %v7086_v26  ;;  %v7144_v22 = vld [vmem:[%s9201_s1 + $0x548] sm:$0xff]   ;;  %v7148_v26 = vld [vmem:[%s9201_s1 + $0x540] sm:$0xff]  }
  0x85   :  { %6435 = vmatpush3.bf16.msra.mxu1 %v7087_v27  ;;  %6414 = vmatprep.subr.bf16.mxu0 %v7088_v28  ;;  %v7149_v27 = vld [vmem:[%s9201_s1 + $0x5c0] sm:$0xff]  }
  0x86   :  { %6436 = vmatprep.subr.bf16.mxu1 %v7089_v29  ;;  %4726 = vmatprep.mubr.bf16.mxu0 %v5677_v58  ;;  %v7150_v28 = vld [vmem:[%s9201_s1 + $0x500] sm:$0xff]   ;;  %v7178_v58 = vld [vmem:[%s9201_s1 + $0x610] sm:$0xff]  }
  0x87   :  { %4766 = vmatprep.mubr.bf16.mxu1 %v5679_v61  ;;  %v7151_v29 = vld [vmem:[%s9201_s1 + $0x580] sm:$0xff]   ;;  %v7181_v61 = vld [vmem:[%s9201_s1 + $0x6c8] sm:$0xff]  }
  0x88   :  { %6415 = vmatpush3.bf16.msra.mxu0 %v7090_v30  ;;  %v25_v30 = vld [vmem:[%s9202_s0 + $0x50] sm:$0xff] }
  0x89   :  { %6437 = vmatpush3.bf16.msra.mxu1 %v7091_v31  ;;  %6416 = vmatprep.subr.bf16.mxu0 %v7092_v32  ;;  %v26_v31 = vld [vmem:[%s9202_s0 + $0x58] sm:$0xff]  ;;  %v5680_v32 = vcombine.low %v25_v30, %v25_v30 }
  0x8a   :  { %6438 = vmatprep.subr.bf16.mxu1 %v7093_v33  ;;  %v5681_v33 = vcombine.high %v25_v30, %v25_v30  ;;  %v7199_v30 = vld [vmem:[%s9201_s1 + $0x7b0] sm:$0xff]  }
  0x8c   :  { %6417 = vmatpush3.bf16.msra.mxu0 %v7094_v34  ;;  %v5682_v34 = vcombine.low %v26_v31, %v26_v31 }
  0x8d   :  { %6439 = vmatpush3.bf16.msra.mxu1 %v7095_v35  ;;  %6418 = vmatprep.subr.bf16.mxu0 %v7096_v36  ;;  %v5683_v35 = vcombine.high %v26_v31, %v26_v31  ;;  %v7156_v36 = vld [vmem:[%s9201_s1 + $0x678] sm:$0xff]   ;;  %v7200_v31 = vld [vmem:[%s9201_s1 + $0x768] sm:$0xff]  }
  0x8e   :  { %6440 = vmatprep.subr.bf16.mxu1 %v7097_v37  ;;  %v7157_v37 = vld [vmem:[%s9201_s1 + $0x6f8] sm:$0xff]  }
  0x90   :  { %6419 = vmatpush3.bf16.msra.mxu0 %v7098_v38  ;;  %v7158_v38 = vld [vmem:[%s9201_s1 + $0x638] sm:$0xff]  }
  0x91   :  { %6441 = vmatpush3.bf16.msra.mxu1 %v7099_v39  ;;  %6420 = vmatprep.subr.bf16.mxu0 %v7100_v40  ;;  %v7159_v39 = vld [vmem:[%s9201_s1 + $0x6b8] sm:$0xff]   ;;  %v7160_v40 = vld [vmem:[%s9201_s1 + $0x670] sm:$0xff]  }
  0x92   :  { %6442 = vmatprep.subr.bf16.mxu1 %v7101_v41  ;;  %v7161_v41 = vld [vmem:[%s9201_s1 + $0x6f0] sm:$0xff]  }
  0x94   :  { %6421 = vmatpush3.bf16.msra.mxu0 %v7102_v42  ;;  %v7162_v42 = vld [vmem:[%s9201_s1 + $0x630] sm:$0xff]  }
  0x95   :  { %6443 = vmatpush3.bf16.msra.mxu1 %v7103_v43  ;;  %6422 = vmatprep.subr.bf16.mxu0 %v7104_v44  ;;  %v7163_v43 = vld [vmem:[%s9201_s1 + $0x6b0] sm:$0xff]   ;;  %v7164_v44 = vld [vmem:[%s9201_s1 + $0x668] sm:$0xff]  }
  0x96   :  { %6444 = vmatprep.subr.bf16.mxu1 %v7105_v45  ;;  %v7165_v45 = vld [vmem:[%s9201_s1 + $0x6e8] sm:$0xff]  }
  0x98   :  { %6423 = vmatpush3.bf16.msra.mxu0 %v7106_v46  ;;  %v7166_v46 = vld [vmem:[%s9201_s1 + $0x628] sm:$0xff]  }
  0x99   :  { %6445 = vmatpush3.bf16.msra.mxu1 %v7107_v47  ;;  %6424 = vmatprep.subr.bf16.mxu0 %v7108_v48  ;;  %v7167_v47 = vld [vmem:[%s9201_s1 + $0x6a8] sm:$0xff]   ;;  %v7168_v48 = vld [vmem:[%s9201_s1 + $0x660] sm:$0xff]  }
  0x9a   :  { %6446 = vmatprep.subr.bf16.mxu1 %v7109_v49  ;;  %v7169_v49 = vld [vmem:[%s9201_s1 + $0x6e0] sm:$0xff]  }
  0x9c   :  { %6425 = vmatpush3.bf16.msra.mxu0 %v7110_v50  ;;  %v7170_v50 = vld [vmem:[%s9201_s1 + $0x620] sm:$0xff]  }
  0x9d   :  { %6447 = vmatpush3.bf16.msra.mxu1 %v7111_v51  ;;  %6426 = vmatprep.subr.bf16.mxu0 %v7112_v52  ;;  %v7171_v51 = vld [vmem:[%s9201_s1 + $0x6a0] sm:$0xff]   ;;  %v7172_v52 = vld [vmem:[%s9201_s1 + $0x658] sm:$0xff]  }
  0x9e   :  { %6448 = vmatprep.subr.bf16.mxu1 %v7113_v53  ;;  %v7173_v53 = vld [vmem:[%s9201_s1 + $0x6d8] sm:$0xff]  }
  0xa0   :  { %6427 = vmatpush3.bf16.msra.mxu0 %v7114_v54  ;;  %v7174_v54 = vld [vmem:[%s9201_s1 + $0x618] sm:$0xff]  }
  0xa1   :  { %6449 = vmatpush3.bf16.msra.mxu1 %v7115_v55  ;;  %6456 = vmatprep.subr.bf16.mxu0 %v7120_v62  ;;  %v7175_v55 = vld [vmem:[%s9201_s1 + $0x698] sm:$0xff]   ;;  %v7182_v62 = vld [vmem:[%s9201_s1 + $0x608] sm:$0xff]  }
  0xa2   :  { %6478 = vmatprep.subr.bf16.mxu1 %v7121_v63  ;;  %v7183_v63 = vld [vmem:[%s9201_s1 + $0x688] sm:$0xff]  }
  0xa3   :  { %4727 = vmatmul.mubr.bf16.vlgmr.msra.gmra.mxu0 %v5676_v57  ;;  %v7177_v57 = vld [vmem:[%s9201_s1 + $0x6d0] sm:$0xff]  }
  0xa4   :  { %4767 = vmatmul.mubr.bf16.vlgmr.msra.gmra.mxu1 %v5678_v60  ;;  %6457 = vmatpush3.bf16.msra.mxu0 %v7122_v0  ;;  %v7180_v60 = vld [vmem:[%s9201_s1 + $0x648] sm:$0xff]   ;;  %v7184_v0 = vld [vmem:[%s9201_s1 + $0x640] sm:$0xff]  }
  0xa5   :  { %6479 = vmatpush3.bf16.msra.mxu1 %v7123_v1  ;;  %6458 = vmatprep.subr.bf16.mxu0 %v7124_v2  ;;  %v7185_v1 = vld [vmem:[%s9201_s1 + $0x6c0] sm:$0xff]  }
  0xa6   :  { %6480 = vmatprep.subr.bf16.mxu1 %v7125_v3  ;;  %4806 = vmatprep.mubr.bf16.mxu0 %v5681_v33  ;;  %v7186_v2 = vld [vmem:[%s9201_s1 + $0x600] sm:$0xff]   ;;  %v7202_v33 = vld [vmem:[%s9201_s1 + $0x728] sm:$0xff]  }
  0xa7   :  { %4846 = vmatprep.mubr.bf16.mxu1 %v5683_v35  ;;  %v7187_v3 = vld [vmem:[%s9201_s1 + $0x680] sm:$0xff]  }
  0xa8   :  { %6459 = vmatpush3.bf16.msra.mxu0 %v7126_v4  ;;  %v27_v4 = vld [vmem:[%s9202_s0 + $0x60] sm:$0xff] }
  0xa9   :  { %6481 = vmatpush3.bf16.msra.mxu1 %v7127_v5  ;;  %6460 = vmatprep.subr.bf16.mxu0 %v7128_v6  ;;  %v28_v5 = vld [vmem:[%s9202_s0 + $0x68] sm:$0xff]  ;;  %v7204_v35 = vld [vmem:[%s9201_s1 + $0x760] sm:$0xff]  }
  0xaa   :  { %6482 = vmatprep.subr.bf16.mxu1 %v7129_v7 }
  0xac   :  { %6461 = vmatpush3.bf16.msra.mxu0 %v7130_v8  ;;  %v5684_v8 = vcombine.low %v27_v4, %v27_v4 }
  0xad   :  { %6483 = vmatpush3.bf16.msra.mxu1 %v7131_v9  ;;  %6462 = vmatprep.subr.bf16.mxu0 %v7132_v10  ;;  %v5685_v9 = vcombine.high %v27_v4, %v27_v4  ;;  %v5686_v10 = vcombine.low %v28_v5, %v28_v5 }
  0xae   :  { %6484 = vmatprep.subr.bf16.mxu1 %v7133_v11  ;;  %v7192_v11 = vld [vmem:[%s9201_s1 + $0x778] sm:$0xff]  }
  0xb0   :  { %6463 = vmatpush3.bf16.msra.mxu0 %v7134_v12  ;;  %v5687_v12 = vcombine.high %v28_v5, %v28_v5 }
  0xb1   :  { %6485 = vmatpush3.bf16.msra.mxu1 %v7135_v13  ;;  %6464 = vmatprep.subr.bf16.mxu0 %v7136_v14  ;;  %v7193_v13 = vld [vmem:[%s9201_s1 + $0x7f8] sm:$0xff]  }
  0xb2   :  { %6486 = vmatprep.subr.bf16.mxu1 %v7137_v15 }
  0xb4   :  { %6465 = vmatpush3.bf16.msra.mxu0 %v7138_v16  ;;  %v7194_v16 = vld [vmem:[%s9201_s1 + $0x738] sm:$0xff]  }
  0xb5   :  { %6487 = vmatpush3.bf16.msra.mxu1 %v7139_v17  ;;  %6466 = vmatprep.subr.bf16.mxu0 %v7140_v18 }
  0xb6   :  { %6488 = vmatprep.subr.bf16.mxu1 %v7141_v19  ;;  %v7195_v19 = vld [vmem:[%s9201_s1 + $0x7b8] sm:$0xff]  }
  0xb8   :  { %6467 = vmatpush3.bf16.msra.mxu0 %v7142_v20  ;;  %v5659_v20 = vld [vmem:[%s9203_s2] ss:$0 sm:$0xff] }
  0xb9   :  { %6489 = vmatpush3.bf16.msra.mxu1 %v7143_v21  ;;  %6468 = vmatprep.subr.bf16.mxu0 %v7144_v22 }
  0xba   :  { %6490 = vmatprep.subr.bf16.mxu1 %v7145_v23 }
  0xbc   :  { %6469 = vmatpush3.bf16.msra.mxu0 %v7146_v24  ;;  %v7196_v24 = vld [vmem:[%s9201_s1 + $0x770] sm:$0xff]  }
  0xbd   :  { %6491 = vmatpush3.bf16.msra.mxu1 %v7147_v25  ;;  %6470 = vmatprep.subr.bf16.mxu0 %v7148_v26  ;;  %v7197_v25 = vld [vmem:[%s9201_s1 + $0x7f0] sm:$0xff]  }
  0xbe   :  { %6492 = vmatprep.subr.bf16.mxu1 %v7149_v27 }
  0xc0   :  { %6471 = vmatpush3.bf16.msra.mxu0 %v7150_v28 }
  0xc1   :  { %6493 = vmatpush3.bf16.msra.mxu1 %v7151_v29  ;;  %6500 = vmatprep.subr.bf16.mxu0 %v7156_v36  ;;  %v7198_v29 = vld [vmem:[%s9201_s1 + $0x730] sm:$0xff]   ;;  %v7205_v36 = vld [vmem:[%s9201_s1 + $0x7e0] sm:$0xff]  }
  0xc2   :  { %6522 = vmatprep.subr.bf16.mxu1 %v7157_v37  ;;  %v7206_v37 = vld [vmem:[%s9201_s1 + $0x720] sm:$0xff]  }
  0xc3   :  { %4807 = vmatmul.mubr.bf16.vlgmr.msra.gmra.mxu0 %v5680_v32  ;;  %v7201_v32 = vld [vmem:[%s9201_s1 + $0x7e8] sm:$0xff]  }
  0xc4   :  { %4847 = vmatmul.mubr.bf16.vlgmr.msra.gmra.mxu1 %v5682_v34  ;;  %6501 = vmatpush3.bf16.msra.mxu0 %v7158_v38  ;;  %v7203_v34 = vld [vmem:[%s9201_s1 + $0x7a8] sm:$0xff]   ;;  %v7207_v38 = vld [vmem:[%s9201_s1 + $0x7a0] sm:$0xff]  }
  0xc5   :  { %6523 = vmatpush3.bf16.msra.mxu1 %v7159_v39  ;;  %6502 = vmatprep.subr.bf16.mxu0 %v7160_v40  ;;  %v7208_v39 = vld [vmem:[%s9201_s1 + $0x758] sm:$0xff]  }
  0xc6   :  { %6524 = vmatprep.subr.bf16.mxu1 %v7161_v41  ;;  %4886 = vmatprep.mubr.bf16.mxu0 %v5685_v9  ;;  %v7209_v40 = vld [vmem:[%s9201_s1 + $0x7d8] sm:$0xff]  }
  0xc7   :  { %4926 = vmatprep.mubr.bf16.mxu1 %v5687_v12  ;;  %v7210_v41 = vld [vmem:[%s9201_s1 + $0x718] sm:$0xff]  }
  0xc8   :  { %6503 = vmatpush3.bf16.msra.mxu0 %v7162_v42  ;;  %v7211_v42 = vld [vmem:[%s9201_s1 + $0x798] sm:$0xff]  }
  0xc9   :  { %6525 = vmatpush3.bf16.msra.mxu1 %v7163_v43  ;;  %6504 = vmatprep.subr.bf16.mxu0 %v7164_v44  ;;  %v7212_v43 = vld [vmem:[%s9201_s1 + $0x750] sm:$0xff]  }
  0xca   :  { %6526 = vmatprep.subr.bf16.mxu1 %v7165_v45  ;;  %v7213_v44 = vld [vmem:[%s9201_s1 + $0x7d0] sm:$0xff]  }
  0xcb   :  { %v7214_v45 = vld [vmem:[%s9201_s1 + $0x710] sm:$0xff]  }
  0xcc   :  { %6505 = vmatpush3.bf16.msra.mxu0 %v7166_v46  ;;  %v7215_v46 = vld [vmem:[%s9201_s1 + $0x790] sm:$0xff]  }
  0xcd   :  { %6527 = vmatpush3.bf16.msra.mxu1 %v7167_v47  ;;  %6506 = vmatprep.subr.bf16.mxu0 %v7168_v48  ;;  %v7216_v47 = vld [vmem:[%s9201_s1 + $0x748] sm:$0xff]  }
  0xce   :  { %6528 = vmatprep.subr.bf16.mxu1 %v7169_v49  ;;  %v7217_v48 = vld [vmem:[%s9201_s1 + $0x7c8] sm:$0xff]  }
  0xcf   :  { %v7218_v49 = vld [vmem:[%s9201_s1 + $0x708] sm:$0xff]  }
  0xd0   :  { %6507 = vmatpush3.bf16.msra.mxu0 %v7170_v50  ;;  %v7219_v50 = vld [vmem:[%s9201_s1 + $0x788] sm:$0xff]  }
  0xd1   :  { %6529 = vmatpush3.bf16.msra.mxu1 %v7171_v51  ;;  %6508 = vmatprep.subr.bf16.mxu0 %v7172_v52  ;;  %v7220_v51 = vld [vmem:[%s9201_s1 + $0x740] sm:$0xff]  }
  0xd2   :  { %6530 = vmatprep.subr.bf16.mxu1 %v7173_v53  ;;  %v7221_v52 = vld [vmem:[%s9201_s1 + $0x7c0] sm:$0xff]  }
  0xd3   :  { %v7222_v53 = vld [vmem:[%s9201_s1 + $0x700] sm:$0xff]  }
  0xd4   :  { %6509 = vmatpush3.bf16.msra.mxu0 %v7174_v54  ;;  %v7223_v54 = vld [vmem:[%s9201_s1 + $0x780] sm:$0xff]  }
  0xd5   :  { %6531 = vmatpush3.bf16.msra.mxu1 %v7175_v55  ;;  %6510 = vmatprep.subr.bf16.mxu0 %v7176_v56  ;;  %v29_v55 = vld [vmem:[%s9202_s0 + $0x70] sm:$0xff]  ;;  %v30_v56 = vld [vmem:[%s9202_s0 + $0x78] sm:$0xff] }
  0xd6   :  { %6532 = vmatprep.subr.bf16.mxu1 %v7177_v57 }
  0xd8   :  { %6511 = vmatpush3.bf16.msra.mxu0 %v7178_v58 }
  0xd9   :  { %6533 = vmatpush3.bf16.msra.mxu1 %v7179_v59  ;;  %6512 = vmatprep.subr.bf16.mxu0 %v7180_v60  ;;  %v5688_v59 = vcombine.low %v29_v55, %v29_v55  ;;  %v5689_v60 = vcombine.high %v29_v55, %v29_v55 }
  0xda   :  { %6534 = vmatprep.subr.bf16.mxu1 %v7181_v61  ;;  %v5690_v61 = vcombine.low %v30_v56, %v30_v56 }
  0xdc   :  { %6513 = vmatpush3.bf16.msra.mxu0 %v7182_v62  ;;  %v7228_v62 = vld [vmem:[%s9201_s1 + $0x878] sm:$0xff]  }
  0xdd   :  { %6535 = vmatpush3.bf16.msra.mxu1 %v7183_v63  ;;  %6514 = vmatprep.subr.bf16.mxu0 %v7184_v0  ;;  %v5691_v63 = vcombine.high %v30_v56, %v30_v56  ;;  %v7229_v0 = vld [vmem:[%s9201_s1 + $0x8f8] sm:$0xff]  }
  0xde   :  { %6536 = vmatprep.subr.bf16.mxu1 %v7185_v1 }
  0xe0   :  { %6515 = vmatpush3.bf16.msra.mxu0 %v7186_v2 }
  0xe1   :  { %6537 = vmatpush3.bf16.msra.mxu1 %v7187_v3  ;;  %6544 = vmatprep.subr.bf16.mxu0 %v7192_v11  ;;  %v7230_v3 = vld [vmem:[%s9201_s1 + $0x838] sm:$0xff]   ;;  %v7233_v11 = vld [vmem:[%s9201_s1 + $0x8f0] sm:$0xff]  }
  0xe2   :  { %6566 = vmatprep.subr.bf16.mxu1 %v7193_v13 }
  0xe3   :  { %v6252_v6 = vpop.f32.mrf.mxu0  ;;  %4887 = vmatmul.mubr.bf16.vlgmr.msra.gmra.mxu0 %v5684_v8 }
  0xe4   :  { %v6274_v7 = vpop.f32.mrf.mxu1  ;;  %4927 = vmatmul.mubr.bf16.vlgmr.msra.gmra.mxu1 %v5686_v10  ;;  %6545 = vmatpush3.bf16.msra.mxu0 %v7194_v16  ;;  %v7232_v10 = vld [vmem:[%s9201_s1 + $0x870] sm:$0xff]  }
  0xe5   :  { %v6253_v14 = vpop.f32.mrf.mxu0  ;;  %6567 = vmatpush3.bf16.msra.mxu1 %v7195_v19  ;;  %6546 = vmatprep.subr.bf16.mxu0 %v7196_v24  ;;  %v7235_v16 = vld [vmem:[%s9201_s1 + $0x8b0] sm:$0xff]   ;;  %v7238_v19 = vld [vmem:[%s9201_s1 + $0x828] sm:$0xff]   ;;  %v7243_v24 = vld [vmem:[%s9201_s1 + $0x8a0] sm:$0xff]  }
  0xe6   :  { %v6275_v15 = vpop.f32.mrf.mxu1  ;;  %v6254_v17 = vadd.f32 %v6253_v14, %v6252_v6  ;;  %6568 = vmatprep.subr.bf16.mxu1 %v7197_v25  ;;  %4966 = vmatprep.mubr.bf16.mxu0 %v5689_v60  ;;  %v7231_v6 = vld [vmem:[%s9201_s1 + $0x8b8] sm:$0xff]   ;;  %v7268_v60 = vld [vmem:[%s9201_s1 + $0x970] sm:$0xff]  }
  0xe7   :  { %v6276_v18 = vadd.f32 %v6275_v15, %v6274_v7  ;;  %v6255_v21 = vpop.f32.mrf.mxu0  ;;  %5006 = vmatprep.mubr.bf16.mxu1 %v5691_v63  ;;  %v7234_v15 = vld [vmem:[%s9201_s1 + $0x830] sm:$0xff]   ;;  %v7244_v25 = vld [vmem:[%s9201_s1 + $0x858] sm:$0xff]  }
  0xe8   :  { %v6277_v22 = vpop.f32.mrf.mxu1  ;;  %v4409_v23 = vadd.f32 %v6254_v17, %v5659_v20  ;;  %6547 = vmatpush3.bf16.msra.mxu0 %v7198_v29  ;;  %v7236_v17 = vld [vmem:[%s9201_s1 + $0x868] sm:$0xff]   ;;  %v7240_v21 = vld [vmem:[%s9201_s1 + $0x860] sm:$0xff]   ;;  %v7248_v29 = vld [vmem:[%s9201_s1 + $0x850] sm:$0xff]  }
  0xe9   :  { %v6256_v26 = vpop.f32.mrf.mxu0  ;;  %6569 = vmatpush3.bf16.msra.mxu1 %v7199_v30  ;;  %6548 = vmatprep.subr.bf16.mxu0 %v7200_v31  ;;  %v7239_v20 = vld [vmem:[%s9201_s1 + $0x8a8] sm:$0xff]   ;;  %v7241_v22 = vld [vmem:[%s9201_s1 + $0x8e0] sm:$0xff]   ;;  %v7249_v30 = vld [vmem:[%s9201_s1 + $0x8d0] sm:$0xff]  }
  0xea   :  { %v6278_v27 = vpop.f32.mrf.mxu1  ;;  %v8271_v28 = vadd.f32 %v6276_v18, %v4409_v23  ;;  %6570 = vmatprep.subr.bf16.mxu1 %v7201_v32  ;;  %v7237_v18 = vld [vmem:[%s9201_s1 + $0x8e8] sm:$0xff]   ;;  %v7242_v23 = vld [vmem:[%s9201_s1 + $0x820] sm:$0xff]   ;;  %v7245_v26 = vld [vmem:[%s9201_s1 + $0x8d8] sm:$0xff]  }
  0xeb   :  { %v7246_v27 = vld [vmem:[%s9201_s1 + $0x818] sm:$0xff]   ;;  %v7250_v31 = vld [vmem:[%s9201_s1 + $0x810] sm:$0xff]  }
  0xec   :  { %6549 = vmatpush3.bf16.msra.mxu0 %v7202_v33  ;;  %v7251_v32 = vld [vmem:[%s9201_s1 + $0x890] sm:$0xff]   ;;  %v7252_v33 = vld [vmem:[%s9201_s1 + $0x848] sm:$0xff]  }
  0xed   :  { %6571 = vmatpush3.bf16.msra.mxu1 %v7203_v34  ;;  %6550 = vmatprep.subr.bf16.mxu0 %v7204_v35  ;;  %v7253_v34 = vld [vmem:[%s9201_s1 + $0x8c8] sm:$0xff]   ;;  %v7269_v63 = vld [vmem:[%s9201_s1 + $0x9f0] sm:$0xff]  }
  0xee   :  { %6572 = vmatprep.subr.bf16.mxu1 %v7205_v36  ;;  %v7254_v35 = vld [vmem:[%s9201_s1 + $0x808] sm:$0xff]  }
  0xef   :  { %v7255_v36 = vld [vmem:[%s9201_s1 + $0x888] sm:$0xff]  }
  0xf0   :  { %6551 = vmatpush3.bf16.msra.mxu0 %v7206_v37  ;;  %v7256_v37 = vld [vmem:[%s9201_s1 + $0x840] sm:$0xff]  }
  0xf1   :  { %6573 = vmatpush3.bf16.msra.mxu1 %v7207_v38  ;;  %6552 = vmatprep.subr.bf16.mxu0 %v7208_v39  ;;  %v7257_v38 = vld [vmem:[%s9201_s1 + $0x8c0] sm:$0xff]  }
  0xf2   :  { %6574 = vmatprep.subr.bf16.mxu1 %v7209_v40  ;;  %v7258_v39 = vld [vmem:[%s9201_s1 + $0x800] sm:$0xff]  }
  0xf3   :  { %v7259_v40 = vld [vmem:[%s9201_s1 + $0x880] sm:$0xff]  }
  0xf4   :  { %6553 = vmatpush3.bf16.msra.mxu0 %v7210_v41  ;;  %v31_v41 = vld [vmem:[%s9202_s0 + $0x80] sm:$0xff] }
  0xf5   :  { %6575 = vmatpush3.bf16.msra.mxu1 %v7211_v42  ;;  %6554 = vmatprep.subr.bf16.mxu0 %v7212_v43  ;;  %v5692_v43 = vcombine.low %v31_v41, %v31_v41 }
  0xf6   :  { %6576 = vmatprep.subr.bf16.mxu1 %v7213_v44  ;;  %v5693_v44 = vcombine.high %v31_v41, %v31_v41  ;;  %v7303_v41 = vld [vmem:[%s9201_s1 + $0xab8] sm:$0xff]  }
  0xf8   :  { %6555 = vmatpush3.bf16.msra.mxu0 %v7214_v45  ;;  %v32_v45 = vld [vmem:[%s9202_s0 + $0x88] sm:$0xff] }
  0xf9   :  { %6577 = vmatpush3.bf16.msra.mxu1 %v7215_v46  ;;  %6556 = vmatprep.subr.bf16.mxu0 %v7216_v47  ;;  %v5694_v47 = vcombine.low %v32_v45, %v32_v45 }
  0xfa   :  { %6578 = vmatprep.subr.bf16.mxu1 %v7217_v48  ;;  %v5695_v48 = vcombine.high %v32_v45, %v32_v45 }
  0xfc   :  { %6557 = vmatpush3.bf16.msra.mxu0 %v7218_v49  ;;  %v7264_v49 = vld [vmem:[%s9201_s1 + $0x978] sm:$0xff]  }
  0xfd   :  { %6579 = vmatpush3.bf16.msra.mxu1 %v7219_v50  ;;  %6558 = vmatprep.subr.bf16.mxu0 %v7220_v51  ;;  %v7265_v51 = vld [vmem:[%s9201_s1 + $0x9f8] sm:$0xff]  }
  0xfe   :  { %6580 = vmatprep.subr.bf16.mxu1 %v7221_v52 }
 0x100   :  { %6559 = vmatpush3.bf16.msra.mxu0 %v7222_v53 }
 0x101   :  { %6581 = vmatpush3.bf16.msra.mxu1 %v7223_v54  ;;  %6588 = vmatprep.subr.bf16.mxu0 %v7228_v62  ;;  %v7266_v54 = vld [vmem:[%s9201_s1 + $0x938] sm:$0xff]  }
 0x102   :  { %6610 = vmatprep.subr.bf16.mxu1 %v7229_v0 }
 0x103   :  { %v6296_v57 = vpop.f32.mrf.mxu0  ;;  %4967 = vmatmul.mubr.bf16.vlgmr.msra.gmra.mxu0 %v5688_v59 }
 0x104   :  { %v6318_v58 = vpop.f32.mrf.mxu1  ;;  %5007 = vmatmul.mubr.bf16.vlgmr.msra.gmra.mxu1 %v5690_v61  ;;  %6589 = vmatpush3.bf16.msra.mxu0 %v7230_v3  ;;  %v7272_v3 = vld [vmem:[%s9201_s1 + $0x968] sm:$0xff]  }
 0x105   :  { %v6297_v1 = vpop.f32.mrf.mxu0  ;;  %6611 = vmatpush3.bf16.msra.mxu1 %v7231_v6  ;;  %6590 = vmatprep.subr.bf16.mxu0 %v7232_v10  ;;  %v7275_v6 = vld [vmem:[%s9201_s1 + $0x9a8] sm:$0xff]   ;;  %v7279_v10 = vld [vmem:[%s9201_s1 + $0x9a0] sm:$0xff]  }
 0x106   :  { %v6319_v2 = vpop.f32.mrf.mxu1  ;;  %v6298_v4 = vadd.f32 %v6297_v1, %v6296_v57  ;;  %6612 = vmatprep.subr.bf16.mxu1 %v7233_v11  ;;  %5046 = vmatprep.mubr.bf16.mxu0 %v5693_v44  ;;  %v7267_v57 = vld [vmem:[%s9201_s1 + $0x9b8] sm:$0xff]   ;;  %v7270_v1 = vld [vmem:[%s9201_s1 + $0x930] sm:$0xff]  }
 0x107   :  { %v6320_v5 = vadd.f32 %v6319_v2, %v6318_v58  ;;  %v6299_v7 = vpop.f32.mrf.mxu0  ;;  %5086 = vmatprep.mubr.bf16.mxu1 %v5695_v48  ;;  %v7271_v2 = vld [vmem:[%s9201_s1 + $0x9b0] sm:$0xff]   ;;  %v7280_v11 = vld [vmem:[%s9201_s1 + $0x958] sm:$0xff]  }
 0x108   :  { %v6321_v8 = vpop.f32.mrf.mxu1  ;;  %v4489_v9 = vadd.f32 %v6298_v4, %v8271_v28  ;;  %6591 = vmatpush3.bf16.msra.mxu0 %v7234_v15  ;;  %v7247_v28 = vld [vmem:[%s9201_s1 + $0x898] sm:$0xff]   ;;  %v7273_v4 = vld [vmem:[%s9201_s1 + $0x9e8] sm:$0xff]   ;;  %v7276_v7 = vld [vmem:[%s9201_s1 + $0x960] sm:$0xff]  }
 0x109   :  { %v6300_v12 = vpop.f32.mrf.mxu0  ;;  %6613 = vmatpush3.bf16.msra.mxu1 %v7235_v16  ;;  %6592 = vmatprep.subr.bf16.mxu0 %v7236_v17  ;;  %v7277_v8 = vld [vmem:[%s9201_s1 + $0x9e0] sm:$0xff]   ;;  %v7284_v15 = vld [vmem:[%s9201_s1 + $0x950] sm:$0xff]  }
 0x10a   :  { %v6322_v13 = vpop.f32.mrf.mxu1  ;;  %v8376_v14 = vadd.f32 %v6320_v5, %v4489_v9  ;;  %6614 = vmatprep.subr.bf16.mxu1 %v7237_v18  ;;  %v7274_v5 = vld [vmem:[%s9201_s1 + $0x928] sm:$0xff]   ;;  %v7278_v9 = vld [vmem:[%s9201_s1 + $0x920] sm:$0xff]   ;;  %v7281_v12 = vld [vmem:[%s9201_s1 + $0x9d8] sm:$0xff]  }
 0x10b   :  { %v7282_v13 = vld [vmem:[%s9201_s1 + $0x918] sm:$0xff]   ;;  %v7285_v16 = vld [vmem:[%s9201_s1 + $0x9d0] sm:$0xff]  }
 0x10c   :  { %6593 = vmatpush3.bf16.msra.mxu0 %v7238_v19  ;;  %v7286_v17 = vld [vmem:[%s9201_s1 + $0x910] sm:$0xff]   ;;  %v7288_v19 = vld [vmem:[%s9201_s1 + $0x948] sm:$0xff]  }
 0x10d   :  { %6615 = vmatpush3.bf16.msra.mxu1 %v7239_v20  ;;  %6594 = vmatprep.subr.bf16.mxu0 %v7240_v21  ;;  %v7287_v18 = vld [vmem:[%s9201_s1 + $0x990] sm:$0xff]   ;;  %v7289_v20 = vld [vmem:[%s9201_s1 + $0x9c8] sm:$0xff]  }
 0x10e   :  { %6616 = vmatprep.subr.bf16.mxu1 %v7241_v22  ;;  %v7290_v21 = vld [vmem:[%s9201_s1 + $0x908] sm:$0xff]  }
 0x10f   :  { %v7291_v22 = vld [vmem:[%s9201_s1 + $0x988] sm:$0xff]  }
 0x110   :  { %6595 = vmatpush3.bf16.msra.mxu0 %v7242_v23  ;;  %v7292_v23 = vld [vmem:[%s9201_s1 + $0x940] sm:$0xff]  }
 0x111   :  { %6617 = vmatpush3.bf16.msra.mxu1 %v7243_v24  ;;  %6596 = vmatprep.subr.bf16.mxu0 %v7244_v25  ;;  %v7293_v24 = vld [vmem:[%s9201_s1 + $0x9c0] sm:$0xff]  }
 0x112   :  { %6618 = vmatprep.subr.bf16.mxu1 %v7245_v26  ;;  %v7294_v25 = vld [vmem:[%s9201_s1 + $0x900] sm:$0xff]  }
 0x113   :  { %v7295_v26 = vld [vmem:[%s9201_s1 + $0x980] sm:$0xff]  }
 0x114   :  { %6597 = vmatpush3.bf16.msra.mxu0 %v7246_v27  ;;  %v33_v27 = vld [vmem:[%s9202_s0 + $0x90] sm:$0xff] }
 0x115   :  { %6619 = vmatpush3.bf16.msra.mxu1 %v7247_v28  ;;  %6598 = vmatprep.subr.bf16.mxu0 %v7248_v29  ;;  %v34_v28 = vld [vmem:[%s9202_s0 + $0x98] sm:$0xff] }
 0x116   :  { %6620 = vmatprep.subr.bf16.mxu1 %v7249_v30  ;;  %v5696_v30 = vcombine.low %v33_v27, %v33_v27 }
 0x118   :  { %6599 = vmatpush3.bf16.msra.mxu0 %v7250_v31  ;;  %v5697_v31 = vcombine.high %v33_v27, %v33_v27 }
 0x119   :  { %6621 = vmatpush3.bf16.msra.mxu1 %v7251_v32  ;;  %6600 = vmatprep.subr.bf16.mxu0 %v7252_v33  ;;  %v5698_v32 = vcombine.low %v34_v28, %v34_v28  ;;  %v5699_v33 = vcombine.high %v34_v28, %v34_v28  ;;  %v7339_v28 = vld [vmem:[%s9201_s1 + $0xbb8] sm:$0xff]  }
 0x11a   :  { %6622 = vmatprep.subr.bf16.mxu1 %v7253_v34 }
 0x11c   :  { %6601 = vmatpush3.bf16.msra.mxu0 %v7254_v35  ;;  %v7300_v35 = vld [vmem:[%s9201_s1 + $0xa78] sm:$0xff]  }
 0x11d   :  { %6623 = vmatpush3.bf16.msra.mxu1 %v7255_v36  ;;  %6602 = vmatprep.subr.bf16.mxu0 %v7256_v37  ;;  %v7301_v36 = vld [vmem:[%s9201_s1 + $0xaf8] sm:$0xff]  }
 0x11e   :  { %6624 = vmatprep.subr.bf16.mxu1 %v7257_v38  ;;  %v7302_v38 = vld [vmem:[%s9201_s1 + $0xa38] sm:$0xff]  }
 0x120   :  { %6603 = vmatpush3.bf16.msra.mxu0 %v7258_v39 }
 0x121   :  { %6625 = vmatpush3.bf16.msra.mxu1 %v7259_v40  ;;  %6632 = vmatprep.subr.bf16.mxu0 %v7264_v49 }
 0x122   :  { %6654 = vmatprep.subr.bf16.mxu1 %v7265_v51 }
 0x123   :  { %v6340_v42 = vpop.f32.mrf.mxu0  ;;  %5047 = vmatmul.mubr.bf16.vlgmr.msra.gmra.mxu0 %v5692_v43 }
 0x124   :  { %v6362_v46 = vpop.f32.mrf.mxu1  ;;  %5087 = vmatmul.mubr.bf16.vlgmr.msra.gmra.mxu1 %v5694_v47  ;;  %6633 = vmatpush3.bf16.msra.mxu0 %v7266_v54  ;;  %v7305_v47 = vld [vmem:[%s9201_s1 + $0xaf0] sm:$0xff]   ;;  %v7309_v54 = vld [vmem:[%s9201_s1 + $0xae8] sm:$0xff]  }
 0x125   :  { %v6341_v50 = vpop.f32.mrf.mxu0  ;;  %6655 = vmatpush3.bf16.msra.mxu1 %v7267_v57  ;;  %6634 = vmatprep.subr.bf16.mxu0 %v7268_v60  ;;  %v7312_v57 = vld [vmem:[%s9201_s1 + $0xa60] sm:$0xff]  }
 0x126   :  { %v6342_v52 = vadd.f32 %v6341_v50, %v6340_v42  ;;  %v6363_v53 = vpop.f32.mrf.mxu1  ;;  %6656 = vmatprep.subr.bf16.mxu1 %v7269_v63  ;;  %5126 = vmatprep.mubr.bf16.mxu0 %v5697_v31  ;;  %v7306_v50 = vld [vmem:[%s9201_s1 + $0xa30] sm:$0xff]   ;;  %v7315_v60 = vld [vmem:[%s9201_s1 + $0xaa0] sm:$0xff]   ;;  %v7318_v63 = vld [vmem:[%s9201_s1 + $0xa18] sm:$0xff]  }
 0x127   :  { %v6364_v55 = vadd.f32 %v6363_v53, %v6362_v46  ;;  %v6343_v56 = vpop.f32.mrf.mxu0  ;;  %5166 = vmatprep.mubr.bf16.mxu1 %v5699_v33  ;;  %v7304_v46 = vld [vmem:[%s9201_s1 + $0xa70] sm:$0xff]   ;;  %v7308_v53 = vld [vmem:[%s9201_s1 + $0xa68] sm:$0xff]  }
 0x128   :  { %v4569_v58 = vadd.f32 %v6342_v52, %v8376_v14  ;;  %v6365_v59 = vpop.f32.mrf.mxu1  ;;  %6635 = vmatpush3.bf16.msra.mxu0 %v7270_v1  ;;  %v7283_v14 = vld [vmem:[%s9201_s1 + $0x998] sm:$0xff]   ;;  %v7307_v52 = vld [vmem:[%s9201_s1 + $0xab0] sm:$0xff]   ;;  %v7311_v56 = vld [vmem:[%s9201_s1 + $0xaa8] sm:$0xff]  }
 0x129   :  { %v6344_v61 = vpop.f32.mrf.mxu0  ;;  %6657 = vmatpush3.bf16.msra.mxu1 %v7271_v2  ;;  %6636 = vmatprep.subr.bf16.mxu0 %v7272_v3  ;;  %v7314_v59 = vld [vmem:[%s9201_s1 + $0xa20] sm:$0xff]   ;;  %v7320_v1 = vld [vmem:[%s9201_s1 + $0xa50] sm:$0xff]  }
 0x12a   :  { %v8478_v62 = vadd.f32 %v6364_v55, %v4569_v58  ;;  %v6366_v0 = vpop.f32.mrf.mxu1  ;;  %6658 = vmatprep.subr.bf16.mxu1 %v7273_v4  ;;  %v7310_v55 = vld [vmem:[%s9201_s1 + $0xa28] sm:$0xff]   ;;  %v7313_v58 = vld [vmem:[%s9201_s1 + $0xae0] sm:$0xff]   ;;  %v7316_v61 = vld [vmem:[%s9201_s1 + $0xa58] sm:$0xff]  }
 0x12b   :  { %v7319_v0 = vld [vmem:[%s9201_s1 + $0xa98] sm:$0xff]   ;;  %v7321_v2 = vld [vmem:[%s9201_s1 + $0xad0] sm:$0xff]  }
 0x12c   :  { %6637 = vmatpush3.bf16.msra.mxu0 %v7274_v5  ;;  %v7322_v3 = vld [vmem:[%s9201_s1 + $0xa10] sm:$0xff]   ;;  %v7324_v5 = vld [vmem:[%s9201_s1 + $0xa48] sm:$0xff]  }
 0x12d   :  { %6659 = vmatpush3.bf16.msra.mxu1 %v7275_v6  ;;  %6638 = vmatprep.subr.bf16.mxu0 %v7276_v7  ;;  %v7323_v4 = vld [vmem:[%s9201_s1 + $0xa90] sm:$0xff]   ;;  %v7325_v6 = vld [vmem:[%s9201_s1 + $0xac8] sm:$0xff]  }
 0x12e   :  { %6660 = vmatprep.subr.bf16.mxu1 %v7277_v8  ;;  %v7326_v7 = vld [vmem:[%s9201_s1 + $0xa08] sm:$0xff]   ;;  %v7341_v33 = vld [vmem:[%s9201_s1 + $0xbf0] sm:$0xff]  }
 0x12f   :  { %v7327_v8 = vld [vmem:[%s9201_s1 + $0xa88] sm:$0xff]  }
 0x130   :  { %6639 = vmatpush3.bf16.msra.mxu0 %v7278_v9  ;;  %v7328_v9 = vld [vmem:[%s9201_s1 + $0xa40] sm:$0xff]  }
 0x131   :  { %6661 = vmatpush3.bf16.msra.mxu1 %v7279_v10  ;;  %6640 = vmatprep.subr.bf16.mxu0 %v7280_v11  ;;  %v7329_v10 = vld [vmem:[%s9201_s1 + $0xac0] sm:$0xff]  }
 0x132   :  { %6662 = vmatprep.subr.bf16.mxu1 %v7281_v12  ;;  %v7330_v11 = vld [vmem:[%s9201_s1 + $0xa00] sm:$0xff]  }
 0x133   :  { %v7331_v12 = vld [vmem:[%s9201_s1 + $0xa80] sm:$0xff]  }
 0x134   :  { %6641 = vmatpush3.bf16.msra.mxu0 %v7282_v13  ;;  %v35_v13 = vld [vmem:[%s9202_s0 + $0xa0] sm:$0xff] }
 0x135   :  { %6663 = vmatpush3.bf16.msra.mxu1 %v7283_v14  ;;  %6642 = vmatprep.subr.bf16.mxu0 %v7284_v15  ;;  %v36_v14 = vld [vmem:[%s9202_s0 + $0xa8] sm:$0xff] }
 0x136   :  { %6664 = vmatprep.subr.bf16.mxu1 %v7285_v16 }
 0x138   :  { %6643 = vmatpush3.bf16.msra.mxu0 %v7286_v17  ;;  %v5700_v17 = vcombine.low %v35_v13, %v35_v13 }
 0x139   :  { %6665 = vmatpush3.bf16.msra.mxu1 %v7287_v18  ;;  %6644 = vmatprep.subr.bf16.mxu0 %v7288_v19  ;;  %v5701_v18 = vcombine.high %v35_v13, %v35_v13  ;;  %v5702_v19 = vcombine.low %v36_v14, %v36_v14 }
 0x13a   :  { %6666 = vmatprep.subr.bf16.mxu1 %v7289_v20  ;;  %v7336_v20 = vld [vmem:[%s9201_s1 + $0xb78] sm:$0xff]  }
 0x13c   :  { %6645 = vmatpush3.bf16.msra.mxu0 %v7290_v21  ;;  %v5703_v21 = vcombine.high %v36_v14, %v36_v14 }
 0x13d   :  { %6667 = vmatpush3.bf16.msra.mxu1 %v7291_v22  ;;  %6646 = vmatprep.subr.bf16.mxu0 %v7292_v23  ;;  %v7337_v22 = vld [vmem:[%s9201_s1 + $0xbf8] sm:$0xff]  }
 0x13e   :  { %6668 = vmatprep.subr.bf16.mxu1 %v7293_v24 }
 0x140   :  { %6647 = vmatpush3.bf16.msra.mxu0 %v7294_v25  ;;  %v7338_v25 = vld [vmem:[%s9201_s1 + $0xb38] sm:$0xff]  }
 0x141   :  { %6669 = vmatpush3.bf16.msra.mxu1 %v7295_v26  ;;  %6676 = vmatprep.subr.bf16.mxu0 %v7300_v35 }
 0x142   :  { %6698 = vmatprep.subr.bf16.mxu1 %v7301_v36 }
 0x143   :  { %v6384_v29 = vpop.f32.mrf.mxu0  ;;  %5127 = vmatmul.mubr.bf16.vlgmr.msra.gmra.mxu0 %v5696_v30 }
 0x144   :  { %v6406_v34 = vpop.f32.mrf.mxu1  ;;  %5167 = vmatmul.mubr.bf16.vlgmr.msra.gmra.mxu1 %v5698_v32  ;;  %6677 = vmatpush3.bf16.msra.mxu0 %v7302_v38  ;;  %v7340_v32 = vld [vmem:[%s9201_s1 + $0xb70] sm:$0xff]  }
 0x145   :  { %v6385_v37 = vpop.f32.mrf.mxu0  ;;  %6699 = vmatpush3.bf16.msra.mxu1 %v7303_v41  ;;  %6678 = vmatprep.subr.bf16.mxu0 %v7304_v46  ;;  %v7343_v38 = vld [vmem:[%s9201_s1 + $0xbb0] sm:$0xff]   ;;  %v7346_v41 = vld [vmem:[%s9201_s1 + $0xb28] sm:$0xff]   ;;  %v7351_v46 = vld [vmem:[%s9201_s1 + $0xba0] sm:$0xff]  }
 0x146   :  { %v6386_v39 = vadd.f32 %v6385_v37, %v6384_v29  ;;  %v6407_v40 = vpop.f32.mrf.mxu1  ;;  %6700 = vmatprep.subr.bf16.mxu1 %v7305_v47  ;;  %5206 = vmatprep.mubr.bf16.mxu0 %v5701_v18  ;;  %v7342_v37 = vld [vmem:[%s9201_s1 + $0xb30] sm:$0xff]   ;;  %v7352_v47 = vld [vmem:[%s9201_s1 + $0xb58] sm:$0xff]  }
 0x147   :  { %v6408_v42 = vadd.f32 %v6407_v40, %v6406_v34  ;;  %v6387_v43 = vpop.f32.mrf.mxu0  ;;  %5246 = vmatprep.mubr.bf16.mxu1 %v5703_v21  ;;  %v7345_v40 = vld [vmem:[%s9201_s1 + $0xbe8] sm:$0xff]   ;;  %v7376_v18 = vld [vmem:[%s9201_s1 + $0xc70] sm:$0xff]  }
 0x148   :  { %v4649_v44 = vadd.f32 %v6386_v39, %v8478_v62  ;;  %v6409_v45 = vpop.f32.mrf.mxu1  ;;  %6679 = vmatpush3.bf16.msra.mxu0 %v7306_v50  ;;  %v7317_v62 = vld [vmem:[%s9201_s1 + $0xad8] sm:$0xff]   ;;  %v7344_v39 = vld [vmem:[%s9201_s1 + $0xb68] sm:$0xff]   ;;  %v7348_v43 = vld [vmem:[%s9201_s1 + $0xb60] sm:$0xff]  }
 0x149   :  { %v6388_v48 = vpop.f32.mrf.mxu0  ;;  %6701 = vmatpush3.bf16.msra.mxu1 %v7307_v52  ;;  %6680 = vmatprep.subr.bf16.mxu0 %v7308_v53  ;;  %v7350_v45 = vld [vmem:[%s9201_s1 + $0xb20] sm:$0xff]   ;;  %v7355_v50 = vld [vmem:[%s9201_s1 + $0xb98] sm:$0xff]   ;;  %v7357_v52 = vld [vmem:[%s9201_s1 + $0xbd0] sm:$0xff]  }
 0x14a   :  { %v8586_v49 = vadd.f32 %v6408_v42, %v4649_v44  ;;  %v6410_v51 = vpop.f32.mrf.mxu1  ;;  %6702 = vmatprep.subr.bf16.mxu1 %v7309_v54  ;;  %v7347_v42 = vld [vmem:[%s9201_s1 + $0xba8] sm:$0xff]   ;;  %v7349_v44 = vld [vmem:[%s9201_s1 + $0xbe0] sm:$0xff]   ;;  %v7353_v48 = vld [vmem:[%s9201_s1 + $0xbd8] sm:$0xff]  }
 0x14b   :  { %v7356_v51 = vld [vmem:[%s9201_s1 + $0xb50] sm:$0xff]  }
 0x14c   :  { %6681 = vmatpush3.bf16.msra.mxu0 %v7310_v55  ;;  %v7358_v53 = vld [vmem:[%s9201_s1 + $0xb10] sm:$0xff]   ;;  %v7360_v55 = vld [vmem:[%s9201_s1 + $0xb48] sm:$0xff]  }
 0x14d   :  { %6703 = vmatpush3.bf16.msra.mxu1 %v7311_v56  ;;  %6682 = vmatprep.subr.bf16.mxu0 %v7312_v57  ;;  %v7359_v54 = vld [vmem:[%s9201_s1 + $0xb90] sm:$0xff]   ;;  %v7361_v56 = vld [vmem:[%s9201_s1 + $0xbc8] sm:$0xff]  }
 0x14e   :  { %6704 = vmatprep.subr.bf16.mxu1 %v7313_v58  ;;  %v7362_v57 = vld [vmem:[%s9201_s1 + $0xb08] sm:$0xff]   ;;  %v7377_v21 = vld [vmem:[%s9201_s1 + $0xcf0] sm:$0xff]  }
 0x14f   :  { %v7363_v58 = vld [vmem:[%s9201_s1 + $0xb88] sm:$0xff]  }
 0x150   :  { %6683 = vmatpush3.bf16.msra.mxu0 %v7314_v59  ;;  %v7364_v59 = vld [vmem:[%s9201_s1 + $0xb40] sm:$0xff]  }
 0x151   :  { %6705 = vmatpush3.bf16.msra.mxu1 %v7315_v60  ;;  %6684 = vmatprep.subr.bf16.mxu0 %v7316_v61  ;;  %v7365_v60 = vld [vmem:[%s9201_s1 + $0xbc0] sm:$0xff]  }
 0x152   :  { %6706 = vmatprep.subr.bf16.mxu1 %v7317_v62  ;;  %v7366_v61 = vld [vmem:[%s9201_s1 + $0xb00] sm:$0xff]  }
 0x153   :  { %v7367_v62 = vld [vmem:[%s9201_s1 + $0xb80] sm:$0xff]  }
 0x154   :  { %6685 = vmatpush3.bf16.msra.mxu0 %v7318_v63  ;;  %v37_v63 = vld [vmem:[%s9202_s0 + $0xb0] sm:$0xff] }
 0x155   :  { %6707 = vmatpush3.bf16.msra.mxu1 %v7319_v0  ;;  %6686 = vmatprep.subr.bf16.mxu0 %v7320_v1  ;;  %v5704_v1 = vcombine.low %v37_v63, %v37_v63 }
 0x156   :  { %6708 = vmatprep.subr.bf16.mxu1 %v7321_v2  ;;  %v5705_v2 = vcombine.high %v37_v63, %v37_v63  ;;  %v7411_v63 = vld [vmem:[%s9201_s1 + $0xdb8] sm:$0xff]  }
 0x158   :  { %6687 = vmatpush3.bf16.msra.mxu0 %v7322_v3  ;;  %v38_v3 = vld [vmem:[%s9202_s0 + $0xb8] sm:$0xff] }
 0x159   :  { %6709 = vmatpush3.bf16.msra.mxu1 %v7323_v4  ;;  %6688 = vmatprep.subr.bf16.mxu0 %v7324_v5  ;;  %v5706_v5 = vcombine.low %v38_v3, %v38_v3 }
 0x15a   :  { %6710 = vmatprep.subr.bf16.mxu1 %v7325_v6  ;;  %v5707_v6 = vcombine.high %v38_v3, %v38_v3 }
 0x15c   :  { %6689 = vmatpush3.bf16.msra.mxu0 %v7326_v7  ;;  %v7372_v7 = vld [vmem:[%s9201_s1 + $0xc78] sm:$0xff]  }
 0x15d   :  { %6711 = vmatpush3.bf16.msra.mxu1 %v7327_v8  ;;  %6690 = vmatprep.subr.bf16.mxu0 %v7328_v9  ;;  %v7373_v9 = vld [vmem:[%s9201_s1 + $0xcf8] sm:$0xff]  }
 0x15e   :  { %6712 = vmatprep.subr.bf16.mxu1 %v7329_v10 }
 0x160   :  { %6691 = vmatpush3.bf16.msra.mxu0 %v7330_v11 }
 0x161   :  { %6713 = vmatpush3.bf16.msra.mxu1 %v7331_v12  ;;  %6720 = vmatprep.subr.bf16.mxu0 %v7336_v20  ;;  %v7374_v12 = vld [vmem:[%s9201_s1 + $0xc38] sm:$0xff]  }
 0x162   :  { %6742 = vmatprep.subr.bf16.mxu1 %v7337_v22 }
 0x163   :  { %v6428_v15 = vpop.f32.mrf.mxu0  ;;  %5207 = vmatmul.mubr.bf16.vlgmr.msra.gmra.mxu0 %v5700_v17 }
 0x164   :  { %v6450_v16 = vpop.f32.mrf.mxu1  ;;  %5247 = vmatmul.mubr.bf16.vlgmr.msra.gmra.mxu1 %v5702_v19  ;;  %6721 = vmatpush3.bf16.msra.mxu0 %v7338_v25  ;;  %v7380_v25 = vld [vmem:[%s9201_s1 + $0xc68] sm:$0xff]  }
 0x165   :  { %v6429_v23 = vpop.f32.mrf.mxu0  ;;  %6743 = vmatpush3.bf16.msra.mxu1 %v7339_v28  ;;  %6722 = vmatprep.subr.bf16.mxu0 %v7340_v32  ;;  %v7383_v28 = vld [vmem:[%s9201_s1 + $0xca8] sm:$0xff]   ;;  %v7387_v32 = vld [vmem:[%s9201_s1 + $0xca0] sm:$0xff]  }
 0x166   :  { %v6451_v24 = vpop.f32.mrf.mxu1  ;;  %v6430_v26 = vadd.f32 %v6429_v23, %v6428_v15  ;;  %6744 = vmatprep.subr.bf16.mxu1 %v7341_v33  ;;  %5286 = vmatprep.mubr.bf16.mxu0 %v5705_v2  ;;  %v7375_v15 = vld [vmem:[%s9201_s1 + $0xcb8] sm:$0xff]   ;;  %v7378_v23 = vld [vmem:[%s9201_s1 + $0xc30] sm:$0xff]  }
 0x167   :  { %v6452_v27 = vadd.f32 %v6451_v24, %v6450_v16  ;;  %v6431_v29 = vpop.f32.mrf.mxu0  ;;  %5326 = vmatprep.mubr.bf16.mxu1 %v5707_v6  ;;  %v7379_v24 = vld [vmem:[%s9201_s1 + $0xcb0] sm:$0xff]   ;;  %v7388_v33 = vld [vmem:[%s9201_s1 + $0xc58] sm:$0xff]  }
 0x168   :  { %v6453_v30 = vpop.f32.mrf.mxu1  ;;  %v4729_v31 = vadd.f32 %v6430_v26, %v8586_v49  ;;  %6723 = vmatpush3.bf16.msra.mxu0 %v7342_v37  ;;  %v7354_v49 = vld [vmem:[%s9201_s1 + $0xb18] sm:$0xff]   ;;  %v7381_v26 = vld [vmem:[%s9201_s1 + $0xce8] sm:$0xff]   ;;  %v7384_v29 = vld [vmem:[%s9201_s1 + $0xc60] sm:$0xff]  }
 0x169   :  { %v6432_v34 = vpop.f32.mrf.mxu0  ;;  %6745 = vmatpush3.bf16.msra.mxu1 %v7343_v38  ;;  %6724 = vmatprep.subr.bf16.mxu0 %v7344_v39  ;;  %v7385_v30 = vld [vmem:[%s9201_s1 + $0xce0] sm:$0xff]   ;;  %v7392_v37 = vld [vmem:[%s9201_s1 + $0xc50] sm:$0xff]  }
 0x16a   :  { %v6454_v35 = vpop.f32.mrf.mxu1  ;;  %v8691_v36 = vadd.f32 %v6452_v27, %v4729_v31  ;;  %6746 = vmatprep.subr.bf16.mxu1 %v7345_v40  ;;  %v7382_v27 = vld [vmem:[%s9201_s1 + $0xc28] sm:$0xff]   ;;  %v7386_v31 = vld [vmem:[%s9201_s1 + $0xc20] sm:$0xff]   ;;  %v7389_v34 = vld [vmem:[%s9201_s1 + $0xcd8] sm:$0xff]  }
 0x16b   :  { %v7390_v35 = vld [vmem:[%s9201_s1 + $0xc18] sm:$0xff]   ;;  %v7393_v38 = vld [vmem:[%s9201_s1 + $0xcd0] sm:$0xff]  }
 0x16c   :  { %6725 = vmatpush3.bf16.msra.mxu0 %v7346_v41  ;;  %v7394_v39 = vld [vmem:[%s9201_s1 + $0xc10] sm:$0xff]   ;;  %v7396_v41 = vld [vmem:[%s9201_s1 + $0xc48] sm:$0xff]  }
 0x16d   :  { %6747 = vmatpush3.bf16.msra.mxu1 %v7347_v42  ;;  %6726 = vmatprep.subr.bf16.mxu0 %v7348_v43  ;;  %v7395_v40 = vld [vmem:[%s9201_s1 + $0xc90] sm:$0xff]   ;;  %v7397_v42 = vld [vmem:[%s9201_s1 + $0xcc8] sm:$0xff]  }
 0x16e   :  { %6748 = vmatprep.subr.bf16.mxu1 %v7349_v44  ;;  %v7398_v43 = vld [vmem:[%s9201_s1 + $0xc08] sm:$0xff]  }
 0x16f   :  { %v7399_v44 = vld [vmem:[%s9201_s1 + $0xc88] sm:$0xff]  }
 0x170   :  { %6727 = vmatpush3.bf16.msra.mxu0 %v7350_v45  ;;  %v7400_v45 = vld [vmem:[%s9201_s1 + $0xc40] sm:$0xff]  }
 0x171   :  { %6749 = vmatpush3.bf16.msra.mxu1 %v7351_v46  ;;  %6728 = vmatprep.subr.bf16.mxu0 %v7352_v47  ;;  %v7401_v46 = vld [vmem:[%s9201_s1 + $0xcc0] sm:$0xff]  }
 0x172   :  { %6750 = vmatprep.subr.bf16.mxu1 %v7353_v48  ;;  %v7402_v47 = vld [vmem:[%s9201_s1 + $0xc00] sm:$0xff]  }
 0x173   :  { %v7403_v48 = vld [vmem:[%s9201_s1 + $0xc80] sm:$0xff]  }
 0x174   :  { %6729 = vmatpush3.bf16.msra.mxu0 %v7354_v49  ;;  %v39_v49 = vld [vmem:[%s9202_s0 + $0xc0] sm:$0xff] }
 0x175   :  { %6751 = vmatpush3.bf16.msra.mxu1 %v7355_v50  ;;  %6730 = vmatprep.subr.bf16.mxu0 %v7356_v51  ;;  %v40_v50 = vld [vmem:[%s9202_s0 + $0xc8] sm:$0xff] }
 0x176   :  { %6752 = vmatprep.subr.bf16.mxu1 %v7357_v52  ;;  %v5708_v52 = vcombine.low %v39_v49, %v39_v49 }
 0x178   :  { %6731 = vmatpush3.bf16.msra.mxu0 %v7358_v53  ;;  %v5709_v53 = vcombine.high %v39_v49, %v39_v49  ;;  %v7447_v49 = vld [vmem:[%s9201_s1 + $0xeb8] sm:$0xff]  }
 0x179   :  { %6753 = vmatpush3.bf16.msra.mxu1 %v7359_v54  ;;  %6732 = vmatprep.subr.bf16.mxu0 %v7360_v55  ;;  %v5710_v54 = vcombine.low %v40_v50, %v40_v50  ;;  %v5711_v55 = vcombine.high %v40_v50, %v40_v50 }
 0x17a   :  { %6754 = vmatprep.subr.bf16.mxu1 %v7361_v56 }
 0x17c   :  { %6733 = vmatpush3.bf16.msra.mxu0 %v7362_v57  ;;  %v7408_v57 = vld [vmem:[%s9201_s1 + $0xd78] sm:$0xff]  }
 0x17d   :  { %6755 = vmatpush3.bf16.msra.mxu1 %v7363_v58  ;;  %6734 = vmatprep.subr.bf16.mxu0 %v7364_v59  ;;  %v7409_v58 = vld [vmem:[%s9201_s1 + $0xdf8] sm:$0xff]  }
 0x17e   :  { %6756 = vmatprep.subr.bf16.mxu1 %v7365_v60  ;;  %v7410_v60 = vld [vmem:[%s9201_s1 + $0xd38] sm:$0xff]  }
 0x180   :  { %6735 = vmatpush3.bf16.msra.mxu0 %v7366_v61 }
 0x181   :  { %6757 = vmatpush3.bf16.msra.mxu1 %v7367_v62  ;;  %6764 = vmatprep.subr.bf16.mxu0 %v7372_v7 }
 0x182   :  { %6786 = vmatprep.subr.bf16.mxu1 %v7373_v9 }
 0x183   :  { %v6472_v0 = vpop.f32.mrf.mxu0  ;;  %5287 = vmatmul.mubr.bf16.vlgmr.msra.gmra.mxu0 %v5704_v1 }
 0x184   :  { %v6494_v4 = vpop.f32.mrf.mxu1  ;;  %5327 = vmatmul.mubr.bf16.vlgmr.msra.gmra.mxu1 %v5706_v5  ;;  %6765 = vmatpush3.bf16.msra.mxu0 %v7374_v12  ;;  %v7413_v5 = vld [vmem:[%s9201_s1 + $0xdf0] sm:$0xff]   ;;  %v7417_v12 = vld [vmem:[%s9201_s1 + $0xde8] sm:$0xff]  }
 0x185   :  { %v6473_v8 = vpop.f32.mrf.mxu0  ;;  %6787 = vmatpush3.bf16.msra.mxu1 %v7375_v15  ;;  %6766 = vmatprep.subr.bf16.mxu0 %v7376_v18  ;;  %v7420_v15 = vld [vmem:[%s9201_s1 + $0xd60] sm:$0xff]  }
 0x186   :  { %v6474_v10 = vadd.f32 %v6473_v8, %v6472_v0  ;;  %v6495_v11 = vpop.f32.mrf.mxu1  ;;  %6788 = vmatprep.subr.bf16.mxu1 %v7377_v21  ;;  %5366 = vmatprep.mubr.bf16.mxu0 %v5709_v53  ;;  %v7414_v8 = vld [vmem:[%s9201_s1 + $0xd30] sm:$0xff]   ;;  %v7423_v18 = vld [vmem:[%s9201_s1 + $0xda0] sm:$0xff]   ;;  %v7426_v21 = vld [vmem:[%s9201_s1 + $0xd18] sm:$0xff]  }
 0x187   :  { %v6496_v13 = vadd.f32 %v6495_v11, %v6494_v4  ;;  %v6475_v14 = vpop.f32.mrf.mxu0  ;;  %5406 = vmatprep.mubr.bf16.mxu1 %v5711_v55  ;;  %v7412_v4 = vld [vmem:[%s9201_s1 + $0xd70] sm:$0xff]   ;;  %v7416_v11 = vld [vmem:[%s9201_s1 + $0xd68] sm:$0xff]  }
 0x188   :  { %v4809_v16 = vadd.f32 %v6474_v10, %v8691_v36  ;;  %v6497_v17 = vpop.f32.mrf.mxu1  ;;  %6767 = vmatpush3.bf16.msra.mxu0 %v7378_v23  ;;  %v7391_v36 = vld [vmem:[%s9201_s1 + $0xc98] sm:$0xff]   ;;  %v7415_v10 = vld [vmem:[%s9201_s1 + $0xdb0] sm:$0xff]   ;;  %v7419_v14 = vld [vmem:[%s9201_s1 + $0xda8] sm:$0xff]  }
 0x189   :  { %v6476_v19 = vpop.f32.mrf.mxu0  ;;  %6789 = vmatpush3.bf16.msra.mxu1 %v7379_v24  ;;  %6768 = vmatprep.subr.bf16.mxu0 %v7380_v25  ;;  %v7422_v17 = vld [vmem:[%s9201_s1 + $0xd20] sm:$0xff]   ;;  %v7428_v23 = vld [vmem:[%s9201_s1 + $0xd50] sm:$0xff]  }
 0x18a   :  { %v8793_v20 = vadd.f32 %v6496_v13, %v4809_v16  ;;  %v6498_v22 = vpop.f32.mrf.mxu1  ;;  %6790 = vmatprep.subr.bf16.mxu1 %v7381_v26  ;;  %v7418_v13 = vld [vmem:[%s9201_s1 + $0xd28] sm:$0xff]   ;;  %v7421_v16 = vld [vmem:[%s9201_s1 + $0xde0] sm:$0xff]   ;;  %v7424_v19 = vld [vmem:[%s9201_s1 + $0xd58] sm:$0xff]  }
 0x18b   :  { %v7427_v22 = vld [vmem:[%s9201_s1 + $0xd98] sm:$0xff]   ;;  %v7429_v24 = vld [vmem:[%s9201_s1 + $0xdd0] sm:$0xff]  }
 0x18c   :  { %6769 = vmatpush3.bf16.msra.mxu0 %v7382_v27  ;;  %v7430_v25 = vld [vmem:[%s9201_s1 + $0xd10] sm:$0xff]   ;;  %v7432_v27 = vld [vmem:[%s9201_s1 + $0xd48] sm:$0xff]  }
 0x18d   :  { %6791 = vmatpush3.bf16.msra.mxu1 %v7383_v28  ;;  %6770 = vmatprep.subr.bf16.mxu0 %v7384_v29  ;;  %v7431_v26 = vld [vmem:[%s9201_s1 + $0xd90] sm:$0xff]   ;;  %v7433_v28 = vld [vmem:[%s9201_s1 + $0xdc8] sm:$0xff]  }
 0x18e   :  { %6792 = vmatprep.subr.bf16.mxu1 %v7385_v30  ;;  %v7434_v29 = vld [vmem:[%s9201_s1 + $0xd08] sm:$0xff]   ;;  %v7449_v55 = vld [vmem:[%s9201_s1 + $0xef0] sm:$0xff]  }
 0x18f   :  { %v7435_v30 = vld [vmem:[%s9201_s1 + $0xd88] sm:$0xff]  }
 0x190   :  { %6771 = vmatpush3.bf16.msra.mxu0 %v7386_v31  ;;  %v7436_v31 = vld [vmem:[%s9201_s1 + $0xd40] sm:$0xff]  }
 0x191   :  { %6793 = vmatpush3.bf16.msra.mxu1 %v7387_v32  ;;  %6772 = vmatprep.subr.bf16.mxu0 %v7388_v33  ;;  %v7437_v32 = vld [vmem:[%s9201_s1 + $0xdc0] sm:$0xff]  }
 0x192   :  { %6794 = vmatprep.subr.bf16.mxu1 %v7389_v34  ;;  %v7438_v33 = vld [vmem:[%s9201_s1 + $0xd00] sm:$0xff]  }
 0x193   :  { %v7439_v34 = vld [vmem:[%s9201_s1 + $0xd80] sm:$0xff]  }
 0x194   :  { %6773 = vmatpush3.bf16.msra.mxu0 %v7390_v35  ;;  %v41_v35 = vld [vmem:[%s9202_s0 + $0xd0] sm:$0xff] }
 0x195   :  { %6795 = vmatpush3.bf16.msra.mxu1 %v7391_v36  ;;  %6774 = vmatprep.subr.bf16.mxu0 %v7392_v37  ;;  %v42_v36 = vld [vmem:[%s9202_s0 + $0xd8] sm:$0xff] }
 0x196   :  { %6796 = vmatprep.subr.bf16.mxu1 %v7393_v38  ;;  %v5712_v38 = vcombine.low %v41_v35, %v41_v35 }
 0x198   :  { %6775 = vmatpush3.bf16.msra.mxu0 %v7394_v39  ;;  %v5713_v39 = vcombine.high %v41_v35, %v41_v35 }
 0x199   :  { %6797 = vmatpush3.bf16.msra.mxu1 %v7395_v40  ;;  %6776 = vmatprep.subr.bf16.mxu0 %v7396_v41  ;;  %v5714_v40 = vcombine.low %v42_v36, %v42_v36 }
 0x19a   :  { %6798 = vmatprep.subr.bf16.mxu1 %v7397_v42  ;;  %v7444_v42 = vld [vmem:[%s9201_s1 + $0xe78] sm:$0xff]  }
 0x19c   :  { %6777 = vmatpush3.bf16.msra.mxu0 %v7398_v43  ;;  %v5715_v43 = vcombine.high %v42_v36, %v42_v36  ;;  %v7483_v36 = vld [vmem:[%s9201_s1 + $0xfb8] sm:$0xff]  }
 0x19d   :  { %6799 = vmatpush3.bf16.msra.mxu1 %v7399_v44  ;;  %6778 = vmatprep.subr.bf16.mxu0 %v7400_v45  ;;  %v7445_v44 = vld [vmem:[%s9201_s1 + $0xef8] sm:$0xff]  }
 0x19e   :  { %6800 = vmatprep.subr.bf16.mxu1 %v7401_v46  ;;  %v7446_v46 = vld [vmem:[%s9201_s1 + $0xe38] sm:$0xff]  }
 0x1a0   :  { %6779 = vmatpush3.bf16.msra.mxu0 %v7402_v47 }
 0x1a1   :  { %6801 = vmatpush3.bf16.msra.mxu1 %v7403_v48  ;;  %6808 = vmatprep.subr.bf16.mxu0 %v7408_v57 }
 0x1a2   :  { %6830 = vmatprep.subr.bf16.mxu1 %v7409_v58  ;;  %v7450_v58 = vld [vmem:[%s9201_s1 + $0xe30] sm:$0xff]  }
 0x1a3   :  { %v6516_v51 = vpop.f32.mrf.mxu0  ;;  %5367 = vmatmul.mubr.bf16.vlgmr.msra.gmra.mxu0 %v5708_v52 }
 0x1a4   :  { %v6538_v56 = vpop.f32.mrf.mxu1  ;;  %5407 = vmatmul.mubr.bf16.vlgmr.msra.gmra.mxu1 %v5710_v54  ;;  %6809 = vmatpush3.bf16.msra.mxu0 %v7410_v60  ;;  %v7448_v54 = vld [vmem:[%s9201_s1 + $0xe70] sm:$0xff]  }
 0x1a5   :  { %v6517_v59 = vpop.f32.mrf.mxu0  ;;  %6831 = vmatpush3.bf16.msra.mxu1 %v7411_v63  ;;  %6810 = vmatprep.subr.bf16.mxu0 %v7412_v4  ;;  %v7451_v60 = vld [vmem:[%s9201_s1 + $0xeb0] sm:$0xff]   ;;  %v7454_v63 = vld [vmem:[%s9201_s1 + $0xe28] sm:$0xff]   ;;  %v7459_v4 = vld [vmem:[%s9201_s1 + $0xea0] sm:$0xff]  }
 0x1a6   :  { %v6518_v61 = vadd.f32 %v6517_v59, %v6516_v51  ;;  %v6539_v62 = vpop.f32.mrf.mxu1  ;;  %6832 = vmatprep.subr.bf16.mxu1 %v7413_v5  ;;  %5446 = vmatprep.mubr.bf16.mxu0 %v5713_v39  ;;  %v7460_v5 = vld [vmem:[%s9201_s1 + $0xe58] sm:$0xff]  }
 0x1a7   :  { %v6540_v0 = vadd.f32 %v6539_v62, %v6538_v56  ;;  %v6519_v1 = vpop.f32.mrf.mxu0  ;;  %5486 = vmatprep.mubr.bf16.mxu1 %v5715_v43  ;;  %v7453_v62 = vld [vmem:[%s9201_s1 + $0xee8] sm:$0xff]  }
 0x1a8   :  { %v4889_v2 = vadd.f32 %v6518_v61, %v8793_v20  ;;  %v6541_v3 = vpop.f32.mrf.mxu1  ;;  %6811 = vmatpush3.bf16.msra.mxu0 %v7414_v8  ;;  %v7425_v20 = vld [vmem:[%s9201_s1 + $0xdd8] sm:$0xff]   ;;  %v7452_v61 = vld [vmem:[%s9201_s1 + $0xe68] sm:$0xff]   ;;  %v7456_v1 = vld [vmem:[%s9201_s1 + $0xe60] sm:$0xff]  }
 0x1a9   :  { %v6520_v6 = vpop.f32.mrf.mxu0  ;;  %6833 = vmatpush3.bf16.msra.mxu1 %v7415_v10  ;;  %6812 = vmatprep.subr.bf16.mxu0 %v7416_v11  ;;  %v7458_v3 = vld [vmem:[%s9201_s1 + $0xe20] sm:$0xff]   ;;  %v7463_v8 = vld [vmem:[%s9201_s1 + $0xe98] sm:$0xff]   ;;  %v7465_v10 = vld [vmem:[%s9201_s1 + $0xed0] sm:$0xff]  }
 0x1aa   :  { %v8901_v7 = vadd.f32 %v6540_v0, %v4889_v2  ;;  %v6542_v9 = vpop.f32.mrf.mxu1  ;;  %6834 = vmatprep.subr.bf16.mxu1 %v7417_v12  ;;  %v7455_v0 = vld [vmem:[%s9201_s1 + $0xea8] sm:$0xff]   ;;  %v7457_v2 = vld [vmem:[%s9201_s1 + $0xee0] sm:$0xff]   ;;  %v7461_v6 = vld [vmem:[%s9201_s1 + $0xed8] sm:$0xff]  }
 0x1ab   :  { %v7464_v9 = vld [vmem:[%s9201_s1 + $0xe50] sm:$0xff]  }
 0x1ac   :  { %6813 = vmatpush3.bf16.msra.mxu0 %v7418_v13  ;;  %v7466_v11 = vld [vmem:[%s9201_s1 + $0xe10] sm:$0xff]   ;;  %v7468_v13 = vld [vmem:[%s9201_s1 + $0xe48] sm:$0xff]  }
 0x1ad   :  { %6835 = vmatpush3.bf16.msra.mxu1 %v7419_v14  ;;  %6814 = vmatprep.subr.bf16.mxu0 %v7420_v15  ;;  %v7467_v12 = vld [vmem:[%s9201_s1 + $0xe90] sm:$0xff]   ;;  %v7469_v14 = vld [vmem:[%s9201_s1 + $0xec8] sm:$0xff]  }
 0x1ae   :  { %6836 = vmatprep.subr.bf16.mxu1 %v7421_v16  ;;  %v7470_v15 = vld [vmem:[%s9201_s1 + $0xe08] sm:$0xff]  }
 0x1af   :  { %v7471_v16 = vld [vmem:[%s9201_s1 + $0xe88] sm:$0xff]  }
 0x1b0   :  { %6815 = vmatpush3.bf16.msra.mxu0 %v7422_v17  ;;  %v7472_v17 = vld [vmem:[%s9201_s1 + $0xe40] sm:$0xff]  }
 0x1b1   :  { %6837 = vmatpush3.bf16.msra.mxu1 %v7423_v18  ;;  %6816 = vmatprep.subr.bf16.mxu0 %v7424_v19  ;;  %v7473_v18 = vld [vmem:[%s9201_s1 + $0xec0] sm:$0xff]  }
 0x1b2   :  { %6838 = vmatprep.subr.bf16.mxu1 %v7425_v20  ;;  %v7474_v19 = vld [vmem:[%s9201_s1 + $0xe00] sm:$0xff]  }
 0x1b3   :  { %v7475_v20 = vld [vmem:[%s9201_s1 + $0xe80] sm:$0xff]  }
 0x1b4   :  { %6817 = vmatpush3.bf16.msra.mxu0 %v7426_v21  ;;  %v43_v21 = vld [vmem:[%s9202_s0 + $0xe0] sm:$0xff] }
 0x1b5   :  { %6839 = vmatpush3.bf16.msra.mxu1 %v7427_v22  ;;  %6818 = vmatprep.subr.bf16.mxu0 %v7428_v23  ;;  %v5716_v22 = vcombine.low %v43_v21, %v43_v21  ;;  %v5717_v23 = vcombine.high %v43_v21, %v43_v21 }
 0x1b6   :  { %6840 = vmatprep.subr.bf16.mxu1 %v7429_v24  ;;  %v44_v24 = vld [vmem:[%s9202_s0 + $0xe8] sm:$0xff] }
 0x1b8   :  { %6819 = vmatpush3.bf16.msra.mxu0 %v7430_v25 }
 0x1b9   :  { %6841 = vmatpush3.bf16.msra.mxu1 %v7431_v26  ;;  %6820 = vmatprep.subr.bf16.mxu0 %v7432_v27  ;;  %v5718_v27 = vcombine.low %v44_v24, %v44_v24 }
 0x1ba   :  { %6842 = vmatprep.subr.bf16.mxu1 %v7433_v28  ;;  %v5719_v28 = vcombine.high %v44_v24, %v44_v24 }
 0x1bc   :  { %6821 = vmatpush3.bf16.msra.mxu0 %v7434_v29  ;;  %v7480_v29 = vld [vmem:[%s9201_s1 + $0xf78] sm:$0xff]  }
 0x1bd   :  { %6843 = vmatpush3.bf16.msra.mxu1 %v7435_v30  ;;  %6822 = vmatprep.subr.bf16.mxu0 %v7436_v31  ;;  %v7481_v30 = vld [vmem:[%s9201_s1 + $0xff8] sm:$0xff]  }
 0x1be   :  { %6844 = vmatprep.subr.bf16.mxu1 %v7437_v32 }
 0x1c0   :  { %6823 = vmatpush3.bf16.msra.mxu0 %v7438_v33  ;;  %v7482_v33 = vld [vmem:[%s9201_s1 + $0xf38] sm:$0xff]  }
 0x1c1   :  { %6845 = vmatpush3.bf16.msra.mxu1 %v7439_v34  ;;  %6852 = vmatprep.subr.bf16.mxu0 %v7444_v42 }
 0x1c2   :  { %6874 = vmatprep.subr.bf16.mxu1 %v7445_v44 }
 0x1c3   :  { %v6560_v37 = vpop.f32.mrf.mxu0  ;;  %5447 = vmatmul.mubr.bf16.vlgmr.msra.gmra.mxu0 %v5712_v38 }
 0x1c4   :  { %v6582_v41 = vpop.f32.mrf.mxu1  ;;  %5487 = vmatmul.mubr.bf16.vlgmr.msra.gmra.mxu1 %v5714_v40  ;;  %6853 = vmatpush3.bf16.msra.mxu0 %v7446_v46  ;;  %v7484_v40 = vld [vmem:[%s9201_s1 + $0xf70] sm:$0xff]  }
 0x1c5   :  { %v6561_v45 = vpop.f32.mrf.mxu0  ;;  %6875 = vmatpush3.bf16.msra.mxu1 %v7447_v49  ;;  %6854 = vmatprep.subr.bf16.mxu0 %v7448_v54  ;;  %v7487_v46 = vld [vmem:[%s9201_s1 + $0xfb0] sm:$0xff]   ;;  %v7490_v49 = vld [vmem:[%s9201_s1 + $0xf28] sm:$0xff]   ;;  %v7495_v54 = vld [vmem:[%s9201_s1 + $0xfa0] sm:$0xff]  }
 0x1c6   :  { %v6562_v47 = vadd.f32 %v6561_v45, %v6560_v37  ;;  %v6583_v48 = vpop.f32.mrf.mxu1  ;;  %6876 = vmatprep.subr.bf16.mxu1 %v7449_v55  ;;  %5526 = vmatprep.mubr.bf16.mxu0 %v5717_v23  ;;  %v7486_v45 = vld [vmem:[%s9201_s1 + $0xf30] sm:$0xff]   ;;  %v7496_v55 = vld [vmem:[%s9201_s1 + $0xf58] sm:$0xff]  }
 0x1c7   :  { %v6584_v50 = vadd.f32 %v6583_v48, %v6582_v41  ;;  %v6563_v51 = vpop.f32.mrf.mxu0  ;;  %5566 = vmatprep.mubr.bf16.mxu1 %v5719_v28  ;;  %v7485_v41 = vld [vmem:[%s9201_s1 + $0xff0] sm:$0xff]   ;;  %v7489_v48 = vld [vmem:[%s9201_s1 + $0xfe8] sm:$0xff]  }
 0x1c8   :  { %v4969_v52 = vadd.f32 %v6562_v47, %v8901_v7  ;;  %v6585_v53 = vpop.f32.mrf.mxu1  ;;  %6855 = vmatpush3.bf16.msra.mxu0 %v7450_v58  ;;  %v7462_v7 = vld [vmem:[%s9201_s1 + $0xe18] sm:$0xff]   ;;  %v7488_v47 = vld [vmem:[%s9201_s1 + $0xf68] sm:$0xff]   ;;  %v7492_v51 = vld [vmem:[%s9201_s1 + $0xf60] sm:$0xff]  }
 0x1c9   :  { %v6564_v56 = vpop.f32.mrf.mxu0  ;;  %6877 = vmatpush3.bf16.msra.mxu1 %v7451_v60  ;;  %6856 = vmatprep.subr.bf16.mxu0 %v7452_v61  ;;  %v7494_v53 = vld [vmem:[%s9201_s1 + $0xf20] sm:$0xff]   ;;  %v7499_v58 = vld [vmem:[%s9201_s1 + $0xf98] sm:$0xff]   ;;  %v7501_v60 = vld [vmem:[%s9201_s1 + $0xfd0] sm:$0xff]  }
 0x1ca   :  { %v9006_v57 = vadd.f32 %v6584_v50, %v4969_v52  ;;  %v6586_v59 = vpop.f32.mrf.mxu1  ;;  %6878 = vmatprep.subr.bf16.mxu1 %v7453_v62  ;;  %v7491_v50 = vld [vmem:[%s9201_s1 + $0xfa8] sm:$0xff]   ;;  %v7493_v52 = vld [vmem:[%s9201_s1 + $0xfe0] sm:$0xff]   ;;  %v7497_v56 = vld [vmem:[%s9201_s1 + $0xfd8] sm:$0xff]  }
 0x1cb   :  { %v7500_v59 = vld [vmem:[%s9201_s1 + $0xf50] sm:$0xff]  }
 0x1cc   :  { %6857 = vmatpush3.bf16.msra.mxu0 %v7454_v63  ;;  %v7502_v61 = vld [vmem:[%s9201_s1 + $0xf10] sm:$0xff]   ;;  %v7504_v63 = vld [vmem:[%s9201_s1 + $0xf48] sm:$0xff]  }
 0x1cd   :  { %6879 = vmatpush3.bf16.msra.mxu1 %v7455_v0  ;;  %6858 = vmatprep.subr.bf16.mxu0 %v7456_v1  ;;  %v7503_v62 = vld [vmem:[%s9201_s1 + $0xf90] sm:$0xff]   ;;  %v7505_v0 = vld [vmem:[%s9201_s1 + $0xfc8] sm:$0xff]  }
 0x1ce   :  { %6880 = vmatprep.subr.bf16.mxu1 %v7457_v2  ;;  %v7506_v1 = vld [vmem:[%s9201_s1 + $0xf08] sm:$0xff]  }
 0x1cf   :  { %v7507_v2 = vld [vmem:[%s9201_s1 + $0xf88] sm:$0xff]  }
 0x1d0   :  { %6859 = vmatpush3.bf16.msra.mxu0 %v7458_v3  ;;  %v7508_v3 = vld [vmem:[%s9201_s1 + $0xf40] sm:$0xff]  }
 0x1d1   :  { %6881 = vmatpush3.bf16.msra.mxu1 %v7459_v4  ;;  %6860 = vmatprep.subr.bf16.mxu0 %v7460_v5  ;;  %v7509_v4 = vld [vmem:[%s9201_s1 + $0xfc0] sm:$0xff]  }
 0x1d2   :  { %6882 = vmatprep.subr.bf16.mxu1 %v7461_v6  ;;  %v7510_v5 = vld [vmem:[%s9201_s1 + $0xf00] sm:$0xff]  }
 0x1d3   :  { %v7511_v6 = vld [vmem:[%s9201_s1 + $0xf80] sm:$0xff]  }
 0x1d4   :  { %6861 = vmatpush3.bf16.msra.mxu0 %v7462_v7  ;;  %v45_v7 = vld [vmem:[%s9202_s0 + $0xf0] sm:$0xff] }
 0x1d5   :  { %6883 = vmatpush3.bf16.msra.mxu1 %v7463_v8  ;;  %6862 = vmatprep.subr.bf16.mxu0 %v7464_v9  ;;  %v46_v8 = vld [vmem:[%s9202_s0 + $0xf8] sm:$0xff] }
 0x1d6   :  { %6884 = vmatprep.subr.bf16.mxu1 %v7465_v10  ;;  %v5720_v10 = vcombine.low %v45_v7, %v45_v7 }
 0x1d8   :  { %6863 = vmatpush3.bf16.msra.mxu0 %v7466_v11  ;;  %v5721_v11 = vcombine.high %v45_v7, %v45_v7 }
 0x1d9   :  { %6885 = vmatpush3.bf16.msra.mxu1 %v7467_v12  ;;  %6864 = vmatprep.subr.bf16.mxu0 %v7468_v13  ;;  %v5722_v12 = vcombine.low %v46_v8, %v46_v8  ;;  %v5723_v13 = vcombine.high %v46_v8, %v46_v8 }
 0x1da   :  { %6886 = vmatprep.subr.bf16.mxu1 %v7469_v14 }
 0x1dc   :  { %6865 = vmatpush3.bf16.msra.mxu0 %v7470_v15 }
 0x1dd   :  { %6887 = vmatpush3.bf16.msra.mxu1 %v7471_v16  ;;  %6866 = vmatprep.subr.bf16.mxu0 %v7472_v17 }
 0x1de   :  { %6888 = vmatprep.subr.bf16.mxu1 %v7473_v18 }
 0x1e0   :  { %6867 = vmatpush3.bf16.msra.mxu0 %v7474_v19 }
 0x1e1   :  { %6889 = vmatpush3.bf16.msra.mxu1 %v7475_v20  ;;  %6896 = vmatprep.subr.bf16.mxu0 %v7480_v29 }
 0x1e2   :  { %6918 = vmatprep.subr.bf16.mxu1 %v7481_v30 }
 0x1e3   :  { %v6604_v25 = vpop.f32.mrf.mxu0  ;;  %5527 = vmatmul.mubr.bf16.vlgmr.msra.gmra.mxu0 %v5716_v22 }
 0x1e4   :  { %v6626_v26 = vpop.f32.mrf.mxu1  ;;  %5567 = vmatmul.mubr.bf16.vlgmr.msra.gmra.mxu1 %v5718_v27  ;;  %6897 = vmatpush3.bf16.msra.mxu0 %v7482_v33 }
 0x1e5   :  { %v6605_v31 = vpop.f32.mrf.mxu0  ;;  %6919 = vmatpush3.bf16.msra.mxu1 %v7483_v36  ;;  %6898 = vmatprep.subr.bf16.mxu0 %v7484_v40 }
 0x1e6   :  { %v6627_v32 = vpop.f32.mrf.mxu1  ;;  %v6606_v34 = vadd.f32 %v6605_v31, %v6604_v25  ;;  %6920 = vmatprep.subr.bf16.mxu1 %v7485_v41  ;;  %5606 = vmatprep.mubr.bf16.mxu0 %v5721_v11 }
 0x1e7   :  { %v6628_v35 = vadd.f32 %v6627_v32, %v6626_v26  ;;  %v6607_v37 = vpop.f32.mrf.mxu0  ;;  %5646 = vmatprep.mubr.bf16.mxu1 %v5723_v13 }
 0x1e8   :  { %v6629_v38 = vpop.f32.mrf.mxu1  ;;  %v5049_v39 = vadd.f32 %v6606_v34, %v9006_v57  ;;  %6899 = vmatpush3.bf16.msra.mxu0 %v7486_v45  ;;  %v7498_v57 = vld [vmem:[%s9201_s1 + $0xf18] sm:$0xff]  }
 0x1e9   :  { %v6608_v42 = vpop.f32.mrf.mxu0  ;;  %6921 = vmatpush3.bf16.msra.mxu1 %v7487_v46  ;;  %6900 = vmatprep.subr.bf16.mxu0 %v7488_v47 }
 0x1ea   :  { %v6630_v43 = vpop.f32.mrf.mxu1  ;;  %v9111_v44 = vadd.f32 %v6628_v35, %v5049_v39  ;;  %6922 = vmatprep.subr.bf16.mxu1 %v7489_v48 }
 0x1ec   :  { %6901 = vmatpush3.bf16.msra.mxu0 %v7490_v49 }
 0x1ed   :  { %6923 = vmatpush3.bf16.msra.mxu1 %v7491_v50  ;;  %6902 = vmatprep.subr.bf16.mxu0 %v7492_v51 }
 0x1ee   :  { %6924 = vmatprep.subr.bf16.mxu1 %v7493_v52 }
 0x1f0   :  { %6903 = vmatpush3.bf16.msra.mxu0 %v7494_v53 }
 0x1f1   :  { %6925 = vmatpush3.bf16.msra.mxu1 %v7495_v54  ;;  %6904 = vmatprep.subr.bf16.mxu0 %v7496_v55 }
 0x1f2   :  { %6926 = vmatprep.subr.bf16.mxu1 %v7497_v56 }
 0x1f4   :  { %6905 = vmatpush3.bf16.msra.mxu0 %v7498_v57 }
 0x1f5   :  { %6927 = vmatpush3.bf16.msra.mxu1 %v7499_v58  ;;  %6906 = vmatprep.subr.bf16.mxu0 %v7500_v59 }
 0x1f6   :  { %6928 = vmatprep.subr.bf16.mxu1 %v7501_v60 }
 0x1f8   :  { %6907 = vmatpush3.bf16.msra.mxu0 %v7502_v61 }
 0x1f9   :  { %6929 = vmatpush3.bf16.msra.mxu1 %v7503_v62  ;;  %6908 = vmatprep.subr.bf16.mxu0 %v7504_v63 }
 0x1fa   :  { %6930 = vmatprep.subr.bf16.mxu1 %v7505_v0 }
 0x1fc   :  { %6909 = vmatpush3.bf16.msra.mxu0 %v7506_v1 }
 0x1fd   :  { %6931 = vmatpush3.bf16.msra.mxu1 %v7507_v2  ;;  %6910 = vmatprep.subr.bf16.mxu0 %v7508_v3 }
 0x1fe   :  { %6932 = vmatprep.subr.bf16.mxu1 %v7509_v4 }
 0x200   :  { %6911 = vmatpush3.bf16.msra.mxu0 %v7510_v5 }
 0x201   :  { %6933 = vmatpush3.bf16.msra.mxu1 %v7511_v6 }
 0x203   :  { %v6648_v9 = vpop.f32.mrf.mxu0  ;;  %5607 = vmatmul.mubr.bf16.vlgmr.msra.gmra.mxu0 %v5720_v10 }
 0x204   :  { %v6670_v14 = vpop.f32.mrf.mxu1  ;;  %5647 = vmatmul.mubr.bf16.vlgmr.msra.gmra.mxu1 %v5722_v12 }
 0x205   :  { %v6649_v15 = vpop.f32.mrf.mxu0 }
 0x206   :  { %v6650_v16 = vadd.f32 %v6649_v15, %v6648_v9  ;;  %v6671_v17 = vpop.f32.mrf.mxu1 }
 0x207   :  { %v6672_v18 = vadd.f32 %v6671_v17, %v6670_v14  ;;  %v6651_v19 = vpop.f32.mrf.mxu0 }
 0x208   :  { %v5129_v20 = vadd.f32 %v6650_v16, %v9111_v44  ;;  %v6673_v21 = vpop.f32.mrf.mxu1 }
 0x209   :  { %v6652_v22 = vpop.f32.mrf.mxu0 }
 0x20a   :  { %v5169_v23 = vadd.f32 %v6672_v18, %v5129_v20  ;;  %v6674_v24 = vpop.f32.mrf.mxu1 }
 0x223   :  { %v6692_v25 = vpop.f32.mrf.mxu0 }
 0x224   :  { %v6714_v26 = vpop.f32.mrf.mxu1 }
 0x225   :  { %v6693_v27 = vpop.f32.mrf.mxu0 }
 0x226   :  { %v6694_v28 = vadd.f32 %v6693_v27, %v6692_v25  ;;  %v6715_v29 = vpop.f32.mrf.mxu1 }
 0x227   :  { %v6716_v30 = vadd.f32 %v6715_v29, %v6714_v26  ;;  %v6695_v31 = vpop.f32.mrf.mxu0 }
 0x228   :  { %v5209_v32 = vadd.f32 %v6694_v28, %v5169_v23  ;;  %v6717_v33 = vpop.f32.mrf.mxu1 }
 0x229   :  { %v6696_v34 = vpop.f32.mrf.mxu0 }
 0x22a   :  { %v5249_v35 = vadd.f32 %v6716_v30, %v5209_v32  ;;  %v6718_v36 = vpop.f32.mrf.mxu1 }
 0x243   :  { %v6736_v37 = vpop.f32.mrf.mxu0 }
 0x244   :  { %v6758_v38 = vpop.f32.mrf.mxu1 }
 0x245   :  { %v6737_v39 = vpop.f32.mrf.mxu0 }
 0x246   :  { %v6759_v40 = vpop.f32.mrf.mxu1  ;;  %v6738_v41 = vadd.f32 %v6737_v39, %v6736_v37 }
 0x247   :  { %v6760_v42 = vadd.f32 %v6759_v40, %v6758_v38  ;;  %v6739_v43 = vpop.f32.mrf.mxu0 }
 0x248   :  { %v6761_v44 = vpop.f32.mrf.mxu1  ;;  %v5289_v45 = vadd.f32 %v6738_v41, %v5249_v35 }
 0x249   :  { %v6740_v46 = vpop.f32.mrf.mxu0 }
 0x24a   :  { %v6762_v47 = vpop.f32.mrf.mxu1  ;;  %v5329_v48 = vadd.f32 %v6760_v42, %v5289_v45 }
 0x263   :  { %v6780_v49 = vpop.f32.mrf.mxu0 }
 0x264   :  { %v6802_v50 = vpop.f32.mrf.mxu1 }
 0x265   :  { %v6781_v51 = vpop.f32.mrf.mxu0 }
 0x266   :  { %v6782_v52 = vadd.f32 %v6781_v51, %v6780_v49  ;;  %v6803_v53 = vpop.f32.mrf.mxu1 }
 0x267   :  { %v6804_v54 = vadd.f32 %v6803_v53, %v6802_v50  ;;  %v6783_v55 = vpop.f32.mrf.mxu0 }
 0x268   :  { %v5369_v56 = vadd.f32 %v6782_v52, %v5329_v48  ;;  %v6805_v57 = vpop.f32.mrf.mxu1 }
 0x269   :  { %v6784_v58 = vpop.f32.mrf.mxu0 }
 0x26a   :  { %v5409_v59 = vadd.f32 %v6804_v54, %v5369_v56  ;;  %v6806_v60 = vpop.f32.mrf.mxu1 }
 0x283   :  { %v6824_v61 = vpop.f32.mrf.mxu0 }
 0x284   :  { %v6846_v62 = vpop.f32.mrf.mxu1 }
 0x285   :  { %v6825_v63 = vpop.f32.mrf.mxu0 }
 0x286   :  { %v6847_v0 = vpop.f32.mrf.mxu1  ;;  %v6826_v13 = vadd.f32 %v6825_v63, %v6824_v61 }
 0x287   :  { %v6827_v1 = vpop.f32.mrf.mxu0  ;;  %v6848_v15 = vadd.f32 %v6847_v0, %v6846_v62 }
 0x288   :  { %v6849_v2 = vpop.f32.mrf.mxu1  ;;  %v5449_v14 = vadd.f32 %v6826_v13, %v5409_v59 }
 0x289   :  { %v6828_v3 = vpop.f32.mrf.mxu0 }
 0x28a   :  { %v6850_v4 = vpop.f32.mrf.mxu1  ;;  %v5489_v17 = vadd.f32 %v6848_v15, %v5449_v14 }
 0x2a3   :  { %v6868_v5 = vpop.f32.mrf.mxu0 }
 0x2a4   :  { %v6890_v6 = vpop.f32.mrf.mxu1 }
 0x2a5   :  { %v6869_v7 = vpop.f32.mrf.mxu0 }
 0x2a6   :  { %v6891_v8 = vpop.f32.mrf.mxu1  ;;  %v6870_v16 = vadd.f32 %v6869_v7, %v6868_v5 }
 0x2a7   :  { %v6871_v9 = vpop.f32.mrf.mxu0  ;;  %v6892_v19 = vadd.f32 %v6891_v8, %v6890_v6 }
 0x2a8   :  { %v6893_v10 = vpop.f32.mrf.mxu1  ;;  %v5529_v18 = vadd.f32 %v6870_v16, %v5489_v17 }
 0x2a9   :  { %v6872_v11 = vpop.f32.mrf.mxu0 }
 0x2aa   :  { %v6894_v12 = vpop.f32.mrf.mxu1  ;;  %v5569_v23 = vadd.f32 %v6892_v19, %v5529_v18 }
 0x2c3   :  { %v6912_v20 = vpop.f32.mrf.mxu0 }
 0x2c4   :  { %v6934_v21 = vpop.f32.mrf.mxu1 }
 0x2c5   :  { %v6913_v22 = vpop.f32.mrf.mxu0 }
 0x2c6   :  { %v6914_v24 = vadd.f32 %v6913_v22, %v6912_v20  ;;  %v6935_v25 = vpop.f32.mrf.mxu1 }
 0x2c7   :  { %v6915_v26 = vpop.f32.mrf.mxu0  ;;  %v6936_v28 = vadd.f32 %v6935_v25, %v6934_v21 }
 0x2c8   :  { %v5609_v27 = vadd.f32 %v6914_v24, %v5569_v23  ;;  %v6937_v29 = vpop.f32.mrf.mxu1 }
 0x2c9   :  { %v6916_v30 = vpop.f32.mrf.mxu0 }
 0x2ca   :  { %v5649_v31 = vadd.f32 %v6936_v28, %v5609_v27  ;;  %v6938_v32 = vpop.f32.mrf.mxu1 }
 0x2cc   :  { %5654 = vst [vmem:[%s9204_s3] sm:$0xff] %v5649_v31 }

</bundles_post_ra>
